<compile_context>
chip_gen: v7x
topology: tpu7x:2x2x1
jax: 0.10.0
libtpu: 0.0.40
codegen_flags: <defaults>
</compile_context>

<pallas_src>
import math

import jax
import jax.numpy as jnp
from jax.experimental import pallas as pl
from jax.experimental.pallas import tpu as pltpu


# ----------------------------------------------------------------------------
# Kernel 1: fused im2col-conv GEMM + 2x2 max-pool + bias + ReLU
# ----------------------------------------------------------------------------
def _conv_relu_pool_kernel(p_ref, w_ref, b_ref, o_ref):
    # p_ref: (4, TM, K)  -- the 4 pool-window positions of TM pool windows
    # w_ref: (K, CP)     -- weights, Cout zero-padded to CP (lane-dense)
    # b_ref: (1, CP)
    # o_ref: (TM, CP)
    #
    # All four matmuls run in ONE grid step against the resident weight tile
    # (same MXU work as one folded (4*TM,K)@(K,CP) matmul, but no per-step grid
    # overhead and no output-block revisits).  max(relu(y_p + b)) ==
    # relu(max_p(y_p) + b), so bias/ReLU are applied once after the pool max.
    w = w_ref[...]
    y0 = jnp.dot(p_ref[0], w, preferred_element_type=jnp.float32)
    y1 = jnp.dot(p_ref[1], w, preferred_element_type=jnp.float32)
    y2 = jnp.dot(p_ref[2], w, preferred_element_type=jnp.float32)
    y3 = jnp.dot(p_ref[3], w, preferred_element_type=jnp.float32)
    m = jnp.maximum(jnp.maximum(y0, y1), jnp.maximum(y2, y3))
    o_ref[...] = jnp.maximum(m + b_ref[...], 0.0)


def _pick_row_tile(m, k_cols, target_bytes=2 * 1024 * 1024):
    """Largest power-of-two divisor of m whose (4, TM, K) f32 patch block is
    roughly <= target_bytes (keeps VMEM bounded and double-bufferable on
    v5e/v6e/v7x regardless of batch size)."""
    cap = max(8, target_bytes // (4 * k_cols * 4))
    pow2 = 1 << (int(cap).bit_length() - 1)
    return max(math.gcd(m, pow2), 8)


def conv_relu_pool(patches_p, w_mat, bias, cout):
    """patches_p: (4, M, K) f32; w_mat: (K, cout); bias: (cout,) -> (M, cout)."""
    _, M, K = patches_p.shape
    CP = max(128, ((cout + 127) // 128) * 128)   # lane-dense output channels
    w_p = jnp.pad(w_mat.astype(jnp.float32), ((0, 0), (0, CP - cout)))
    b_p = jnp.pad(bias.reshape(1, -1).astype(jnp.float32),
                  ((0, 0), (0, CP - cout)))
    TM = _pick_row_tile(M, K)

    out = pl.pallas_call(
        _conv_relu_pool_kernel,
        out_shape=jax.ShapeDtypeStruct((M, CP), jnp.float32),
        grid_spec=pltpu.PrefetchScalarGridSpec(
            num_scalar_prefetch=0,
            grid=(M // TM,),
            in_specs=[
                pl.BlockSpec((4, TM, K), lambda i: (0, i, 0)),
                pl.BlockSpec((K, CP), lambda i: (0, 0)),   # resident
                pl.BlockSpec((1, CP), lambda i: (0, 0)),   # resident
            ],
            out_specs=pl.BlockSpec((TM, CP), lambda i: (i, 0)),
        ),
        compiler_params=pltpu.CompilerParams(
            dimension_semantics=("parallel",)),   # independent row tiles
    )(patches_p, w_p, b_p)
    return out[:, :cout]


# ----------------------------------------------------------------------------
# Kernel 2: fused classifier  Linear(4096,512) -> ReLU -> Linear(512,10)
#           (K-tiled fc1 reduction, bf16 weight streaming, f32 accumulation)
# ----------------------------------------------------------------------------
def _mlp_kernel(x_ref, w1_ref, b1_ref, w2_ref, b2_ref, o_ref, acc_ref):
    k = pl.program_id(0)

    @pl.when(k == 0)
    def _():
        acc_ref[...] = jnp.zeros_like(acc_ref)

    # bf16 weight tile promoted to f32 in VMEM -> near-f32 accuracy while the
    # HBM stream is half-width and double-buffered across K tiles.
    acc_ref[...] += jnp.dot(x_ref[...], w1_ref[...].astype(jnp.float32),
                            preferred_element_type=jnp.float32)

    @pl.when(k == pl.num_programs(0) - 1)
    def _():
        h = jnp.maximum(acc_ref[...] + b1_ref[...], 0.0)
        o_ref[...] = (jnp.dot(h, w2_ref[...].astype(jnp.float32),
                              preferred_element_type=jnp.float32)
                      + b2_ref[...])


def mlp(x, w1, b1, w2, b2, *, tk=512):
    """x: (B,K) f32; w1: (K,H) bf16; b1: (1,H) f32; w2: (H,NP) bf16;
    b2: (1,NP) f32 -> (B, NP) f32."""
    B, K = x.shape
    H = w1.shape[1]
    NP = w2.shape[1]
    assert K % tk == 0
    return pl.pallas_call(
        _mlp_kernel,
        out_shape=jax.ShapeDtypeStruct((B, NP), jnp.float32),
        grid_spec=pltpu.PrefetchScalarGridSpec(
            num_scalar_prefetch=0,
            grid=(K // tk,),
            in_specs=[
                pl.BlockSpec((B, tk), lambda k: (0, k)),
                pl.BlockSpec((tk, H), lambda k: (k, 0)),
                pl.BlockSpec((1, H), lambda k: (0, 0)),    # resident
                pl.BlockSpec((H, NP), lambda k: (0, 0)),   # resident
                pl.BlockSpec((1, NP), lambda k: (0, 0)),   # resident
            ],
            out_specs=pl.BlockSpec((B, NP), lambda k: (0, 0)),
            scratch_shapes=[pltpu.VMEM((B, H), jnp.float32)],
        ),
        compiler_params=pltpu.CompilerParams(
            dimension_semantics=("arbitrary",)),   # K is a reduction axis
    )(x, w1, b1, w2, b2)


# ----------------------------------------------------------------------------
# Glue: im2col patch extraction grouped by 2x2 pool position (data movement)
# ----------------------------------------------------------------------------
def _im2col_pooled(x_nhwc, ksize=5, pad=2):
    """(B, H, W, Cin) -> (4, B*(H//2)*(W//2), ksize*ksize*Cin)."""
    B, H, W, Cin = x_nhwc.shape
    xp = jnp.pad(x_nhwc, ((0, 0), (pad, pad), (pad, pad), (0, 0)))
    shifted = [xp[:, kh:kh + H, kw:kw + W, :]
               for kh in range(ksize) for kw in range(ksize)]
    patches = jnp.stack(shifted, axis=3)                     # (B,H,W,KK,Cin)
    K = ksize * ksize * Cin
    patches = patches.reshape(B, H, W, K)
    patches = patches.reshape(B, H // 2, 2, W // 2, 2, K)
    patches = jnp.transpose(patches, (2, 4, 0, 1, 3, 5))     # (2,2,B,H/2,W/2,K)
    return patches.reshape(4, B * (H // 2) * (W // 2), K)


# ----------------------------------------------------------------------------
# Model
# ----------------------------------------------------------------------------
def init_params(key):
    ks = jax.random.split(key, 8)

    def nrm(k, shape, scale):
        return scale * jax.random.normal(k, shape, dtype=jnp.float32)

    # Shapes follow the PyTorch module (non-fedsr branch): conv(3->32),
    # conv(32->64), Linear(64*8*8 -> 512), Linear(512 -> 10); torch layouts.
    return {
        "conv1_w": nrm(ks[0], (32, 3, 5, 5), 0.10),
        "conv1_b": nrm(ks[1], (32,), 0.10),
        "conv2_w": nrm(ks[2], (64, 32, 5, 5), 0.05),
        "conv2_b": nrm(ks[3], (64,), 0.05),
        "fc1_w":  nrm(ks[4], (512, 64 * 8 * 8), 0.02),
        "fc1_b":  nrm(ks[5], (512,), 0.02),
        "fc2_w":  nrm(ks[6], (10, 512), 0.05),
        "fc2_b":  nrm(ks[7], (10,), 0.05),
    }


def lenet5_forward(x_nchw, params):
    B = x_nchw.shape[0]
    x = jnp.transpose(x_nchw, (0, 2, 3, 1)).astype(jnp.float32)    # NHWC

    # conv1 (3->32, 5x5, pad 2) + ReLU + maxpool 2x2   -> (B,16,16,32)
    w1 = jnp.transpose(params["conv1_w"], (2, 3, 1, 0)).reshape(5 * 5 * 3, 32)
    p1 = _im2col_pooled(x)                                   # (4, B*256, 75)
    y1 = conv_relu_pool(p1, w1, params["conv1_b"], 32)       # (B*256, 32)
    y1 = y1.reshape(B, 16, 16, 32)

    # conv2 (32->64, 5x5, pad 2) + ReLU + maxpool 2x2  -> (B,8,8,64)
    w2 = jnp.transpose(params["conv2_w"], (2, 3, 1, 0)).reshape(5 * 5 * 32, 64)
    p2 = _im2col_pooled(y1)                                  # (4, B*64, 800)
    y2 = conv_relu_pool(p2, w2, params["conv2_b"], 64)       # (B*64, 64)
    y2 = y2.reshape(B, 8, 8, 64)

    # flatten in torch NCHW order: (B, C, H, W) -> (B, 4096)
    feat = jnp.transpose(y2, (0, 3, 1, 2)).reshape(B, 64 * 8 * 8)

    # classifier (Linear -> ReLU -> Linear); torch Linear: y = x @ W.T + b.
    # fc weights streamed as bf16; fc2 output padded to 128 lanes and sliced.
    NP = 128
    fc1_w = params["fc1_w"].T.astype(jnp.bfloat16)                 # (4096,512)
    fc1_b = params["fc1_b"].reshape(1, -1)
    fc2_w = jnp.pad(params["fc2_w"].T, ((0, 0), (0, NP - 10))).astype(
        jnp.bfloat16)                                              # (512,128)
    fc2_b = jnp.pad(params["fc2_b"].reshape(1, -1), ((0, 0), (0, NP - 10)))
    out = mlp(feat, fc1_w, fc1_b, fc2_w, fc2_b)
    return out[:, :10]


# Pure-JAX reference (for validation only; not part of the kernel path).
def _reference(x, params):
    hp = jax.lax.Precision.HIGHEST
    y = jax.lax.conv_general_dilated(
        x, params["conv1_w"], (1, 1), ((2, 2), (2, 2)),
        dimension_numbers=("NCHW", "OIHW", "NCHW"), precision=hp)
    y = jax.nn.relu(y + params["conv1_b"][None, :, None, None])
    y = jax.lax.reduce_window(y, -jnp.inf, jax.lax.max,
                              (1, 1, 2, 2), (1, 1, 2, 2), "VALID")
    y = jax.lax.conv_general_dilated(
        y, params["conv2_w"], (1, 1), ((2, 2), (2, 2)),
        dimension_numbers=("NCHW", "OIHW", "NCHW"), precision=hp)
    y = jax.nn.relu(y + params["conv2_b"][None, :, None, None])
    y = jax.lax.reduce_window(y, -jnp.inf, jax.lax.max,
                              (1, 1, 2, 2), (1, 1, 2, 2), "VALID")
    y = y.reshape(y.shape[0], -1)                       # NCHW flatten
    # The kernel deliberately streams fc weights in bf16; mirror that rounding
    # here so the comparison isolates the Pallas math from that choice.
    w1 = params["fc1_w"].astype(jnp.bfloat16).astype(jnp.float32)
    w2 = params["fc2_w"].astype(jnp.bfloat16).astype(jnp.float32)
    y = jax.nn.relu(jnp.dot(y, w1.T, precision=hp) + params["fc1_b"])
    return jnp.dot(y, w2.T, precision=hp) + params["fc2_b"]


if __name__ == "__main__":
    key = jax.random.PRNGKey(0)
    k_x, k_p = jax.random.split(key)

    # Spatial size 32 / 3 channels are required by the module
    # (the first Linear expects 64*8*8 features).
    x = jax.random.normal(k_x, (2, 3, 32, 32), dtype=jnp.float32)
    params = init_params(k_p)

    out = jax.jit(lenet5_forward)(x, params)
    out = jax.block_until_ready(out)

    ref = jax.block_until_ready(_reference(x, params))
    assert out.shape == (2, 10)
    assert jnp.allclose(out, ref, rtol=1e-3, atol=1e-3), "mismatch vs reference"

    print("KERNEL_OK")
</pallas_src>

<mosaic_0001>
module attributes {stable_mosaic.version = 11 : i64} {
  func.func @_conv_relu_pool_kernel(%arg0: i32, %arg1: memref<4x512x75xf32, #tpu.memory_space<vmem>>, %arg2: memref<75x128xf32, #tpu.memory_space<vmem>>, %arg3: memref<1x128xf32, #tpu.memory_space<vmem>>, %arg4: memref<512x128xf32, #tpu.memory_space<vmem>>) attributes {dimension_semantics = [#tpu.dimension_semantics<parallel>], iteration_bounds = array<i64: 1>, scalar_prefetch = 0 : i64, scratch_operands = 0 : i64, tpu.core_type = #tpu.core_type<tc>, window_params = [{transform_indices = @transform_0, window_bounds = array<i64: 4, 512, 75>}, {pipeline_mode = #tpu.pipeline_mode<synchronous>, transform_indices = @transform_1, window_bounds = array<i64: 75, 128>}, {pipeline_mode = #tpu.pipeline_mode<synchronous>, transform_indices = @transform_2, window_bounds = array<i64: 1, 128>}, {transform_indices = @transform_3, window_bounds = array<i64: 512, 128>}]} {
    %c0 = arith.constant 0 : index
    %c0_0 = arith.constant 0 : index
    %0 = vector.load %arg2[%c0, %c0_0] : memref<75x128xf32, #tpu.memory_space<vmem>>, vector<75x128xf32>
    %c0_1 = arith.constant 0 : index
    %c0_2 = arith.constant 0 : index
    %c0_3 = arith.constant 0 : index
    %1 = vector.load %arg1[%c0_1, %c0_2, %c0_3] : memref<4x512x75xf32, #tpu.memory_space<vmem>>, vector<1x512x75xf32>
    %2 = vector.shape_cast %1 : vector<1x512x75xf32> to vector<512x75xf32>
    %cst = arith.constant dense<0.000000e+00> : vector<512x128xf32>
    %3 = tpu.matmul %2, %0, %cst {dimension_numbers = #tpu.dot_dimension_numbers<[1], [0], [0], [1], [0, 0, 1, 1], [], []>} : vector<512x75xf32>, vector<75x128xf32>, vector<512x128xf32> -> vector<512x128xf32>
    %c1 = arith.constant 1 : index
    %c0_4 = arith.constant 0 : index
    %c0_5 = arith.constant 0 : index
    %4 = vector.load %arg1[%c1, %c0_4, %c0_5] : memref<4x512x75xf32, #tpu.memory_space<vmem>>, vector<1x512x75xf32>
    %5 = vector.shape_cast %4 : vector<1x512x75xf32> to vector<512x75xf32>
    %cst_6 = arith.constant dense<0.000000e+00> : vector<512x128xf32>
    %6 = tpu.matmul %5, %0, %cst_6 {dimension_numbers = #tpu.dot_dimension_numbers<[1], [0], [0], [1], [0, 0, 1, 1], [], []>} : vector<512x75xf32>, vector<75x128xf32>, vector<512x128xf32> -> vector<512x128xf32>
    %c2 = arith.constant 2 : index
    %c0_7 = arith.constant 0 : index
    %c0_8 = arith.constant 0 : index
    %7 = vector.load %arg1[%c2, %c0_7, %c0_8] : memref<4x512x75xf32, #tpu.memory_space<vmem>>, vector<1x512x75xf32>
    %8 = vector.shape_cast %7 : vector<1x512x75xf32> to vector<512x75xf32>
    %cst_9 = arith.constant dense<0.000000e+00> : vector<512x128xf32>
    %9 = tpu.matmul %8, %0, %cst_9 {dimension_numbers = #tpu.dot_dimension_numbers<[1], [0], [0], [1], [0, 0, 1, 1], [], []>} : vector<512x75xf32>, vector<75x128xf32>, vector<512x128xf32> -> vector<512x128xf32>
    %c3 = arith.constant 3 : index
    %c0_10 = arith.constant 0 : index
    %c0_11 = arith.constant 0 : index
    %10 = vector.load %arg1[%c3, %c0_10, %c0_11] : memref<4x512x75xf32, #tpu.memory_space<vmem>>, vector<1x512x75xf32>
    %11 = vector.shape_cast %10 : vector<1x512x75xf32> to vector<512x75xf32>
    %cst_12 = arith.constant dense<0.000000e+00> : vector<512x128xf32>
    %12 = tpu.matmul %11, %0, %cst_12 {dimension_numbers = #tpu.dot_dimension_numbers<[1], [0], [0], [1], [0, 0, 1, 1], [], []>} : vector<512x75xf32>, vector<75x128xf32>, vector<512x128xf32> -> vector<512x128xf32>
    %13 = arith.maximumf %3, %6 : vector<512x128xf32>
    %14 = arith.maximumf %9, %12 : vector<512x128xf32>
    %15 = arith.maximumf %13, %14 : vector<512x128xf32>
    %c0_13 = arith.constant 0 : index
    %c0_14 = arith.constant 0 : index
    %16 = vector.load %arg3[%c0_13, %c0_14] : memref<1x128xf32, #tpu.memory_space<vmem>>, vector<1x128xf32>
    %17 = vector.broadcast %16 : vector<1x128xf32> to vector<512x128xf32>
    %18 = arith.addf %15, %17 : vector<512x128xf32>
    %cst_15 = arith.constant 0.000000e+00 : f32
    %19 = vector.broadcast %cst_15 : f32 to vector<512x128xf32>
    %20 = arith.maximumf %18, %19 : vector<512x128xf32>
    %c0_16 = arith.constant 0 : index
    %c0_17 = arith.constant 0 : index
    %21 = vector.load %arg4[%c0_16, %c0_17] : memref<512x128xf32, #tpu.memory_space<vmem>>, vector<512x128xf32>
    tpu.vector_store %arg4[%c0_16, %c0_17], %20 {strides = array<i32>} : memref<512x128xf32, #tpu.memory_space<vmem>>, vector<512x128xf32>,
    return
  }
  func.func @transform_0(%arg0: i32) -> (i32, i32, i32) {
    %c0_i32 = arith.constant 0 : i32
    %c0_i32_0 = arith.constant 0 : i32
    %c0_i32_1 = arith.constant 0 : i32
    return %c0_i32, %arg0, %c0_i32_0 : i32, i32, i32
  }
  func.func @transform_1(%arg0: i32) -> (i32, i32) {
    %c0_i32 = arith.constant 0 : i32
    %c0_i32_0 = arith.constant 0 : i32
    %c0_i32_1 = arith.constant 0 : i32
    return %c0_i32, %c0_i32_0 : i32, i32
  }
  func.func @transform_2(%arg0: i32) -> (i32, i32) {
    %c0_i32 = arith.constant 0 : i32
    %c0_i32_0 = arith.constant 0 : i32
    %c0_i32_1 = arith.constant 0 : i32
    return %c0_i32, %c0_i32_0 : i32, i32
  }
  func.func @transform_3(%arg0: i32) -> (i32, i32) {
    %c0_i32 = arith.constant 0 : i32
    %c0_i32_0 = arith.constant 0 : i32
    return %arg0, %c0_i32 : i32, i32
  }
}

module attributes {stable_mosaic.version = 11 : i64} {
  func.func @_conv_relu_pool_kernel(%arg0: i32, %arg1: memref<4x128x800xf32, #tpu.memory_space<vmem>>, %arg2: memref<800x128xf32, #tpu.memory_space<vmem>>, %arg3: memref<1x128xf32, #tpu.memory_space<vmem>>, %arg4: memref<128x128xf32, #tpu.memory_space<vmem>>) attributes {dimension_semantics = [#tpu.dimension_semantics<parallel>], iteration_bounds = array<i64: 1>, scalar_prefetch = 0 : i64, scratch_operands = 0 : i64, tpu.core_type = #tpu.core_type<tc>, window_params = [{transform_indices = @transform_0, window_bounds = array<i64: 4, 128, 800>}, {pipeline_mode = #tpu.pipeline_mode<synchronous>, transform_indices = @transform_1, window_bounds = array<i64: 800, 128>}, {pipeline_mode = #tpu.pipeline_mode<synchronous>, transform_indices = @transform_2, window_bounds = array<i64: 1, 128>}, {transform_indices = @transform_3, window_bounds = array<i64: 128, 128>}]} {
    %c0 = arith.constant 0 : index
    %c0_0 = arith.constant 0 : index
    %0 = vector.load %arg2[%c0, %c0_0] : memref<800x128xf32, #tpu.memory_space<vmem>>, vector<800x128xf32>
    %c0_1 = arith.constant 0 : index
    %c0_2 = arith.constant 0 : index
    %c0_3 = arith.constant 0 : index
    %1 = vector.load %arg1[%c0_1, %c0_2, %c0_3] : memref<4x128x800xf32, #tpu.memory_space<vmem>>, vector<1x128x800xf32>
    %2 = vector.shape_cast %1 : vector<1x128x800xf32> to vector<128x800xf32>
    %cst = arith.constant dense<0.000000e+00> : vector<128x128xf32>
    %3 = tpu.matmul %2, %0, %cst {dimension_numbers = #tpu.dot_dimension_numbers<[1], [0], [0], [1], [0, 0, 1, 1], [], []>} : vector<128x800xf32>, vector<800x128xf32>, vector<128x128xf32> -> vector<128x128xf32>
    %c1 = arith.constant 1 : index
    %c0_4 = arith.constant 0 : index
    %c0_5 = arith.constant 0 : index
    %4 = vector.load %arg1[%c1, %c0_4, %c0_5] : memref<4x128x800xf32, #tpu.memory_space<vmem>>, vector<1x128x800xf32>
    %5 = vector.shape_cast %4 : vector<1x128x800xf32> to vector<128x800xf32>
    %cst_6 = arith.constant dense<0.000000e+00> : vector<128x128xf32>
    %6 = tpu.matmul %5, %0, %cst_6 {dimension_numbers = #tpu.dot_dimension_numbers<[1], [0], [0], [1], [0, 0, 1, 1], [], []>} : vector<128x800xf32>, vector<800x128xf32>, vector<128x128xf32> -> vector<128x128xf32>
    %c2 = arith.constant 2 : index
    %c0_7 = arith.constant 0 : index
    %c0_8 = arith.constant 0 : index
    %7 = vector.load %arg1[%c2, %c0_7, %c0_8] : memref<4x128x800xf32, #tpu.memory_space<vmem>>, vector<1x128x800xf32>
    %8 = vector.shape_cast %7 : vector<1x128x800xf32> to vector<128x800xf32>
    %cst_9 = arith.constant dense<0.000000e+00> : vector<128x128xf32>
    %9 = tpu.matmul %8, %0, %cst_9 {dimension_numbers = #tpu.dot_dimension_numbers<[1], [0], [0], [1], [0, 0, 1, 1], [], []>} : vector<128x800xf32>, vector<800x128xf32>, vector<128x128xf32> -> vector<128x128xf32>
    %c3 = arith.constant 3 : index
    %c0_10 = arith.constant 0 : index
    %c0_11 = arith.constant 0 : index
    %10 = vector.load %arg1[%c3, %c0_10, %c0_11] : memref<4x128x800xf32, #tpu.memory_space<vmem>>, vector<1x128x800xf32>
    %11 = vector.shape_cast %10 : vector<1x128x800xf32> to vector<128x800xf32>
    %cst_12 = arith.constant dense<0.000000e+00> : vector<128x128xf32>
    %12 = tpu.matmul %11, %0, %cst_12 {dimension_numbers = #tpu.dot_dimension_numbers<[1], [0], [0], [1], [0, 0, 1, 1], [], []>} : vector<128x800xf32>, vector<800x128xf32>, vector<128x128xf32> -> vector<128x128xf32>
    %13 = arith.maximumf %3, %6 : vector<128x128xf32>
    %14 = arith.maximumf %9, %12 : vector<128x128xf32>
    %15 = arith.maximumf %13, %14 : vector<128x128xf32>
    %c0_13 = arith.constant 0 : index
    %c0_14 = arith.constant 0 : index
    %16 = vector.load %arg3[%c0_13, %c0_14] : memref<1x128xf32, #tpu.memory_space<vmem>>, vector<1x128xf32>
    %17 = vector.broadcast %16 : vector<1x128xf32> to vector<128x128xf32>
    %18 = arith.addf %15, %17 : vector<128x128xf32>
    %cst_15 = arith.constant 0.000000e+00 : f32
    %19 = vector.broadcast %cst_15 : f32 to vector<128x128xf32>
    %20 = arith.maximumf %18, %19 : vector<128x128xf32>
    %c0_16 = arith.constant 0 : index
    %c0_17 = arith.constant 0 : index
    %21 = vector.load %arg4[%c0_16, %c0_17] : memref<128x128xf32, #tpu.memory_space<vmem>>, vector<128x128xf32>
    tpu.vector_store %arg4[%c0_16, %c0_17], %20 {strides = array<i32>} : memref<128x128xf32, #tpu.memory_space<vmem>>, vector<128x128xf32>,
    return
  }
  func.func @transform_0(%arg0: i32) -> (i32, i32, i32) {
    %c0_i32 = arith.constant 0 : i32
    %c0_i32_0 = arith.constant 0 : i32
    %c0_i32_1 = arith.constant 0 : i32
    return %c0_i32, %arg0, %c0_i32_0 : i32, i32, i32
  }
  func.func @transform_1(%arg0: i32) -> (i32, i32) {
    %c0_i32 = arith.constant 0 : i32
    %c0_i32_0 = arith.constant 0 : i32
    %c0_i32_1 = arith.constant 0 : i32
    return %c0_i32, %c0_i32_0 : i32, i32
  }
  func.func @transform_2(%arg0: i32) -> (i32, i32) {
    %c0_i32 = arith.constant 0 : i32
    %c0_i32_0 = arith.constant 0 : i32
    %c0_i32_1 = arith.constant 0 : i32
    return %c0_i32, %c0_i32_0 : i32, i32
  }
  func.func @transform_3(%arg0: i32) -> (i32, i32) {
    %c0_i32 = arith.constant 0 : i32
    %c0_i32_0 = arith.constant 0 : i32
    return %arg0, %c0_i32 : i32, i32
  }
}

module attributes {stable_mosaic.version = 11 : i64} {
  func.func @_mlp_kernel(%arg0: i32, %arg1: memref<2x512xf32, #tpu.memory_space<vmem>>, %arg2: memref<512x512xbf16, #tpu.memory_space<vmem>>, %arg3: memref<1x512xf32, #tpu.memory_space<vmem>>, %arg4: memref<512x128xbf16, #tpu.memory_space<vmem>>, %arg5: memref<1x128xf32, #tpu.memory_space<vmem>>, %arg6: memref<2x128xf32, #tpu.memory_space<vmem>>, %arg7: memref<2x512xf32, #tpu.memory_space<vmem>>) attributes {dimension_semantics = [#tpu.dimension_semantics<arbitrary>], iteration_bounds = array<i64: 8>, scalar_prefetch = 0 : i64, scratch_operands = 1 : i64, tpu.core_type = #tpu.core_type<tc>, window_params = [{transform_indices = @transform_0, window_bounds = array<i64: 2, 512>}, {transform_indices = @transform_1, window_bounds = array<i64: 512, 512>}, {pipeline_mode = #tpu.pipeline_mode<synchronous>, transform_indices = @transform_2, window_bounds = array<i64: 1, 512>}, {pipeline_mode = #tpu.pipeline_mode<synchronous>, transform_indices = @transform_3, window_bounds = array<i64: 512, 128>}, {pipeline_mode = #tpu.pipeline_mode<synchronous>, transform_indices = @transform_4, window_bounds = array<i64: 1, 128>}, {pipeline_mode = #tpu.pipeline_mode<synchronous>, transform_indices = @transform_5, window_bounds = array<i64: 2, 128>}]} {
    %c0_i32 = arith.constant 0 : i32
    %0 = arith.cmpi eq, %arg0, %c0_i32 : i32
    %1 = arith.extui %0 : i1 to i32
    %c0_i32_0 = arith.constant 0 : i32
    %2 = arith.cmpi ne, %1, %c0_i32_0 : i32
    scf.if %2 {
      %cst_9 = arith.constant 0.000000e+00 : f32
      %13 = vector.broadcast %cst_9 : f32 to vector<2x512xf32>
      %c0_10 = arith.constant 0 : index
      %c0_11 = arith.constant 0 : index
      %14 = vector.load %arg7[%c0_10, %c0_11] : memref<2x512xf32, #tpu.memory_space<vmem>>, vector<2x512xf32>
      tpu.vector_store %arg7[%c0_10, %c0_11], %13 {strides = array<i32>} : memref<2x512xf32, #tpu.memory_space<vmem>>, vector<2x512xf32>,
    } else {
    }
    %c0 = arith.constant 0 : index
    %c0_1 = arith.constant 0 : index
    %3 = vector.load %arg7[%c0, %c0_1] : memref<2x512xf32, #tpu.memory_space<vmem>>, vector<2x512xf32>
    %c0_2 = arith.constant 0 : index
    %c0_3 = arith.constant 0 : index
    %4 = vector.load %arg1[%c0_2, %c0_3] : memref<2x512xf32, #tpu.memory_space<vmem>>, vector<2x512xf32>
    %c0_4 = arith.constant 0 : index
    %c0_5 = arith.constant 0 : index
    %5 = vector.load %arg2[%c0_4, %c0_5] : memref<512x512xbf16, #tpu.memory_space<vmem>>, vector<512x512xbf16>
    %6 = arith.extf %5 : vector<512x512xbf16> to vector<512x512xf32>
    %cst = arith.constant dense<0.000000e+00> : vector<2x512xf32>
    %7 = tpu.matmul %4, %6, %cst {dimension_numbers = #tpu.dot_dimension_numbers<[1], [0], [0], [1], [0, 0, 1, 1], [], []>} : vector<2x512xf32>, vector<512x512xf32>, vector<2x512xf32> -> vector<2x512xf32>
    %8 = arith.addf %3, %7 : vector<2x512xf32>
    %c0_6 = arith.constant 0 : index
    %c0_7 = arith.constant 0 : index
    %9 = vector.load %arg7[%c0_6, %c0_7] : memref<2x512xf32, #tpu.memory_space<vmem>>, vector<2x512xf32>
    tpu.vector_store %arg7[%c0_6, %c0_7], %8 {strides = array<i32>} : memref<2x512xf32, #tpu.memory_space<vmem>>, vector<2x512xf32>,
    %c7_i32 = arith.constant 7 : i32
    %10 = arith.cmpi eq, %arg0, %c7_i32 : i32
    %11 = arith.extui %10 : i1 to i32
    %c0_i32_8 = arith.constant 0 : i32
    %12 = arith.cmpi ne, %11, %c0_i32_8 : i32
    scf.if %12 {
      %c0_9 = arith.constant 0 : index
      %c0_10 = arith.constant 0 : index
      %13 = vector.load %arg7[%c0_9, %c0_10] : memref<2x512xf32, #tpu.memory_space<vmem>>, vector<2x512xf32>
      %c0_11 = arith.constant 0 : index
      %c0_12 = arith.constant 0 : index
      %14 = vector.load %arg3[%c0_11, %c0_12] : memref<1x512xf32, #tpu.memory_space<vmem>>, vector<1x512xf32>
      %15 = vector.broadcast %14 : vector<1x512xf32> to vector<2x512xf32>
      %16 = arith.addf %13, %15 : vector<2x512xf32>
      %cst_13 = arith.constant 0.000000e+00 : f32
      %17 = vector.broadcast %cst_13 : f32 to vector<2x512xf32>
      %18 = arith.maximumf %16, %17 : vector<2x512xf32>
      %c0_14 = arith.constant 0 : index
      %c0_15 = arith.constant 0 : index
      %19 = vector.load %arg4[%c0_14, %c0_15] : memref<512x128xbf16, #tpu.memory_space<vmem>>, vector<512x128xbf16>
      %20 = arith.extf %19 : vector<512x128xbf16> to vector<512x128xf32>
      %cst_16 = arith.constant dense<0.000000e+00> : vector<2x128xf32>
      %21 = tpu.matmul %18, %20, %cst_16 {dimension_numbers = #tpu.dot_dimension_numbers<[1], [0], [0], [1], [0, 0, 1, 1], [], []>} : vector<2x512xf32>, vector<512x128xf32>, vector<2x128xf32> -> vector<2x128xf32>
      %c0_17 = arith.constant 0 : index
      %c0_18 = arith.constant 0 : index
      %22 = vector.load %arg5[%c0_17, %c0_18] : memref<1x128xf32, #tpu.memory_space<vmem>>, vector<1x128xf32>
      %23 = vector.broadcast %22 : vector<1x128xf32> to vector<2x128xf32>
      %24 = arith.addf %21, %23 : vector<2x128xf32>
      %c0_19 = arith.constant 0 : index
      %c0_20 = arith.constant 0 : index
      %25 = vector.load %arg6[%c0_19, %c0_20] : memref<2x128xf32, #tpu.memory_space<vmem>>, vector<2x128xf32>
      tpu.vector_store %arg6[%c0_19, %c0_20], %24 {strides = array<i32>} : memref<2x128xf32, #tpu.memory_space<vmem>>, vector<2x128xf32>,
    } else {
    }
    return
  }
  func.func @transform_0(%arg0: i32) -> (i32, i32) {
    %c0_i32 = arith.constant 0 : i32
    %c0_i32_0 = arith.constant 0 : i32
    return %c0_i32, %arg0 : i32, i32
  }
  func.func @transform_1(%arg0: i32) -> (i32, i32) {
    %c0_i32 = arith.constant 0 : i32
    %c0_i32_0 = arith.constant 0 : i32
    return %arg0, %c0_i32 : i32, i32
  }
  func.func @transform_2(%arg0: i32) -> (i32, i32) {
    %c0_i32 = arith.constant 0 : i32
    %c0_i32_0 = arith.constant 0 : i32
    %c0_i32_1 = arith.constant 0 : i32
    return %c0_i32, %c0_i32_0 : i32, i32
  }
  func.func @transform_3(%arg0: i32) -> (i32, i32) {
    %c0_i32 = arith.constant 0 : i32
    %c0_i32_0 = arith.constant 0 : i32
    %c0_i32_1 = arith.constant 0 : i32
    return %c0_i32, %c0_i32_0 : i32, i32
  }
  func.func @transform_4(%arg0: i32) -> (i32, i32) {
    %c0_i32 = arith.constant 0 : i32
    %c0_i32_0 = arith.constant 0 : i32
    %c0_i32_1 = arith.constant 0 : i32
    return %c0_i32, %c0_i32_0 : i32, i32
  }
  func.func @transform_5(%arg0: i32) -> (i32, i32) {
    %c0_i32 = arith.constant 0 : i32
    %c0_i32_0 = arith.constant 0 : i32
    %c0_i32_1 = arith.constant 0 : i32
    return %c0_i32, %c0_i32_0 : i32, i32
  }
}

</mosaic_0001>

<bundles_post_ra>
// kernel: lenet5_forward.3
= control target key start
LH: loop header
LB: loop body
LE: loop exit
PB: predicated region body
PF: predicated region fallthrough
CT: control target
= control target key end

     0   :  { %vm88_vm0 = vcmask 613376   ;;  %vm281_vm1 = vcmask 1042432   ;;  %vm4293_vm2 = vmmov 1   ;;  %s6265_s1 = inlined_call_operand.vmem [shape: f32[75,128], index: 1, kind: input, shape index: {}]   ;;  %s6266_s0 = inlined_call_operand.vmem [shape: f32[4,512,75], index: 0, kind: input, shape index: {}]   ;;  %s6267_s2 = inlined_call_operand.vmem [shape: f32[1,128], index: 2, kind: input, shape index: {}]   ;;  %s6268_s3 = inlined_call_operand.vmem [shape: f32[512,128], index: 3, kind: output, shape index: {}]  }
   0x1   :  { %v14_v0 = vld [vmem:[%s6265_s1] sm:$0xff]  ;;  %v15_v1 = vld [vmem:[%s6265_s1 + $0x8] sm:$0xff]  ;;  %v16_v2 = vld [vmem:[%s6265_s1 + $0x10] sm:$0xff] }
   0x2   :  { %v4204_v3 = vpack.c.bf16 %v15_v1, %v14_v0  ;;  %v17_v4 = vld [vmem:[%s6265_s1 + $0x18] sm:$0xff]  ;;  %v18_v6 = vld [vmem:[%s6265_s1 + $0x20] sm:$0xff]  ;;  %v19_v7 = vld [vmem:[%s6265_s1 + $0x28] sm:$0xff] }
   0x3   :  { %v4326_v5 = vpack.c.bf16 %v17_v4, %v16_v2  ;;  %v24_v8 = vld [vmem:[%s6266_s0] sm:$0xff]  ;;  %v4342_v10 = vpack.c.bf16 %v19_v7, %v18_v6  ;;  %v20_v11 = vld [vmem:[%s6265_s1 + $0x30] sm:$0xff]  ;;  %v21_v12 = vld [vmem:[%s6265_s1 + $0x38] sm:$0xff] }
   0x4   :  { %4205 = vmatprep.subr.bf16.mxu0 %v4204_v3  ;;  %4227 = vmatprep.subr.bf16.mxu1 %v4204_v3  ;;  %v3056_v9 = vld [vmem:[%s6266_s0 + $0x200] sm:$0xff]  ;;  %v4356_v13 = vpack.c.bf16 %v21_v12, %v20_v11  ;;  %v23_v15 = vld [vmem:[%s6265_s1 + $0x48] sm:$0x7]  ;;  %vm4370_vm3 = vmpackc.low %vm281_vm1, %vm4293_vm2 }
   0x5   :  { %4207 = vmatpush3.bf16.msra.mxu0 %v4204_v3  ;;  %4229 = vmatpush3.bf16.msra.mxu1 %v4204_v3  ;;  %v22_v14 = vld [vmem:[%s6265_s1 + $0x40] sm:$0xff]  ;;  %v25_v18 = vld [vmem:[%s6266_s0 + $0x8] sm:$0xff]  ;;  %v26_v20 = vld [vmem:[%s6266_s0 + $0x10] sm:$0xff] }
   0x6   :  { %4209 = vmatprep.subr.bf16.mxu0 %v4326_v5  ;;  %4231 = vmatprep.subr.bf16.mxu1 %v4326_v5  ;;  %v4368_v16 = vpack.c.bf16 %v23_v15, %v22_v14  ;;  %v3057_v19 = vld [vmem:[%s6266_s0 + $0x208] sm:$0xff]  ;;  %v3058_v21 = vld [vmem:[%s6266_s0 + $0x210] sm:$0xff]  ;;  %v27_v22 = vld [vmem:[%s6266_s0 + $0x18] sm:$0xff] }
   0x7   :  { %3760 = vmatprep.mubr.msk.f32.mxu0 %vm88_vm0, %v24_v8  ;;  %3876 = vmatprep.mubr.msk.f32.mxu1 %vm88_vm0, %v3056_v9  ;;  %v3059_v23 = vld [vmem:[%s6266_s0 + $0x218] sm:$0xff]  ;;  %v28_v24 = vld [vmem:[%s6266_s0 + $0x20] sm:$0xff]  ;;  %v29_v26 = vld [vmem:[%s6266_s0 + $0x28] sm:$0xff] }
   0x8   :  { %v3060_v25 = vld [vmem:[%s6266_s0 + $0x220] sm:$0xff]  ;;  %v3061_v27 = vld [vmem:[%s6266_s0 + $0x228] sm:$0xff]  ;;  %v30_v28 = vld [vmem:[%s6266_s0 + $0x30] sm:$0xff] }
   0x9   :  { %4211 = vmatpush3.bf16.msra.mxu0 %v4326_v5  ;;  %4233 = vmatpush3.bf16.msra.mxu1 %v4326_v5  ;;  %v3062_v29 = vld [vmem:[%s6266_s0 + $0x230] sm:$0xff]  ;;  %v31_v30 = vld [vmem:[%s6266_s0 + $0x38] sm:$0xff]  ;;  %v32_v32 = vld [vmem:[%s6266_s0 + $0x40] sm:$0xff] }
   0xa   :  { %4213 = vmatprep.subr.bf16.mxu0 %v4342_v10  ;;  %4235 = vmatprep.subr.bf16.mxu1 %v4342_v10  ;;  %v3063_v31 = vld [vmem:[%s6266_s0 + $0x238] sm:$0xff]  ;;  %v3064_v33 = vld [vmem:[%s6266_s0 + $0x240] sm:$0xff]  ;;  %v33_v34 = vld [vmem:[%s6266_s0 + $0x48] sm:$0xff] }
   0xb   :  { %v3065_v35 = vld [vmem:[%s6266_s0 + $0x248] sm:$0xff]  ;;  %v34_v36 = vld [vmem:[%s6266_s0 + $0x50] sm:$0xff]  ;;  %v35_v38 = vld [vmem:[%s6266_s0 + $0x58] sm:$0xff] }
   0xc   :  { %v3066_v37 = vld [vmem:[%s6266_s0 + $0x250] sm:$0xff]  ;;  %v3067_v39 = vld [vmem:[%s6266_s0 + $0x258] sm:$0xff]  ;;  %v36_v40 = vld [vmem:[%s6266_s0 + $0x60] sm:$0xff] }
   0xd   :  { %4215 = vmatpush3.bf16.msra.mxu0 %v4342_v10  ;;  %4237 = vmatpush3.bf16.msra.mxu1 %v4342_v10  ;;  %v3068_v41 = vld [vmem:[%s6266_s0 + $0x260] sm:$0xff]  ;;  %v37_v42 = vld [vmem:[%s6266_s0 + $0x68] sm:$0xff]  ;;  %v38_v44 = vld [vmem:[%s6266_s0 + $0x70] sm:$0xff] }
   0xe   :  { %4217 = vmatprep.subr.bf16.mxu0 %v4356_v13  ;;  %4239 = vmatprep.subr.bf16.mxu1 %v4356_v13  ;;  %v3069_v43 = vld [vmem:[%s6266_s0 + $0x268] sm:$0xff]  ;;  %v3070_v45 = vld [vmem:[%s6266_s0 + $0x270] sm:$0xff]  ;;  %v39_v46 = vld [vmem:[%s6266_s0 + $0x78] sm:$0xff] }
   0xf   :  { %v3071_v47 = vld [vmem:[%s6266_s0 + $0x278] sm:$0xff]  ;;  %v40_v48 = vld [vmem:[%s6266_s0 + $0x80] sm:$0xff]  ;;  %v41_v50 = vld [vmem:[%s6266_s0 + $0x88] sm:$0xff] }
  0x10   :  { %v3072_v49 = vld [vmem:[%s6266_s0 + $0x280] sm:$0xff]  ;;  %v3073_v51 = vld [vmem:[%s6266_s0 + $0x288] sm:$0xff]  ;;  %v42_v52 = vld [vmem:[%s6266_s0 + $0x90] sm:$0xff] }
  0x11   :  { %4219 = vmatpush3.bf16.msra.mxu0 %v4356_v13  ;;  %4241 = vmatpush3.bf16.msra.mxu1 %v4356_v13  ;;  %v3074_v53 = vld [vmem:[%s6266_s0 + $0x290] sm:$0xff]  ;;  %v43_v54 = vld [vmem:[%s6266_s0 + $0x98] sm:$0xff]  ;;  %v44_v56 = vld [vmem:[%s6266_s0 + $0xa0] sm:$0xff] }
  0x12   :  { %4222 = vmatprep.subr.msk.bf16.mxu0 %vm4370_vm3, %v4368_v16  ;;  %4244 = vmatprep.subr.msk.bf16.mxu1 %vm4370_vm3, %v4368_v16  ;;  %v3075_v55 = vld [vmem:[%s6266_s0 + $0x298] sm:$0xff]  ;;  %v3076_v57 = vld [vmem:[%s6266_s0 + $0x2a0] sm:$0xff]  ;;  %v45_v58 = vld [vmem:[%s6266_s0 + $0xa8] sm:$0xff] }
  0x13   :  { %v3077_v59 = vld [vmem:[%s6266_s0 + $0x2a8] sm:$0xff]  ;;  %v46_v60 = vld [vmem:[%s6266_s0 + $0xb0] sm:$0xff]  ;;  %v47_v62 = vld [vmem:[%s6266_s0 + $0xb8] sm:$0xff] }
  0x14   :  { %v3078_v61 = vld [vmem:[%s6266_s0 + $0x2b0] sm:$0xff]  ;;  %v3079_v63 = vld [vmem:[%s6266_s0 + $0x2b8] sm:$0xff]  ;;  %v48_v0 = vld [vmem:[%s6266_s0 + $0xc0] sm:$0xff] }
  0x15   :  { %4225 = vmatpush3.bf16.msk.msra.mxu0 %vm4370_vm3, %v4368_v16  ;;  %4247 = vmatpush3.bf16.msk.msra.mxu1 %vm4370_vm3, %v4368_v16  ;;  %v3080_v1 = vld [vmem:[%s6266_s0 + $0x2c0] sm:$0xff]  ;;  %v49_v2 = vld [vmem:[%s6266_s0 + $0xc8] sm:$0xff]  ;;  %v50_v4 = vld [vmem:[%s6266_s0 + $0xd0] sm:$0xff] }
  0x16   :  { %4249 = vmatprep.subr.bf16.mxu0 %v4204_v3  ;;  %4271 = vmatprep.subr.bf16.mxu1 %v4204_v3  ;;  %v51_v6 = vld [vmem:[%s6266_s0 + $0xd8] sm:$0xff]  ;;  %v52_v8 = vld [vmem:[%s6266_s0 + $0xe0] sm:$0xff]  ;;  %v3085_v11 = vld [vmem:[%s6266_s0 + $0x2e8] sm:$0xff] }
  0x17   :  { %v3083_v7 = vld [vmem:[%s6266_s0 + $0x2d8] sm:$0xff]  ;;  %v3084_v9 = vld [vmem:[%s6266_s0 + $0x2e0] sm:$0xff]  ;;  %v54_v12 = vld [vmem:[%s6266_s0 + $0xf0] sm:$0xff] }
  0x18   :  { %3761 = vmatmul.mubr.msk.f32.vlgmr.msra.gmra.mrb[0].mxu0 %vm88_vm0, %v25_v18  ;;  %3877 = vmatmul.mubr.msk.f32.vlgmr.msra.gmra.mrb[0].mxu1 %vm88_vm0, %v3057_v19  ;;  %v55_v14 = vld [vmem:[%s6266_s0 + $0xf8] sm:$0xff]  ;;  %v3088_v17 = vld [vmem:[%s6266_s0 + $0x300] sm:$0xff]  ;;  %v57_v18 = vld [vmem:[%s6266_s0 + $0x108] sm:$0xff] }
  0x19   :  { %4251 = vmatpush3.bf16.msra.mxu0 %v4204_v3  ;;  %4273 = vmatpush3.bf16.msra.mxu1 %v4204_v3  ;;  %v3081_v3 = vld [vmem:[%s6266_s0 + $0x2c8] sm:$0xff]  ;;  %v3087_v15 = vld [vmem:[%s6266_s0 + $0x2f8] sm:$0xff] }
  0x1a   :  { %3763 = vmatprep.mubr.msk.f32.mxu0 %vm88_vm0, %v26_v20  ;;  %3879 = vmatprep.mubr.msk.f32.mxu1 %vm88_vm0, %v3058_v21  ;;  %v3089_v19 = vld [vmem:[%s6266_s0 + $0x308] sm:$0xff]  ;;  %v58_v20 = vld [vmem:[%s6266_s0 + $0x110] sm:$0xff] }
  0x1b   :  { %4253 = vmatprep.subr.bf16.mxu0 %v4326_v5  ;;  %4275 = vmatprep.subr.bf16.mxu1 %v4326_v5  ;;  %v3090_v21 = vld [vmem:[%s6266_s0 + $0x310] sm:$0xff] }
  0x1c   :  { %3764 = vmatmul.mubr.msk.f32.gmra.mrb[2].mxu0 %vm88_vm0, %v27_v22  ;;  %3880 = vmatmul.mubr.msk.f32.gmra.mrb[2].mxu1 %vm88_vm0, %v3059_v23  ;;  %v59_v22 = vld [vmem:[%s6266_s0 + $0x118] sm:$0xff] }
  0x1d   :  { %3766 = vmatprep.mubr.msk.f32.mxu0 %vm88_vm0, %v28_v24  ;;  %3882 = vmatprep.mubr.msk.f32.mxu1 %vm88_vm0, %v3060_v25  ;;  %v3091_v23 = vld [vmem:[%s6266_s0 + $0x318] sm:$0xff]  ;;  %v60_v24 = vld [vmem:[%s6266_s0 + $0x120] sm:$0xff] }
  0x1e   :  { %4255 = vmatpush3.bf16.msra.mxu0 %v4326_v5  ;;  %4277 = vmatpush3.bf16.msra.mxu1 %v4326_v5  ;;  %v3082_v5 = vld [vmem:[%s6266_s0 + $0x2d0] sm:$0xff]  ;;  %v3092_v25 = vld [vmem:[%s6266_s0 + $0x320] sm:$0xff] }
  0x1f   :  { %4257 = vmatprep.subr.bf16.mxu0 %v4342_v10  ;;  %4279 = vmatprep.subr.bf16.mxu1 %v4342_v10 }
  0x20   :  { %3767 = vmatmul.mubr.msk.f32.gmra.mrb[4].mxu0 %vm88_vm0, %v29_v26  ;;  %3883 = vmatmul.mubr.msk.f32.gmra.mrb[4].mxu1 %vm88_vm0, %v3061_v27  ;;  %v61_v26 = vld [vmem:[%s6266_s0 + $0x128] sm:$0xff] }
  0x21   :  { %3769 = vmatprep.mubr.msk.f32.mxu0 %vm88_vm0, %v30_v28  ;;  %3885 = vmatprep.mubr.msk.f32.mxu1 %vm88_vm0, %v3062_v29  ;;  %v3093_v27 = vld [vmem:[%s6266_s0 + $0x328] sm:$0xff]  ;;  %v62_v28 = vld [vmem:[%s6266_s0 + $0x130] sm:$0xff] }
  0x22   :  { %4259 = vmatpush3.bf16.msra.mxu0 %v4342_v10  ;;  %4281 = vmatpush3.bf16.msra.mxu1 %v4342_v10  ;;  %v53_v10 = vld [vmem:[%s6266_s0 + $0xe8] sm:$0xff]  ;;  %v3094_v29 = vld [vmem:[%s6266_s0 + $0x330] sm:$0xff] }
  0x23   :  { %4261 = vmatprep.subr.bf16.mxu0 %v4356_v13  ;;  %4283 = vmatprep.subr.bf16.mxu1 %v4356_v13 }
  0x24   :  { %3770 = vmatmul.mubr.msk.f32.gmra.mrb[6].mxu0 %vm88_vm0, %v31_v30  ;;  %3886 = vmatmul.mubr.msk.f32.gmra.mrb[6].mxu1 %vm88_vm0, %v3063_v31  ;;  %v63_v30 = vld [vmem:[%s6266_s0 + $0x138] sm:$0xff] }
  0x25   :  { %3772 = vmatprep.mubr.msk.f32.mxu0 %vm88_vm0, %v32_v32  ;;  %3888 = vmatprep.mubr.msk.f32.mxu1 %vm88_vm0, %v3064_v33  ;;  %v3095_v31 = vld [vmem:[%s6266_s0 + $0x338] sm:$0xff]  ;;  %v64_v32 = vld [vmem:[%s6266_s0 + $0x140] sm:$0xff] }
  0x26   :  { %4263 = vmatpush3.bf16.msra.mxu0 %v4356_v13  ;;  %4285 = vmatpush3.bf16.msra.mxu1 %v4356_v13  ;;  %v3086_v13 = vld [vmem:[%s6266_s0 + $0x2f0] sm:$0xff]  ;;  %v3096_v33 = vld [vmem:[%s6266_s0 + $0x340] sm:$0xff] }
  0x27   :  { %4266 = vmatprep.subr.msk.bf16.mxu0 %vm4370_vm3, %v4368_v16  ;;  %4288 = vmatprep.subr.msk.bf16.mxu1 %vm4370_vm3, %v4368_v16 }
  0x28   :  { %3773 = vmatmul.mubr.msk.f32.gmra.mrb[8].mxu0 %vm88_vm0, %v33_v34  ;;  %3889 = vmatmul.mubr.msk.f32.gmra.mrb[8].mxu1 %vm88_vm0, %v3065_v35  ;;  %v65_v34 = vld [vmem:[%s6266_s0 + $0x148] sm:$0xff] }
  0x29   :  { %3775 = vmatprep.mubr.msk.f32.mxu0 %vm88_vm0, %v34_v36  ;;  %3891 = vmatprep.mubr.msk.f32.mxu1 %vm88_vm0, %v3066_v37  ;;  %v3097_v35 = vld [vmem:[%s6266_s0 + $0x348] sm:$0xff]  ;;  %v66_v36 = vld [vmem:[%s6266_s0 + $0x150] sm:$0xff] }
  0x2a   :  { %4269 = vmatpush3.bf16.msk.msra.mxu0 %vm4370_vm3, %v4368_v16  ;;  %4291 = vmatpush3.bf16.msk.msra.mxu1 %vm4370_vm3, %v4368_v16  ;;  %v56_v16 = vld [vmem:[%s6266_s0 + $0x100] sm:$0xff]  ;;  %v3098_v37 = vld [vmem:[%s6266_s0 + $0x350] sm:$0xff] }
  0x2c   :  { %3776 = vmatmul.mubr.msk.f32.gmra.mrb[10].mxu0 %vm88_vm0, %v35_v38  ;;  %3892 = vmatmul.mubr.msk.f32.gmra.mrb[10].mxu1 %vm88_vm0, %v3067_v39  ;;  %v67_v38 = vld [vmem:[%s6266_s0 + $0x158] sm:$0xff] }
  0x2d   :  { %3778 = vmatprep.mubr.msk.f32.mxu0 %vm88_vm0, %v36_v40  ;;  %3894 = vmatprep.mubr.msk.f32.mxu1 %vm88_vm0, %v3068_v41  ;;  %v3099_v39 = vld [vmem:[%s6266_s0 + $0x358] sm:$0xff]  ;;  %v68_v40 = vld [vmem:[%s6266_s0 + $0x160] sm:$0xff] }
  0x2e   :  { %v3100_v41 = vld [vmem:[%s6266_s0 + $0x360] sm:$0xff] }
  0x30   :  { %3779 = vmatmul.mubr.msk.f32.gmra.mrb[12].mxu0 %vm88_vm0, %v37_v42  ;;  %3895 = vmatmul.mubr.msk.f32.gmra.mrb[12].mxu1 %vm88_vm0, %v3069_v43  ;;  %v69_v42 = vld [vmem:[%s6266_s0 + $0x168] sm:$0xff] }
  0x31   :  { %3781 = vmatprep.mubr.msk.f32.mxu0 %vm88_vm0, %v38_v44  ;;  %3897 = vmatprep.mubr.msk.f32.mxu1 %vm88_vm0, %v3070_v45  ;;  %v3101_v43 = vld [vmem:[%s6266_s0 + $0x368] sm:$0xff]  ;;  %v70_v44 = vld [vmem:[%s6266_s0 + $0x170] sm:$0xff] }
  0x32   :  { %v3102_v45 = vld [vmem:[%s6266_s0 + $0x370] sm:$0xff] }
  0x34   :  { %3782 = vmatmul.mubr.msk.f32.gmra.mrb[14].mxu0 %vm88_vm0, %v39_v46  ;;  %3898 = vmatmul.mubr.msk.f32.gmra.mrb[14].mxu1 %vm88_vm0, %v3071_v47  ;;  %v71_v46 = vld [vmem:[%s6266_s0 + $0x178] sm:$0xff] }
  0x35   :  { %3784 = vmatprep.mubr.msk.f32.mxu0 %vm88_vm0, %v40_v48  ;;  %3900 = vmatprep.mubr.msk.f32.mxu1 %vm88_vm0, %v3072_v49  ;;  %v3103_v47 = vld [vmem:[%s6266_s0 + $0x378] sm:$0xff]  ;;  %v72_v48 = vld [vmem:[%s6266_s0 + $0x180] sm:$0xff] }
  0x36   :  { %v3104_v49 = vld [vmem:[%s6266_s0 + $0x380] sm:$0xff] }
  0x38   :  { %3785 = vmatmul.mubr.msk.f32.gmra.mrb[16].mxu0 %vm88_vm0, %v41_v50  ;;  %3901 = vmatmul.mubr.msk.f32.gmra.mrb[16].mxu1 %vm88_vm0, %v3073_v51  ;;  %v73_v50 = vld [vmem:[%s6266_s0 + $0x188] sm:$0xff] }
  0x39   :  { %3787 = vmatprep.mubr.msk.f32.mxu0 %vm88_vm0, %v42_v52  ;;  %3903 = vmatprep.mubr.msk.f32.mxu1 %vm88_vm0, %v3074_v53  ;;  %v3105_v51 = vld [vmem:[%s6266_s0 + $0x388] sm:$0xff]  ;;  %v74_v52 = vld [vmem:[%s6266_s0 + $0x190] sm:$0xff] }
  0x3a   :  { %v3106_v53 = vld [vmem:[%s6266_s0 + $0x390] sm:$0xff] }
  0x3c   :  { %3788 = vmatmul.mubr.msk.f32.gmra.mrb[18].mxu0 %vm88_vm0, %v43_v54  ;;  %3904 = vmatmul.mubr.msk.f32.gmra.mrb[18].mxu1 %vm88_vm0, %v3075_v55  ;;  %v75_v54 = vld [vmem:[%s6266_s0 + $0x198] sm:$0xff] }
  0x3d   :  { %3790 = vmatprep.mubr.msk.f32.mxu0 %vm88_vm0, %v44_v56  ;;  %3906 = vmatprep.mubr.msk.f32.mxu1 %vm88_vm0, %v3076_v57  ;;  %v3107_v55 = vld [vmem:[%s6266_s0 + $0x398] sm:$0xff]  ;;  %v76_v56 = vld [vmem:[%s6266_s0 + $0x1a0] sm:$0xff] }
  0x3e   :  { %v3108_v57 = vld [vmem:[%s6266_s0 + $0x3a0] sm:$0xff] }
  0x40   :  { %3791 = vmatmul.mubr.msk.f32.gmra.mrb[20].mxu0 %vm88_vm0, %v45_v58  ;;  %3907 = vmatmul.mubr.msk.f32.gmra.mrb[20].mxu1 %vm88_vm0, %v3077_v59  ;;  %v77_v58 = vld [vmem:[%s6266_s0 + $0x1a8] sm:$0xff] }
  0x41   :  { %3793 = vmatprep.mubr.msk.f32.mxu0 %vm88_vm0, %v46_v60  ;;  %3909 = vmatprep.mubr.msk.f32.mxu1 %vm88_vm0, %v3078_v61  ;;  %v3109_v59 = vld [vmem:[%s6266_s0 + $0x3a8] sm:$0xff]  ;;  %v78_v60 = vld [vmem:[%s6266_s0 + $0x1b0] sm:$0xff] }
  0x42   :  { %v3110_v61 = vld [vmem:[%s6266_s0 + $0x3b0] sm:$0xff] }
  0x44   :  { %3794 = vmatmul.mubr.msk.f32.gmra.mrb[22].mxu0 %vm88_vm0, %v47_v62  ;;  %3910 = vmatmul.mubr.msk.f32.gmra.mrb[22].mxu1 %vm88_vm0, %v3079_v63  ;;  %v79_v62 = vld [vmem:[%s6266_s0 + $0x1b8] sm:$0xff] }
  0x45   :  { %3796 = vmatprep.mubr.msk.f32.mxu0 %vm88_vm0, %v48_v0  ;;  %3912 = vmatprep.mubr.msk.f32.mxu1 %vm88_vm0, %v3080_v1  ;;  %v3111_v63 = vld [vmem:[%s6266_s0 + $0x3b8] sm:$0xff]  ;;  %v80_v0 = vld [vmem:[%s6266_s0 + $0x1c0] sm:$0xff] }
  0x46   :  { %v3112_v1 = vld [vmem:[%s6266_s0 + $0x3c0] sm:$0xff] }
  0x48   :  { %3797 = vmatmul.mubr.msk.f32.gmra.mrb[24].mxu0 %vm88_vm0, %v49_v2  ;;  %3913 = vmatmul.mubr.msk.f32.gmra.mrb[24].mxu1 %vm88_vm0, %v3081_v3  ;;  %v81_v2 = vld [vmem:[%s6266_s0 + $0x1c8] sm:$0xff] }
  0x49   :  { %3799 = vmatprep.mubr.msk.f32.mxu0 %vm88_vm0, %v50_v4  ;;  %3915 = vmatprep.mubr.msk.f32.mxu1 %vm88_vm0, %v3082_v5  ;;  %v3113_v3 = vld [vmem:[%s6266_s0 + $0x3c8] sm:$0xff]  ;;  %v82_v4 = vld [vmem:[%s6266_s0 + $0x1d0] sm:$0xff] }
  0x4a   :  { %v3114_v5 = vld [vmem:[%s6266_s0 + $0x3d0] sm:$0xff] }
  0x4c   :  { %3800 = vmatmul.mubr.msk.f32.gmra.mrb[26].mxu0 %vm88_vm0, %v51_v6  ;;  %3916 = vmatmul.mubr.msk.f32.gmra.mrb[26].mxu1 %vm88_vm0, %v3083_v7  ;;  %v83_v6 = vld [vmem:[%s6266_s0 + $0x1d8] sm:$0xff] }
  0x4d   :  { %3802 = vmatprep.mubr.msk.f32.mxu0 %vm88_vm0, %v52_v8  ;;  %3918 = vmatprep.mubr.msk.f32.mxu1 %vm88_vm0, %v3084_v9  ;;  %v3115_v7 = vld [vmem:[%s6266_s0 + $0x3d8] sm:$0xff]  ;;  %v84_v8 = vld [vmem:[%s6266_s0 + $0x1e0] sm:$0xff] }
  0x4e   :  { %v3116_v9 = vld [vmem:[%s6266_s0 + $0x3e0] sm:$0xff] }
  0x50   :  { %3803 = vmatmul.mubr.msk.f32.gmra.mrb[28].mxu0 %vm88_vm0, %v53_v10  ;;  %3919 = vmatmul.mubr.msk.f32.gmra.mrb[28].mxu1 %vm88_vm0, %v3085_v11  ;;  %v85_v10 = vld [vmem:[%s6266_s0 + $0x1e8] sm:$0xff] }
  0x51   :  { %3805 = vmatprep.mubr.msk.f32.mxu0 %vm88_vm0, %v54_v12  ;;  %3921 = vmatprep.mubr.msk.f32.mxu1 %vm88_vm0, %v3086_v13  ;;  %v3117_v11 = vld [vmem:[%s6266_s0 + $0x3e8] sm:$0xff]  ;;  %v86_v12 = vld [vmem:[%s6266_s0 + $0x1f0] sm:$0xff] }
  0x52   :  { %v3118_v13 = vld [vmem:[%s6266_s0 + $0x3f0] sm:$0xff] }
  0x54   :  { %3806 = vmatmul.mubr.msk.f32.gmra.mrb[30].mxu0 %vm88_vm0, %v55_v14  ;;  %3922 = vmatmul.mubr.msk.f32.gmra.mrb[30].mxu1 %vm88_vm0, %v3087_v15  ;;  %v87_v14 = vld [vmem:[%s6266_s0 + $0x1f8] sm:$0xff] }
  0x55   :  { %3808 = vmatprep.mubr.msk.f32.mxu0 %vm88_vm0, %v56_v16  ;;  %3924 = vmatprep.mubr.msk.f32.mxu1 %vm88_vm0, %v3088_v17  ;;  %v3119_v15 = vld [vmem:[%s6266_s0 + $0x3f8] sm:$0xff]  ;;  %v3185_v16 = vld [vmem:[%s6266_s0 + $0x400] sm:$0xff] }
  0x56   :  { %v3314_v17 = vld [vmem:[%s6266_s0 + $0x600] sm:$0xff] }
  0x58   :  { %3809 = vmatmul.mubr.msk.f32.gmra.mrb[32].mxu0 %vm88_vm0, %v57_v18  ;;  %3925 = vmatmul.mubr.msk.f32.gmra.mrb[32].mxu1 %vm88_vm0, %v3089_v19  ;;  %v3186_v18 = vld [vmem:[%s6266_s0 + $0x408] sm:$0xff] }
  0x59   :  { %3811 = vmatprep.mubr.msk.f32.mxu0 %vm88_vm0, %v58_v20  ;;  %3927 = vmatprep.mubr.msk.f32.mxu1 %vm88_vm0, %v3090_v21  ;;  %v3315_v19 = vld [vmem:[%s6266_s0 + $0x608] sm:$0xff]  ;;  %v3187_v20 = vld [vmem:[%s6266_s0 + $0x410] sm:$0xff] }
  0x5a   :  { %v3316_v21 = vld [vmem:[%s6266_s0 + $0x610] sm:$0xff] }
  0x5c   :  { %3812 = vmatmul.mubr.msk.f32.gmra.mrb[34].mxu0 %vm88_vm0, %v59_v22  ;;  %3928 = vmatmul.mubr.msk.f32.gmra.mrb[34].mxu1 %vm88_vm0, %v3091_v23  ;;  %v3188_v22 = vld [vmem:[%s6266_s0 + $0x418] sm:$0xff] }
  0x5d   :  { %3814 = vmatprep.mubr.msk.f32.mxu0 %vm88_vm0, %v60_v24  ;;  %3930 = vmatprep.mubr.msk.f32.mxu1 %vm88_vm0, %v3092_v25  ;;  %v3317_v23 = vld [vmem:[%s6266_s0 + $0x618] sm:$0xff]  ;;  %v3189_v24 = vld [vmem:[%s6266_s0 + $0x420] sm:$0xff] }
  0x5e   :  { %v3318_v25 = vld [vmem:[%s6266_s0 + $0x620] sm:$0xff] }
  0x60   :  { %3815 = vmatmul.mubr.msk.f32.gmra.mrb[36].mxu0 %vm88_vm0, %v61_v26  ;;  %3931 = vmatmul.mubr.msk.f32.gmra.mrb[36].mxu1 %vm88_vm0, %v3093_v27  ;;  %v3190_v26 = vld [vmem:[%s6266_s0 + $0x428] sm:$0xff] }
  0x61   :  { %3817 = vmatprep.mubr.msk.f32.mxu0 %vm88_vm0, %v62_v28  ;;  %3933 = vmatprep.mubr.msk.f32.mxu1 %vm88_vm0, %v3094_v29  ;;  %v3319_v27 = vld [vmem:[%s6266_s0 + $0x628] sm:$0xff]  ;;  %v3191_v28 = vld [vmem:[%s6266_s0 + $0x430] sm:$0xff] }
  0x62   :  { %v3320_v29 = vld [vmem:[%s6266_s0 + $0x630] sm:$0xff] }
  0x64   :  { %3818 = vmatmul.mubr.msk.f32.gmra.mrb[38].mxu0 %vm88_vm0, %v63_v30  ;;  %3934 = vmatmul.mubr.msk.f32.gmra.mrb[38].mxu1 %vm88_vm0, %v3095_v31  ;;  %v3192_v30 = vld [vmem:[%s6266_s0 + $0x438] sm:$0xff] }
  0x65   :  { %3820 = vmatprep.mubr.msk.f32.mxu0 %vm88_vm0, %v64_v32  ;;  %3936 = vmatprep.mubr.msk.f32.mxu1 %vm88_vm0, %v3096_v33  ;;  %v3321_v31 = vld [vmem:[%s6266_s0 + $0x638] sm:$0xff]  ;;  %v3193_v32 = vld [vmem:[%s6266_s0 + $0x440] sm:$0xff] }
  0x66   :  { %v3322_v33 = vld [vmem:[%s6266_s0 + $0x640] sm:$0xff] }
  0x68   :  { %3821 = vmatmul.mubr.msk.f32.gmra.mrb[40].mxu0 %vm88_vm0, %v65_v34  ;;  %3937 = vmatmul.mubr.msk.f32.gmra.mrb[40].mxu1 %vm88_vm0, %v3097_v35  ;;  %v3194_v34 = vld [vmem:[%s6266_s0 + $0x448] sm:$0xff] }
  0x69   :  { %3823 = vmatprep.mubr.msk.f32.mxu0 %vm88_vm0, %v66_v36  ;;  %3939 = vmatprep.mubr.msk.f32.mxu1 %vm88_vm0, %v3098_v37  ;;  %v3323_v35 = vld [vmem:[%s6266_s0 + $0x648] sm:$0xff]  ;;  %v3195_v36 = vld [vmem:[%s6266_s0 + $0x450] sm:$0xff] }
  0x6a   :  { %v3324_v37 = vld [vmem:[%s6266_s0 + $0x650] sm:$0xff] }
  0x6c   :  { %3824 = vmatmul.mubr.msk.f32.gmra.mrb[42].mxu0 %vm88_vm0, %v67_v38  ;;  %3940 = vmatmul.mubr.msk.f32.gmra.mrb[42].mxu1 %vm88_vm0, %v3099_v39  ;;  %v3196_v38 = vld [vmem:[%s6266_s0 + $0x458] sm:$0xff] }
  0x6d   :  { %3826 = vmatprep.mubr.msk.f32.mxu0 %vm88_vm0, %v68_v40  ;;  %3942 = vmatprep.mubr.msk.f32.mxu1 %vm88_vm0, %v3100_v41  ;;  %v3325_v39 = vld [vmem:[%s6266_s0 + $0x658] sm:$0xff]  ;;  %v3197_v40 = vld [vmem:[%s6266_s0 + $0x460] sm:$0xff] }
  0x6e   :  { %v3326_v41 = vld [vmem:[%s6266_s0 + $0x660] sm:$0xff] }
  0x70   :  { %3827 = vmatmul.mubr.msk.f32.gmra.mrb[44].mxu0 %vm88_vm0, %v69_v42  ;;  %3943 = vmatmul.mubr.msk.f32.gmra.mrb[44].mxu1 %vm88_vm0, %v3101_v43  ;;  %v3198_v42 = vld [vmem:[%s6266_s0 + $0x468] sm:$0xff] }
  0x71   :  { %3829 = vmatprep.mubr.msk.f32.mxu0 %vm88_vm0, %v70_v44  ;;  %3945 = vmatprep.mubr.msk.f32.mxu1 %vm88_vm0, %v3102_v45  ;;  %v3327_v43 = vld [vmem:[%s6266_s0 + $0x668] sm:$0xff]  ;;  %v3199_v44 = vld [vmem:[%s6266_s0 + $0x470] sm:$0xff] }
  0x72   :  { %v3328_v45 = vld [vmem:[%s6266_s0 + $0x670] sm:$0xff] }
  0x74   :  { %3830 = vmatmul.mubr.msk.f32.gmra.mrb[46].mxu0 %vm88_vm0, %v71_v46  ;;  %3946 = vmatmul.mubr.msk.f32.gmra.mrb[46].mxu1 %vm88_vm0, %v3103_v47  ;;  %v3200_v46 = vld [vmem:[%s6266_s0 + $0x478] sm:$0xff] }
  0x75   :  { %3832 = vmatprep.mubr.msk.f32.mxu0 %vm88_vm0, %v72_v48  ;;  %3948 = vmatprep.mubr.msk.f32.mxu1 %vm88_vm0, %v3104_v49  ;;  %v3329_v47 = vld [vmem:[%s6266_s0 + $0x678] sm:$0xff]  ;;  %v3201_v48 = vld [vmem:[%s6266_s0 + $0x480] sm:$0xff] }
  0x76   :  { %v3330_v49 = vld [vmem:[%s6266_s0 + $0x680] sm:$0xff] }
  0x78   :  { %3833 = vmatmul.mubr.msk.f32.gmra.mrb[48].mxu0 %vm88_vm0, %v73_v50  ;;  %3949 = vmatmul.mubr.msk.f32.gmra.mrb[48].mxu1 %vm88_vm0, %v3105_v51  ;;  %v3202_v50 = vld [vmem:[%s6266_s0 + $0x488] sm:$0xff] }
  0x79   :  { %3835 = vmatprep.mubr.msk.f32.mxu0 %vm88_vm0, %v74_v52  ;;  %3951 = vmatprep.mubr.msk.f32.mxu1 %vm88_vm0, %v3106_v53  ;;  %v3331_v51 = vld [vmem:[%s6266_s0 + $0x688] sm:$0xff]  ;;  %v3203_v52 = vld [vmem:[%s6266_s0 + $0x490] sm:$0xff] }
  0x7a   :  { %v3332_v53 = vld [vmem:[%s6266_s0 + $0x690] sm:$0xff] }
  0x7c   :  { %3836 = vmatmul.mubr.msk.f32.gmra.mrb[50].mxu0 %vm88_vm0, %v75_v54  ;;  %3952 = vmatmul.mubr.msk.f32.gmra.mrb[50].mxu1 %vm88_vm0, %v3107_v55  ;;  %v3204_v54 = vld [vmem:[%s6266_s0 + $0x498] sm:$0xff] }
  0x7d   :  { %3838 = vmatprep.mubr.msk.f32.mxu0 %vm88_vm0, %v76_v56  ;;  %3954 = vmatprep.mubr.msk.f32.mxu1 %vm88_vm0, %v3108_v57  ;;  %v3333_v55 = vld [vmem:[%s6266_s0 + $0x698] sm:$0xff]  ;;  %v3205_v56 = vld [vmem:[%s6266_s0 + $0x4a0] sm:$0xff] }
  0x7e   :  { %v3334_v57 = vld [vmem:[%s6266_s0 + $0x6a0] sm:$0xff] }
  0x80   :  { %3839 = vmatmul.mubr.msk.f32.gmra.mrb[52].mxu0 %vm88_vm0, %v77_v58  ;;  %3955 = vmatmul.mubr.msk.f32.gmra.mrb[52].mxu1 %vm88_vm0, %v3109_v59  ;;  %v3206_v58 = vld [vmem:[%s6266_s0 + $0x4a8] sm:$0xff] }
  0x81   :  { %3841 = vmatprep.mubr.msk.f32.mxu0 %vm88_vm0, %v78_v60  ;;  %3957 = vmatprep.mubr.msk.f32.mxu1 %vm88_vm0, %v3110_v61  ;;  %v3335_v59 = vld [vmem:[%s6266_s0 + $0x6a8] sm:$0xff]  ;;  %v3207_v60 = vld [vmem:[%s6266_s0 + $0x4b0] sm:$0xff] }
  0x82   :  { %v3336_v61 = vld [vmem:[%s6266_s0 + $0x6b0] sm:$0xff] }
  0x84   :  { %3842 = vmatmul.mubr.msk.f32.gmra.mrb[54].mxu0 %vm88_vm0, %v79_v62  ;;  %3958 = vmatmul.mubr.msk.f32.gmra.mrb[54].mxu1 %vm88_vm0, %v3111_v63  ;;  %v3208_v62 = vld [vmem:[%s6266_s0 + $0x4b8] sm:$0xff] }
  0x85   :  { %3844 = vmatprep.mubr.msk.f32.mxu0 %vm88_vm0, %v80_v0  ;;  %3960 = vmatprep.mubr.msk.f32.mxu1 %vm88_vm0, %v3112_v1  ;;  %v3337_v63 = vld [vmem:[%s6266_s0 + $0x6b8] sm:$0xff]  ;;  %v3209_v0 = vld [vmem:[%s6266_s0 + $0x4c0] sm:$0xff] }
  0x86   :  { %v3338_v1 = vld [vmem:[%s6266_s0 + $0x6c0] sm:$0xff] }
  0x88   :  { %3845 = vmatmul.mubr.msk.f32.gmra.mrb[56].mxu0 %vm88_vm0, %v81_v2  ;;  %3961 = vmatmul.mubr.msk.f32.gmra.mrb[56].mxu1 %vm88_vm0, %v3113_v3  ;;  %v3210_v2 = vld [vmem:[%s6266_s0 + $0x4c8] sm:$0xff] }
  0x89   :  { %3847 = vmatprep.mubr.msk.f32.mxu0 %vm88_vm0, %v82_v4  ;;  %3963 = vmatprep.mubr.msk.f32.mxu1 %vm88_vm0, %v3114_v5  ;;  %v3339_v3 = vld [vmem:[%s6266_s0 + $0x6c8] sm:$0xff]  ;;  %v3211_v4 = vld [vmem:[%s6266_s0 + $0x4d0] sm:$0xff] }
  0x8a   :  { %v3340_v5 = vld [vmem:[%s6266_s0 + $0x6d0] sm:$0xff] }
  0x8c   :  { %3848 = vmatmul.mubr.msk.f32.gmra.mrb[58].mxu0 %vm88_vm0, %v83_v6  ;;  %3964 = vmatmul.mubr.msk.f32.gmra.mrb[58].mxu1 %vm88_vm0, %v3115_v7  ;;  %v3212_v6 = vld [vmem:[%s6266_s0 + $0x4d8] sm:$0xff] }
  0x8d   :  { %3850 = vmatprep.mubr.msk.f32.mxu0 %vm88_vm0, %v84_v8  ;;  %3966 = vmatprep.mubr.msk.f32.mxu1 %vm88_vm0, %v3116_v9  ;;  %v3341_v7 = vld [vmem:[%s6266_s0 + $0x6d8] sm:$0xff]  ;;  %v3213_v8 = vld [vmem:[%s6266_s0 + $0x4e0] sm:$0xff] }
  0x8e   :  { %v3342_v9 = vld [vmem:[%s6266_s0 + $0x6e0] sm:$0xff] }
  0x90   :  { %3851 = vmatmul.mubr.msk.f32.gmra.mrb[60].mxu0 %vm88_vm0, %v85_v10  ;;  %3967 = vmatmul.mubr.msk.f32.gmra.mrb[60].mxu1 %vm88_vm0, %v3117_v11  ;;  %v3214_v10 = vld [vmem:[%s6266_s0 + $0x4e8] sm:$0xff] }
  0x91   :  { %3853 = vmatprep.mubr.msk.f32.mxu0 %vm88_vm0, %v86_v12  ;;  %3969 = vmatprep.mubr.msk.f32.mxu1 %vm88_vm0, %v3118_v13  ;;  %v3343_v11 = vld [vmem:[%s6266_s0 + $0x6e8] sm:$0xff]  ;;  %v3215_v12 = vld [vmem:[%s6266_s0 + $0x4f0] sm:$0xff] }
  0x92   :  { %v3344_v13 = vld [vmem:[%s6266_s0 + $0x6f0] sm:$0xff] }
  0x94   :  { %3854 = vmatmul.mubr.msk.f32.gmra.mrb[62].mxu0 %vm88_vm0, %v87_v14  ;;  %3970 = vmatmul.mubr.msk.f32.gmra.mrb[62].mxu1 %vm88_vm0, %v3119_v15  ;;  %v3216_v14 = vld [vmem:[%s6266_s0 + $0x4f8] sm:$0xff] }
  0x95   :  { %3992 = vmatprep.mubr.msk.f32.mxu0 %vm88_vm0, %v3185_v16  ;;  %4108 = vmatprep.mubr.msk.f32.mxu1 %vm88_vm0, %v3314_v17  ;;  %v3345_v15 = vld [vmem:[%s6266_s0 + $0x6f8] sm:$0xff]  ;;  %v3217_v16 = vld [vmem:[%s6266_s0 + $0x500] sm:$0xff] }
  0x96   :  { %v3346_v17 = vld [vmem:[%s6266_s0 + $0x700] sm:$0xff] }
  0x98   :  { %3993 = vmatmul.mubr.msk.f32.vlgmr.msra.gmra.mrb[64].mxu0 %vm88_vm0, %v3186_v18  ;;  %4109 = vmatmul.mubr.msk.f32.vlgmr.msra.gmra.mrb[64].mxu1 %vm88_vm0, %v3315_v19  ;;  %v3218_v18 = vld [vmem:[%s6266_s0 + $0x508] sm:$0xff] }
  0x99   :  { %3995 = vmatprep.mubr.msk.f32.mxu0 %vm88_vm0, %v3187_v20  ;;  %4111 = vmatprep.mubr.msk.f32.mxu1 %vm88_vm0, %v3316_v21  ;;  %v3347_v19 = vld [vmem:[%s6266_s0 + $0x708] sm:$0xff]  ;;  %v3219_v20 = vld [vmem:[%s6266_s0 + $0x510] sm:$0xff] }
  0x9a   :  { %v3348_v21 = vld [vmem:[%s6266_s0 + $0x710] sm:$0xff] }
  0x9c   :  { %3996 = vmatmul.mubr.msk.f32.gmra.mrb[66].mxu0 %vm88_vm0, %v3188_v22  ;;  %4112 = vmatmul.mubr.msk.f32.gmra.mrb[66].mxu1 %vm88_vm0, %v3317_v23  ;;  %v3220_v22 = vld [vmem:[%s6266_s0 + $0x518] sm:$0xff] }
  0x9d   :  { %3998 = vmatprep.mubr.msk.f32.mxu0 %vm88_vm0, %v3189_v24  ;;  %4114 = vmatprep.mubr.msk.f32.mxu1 %vm88_vm0, %v3318_v25  ;;  %v3349_v23 = vld [vmem:[%s6266_s0 + $0x718] sm:$0xff]  ;;  %v3221_v24 = vld [vmem:[%s6266_s0 + $0x520] sm:$0xff] }
  0x9e   :  { %v3350_v25 = vld [vmem:[%s6266_s0 + $0x720] sm:$0xff] }
  0xa0   :  { %3999 = vmatmul.mubr.msk.f32.gmra.mrb[68].mxu0 %vm88_vm0, %v3190_v26  ;;  %4115 = vmatmul.mubr.msk.f32.gmra.mrb[68].mxu1 %vm88_vm0, %v3319_v27  ;;  %v3222_v26 = vld [vmem:[%s6266_s0 + $0x528] sm:$0xff] }
  0xa1   :  { %4001 = vmatprep.mubr.msk.f32.mxu0 %vm88_vm0, %v3191_v28  ;;  %4117 = vmatprep.mubr.msk.f32.mxu1 %vm88_vm0, %v3320_v29  ;;  %v3351_v27 = vld [vmem:[%s6266_s0 + $0x728] sm:$0xff]  ;;  %v3223_v28 = vld [vmem:[%s6266_s0 + $0x530] sm:$0xff] }
  0xa2   :  { %v3352_v29 = vld [vmem:[%s6266_s0 + $0x730] sm:$0xff] }
  0xa4   :  { %4002 = vmatmul.mubr.msk.f32.gmra.mrb[70].mxu0 %vm88_vm0, %v3192_v30  ;;  %4118 = vmatmul.mubr.msk.f32.gmra.mrb[70].mxu1 %vm88_vm0, %v3321_v31  ;;  %v3224_v30 = vld [vmem:[%s6266_s0 + $0x538] sm:$0xff] }
  0xa5   :  { %4004 = vmatprep.mubr.msk.f32.mxu0 %vm88_vm0, %v3193_v32  ;;  %4120 = vmatprep.mubr.msk.f32.mxu1 %vm88_vm0, %v3322_v33  ;;  %v3353_v31 = vld [vmem:[%s6266_s0 + $0x738] sm:$0xff]  ;;  %v3225_v32 = vld [vmem:[%s6266_s0 + $0x540] sm:$0xff] }
  0xa6   :  { %v3354_v33 = vld [vmem:[%s6266_s0 + $0x740] sm:$0xff] }
  0xa8   :  { %4005 = vmatmul.mubr.msk.f32.gmra.mrb[72].mxu0 %vm88_vm0, %v3194_v34  ;;  %4121 = vmatmul.mubr.msk.f32.gmra.mrb[72].mxu1 %vm88_vm0, %v3323_v35  ;;  %v3226_v34 = vld [vmem:[%s6266_s0 + $0x548] sm:$0xff] }
  0xa9   :  { %4007 = vmatprep.mubr.msk.f32.mxu0 %vm88_vm0, %v3195_v36  ;;  %4123 = vmatprep.mubr.msk.f32.mxu1 %vm88_vm0, %v3324_v37  ;;  %v3355_v35 = vld [vmem:[%s6266_s0 + $0x748] sm:$0xff]  ;;  %v3227_v36 = vld [vmem:[%s6266_s0 + $0x550] sm:$0xff] }
  0xaa   :  { %v3356_v37 = vld [vmem:[%s6266_s0 + $0x750] sm:$0xff] }
  0xac   :  { %4008 = vmatmul.mubr.msk.f32.gmra.mrb[74].mxu0 %vm88_vm0, %v3196_v38  ;;  %4124 = vmatmul.mubr.msk.f32.gmra.mrb[74].mxu1 %vm88_vm0, %v3325_v39  ;;  %v3228_v38 = vld [vmem:[%s6266_s0 + $0x558] sm:$0xff] }
  0xad   :  { %4010 = vmatprep.mubr.msk.f32.mxu0 %vm88_vm0, %v3197_v40  ;;  %4126 = vmatprep.mubr.msk.f32.mxu1 %vm88_vm0, %v3326_v41  ;;  %v3357_v39 = vld [vmem:[%s6266_s0 + $0x758] sm:$0xff]  ;;  %v3229_v40 = vld [vmem:[%s6266_s0 + $0x560] sm:$0xff] }
  0xae   :  { %v3358_v41 = vld [vmem:[%s6266_s0 + $0x760] sm:$0xff] }
  0xb0   :  { %4011 = vmatmul.mubr.msk.f32.gmra.mrb[76].mxu0 %vm88_vm0, %v3198_v42  ;;  %4127 = vmatmul.mubr.msk.f32.gmra.mrb[76].mxu1 %vm88_vm0, %v3327_v43 }
  0xb1   :  { %4013 = vmatprep.mubr.msk.f32.mxu0 %vm88_vm0, %v3199_v44  ;;  %4129 = vmatprep.mubr.msk.f32.mxu1 %vm88_vm0, %v3328_v45 }
  0xb4   :  { %4014 = vmatmul.mubr.msk.f32.gmra.mrb[78].mxu0 %vm88_vm0, %v3200_v46  ;;  %4130 = vmatmul.mubr.msk.f32.gmra.mrb[78].mxu1 %vm88_vm0, %v3329_v47 }
  0xb5   :  { %4016 = vmatprep.mubr.msk.f32.mxu0 %vm88_vm0, %v3201_v48  ;;  %4132 = vmatprep.mubr.msk.f32.mxu1 %vm88_vm0, %v3330_v49  ;;  %v3230_v48 = vld [vmem:[%s6266_s0 + $0x568] sm:$0xff] }
  0xb6   :  { %v3359_v49 = vld [vmem:[%s6266_s0 + $0x768] sm:$0xff] }
  0xb8   :  { %4017 = vmatmul.mubr.msk.f32.gmra.mrb[80].mxu0 %vm88_vm0, %v3202_v50  ;;  %4133 = vmatmul.mubr.msk.f32.gmra.mrb[80].mxu1 %vm88_vm0, %v3331_v51  ;;  %v3231_v50 = vld [vmem:[%s6266_s0 + $0x570] sm:$0xff] }
  0xb9   :  { %4019 = vmatprep.mubr.msk.f32.mxu0 %vm88_vm0, %v3203_v52  ;;  %4135 = vmatprep.mubr.msk.f32.mxu1 %vm88_vm0, %v3332_v53  ;;  %v3360_v51 = vld [vmem:[%s6266_s0 + $0x770] sm:$0xff] }
  0xbc   :  { %4020 = vmatmul.mubr.msk.f32.gmra.mrb[82].mxu0 %vm88_vm0, %v3204_v54  ;;  %4136 = vmatmul.mubr.msk.f32.gmra.mrb[82].mxu1 %vm88_vm0, %v3333_v55 }
  0xbd   :  { %4022 = vmatprep.mubr.msk.f32.mxu0 %vm88_vm0, %v3205_v56  ;;  %4138 = vmatprep.mubr.msk.f32.mxu1 %vm88_vm0, %v3334_v57 }
  0xc0   :  { %4023 = vmatmul.mubr.msk.f32.gmra.mrb[84].mxu0 %vm88_vm0, %v3206_v58  ;;  %4139 = vmatmul.mubr.msk.f32.gmra.mrb[84].mxu1 %vm88_vm0, %v3335_v59  ;;  %v3232_v58 = vld [vmem:[%s6266_s0 + $0x578] sm:$0xff] }
  0xc1   :  { %4025 = vmatprep.mubr.msk.f32.mxu0 %vm88_vm0, %v3207_v60  ;;  %4141 = vmatprep.mubr.msk.f32.mxu1 %vm88_vm0, %v3336_v61  ;;  %v3361_v59 = vld [vmem:[%s6266_s0 + $0x778] sm:$0xff]  ;;  %v3233_v60 = vld [vmem:[%s6266_s0 + $0x580] sm:$0xff] }
  0xc2   :  { %v3362_v61 = vld [vmem:[%s6266_s0 + $0x780] sm:$0xff] }
  0xc4   :  { %4026 = vmatmul.mubr.msk.f32.gmra.mrb[86].mxu0 %vm88_vm0, %v3208_v62  ;;  %4142 = vmatmul.mubr.msk.f32.gmra.mrb[86].mxu1 %vm88_vm0, %v3337_v63 }
  0xc5   :  { %4028 = vmatprep.mubr.msk.f32.mxu0 %vm88_vm0, %v3209_v0  ;;  %4144 = vmatprep.mubr.msk.f32.mxu1 %vm88_vm0, %v3338_v1 }
  0xc8   :  { %4029 = vmatmul.mubr.msk.f32.gmra.mrb[88].mxu0 %vm88_vm0, %v3210_v2  ;;  %4145 = vmatmul.mubr.msk.f32.gmra.mrb[88].mxu1 %vm88_vm0, %v3339_v3 }
  0xc9   :  { %4031 = vmatprep.mubr.msk.f32.mxu0 %vm88_vm0, %v3211_v4  ;;  %4147 = vmatprep.mubr.msk.f32.mxu1 %vm88_vm0, %v3340_v5  ;;  %v3234_v4 = vld [vmem:[%s6266_s0 + $0x588] sm:$0xff] }
  0xca   :  { %v3363_v5 = vld [vmem:[%s6266_s0 + $0x788] sm:$0xff] }
  0xcc   :  { %4032 = vmatmul.mubr.msk.f32.gmra.mrb[90].mxu0 %vm88_vm0, %v3212_v6  ;;  %4148 = vmatmul.mubr.msk.f32.gmra.mrb[90].mxu1 %vm88_vm0, %v3341_v7  ;;  %v3235_v6 = vld [vmem:[%s6266_s0 + $0x590] sm:$0xff] }
  0xcd   :  { %4034 = vmatprep.mubr.msk.f32.mxu0 %vm88_vm0, %v3213_v8  ;;  %4150 = vmatprep.mubr.msk.f32.mxu1 %vm88_vm0, %v3342_v9  ;;  %v3364_v7 = vld [vmem:[%s6266_s0 + $0x790] sm:$0xff] }
  0xd0   :  { %4035 = vmatmul.mubr.msk.f32.gmra.mrb[92].mxu0 %vm88_vm0, %v3214_v10  ;;  %4151 = vmatmul.mubr.msk.f32.gmra.mrb[92].mxu1 %vm88_vm0, %v3343_v11 }
  0xd1   :  { %4037 = vmatprep.mubr.msk.f32.mxu0 %vm88_vm0, %v3215_v12  ;;  %4153 = vmatprep.mubr.msk.f32.mxu1 %vm88_vm0, %v3344_v13 }
  0xd4   :  { %4038 = vmatmul.mubr.msk.f32.gmra.mrb[94].mxu0 %vm88_vm0, %v3216_v14  ;;  %4154 = vmatmul.mubr.msk.f32.gmra.mrb[94].mxu1 %vm88_vm0, %v3345_v15  ;;  %v3236_v14 = vld [vmem:[%s6266_s0 + $0x598] sm:$0xff] }
  0xd5   :  { %4040 = vmatprep.mubr.msk.f32.mxu0 %vm88_vm0, %v3217_v16  ;;  %4156 = vmatprep.mubr.msk.f32.mxu1 %vm88_vm0, %v3346_v17  ;;  %v3365_v15 = vld [vmem:[%s6266_s0 + $0x798] sm:$0xff]  ;;  %v3237_v16 = vld [vmem:[%s6266_s0 + $0x5a0] sm:$0xff] }
  0xd6   :  { %v3366_v17 = vld [vmem:[%s6266_s0 + $0x7a0] sm:$0xff] }
  0xd8   :  { %4041 = vmatmul.mubr.msk.f32.gmra.mrb[96].mxu0 %vm88_vm0, %v3218_v18  ;;  %4157 = vmatmul.mubr.msk.f32.gmra.mrb[96].mxu1 %vm88_vm0, %v3347_v19 }
  0xd9   :  { %4043 = vmatprep.mubr.msk.f32.mxu0 %vm88_vm0, %v3219_v20  ;;  %4159 = vmatprep.mubr.msk.f32.mxu1 %vm88_vm0, %v3348_v21 }
  0xdc   :  { %4044 = vmatmul.mubr.msk.f32.gmra.mrb[98].mxu0 %vm88_vm0, %v3220_v22  ;;  %4160 = vmatmul.mubr.msk.f32.gmra.mrb[98].mxu1 %vm88_vm0, %v3349_v23 }
  0xdd   :  { %4046 = vmatprep.mubr.msk.f32.mxu0 %vm88_vm0, %v3221_v24  ;;  %4162 = vmatprep.mubr.msk.f32.mxu1 %vm88_vm0, %v3350_v25  ;;  %v3238_v24 = vld [vmem:[%s6266_s0 + $0x5a8] sm:$0xff] }
  0xde   :  { %v3367_v25 = vld [vmem:[%s6266_s0 + $0x7a8] sm:$0xff] }
  0xe0   :  { %4047 = vmatmul.mubr.msk.f32.gmra.mrb[100].mxu0 %vm88_vm0, %v3222_v26  ;;  %4163 = vmatmul.mubr.msk.f32.gmra.mrb[100].mxu1 %vm88_vm0, %v3351_v27  ;;  %v3239_v26 = vld [vmem:[%s6266_s0 + $0x5b0] sm:$0xff] }
  0xe1   :  { %4049 = vmatprep.mubr.msk.f32.mxu0 %vm88_vm0, %v3223_v28  ;;  %4165 = vmatprep.mubr.msk.f32.mxu1 %vm88_vm0, %v3352_v29  ;;  %v3368_v27 = vld [vmem:[%s6266_s0 + $0x7b0] sm:$0xff] }
  0xe4   :  { %4050 = vmatmul.mubr.msk.f32.gmra.mrb[102].mxu0 %vm88_vm0, %v3224_v30  ;;  %4166 = vmatmul.mubr.msk.f32.gmra.mrb[102].mxu1 %vm88_vm0, %v3353_v31 }
  0xe5   :  { %4052 = vmatprep.mubr.msk.f32.mxu0 %vm88_vm0, %v3225_v32  ;;  %4168 = vmatprep.mubr.msk.f32.mxu1 %vm88_vm0, %v3354_v33 }
  0xe8   :  { %4053 = vmatmul.mubr.msk.f32.gmra.mrb[104].mxu0 %vm88_vm0, %v3226_v34  ;;  %4169 = vmatmul.mubr.msk.f32.gmra.mrb[104].mxu1 %vm88_vm0, %v3355_v35  ;;  %v3240_v34 = vld [vmem:[%s6266_s0 + $0x5b8] sm:$0xff] }
  0xe9   :  { %4055 = vmatprep.mubr.msk.f32.mxu0 %vm88_vm0, %v3227_v36  ;;  %4171 = vmatprep.mubr.msk.f32.mxu1 %vm88_vm0, %v3356_v37  ;;  %v3369_v35 = vld [vmem:[%s6266_s0 + $0x7b8] sm:$0xff]  ;;  %v3241_v36 = vld [vmem:[%s6266_s0 + $0x5c0] sm:$0xff] }
  0xea   :  { %v3370_v37 = vld [vmem:[%s6266_s0 + $0x7c0] sm:$0xff] }
  0xeb   :  { %v5272_v42 = vpop.f32.mrb[0].mxu0  ;;  %v5274_v43 = vpop.f32.mrb[0].mxu1 }
  0xec   :  { %v5278_v45 = vpop.f32.mrb[1].mxu0  ;;  %v5280_v46 = vpop.f32.mrb[1].mxu1  ;;  %4056 = vmatmul.mubr.msk.f32.gmra.mrb[106].mxu0 %vm88_vm0, %v3228_v38  ;;  %4172 = vmatmul.mubr.msk.f32.gmra.mrb[106].mxu1 %vm88_vm0, %v3357_v39  ;;  %v6435_v33 = vmax.f32 %v5272_v42, %v5274_v43 }
  0xed   :  { %4058 = vmatprep.mubr.msk.f32.mxu0 %vm88_vm0, %v3229_v40  ;;  %4174 = vmatprep.mubr.msk.f32.mxu1 %vm88_vm0, %v3358_v41 }
  0xef   :  { %v5300_v52 = vpop.f32.mrb[2].mxu0  ;;  %v5302_v53 = vpop.f32.mrb[2].mxu1 }
  0xf0   :  { %v5306_v55 = vpop.f32.mrb[3].mxu0  ;;  %v5308_v56 = vpop.f32.mrb[3].mxu1  ;;  %4059 = vmatmul.mubr.msk.f32.gmra.mrb[108].mxu0 %vm88_vm0, %v3230_v48  ;;  %4175 = vmatmul.mubr.msk.f32.gmra.mrb[108].mxu1 %vm88_vm0, %v3359_v49  ;;  %v5815_v49 = vld [vmem:[%s6267_s2] ss:$0 sm:$0xff] }
  0xf1   :  { %4061 = vmatprep.mubr.msk.f32.mxu0 %vm88_vm0, %v3231_v50  ;;  %4177 = vmatprep.mubr.msk.f32.mxu1 %vm88_vm0, %v3360_v51  ;;  %v3242_v50 = vld [vmem:[%s6266_s0 + $0x5c8] sm:$0xff] }
  0xf2   :  { %v3371_v51 = vld [vmem:[%s6266_s0 + $0x7c8] sm:$0xff] }
  0xf3   :  { %v5328_v62 = vpop.f32.mrb[4].mxu0  ;;  %v5330_v63 = vpop.f32.mrb[4].mxu1 }
  0xf4   :  { %v5334_v1 = vpop.f32.mrb[5].mxu0  ;;  %v5336_v2 = vpop.f32.mrb[5].mxu1  ;;  %4062 = vmatmul.mubr.msk.f32.gmra.mrb[110].mxu0 %vm88_vm0, %v3232_v58  ;;  %4178 = vmatmul.mubr.msk.f32.gmra.mrb[110].mxu1 %vm88_vm0, %v3361_v59  ;;  %v3243_v58 = vld [vmem:[%s6266_s0 + $0x5d0] sm:$0xff] }
  0xf5   :  { %4064 = vmatprep.mubr.msk.f32.mxu0 %vm88_vm0, %v3233_v60  ;;  %4180 = vmatprep.mubr.msk.f32.mxu1 %vm88_vm0, %v3362_v61  ;;  %v3372_v59 = vld [vmem:[%s6266_s0 + $0x7d0] sm:$0xff] }
  0xf7   :  { %v5356_v8 = vpop.f32.mrb[6].mxu0  ;;  %v5358_v9 = vpop.f32.mrb[6].mxu1 }
  0xf8   :  { %v5362_v11 = vpop.f32.mrb[7].mxu0  ;;  %v5364_v12 = vpop.f32.mrb[7].mxu1  ;;  %4065 = vmatmul.mubr.msk.f32.gmra.mrb[112].mxu0 %vm88_vm0, %v3234_v4  ;;  %4181 = vmatmul.mubr.msk.f32.gmra.mrb[112].mxu1 %vm88_vm0, %v3363_v5 }
  0xf9   :  { %4067 = vmatprep.mubr.msk.f32.mxu0 %vm88_vm0, %v3235_v6  ;;  %4183 = vmatprep.mubr.msk.f32.mxu1 %vm88_vm0, %v3364_v7 }
  0xfb   :  { %v5384_v18 = vpop.f32.mrb[8].mxu0  ;;  %v5386_v19 = vpop.f32.mrb[8].mxu1 }
  0xfc   :  { %v5390_v21 = vpop.f32.mrb[9].mxu0  ;;  %v5392_v22 = vpop.f32.mrb[9].mxu1  ;;  %4068 = vmatmul.mubr.msk.f32.gmra.mrb[114].mxu0 %vm88_vm0, %v3236_v14  ;;  %4184 = vmatmul.mubr.msk.f32.gmra.mrb[114].mxu1 %vm88_vm0, %v3365_v15  ;;  %v3244_v14 = vld [vmem:[%s6266_s0 + $0x5d8] sm:$0xff] }
  0xfd   :  { %4070 = vmatprep.mubr.msk.f32.mxu0 %vm88_vm0, %v3237_v16  ;;  %4186 = vmatprep.mubr.msk.f32.mxu1 %vm88_vm0, %v3366_v17  ;;  %v3373_v15 = vld [vmem:[%s6266_s0 + $0x7d8] sm:$0xff]  ;;  %v3245_v16 = vld [vmem:[%s6266_s0 + $0x5e0] sm:$0xff] }
  0xfe   :  { %v3374_v17 = vld [vmem:[%s6266_s0 + $0x7e0] sm:$0xff] }
  0xff   :  { %v5412_v28 = vpop.f32.mrb[10].mxu0  ;;  %v5414_v29 = vpop.f32.mrb[10].mxu1 }
 0x100   :  { %v5418_v31 = vpop.f32.mrb[11].mxu0  ;;  %v5420_v32 = vpop.f32.mrb[11].mxu1  ;;  %4071 = vmatmul.mubr.msk.f32.gmra.mrb[116].mxu0 %vm88_vm0, %v3238_v24  ;;  %4187 = vmatmul.mubr.msk.f32.gmra.mrb[116].mxu1 %vm88_vm0, %v3367_v25 }
 0x101   :  { %4073 = vmatprep.mubr.msk.f32.mxu0 %vm88_vm0, %v3239_v26  ;;  %4189 = vmatprep.mubr.msk.f32.mxu1 %vm88_vm0, %v3368_v27 }
 0x103   :  { %v5440_v38 = vpop.f32.mrb[12].mxu0  ;;  %v5442_v39 = vpop.f32.mrb[12].mxu1 }
 0x104   :  { %v5446_v41 = vpop.f32.mrb[13].mxu0  ;;  %v5448_v48 = vpop.f32.mrb[13].mxu1  ;;  %4074 = vmatmul.mubr.msk.f32.gmra.mrb[118].mxu0 %vm88_vm0, %v3240_v34  ;;  %4190 = vmatmul.mubr.msk.f32.gmra.mrb[118].mxu1 %vm88_vm0, %v3369_v35  ;;  %v3248_v35 = vld [vmem:[%s6266_s0 + $0x5f8] sm:$0xff] }
 0x105   :  { %4076 = vmatprep.mubr.msk.f32.mxu0 %vm88_vm0, %v3241_v36  ;;  %4192 = vmatprep.mubr.msk.f32.mxu1 %vm88_vm0, %v3370_v37  ;;  %v3246_v36 = vld [vmem:[%s6266_s0 + $0x5e8] sm:$0xff] }
 0x106   :  { %v3375_v37 = vld [vmem:[%s6266_s0 + $0x7e8] sm:$0xff] }
 0x107   :  { %v5468_v60 = vpop.f32.mrb[14].mxu0  ;;  %v5470_v61 = vpop.f32.mrb[14].mxu1 }
 0x108   :  { %v5474_v5 = vpop.f32.mrb[15].mxu0  ;;  %v5476_v6 = vpop.f32.mrb[15].mxu1  ;;  %4077 = vmatmul.mubr.msk.f32.gmra.mrb[120].mxu0 %vm88_vm0, %v3242_v50  ;;  %4193 = vmatmul.mubr.msk.f32.gmra.mrb[120].mxu1 %vm88_vm0, %v3371_v51  ;;  %v3247_v50 = vld [vmem:[%s6266_s0 + $0x5f0] sm:$0xff] }
 0x109   :  { %4079 = vmatprep.mubr.msk.f32.mxu0 %vm88_vm0, %v3243_v58  ;;  %4195 = vmatprep.mubr.msk.f32.mxu1 %vm88_vm0, %v3372_v59  ;;  %v3376_v51 = vld [vmem:[%s6266_s0 + $0x7f0] sm:$0xff] }
 0x10b   :  { %v5496_v24 = vpop.f32.mrb[16].mxu0  ;;  %v5498_v25 = vpop.f32.mrb[16].mxu1 }
 0x10c   :  { %v5502_v27 = vpop.f32.mrb[17].mxu0  ;;  %v5504_v34 = vpop.f32.mrb[17].mxu1  ;;  %4080 = vmatmul.mubr.msk.f32.gmra.mrb[122].mxu0 %vm88_vm0, %v3244_v14  ;;  %4196 = vmatmul.mubr.msk.f32.gmra.mrb[122].mxu1 %vm88_vm0, %v3373_v15  ;;  %v3377_v14 = vld [vmem:[%s6266_s0 + $0x7f8] sm:$0xff] }
 0x10d   :  { %4082 = vmatprep.mubr.msk.f32.mxu0 %vm88_vm0, %v3245_v16  ;;  %4198 = vmatprep.mubr.msk.f32.mxu1 %vm88_vm0, %v3374_v17 }
 0x10f   :  { %v5524_v58 = vpop.f32.mrb[18].mxu0  ;;  %v5526_v59 = vpop.f32.mrb[18].mxu1 }
 0x110   :  { %v5530_v15 = vpop.f32.mrb[19].mxu0  ;;  %v5532_v16 = vpop.f32.mrb[19].mxu1  ;;  %4083 = vmatmul.mubr.msk.f32.gmra.mrb[124].mxu0 %vm88_vm0, %v3246_v36  ;;  %4199 = vmatmul.mubr.msk.f32.gmra.mrb[124].mxu1 %vm88_vm0, %v3375_v37 }
 0x111   :  { %4085 = vmatprep.mubr.msk.f32.mxu0 %vm88_vm0, %v3247_v50  ;;  %4201 = vmatprep.mubr.msk.f32.mxu1 %vm88_vm0, %v3376_v51 }
 0x113   :  { %v5546_v26 = vpop.f32.mrb[20].mxu0  ;;  %v5548_v36 = vpop.f32.mrb[20].mxu1 }
 0x114   :  { %v5552_v17 = vpop.f32.mrb[21].mxu0  ;;  %v5554_v50 = vpop.f32.mrb[21].mxu1  ;;  %4086 = vmatmul.mubr.msk.f32.gmra.mrb[126].mxu0 %vm88_vm0, %v3248_v35  ;;  %4202 = vmatmul.mubr.msk.f32.gmra.mrb[126].mxu1 %vm88_vm0, %v3377_v14 }
 0x117   :  { %v5560_v7 = vpop.f32.mrb[22].mxu0  ;;  %v5562_v4 = vpop.f32.mrb[22].mxu1 }
 0x118   :  { %v5566_v40 = vpop.f32.mrb[23].mxu0  ;;  %v5568_v37 = vpop.f32.mrb[23].mxu1 }
 0x119   :  { %6353 = vst [vmem:[#allocation2_spill] sm:$0xff] %v5566_v40  ;;  %6354 = vst [vmem:[#allocation3_spill] sm:$0xff] %v5568_v37 }
 0x11b   :  { %v5572_v35 = vpop.f32.mrb[24].mxu0  ;;  %v5574_v14 = vpop.f32.mrb[24].mxu1 }
 0x11c   :  { %6355 = vst [vmem:[#allocation4_spill] sm:$0xff] %v5572_v35  ;;  %6356 = vst [vmem:[#allocation5_spill] sm:$0xff] %v5574_v14  ;;  %v5578_v30 = vpop.f32.mrb[25].mxu0  ;;  %v5580_v23 = vpop.f32.mrb[25].mxu1 }
 0x11d   :  { %6357 = vst [vmem:[#allocation6_spill] sm:$0xff] %v5578_v30  ;;  %6358 = vst [vmem:[#allocation7_spill] sm:$0xff] %v5580_v23 }
 0x11f   :  { %v5584_v20 = vpop.f32.mrb[26].mxu0  ;;  %v5586_v13 = vpop.f32.mrb[26].mxu1 }
 0x120   :  { %6359 = vst [vmem:[#allocation8_spill] sm:$0xff] %v5584_v20  ;;  %6360 = vst [vmem:[#allocation9_spill] sm:$0xff] %v5586_v13  ;;  %v5590_v10 = vpop.f32.mrb[27].mxu0  ;;  %v5592_v3 = vpop.f32.mrb[27].mxu1 }
 0x121   :  { %6361 = vst [vmem:[#allocation10_spill] sm:$0xff] %v5590_v10  ;;  %6362 = vst [vmem:[#allocation11_spill] sm:$0xff] %v5592_v3 }
 0x123   :  { %v5596_v0 = vpop.f32.mrb[28].mxu0  ;;  %v5598_v57 = vpop.f32.mrb[28].mxu1 }
 0x124   :  { %6363 = vst [vmem:[#allocation12_spill] sm:$0xff] %v5596_v0  ;;  %6364 = vst [vmem:[#allocation13_spill] sm:$0xff] %v5598_v57  ;;  %v5602_v54 = vpop.f32.mrb[29].mxu0  ;;  %v5604_v47 = vpop.f32.mrb[29].mxu1 }
 0x125   :  { %6365 = vst [vmem:[#allocation14_spill] sm:$0xff] %v5602_v54  ;;  %6366 = vst [vmem:[#allocation15_spill] sm:$0xff] %v5604_v47 }
 0x127   :  { %v5608_v44 = vpop.f32.mrb[30].mxu0  ;;  %v5610_v13 = vpop.f32.mrb[30].mxu1 }
 0x128   :  { %6367 = vst [vmem:[#allocation16_spill] sm:$0xff] %v5608_v44  ;;  %6368 = vst [vmem:[#allocation17_spill] sm:$0xff] %v5610_v13  ;;  %v5614_v3 = vpop.f32.mrb[31].mxu0  ;;  %v5616_v10 = vpop.f32.mrb[31].mxu1 }
 0x129   :  { %6369 = vst [vmem:[#allocation18_spill] sm:$0xff] %v5614_v3  ;;  %6370 = vst [vmem:[#allocation19_spill] sm:$0xff] %v5616_v10 }
 0x12b   :  { %v5620_v57 = vpop.f32.mrb[32].mxu0  ;;  %v5622_v0 = vpop.f32.mrb[32].mxu1 }
 0x12c   :  { %6371 = vst [vmem:[#allocation20_spill] sm:$0xff] %v5620_v57  ;;  %6372 = vst [vmem:[#allocation21_spill] sm:$0xff] %v5622_v0  ;;  %v5626_v47 = vpop.f32.mrb[33].mxu0  ;;  %v5628_v54 = vpop.f32.mrb[33].mxu1 }
 0x12d   :  { %6373 = vst [vmem:[#allocation22_spill] sm:$0xff] %v5626_v47  ;;  %6374 = vst [vmem:[#allocation23_spill] sm:$0xff] %v5628_v54 }
 0x12f   :  { %v5632_v13 = vpop.f32.mrb[34].mxu0  ;;  %v5634_v44 = vpop.f32.mrb[34].mxu1 }
 0x130   :  { %6375 = vst [vmem:[#allocation24_spill] sm:$0xff] %v5632_v13  ;;  %6376 = vst [vmem:[#allocation25_spill] sm:$0xff] %v5634_v44  ;;  %v5638_v10 = vpop.f32.mrb[35].mxu0  ;;  %v5640_v3 = vpop.f32.mrb[35].mxu1 }
 0x131   :  { %6377 = vst [vmem:[#allocation26_spill] sm:$0xff] %v5638_v10  ;;  %6378 = vst [vmem:[#allocation27_spill] sm:$0xff] %v5640_v3 }
 0x133   :  { %v5644_v0 = vpop.f32.mrb[36].mxu0  ;;  %v5646_v57 = vpop.f32.mrb[36].mxu1 }
 0x134   :  { %6379 = vst [vmem:[#allocation28_spill] sm:$0xff] %v5644_v0  ;;  %6380 = vst [vmem:[#allocation29_spill] sm:$0xff] %v5646_v57  ;;  %v5650_v54 = vpop.f32.mrb[37].mxu0  ;;  %v5652_v47 = vpop.f32.mrb[37].mxu1 }
 0x135   :  { %6381 = vst [vmem:[#allocation30_spill] sm:$0xff] %v5650_v54  ;;  %6382 = vst [vmem:[#allocation31_spill] sm:$0xff] %v5652_v47 }
 0x137   :  { %v5656_v44 = vpop.f32.mrb[38].mxu0  ;;  %v5658_v13 = vpop.f32.mrb[38].mxu1 }
 0x138   :  { %6383 = vst [vmem:[#allocation32_spill] sm:$0xff] %v5656_v44  ;;  %6384 = vst [vmem:[#allocation33_spill] sm:$0xff] %v5658_v13  ;;  %v5662_v3 = vpop.f32.mrb[39].mxu0  ;;  %v5664_v10 = vpop.f32.mrb[39].mxu1 }
 0x139   :  { %6385 = vst [vmem:[#allocation34_spill] sm:$0xff] %v5662_v3  ;;  %6386 = vst [vmem:[#allocation35_spill] sm:$0xff] %v5664_v10 }
 0x13b   :  { %v5668_v57 = vpop.f32.mrb[40].mxu0  ;;  %v5670_v0 = vpop.f32.mrb[40].mxu1 }
 0x13c   :  { %6387 = vst [vmem:[#allocation36_spill] sm:$0xff] %v5668_v57  ;;  %6388 = vst [vmem:[#allocation37_spill] sm:$0xff] %v5670_v0  ;;  %v5674_v47 = vpop.f32.mrb[41].mxu0  ;;  %v5676_v54 = vpop.f32.mrb[41].mxu1 }
 0x13d   :  { %6389 = vst [vmem:[#allocation38_spill] sm:$0xff] %v5674_v47  ;;  %6390 = vst [vmem:[#allocation39_spill] sm:$0xff] %v5676_v54 }
 0x13f   :  { %v5680_v13 = vpop.f32.mrb[42].mxu0  ;;  %v5682_v44 = vpop.f32.mrb[42].mxu1 }
 0x140   :  { %6391 = vst [vmem:[#allocation40_spill] sm:$0xff] %v5680_v13  ;;  %6392 = vst [vmem:[#allocation41_spill] sm:$0xff] %v5682_v44  ;;  %v5686_v10 = vpop.f32.mrb[43].mxu0  ;;  %v5688_v3 = vpop.f32.mrb[43].mxu1 }
 0x141   :  { %6393 = vst [vmem:[#allocation42_spill] sm:$0xff] %v5686_v10  ;;  %6394 = vst [vmem:[#allocation43_spill] sm:$0xff] %v5688_v3 }
 0x143   :  { %v5692_v0 = vpop.f32.mrb[44].mxu0  ;;  %v5694_v57 = vpop.f32.mrb[44].mxu1 }
 0x144   :  { %6395 = vst [vmem:[#allocation44_spill] sm:$0xff] %v5692_v0  ;;  %6396 = vst [vmem:[#allocation45_spill] sm:$0xff] %v5694_v57  ;;  %v5698_v54 = vpop.f32.mrb[45].mxu0  ;;  %v5700_v47 = vpop.f32.mrb[45].mxu1 }
 0x145   :  { %6397 = vst [vmem:[#allocation46_spill] sm:$0xff] %v5698_v54  ;;  %6398 = vst [vmem:[#allocation47_spill] sm:$0xff] %v5700_v47 }
 0x147   :  { %v5704_v44 = vpop.f32.mrb[46].mxu0  ;;  %v5706_v13 = vpop.f32.mrb[46].mxu1 }
 0x148   :  { %6399 = vst [vmem:[#allocation48_spill] sm:$0xff] %v5704_v44  ;;  %6400 = vst [vmem:[#allocation49_spill] sm:$0xff] %v5706_v13  ;;  %v5710_v3 = vpop.f32.mrb[47].mxu0  ;;  %v5712_v10 = vpop.f32.mrb[47].mxu1 }
 0x149   :  { %6401 = vst [vmem:[#allocation50_spill] sm:$0xff] %v5710_v3  ;;  %6402 = vst [vmem:[#allocation51_spill] sm:$0xff] %v5712_v10 }
 0x14b   :  { %v5716_v57 = vpop.f32.mrb[48].mxu0  ;;  %v5718_v0 = vpop.f32.mrb[48].mxu1 }
 0x14c   :  { %6403 = vst [vmem:[#allocation52_spill] sm:$0xff] %v5716_v57  ;;  %6404 = vst [vmem:[#allocation53_spill] sm:$0xff] %v5718_v0  ;;  %v5722_v47 = vpop.f32.mrb[49].mxu0  ;;  %v5724_v54 = vpop.f32.mrb[49].mxu1 }
 0x14d   :  { %6405 = vst [vmem:[#allocation54_spill] sm:$0xff] %v5722_v47  ;;  %6406 = vst [vmem:[#allocation55_spill] sm:$0xff] %v5724_v54 }
 0x14f   :  { %v5728_v13 = vpop.f32.mrb[50].mxu0  ;;  %v5730_v44 = vpop.f32.mrb[50].mxu1 }
 0x150   :  { %6407 = vst [vmem:[#allocation56_spill] sm:$0xff] %v5728_v13  ;;  %6408 = vst [vmem:[#allocation57_spill] sm:$0xff] %v5730_v44  ;;  %v5734_v10 = vpop.f32.mrb[51].mxu0  ;;  %v5736_v3 = vpop.f32.mrb[51].mxu1 }
 0x151   :  { %6409 = vst [vmem:[#allocation58_spill] sm:$0xff] %v5734_v10  ;;  %6410 = vst [vmem:[#allocation59_spill] sm:$0xff] %v5736_v3 }
 0x153   :  { %v5740_v0 = vpop.f32.mrb[52].mxu0  ;;  %v5742_v57 = vpop.f32.mrb[52].mxu1 }
 0x154   :  { %6411 = vst [vmem:[#allocation60_spill] sm:$0xff] %v5740_v0  ;;  %6412 = vst [vmem:[#allocation61_spill] sm:$0xff] %v5742_v57  ;;  %v5746_v54 = vpop.f32.mrb[53].mxu0  ;;  %v5748_v47 = vpop.f32.mrb[53].mxu1 }
 0x155   :  { %6413 = vst [vmem:[#allocation62_spill] sm:$0xff] %v5746_v54  ;;  %6414 = vst [vmem:[#allocation63_spill] sm:$0xff] %v5748_v47 }
 0x157   :  { %v5752_v44 = vpop.f32.mrb[54].mxu0  ;;  %v5754_v13 = vpop.f32.mrb[54].mxu1 }
 0x158   :  { %6415 = vst [vmem:[#allocation64_spill] sm:$0xff] %v5752_v44  ;;  %6416 = vst [vmem:[#allocation65_spill] sm:$0xff] %v5754_v13  ;;  %v5758_v3 = vpop.f32.mrb[55].mxu0  ;;  %v5760_v10 = vpop.f32.mrb[55].mxu1 }
 0x159   :  { %6417 = vst [vmem:[#allocation66_spill] sm:$0xff] %v5758_v3  ;;  %6418 = vst [vmem:[#allocation67_spill] sm:$0xff] %v5760_v10 }
 0x15b   :  { %v5764_v57 = vpop.f32.mrb[56].mxu0  ;;  %v5766_v0 = vpop.f32.mrb[56].mxu1 }
 0x15c   :  { %6419 = vst [vmem:[#allocation68_spill] sm:$0xff] %v5764_v57  ;;  %6420 = vst [vmem:[#allocation69_spill] sm:$0xff] %v5766_v0  ;;  %v5770_v47 = vpop.f32.mrb[57].mxu0  ;;  %v5772_v54 = vpop.f32.mrb[57].mxu1 }
 0x15d   :  { %6421 = vst [vmem:[#allocation70_spill] sm:$0xff] %v5770_v47  ;;  %6422 = vst [vmem:[#allocation71_spill] sm:$0xff] %v5772_v54 }
 0x15f   :  { %v5776_v13 = vpop.f32.mrb[58].mxu0  ;;  %v5778_v44 = vpop.f32.mrb[58].mxu1 }
 0x160   :  { %6423 = vst [vmem:[#allocation72_spill] sm:$0xff] %v5776_v13  ;;  %6424 = vst [vmem:[#allocation73_spill] sm:$0xff] %v5778_v44  ;;  %v5782_v10 = vpop.f32.mrb[59].mxu0  ;;  %v5784_v3 = vpop.f32.mrb[59].mxu1 }
 0x161   :  { %6425 = vst [vmem:[#allocation74_spill] sm:$0xff] %v5782_v10  ;;  %6426 = vst [vmem:[#allocation75_spill] sm:$0xff] %v5784_v3 }
 0x163   :  { %v5788_v0 = vpop.f32.mrb[60].mxu0  ;;  %v5790_v57 = vpop.f32.mrb[60].mxu1 }
 0x164   :  { %6427 = vst [vmem:[#allocation76_spill] sm:$0xff] %v5788_v0  ;;  %6428 = vst [vmem:[#allocation77_spill] sm:$0xff] %v5790_v57  ;;  %v5794_v54 = vpop.f32.mrb[61].mxu0  ;;  %v5796_v47 = vpop.f32.mrb[61].mxu1 }
 0x165   :  { %6429 = vst [vmem:[#allocation78_spill] sm:$0xff] %v5794_v54  ;;  %6430 = vst [vmem:[#allocation79_spill] sm:$0xff] %v5796_v47 }
 0x167   :  { %v5800_v44 = vpop.f32.mrb[62].mxu0  ;;  %v5802_v13 = vpop.f32.mrb[62].mxu1 }
 0x168   :  { %6431 = vst [vmem:[#allocation80_spill] sm:$0xff] %v5800_v44  ;;  %6432 = vst [vmem:[#allocation81_spill] sm:$0xff] %v5802_v13  ;;  %v5806_v3 = vpop.f32.mrb[63].mxu0  ;;  %v5808_v10 = vpop.f32.mrb[63].mxu1  ;;  %v6436_v44 = vmax.f32 %v5278_v45, %v5280_v46  ;;  %v6438_v45 = vmax.f32 %v5306_v55, %v5308_v56  ;;  %v6439_v56 = vmax.f32 %v5328_v62, %v5330_v63 }
 0x169   :  { %6433 = vst [vmem:[#allocation82_spill] sm:$0xff] %v5806_v3  ;;  %6434 = vst [vmem:[#allocation83_spill] sm:$0xff] %v5808_v10 }
 0x16b   :  { %v3994_v57 = vpop.f32.mrb[64].mxu0  ;;  %v4110_v0 = vpop.f32.mrb[64].mxu1 }
 0x16c   :  { %v2661_v20 = vmax.f32 %v3994_v57, %v4110_v0  ;;  %v1635_v23 = vpop.f32.mrb[65].mxu0  ;;  %v2277_v30 = vpop.f32.mrb[65].mxu1 }
 0x16d   :  { %v2660_v47 = vmax.f32 %v1635_v23, %v2277_v30  ;;  %v6437_v23 = vmax.f32 %v5300_v52, %v5302_v53 }
 0x16e   :  { %v2725_v13 = vmax.f32 %v6435_v33, %v2661_v20  ;;  %v6440_v33 = vmax.f32 %v5334_v1, %v5336_v2  ;;  %v6441_v2 = vmax.f32 %v5356_v8, %v5358_v9 }
 0x16f   :  { %v2724_v54 = vmax.f32 %v6436_v44, %v2660_v47  ;;  %v3997_v51 = vpop.f32.mrb[66].mxu0  ;;  %v4113_v10 = vpop.f32.mrb[66].mxu1 }
 0x170   :  { %v2796_v57 = vadd.f32 %v5815_v49, %v2725_v13  ;;  %v2663_v0 = vmax.f32 %v3997_v51, %v4113_v10  ;;  %v1645_v3 = vpop.f32.mrb[67].mxu0  ;;  %v2287_v14 = vpop.f32.mrb[67].mxu1 }
 0x171   :  { %v2795_v35 = vadd.f32 %v5815_v49, %v2724_v54  ;;  %v2662_v37 = vmax.f32 %v1645_v3, %v2287_v14 }
 0x172   :  { %v2860_v40 = vmax.f32 %v2796_v57, 0.0  ;;  %v2727_v42 = vmax.f32 %v6437_v23, %v2663_v0 }
 0x173   :  { %v2859_v43 = vmax.f32 %v2795_v35, 0.0  ;;  %v2726_v44 = vmax.f32 %v6438_v45, %v2662_v37  ;;  %v4000_v46 = vpop.f32.mrb[68].mxu0  ;;  %v4116_v47 = vpop.f32.mrb[68].mxu1 }
 0x174   :  { %2924 = vst [vmem:[%s6268_s3 + $0x8] sm:$0xff] %v2860_v40  ;;  %v2798_v10 = vadd.f32 %v5815_v49, %v2727_v42  ;;  %v2665_v54 = vmax.f32 %v4000_v46, %v4116_v47  ;;  %v1655_v3 = vpop.f32.mrb[69].mxu0  ;;  %v2297_v13 = vpop.f32.mrb[69].mxu1 }
 0x175   :  { %2923 = vst [vmem:[%s6268_s3] sm:$0xff] %v2859_v43  ;;  %v2797_v52 = vadd.f32 %v5815_v49, %v2726_v44  ;;  %v2664_v53 = vmax.f32 %v1655_v3, %v2297_v13  ;;  %v6442_v43 = vmax.f32 %v5362_v11, %v5364_v12  ;;  %v6443_v12 = vmax.f32 %v5384_v18, %v5386_v19 }
 0x176   :  { %v2862_v55 = vmax.f32 %v2798_v10, 0.0  ;;  %v2729_v20 = vmax.f32 %v6439_v56, %v2665_v54 }
 0x177   :  { %v2861_v30 = vmax.f32 %v2797_v52, 0.0  ;;  %v2728_v40 = vmax.f32 %v6440_v33, %v2664_v53  ;;  %v4003_v37 = vpop.f32.mrb[70].mxu0  ;;  %v4119_v51 = vpop.f32.mrb[70].mxu1  ;;  %v6444_v53 = vmax.f32 %v5390_v21, %v5392_v22  ;;  %v6445_v22 = vmax.f32 %v5412_v28, %v5414_v29 }
 0x178   :  { %2926 = vst [vmem:[%s6268_s3 + $0x18] sm:$0xff] %v2862_v55  ;;  %v2800_v35 = vadd.f32 %v5815_v49, %v2729_v20  ;;  %v2667_v14 = vmax.f32 %v4003_v37, %v4119_v51  ;;  %v1665_v57 = vpop.f32.mrb[71].mxu0  ;;  %v2307_v0 = vpop.f32.mrb[71].mxu1 }
 0x179   :  { %2925 = vst [vmem:[%s6268_s3 + $0x10] sm:$0xff] %v2861_v30  ;;  %v2799_v62 = vadd.f32 %v5815_v49, %v2728_v40  ;;  %v2666_v63 = vmax.f32 %v1665_v57, %v2307_v0 }
 0x17a   :  { %v2864_v1 = vmax.f32 %v2800_v35, 0.0  ;;  %v2731_v23 = vmax.f32 %v6441_v2, %v2667_v14  ;;  %v6446_v14 = vmax.f32 %v5418_v31, %v5420_v32  ;;  %v6447_v32 = vmax.f32 %v5440_v38, %v5442_v39 }
 0x17b   :  { %v2863_v42 = vmax.f32 %v2799_v62, 0.0  ;;  %v2730_v45 = vmax.f32 %v6442_v43, %v2666_v63  ;;  %v4006_v44 = vpop.f32.mrb[72].mxu0  ;;  %v4122_v46 = vpop.f32.mrb[72].mxu1 }
 0x17c   :  { %2928 = vst [vmem:[%s6268_s3 + $0x28] sm:$0xff] %v2864_v1  ;;  %v2802_v47 = vadd.f32 %v5815_v49, %v2731_v23  ;;  %v2669_v10 = vmax.f32 %v4006_v44, %v4122_v46  ;;  %v1675_v54 = vpop.f32.mrb[73].mxu0  ;;  %v2317_v3 = vpop.f32.mrb[73].mxu1 }
 0x17d   :  { %2927 = vst [vmem:[%s6268_s3 + $0x20] sm:$0xff] %v2863_v42  ;;  %v2801_v8 = vadd.f32 %v5815_v49, %v2730_v45  ;;  %v2668_v9 = vmax.f32 %v1675_v54, %v2317_v3  ;;  %v6448_v45 = vmax.f32 %v5446_v41, %v5448_v48  ;;  %v6449_v48 = vmax.f32 %v5468_v60, %v5470_v61 }
 0x17e   :  { %v2866_v11 = vmax.f32 %v2802_v47, 0.0  ;;  %v2733_v13 = vmax.f32 %v6443_v12, %v2669_v10  ;;  %v6450_v12 = vmax.f32 %v5474_v5, %v5476_v6  ;;  %v6451_v6 = vmax.f32 %v5496_v24, %v5498_v25 }
 0x17f   :  { %v2865_v52 = vmax.f32 %v2801_v8, 0.0  ;;  %v2732_v55 = vmax.f32 %v6444_v53, %v2668_v9  ;;  %v4009_v56 = vpop.f32.mrb[74].mxu0  ;;  %v4125_v20 = vpop.f32.mrb[74].mxu1 }
 0x180   :  { %2930 = vst [vmem:[%s6268_s3 + $0x38] sm:$0xff] %v2866_v11  ;;  %v2804_v30 = vadd.f32 %v5815_v49, %v2733_v13  ;;  %v2671_v33 = vmax.f32 %v4009_v56, %v4125_v20  ;;  %v1685_v40 = vpop.f32.mrb[75].mxu0  ;;  %v2327_v37 = vpop.f32.mrb[75].mxu1 }
 0x181   :  { %2929 = vst [vmem:[%s6268_s3 + $0x30] sm:$0xff] %v2865_v52  ;;  %v2803_v18 = vadd.f32 %v5815_v49, %v2732_v55  ;;  %v2670_v19 = vmax.f32 %v1685_v40, %v2327_v37  ;;  %v6452_v37 = vmax.f32 %v5502_v27, %v5504_v34  ;;  %v6453_v34 = vmax.f32 %v5524_v58, %v5526_v59 }
 0x182   :  { %v2868_v21 = vmax.f32 %v2804_v30, 0.0  ;;  %v2735_v51 = vmax.f32 %v6445_v22, %v2671_v33 }
 0x183   :  { %v2867_v35 = vmax.f32 %v2803_v18, 0.0  ;;  %v2734_v57 = vmax.f32 %v6446_v14, %v2670_v19  ;;  %v4012_v0 = vpop.f32.mrb[76].mxu0  ;;  %v4128_v62 = vpop.f32.mrb[76].mxu1 }
 0x184   :  { %2932 = vst [vmem:[%s6268_s3 + $0x48] sm:$0xff] %v2868_v21  ;;  %v2806_v63 = vadd.f32 %v5815_v49, %v2735_v51  ;;  %v2673_v1 = vmax.f32 %v4012_v0, %v4128_v62  ;;  %v1695_v2 = vpop.f32.mrb[77].mxu0  ;;  %v2337_v23 = vpop.f32.mrb[77].mxu1  ;;  %v6454_v62 = vmax.f32 %v5530_v15, %v5532_v16  ;;  %v6455_v16 = vmax.f32 %v5546_v26, %v5548_v36 }
 0x185   :  { %2931 = vst [vmem:[%s6268_s3 + $0x40] sm:$0xff] %v2867_v35  ;;  %v2805_v28 = vadd.f32 %v5815_v49, %v2734_v57  ;;  %v2672_v29 = vmax.f32 %v1695_v2, %v2337_v23 }
 0x186   :  { %v2870_v31 = vmax.f32 %v2806_v63, 0.0  ;;  %v2737_v42 = vmax.f32 %v6447_v32, %v2673_v1 }
 0x187   :  { %v2869_v43 = vmax.f32 %v2805_v28, 0.0  ;;  %v2736_v44 = vmax.f32 %v6448_v45, %v2672_v29  ;;  %v4015_v46 = vpop.f32.mrb[78].mxu0  ;;  %v4131_v47 = vpop.f32.mrb[78].mxu1 }
 0x188   :  { %2934 = vst [vmem:[%s6268_s3 + $0x58] sm:$0xff] %v2870_v31  ;;  %v2808_v10 = vadd.f32 %v5815_v49, %v2737_v42  ;;  %v2675_v54 = vmax.f32 %v4015_v46, %v4131_v47  ;;  %v1705_v3 = vpop.f32.mrb[79].mxu0  ;;  %v2347_v8 = vpop.f32.mrb[79].mxu1 }
 0x189   :  { %2933 = vst [vmem:[%s6268_s3 + $0x50] sm:$0xff] %v2869_v43  ;;  %v2807_v38 = vadd.f32 %v5815_v49, %v2736_v44  ;;  %v2674_v39 = vmax.f32 %v1705_v3, %v2347_v8  ;;  %v6456_v43 = vmax.f32 %v5552_v17, %v5554_v50  ;;  %v6457_v50 = vmax.f32 %v5560_v7, %v5562_v4 }
 0x18a   :  { %v2872_v41 = vmax.f32 %v2808_v10, 0.0  ;;  %v2739_v9 = vmax.f32 %v6449_v48, %v2675_v54 }
 0x18b   :  { %v2871_v11 = vmax.f32 %v2807_v38, 0.0  ;;  %v2738_v13 = vmax.f32 %v6450_v12, %v2674_v39  ;;  %v4018_v52 = vpop.f32.mrb[80].mxu0  ;;  %v4134_v53 = vpop.f32.mrb[80].mxu1  ;;  %v6458_v39 = vld [vmem:[#allocation2_spill] sm:$0xff] }
 0x18c   :  { %2936 = vst [vmem:[%s6268_s3 + $0x68] sm:$0xff] %v2872_v41  ;;  %v2810_v55 = vadd.f32 %v5815_v49, %v2739_v9  ;;  %v2677_v56 = vmax.f32 %v4018_v52, %v4134_v53  ;;  %v1715_v20 = vpop.f32.mrb[81].mxu0  ;;  %v2357_v30 = vpop.f32.mrb[81].mxu1  ;;  %v6459_v41 = vld [vmem:[#allocation3_spill] sm:$0xff] }
 0x18d   :  { %2935 = vst [vmem:[%s6268_s3 + $0x60] sm:$0xff] %v2871_v11  ;;  %v2809_v60 = vadd.f32 %v5815_v49, %v2738_v13  ;;  %v2676_v61 = vmax.f32 %v1715_v20, %v2357_v30  ;;  %v6460_v48 = vmax.f32 %v6458_v39, %v6459_v41  ;;  %v6461_v20 = vld [vmem:[#allocation4_spill] sm:$0xff]  ;;  %v6462_v30 = vld [vmem:[#allocation5_spill] sm:$0xff] }
 0x18e   :  { %v2874_v5 = vmax.f32 %v2810_v55, 0.0  ;;  %v2741_v33 = vmax.f32 %v6451_v6, %v2677_v56  ;;  %v6464_v6 = vld [vmem:[#allocation6_spill] sm:$0xff] }
 0x18f   :  { %v2873_v40 = vmax.f32 %v2809_v60, 0.0  ;;  %v2740_v18 = vmax.f32 %v6452_v37, %v2676_v61  ;;  %v4021_v19 = vpop.f32.mrb[82].mxu0  ;;  %v4137_v21 = vpop.f32.mrb[82].mxu1  ;;  %v6463_v60 = vmax.f32 %v6461_v20, %v6462_v30 }
 0x190   :  { %2938 = vst [vmem:[%s6268_s3 + $0x78] sm:$0xff] %v2874_v5  ;;  %v2812_v22 = vadd.f32 %v5815_v49, %v2741_v33  ;;  %v2679_v51 = vmax.f32 %v4021_v19, %v4137_v21  ;;  %v1725_v35 = vpop.f32.mrb[83].mxu0  ;;  %v2367_v14 = vpop.f32.mrb[83].mxu1  ;;  %v6465_v33 = vld [vmem:[#allocation7_spill] sm:$0xff] }
 0x191   :  { %2937 = vst [vmem:[%s6268_s3 + $0x70] sm:$0xff] %v2873_v40  ;;  %v2811_v24 = vadd.f32 %v5815_v49, %v2740_v18  ;;  %v2678_v25 = vmax.f32 %v1725_v35, %v2367_v14  ;;  %v6466_v40 = vmax.f32 %v6464_v6, %v6465_v33 }
 0x192   :  { %v2876_v27 = vmax.f32 %v2812_v22, 0.0  ;;  %v2743_v57 = vmax.f32 %v6453_v34, %v2679_v51  ;;  %v6468_v34 = vld [vmem:[#allocation9_spill] sm:$0xff] }
 0x193   :  { %v2875_v0 = vmax.f32 %v2811_v24, 0.0  ;;  %v2742_v63 = vmax.f32 %v6454_v62, %v2678_v25  ;;  %v4024_v1 = vpop.f32.mrb[84].mxu0  ;;  %v4140_v2 = vpop.f32.mrb[84].mxu1 }
 0x194   :  { %2940 = vst [vmem:[%s6268_s3 + $0x88] sm:$0xff] %v2876_v27  ;;  %v2814_v23 = vadd.f32 %v5815_v49, %v2743_v57  ;;  %v2681_v28 = vmax.f32 %v4024_v1, %v4140_v2  ;;  %v1735_v29 = vpop.f32.mrb[85].mxu0  ;;  %v2377_v31 = vpop.f32.mrb[85].mxu1  ;;  %v6467_v27 = vld [vmem:[#allocation8_spill] sm:$0xff]  ;;  %v6471_v1 = vld [vmem:[#allocation11_spill] sm:$0xff] }
 0x195   :  { %2939 = vst [vmem:[%s6268_s3 + $0x80] sm:$0xff] %v2875_v0  ;;  %v2813_v58 = vadd.f32 %v5815_v49, %v2742_v63  ;;  %v2680_v59 = vmax.f32 %v1735_v29, %v2377_v31  ;;  %v6469_v57 = vmax.f32 %v6467_v27, %v6468_v34  ;;  %v6470_v63 = vld [vmem:[#allocation10_spill] sm:$0xff] }
 0x196   :  { %v2878_v15 = vmax.f32 %v2814_v23, 0.0  ;;  %v2745_v32 = vmax.f32 %v6455_v16, %v2681_v28  ;;  %v6472_v2 = vmax.f32 %v6470_v63, %v6471_v1 }
 0x197   :  { %v2877_v42 = vmax.f32 %v2813_v58, 0.0  ;;  %v2744_v45 = vmax.f32 %v6456_v43, %v2680_v59  ;;  %v4027_v44 = vpop.f32.mrb[86].mxu0  ;;  %v4143_v46 = vpop.f32.mrb[86].mxu1  ;;  %v6473_v43 = vld [vmem:[#allocation12_spill] sm:$0xff] }
 0x198   :  { %2942 = vst [vmem:[%s6268_s3 + $0x98] sm:$0xff] %v2878_v15  ;;  %v2816_v47 = vadd.f32 %v5815_v49, %v2745_v32  ;;  %v2683_v10 = vmax.f32 %v4027_v44, %v4143_v46  ;;  %v1745_v54 = vpop.f32.mrb[87].mxu0  ;;  %v2387_v3 = vpop.f32.mrb[87].mxu1 }
 0x199   :  { %2941 = vst [vmem:[%s6268_s3 + $0x90] sm:$0xff] %v2877_v42  ;;  %v2815_v26 = vadd.f32 %v5815_v49, %v2744_v45  ;;  %v2682_v36 = vmax.f32 %v1745_v54, %v2387_v3  ;;  %v6474_v45 = vld [vmem:[#allocation13_spill] sm:$0xff]  ;;  %v6477_v54 = vld [vmem:[#allocation15_spill] sm:$0xff] }
 0x19a   :  { %v2880_v17 = vmax.f32 %v2816_v47, 0.0  ;;  %v2747_v8 = vmax.f32 %v6457_v50, %v2683_v10  ;;  %v6475_v44 = vmax.f32 %v6473_v43, %v6474_v45  ;;  %v6476_v10 = vld [vmem:[#allocation14_spill] sm:$0xff] }
 0x19b   :  { %v2879_v38 = vmax.f32 %v2815_v26, 0.0  ;;  %v2746_v9 = vmax.f32 %v6460_v48, %v2682_v36  ;;  %v4030_v11 = vpop.f32.mrb[88].mxu0  ;;  %v4146_v12 = vpop.f32.mrb[88].mxu1  ;;  %v6478_v3 = vmax.f32 %v6476_v10, %v6477_v54 }
 0x19c   :  { %2944 = vst [vmem:[%s6268_s3 + $0xa8] sm:$0xff] %v2880_v17  ;;  %v2818_v13 = vadd.f32 %v5815_v49, %v2747_v8  ;;  %v2685_v52 = vmax.f32 %v4030_v11, %v4146_v12  ;;  %v1755_v53 = vpop.f32.mrb[89].mxu0  ;;  %v2397_v55 = vpop.f32.mrb[89].mxu1  ;;  %v6479_v11 = vld [vmem:[#allocation16_spill] sm:$0xff]  ;;  %v6480_v12 = vld [vmem:[#allocation17_spill] sm:$0xff] }
 0x19d   :  { %2943 = vst [vmem:[%s6268_s3 + $0xa0] sm:$0xff] %v2879_v38  ;;  %v2817_v4 = vadd.f32 %v5815_v49, %v2746_v9  ;;  %v2684_v7 = vmax.f32 %v1755_v53, %v2397_v55  ;;  %v6482_v55 = vld [vmem:[#allocation18_spill] sm:$0xff] }
 0x19e   :  { %v2882_v56 = vmax.f32 %v2818_v13, 0.0  ;;  %v2749_v61 = vmax.f32 %v6463_v60, %v2685_v52  ;;  %v6481_v13 = vmax.f32 %v6479_v11, %v6480_v12 }
 0x19f   :  { %v2881_v5 = vmax.f32 %v2817_v4, 0.0  ;;  %v2748_v37 = vmax.f32 %v6466_v40, %v2684_v7  ;;  %v4033_v18 = vpop.f32.mrb[90].mxu0  ;;  %v4149_v19 = vpop.f32.mrb[90].mxu1  ;;  %v6483_v4 = vld [vmem:[#allocation19_spill] sm:$0xff] }
 0x1a0   :  { %2946 = vst [vmem:[%s6268_s3 + $0xb8] sm:$0xff] %v2882_v56  ;;  %v2820_v21 = vadd.f32 %v5815_v49, %v2749_v61  ;;  %v2687_v22 = vmax.f32 %v4033_v18, %v4149_v19  ;;  %v1765_v51 = vpop.f32.mrb[91].mxu0  ;;  %v2407_v35 = vpop.f32.mrb[91].mxu1  ;;  %v6484_v7 = vmax.f32 %v6482_v55, %v6483_v4  ;;  %v6485_v18 = vld [vmem:[#allocation20_spill] sm:$0xff]  ;;  %v6486_v19 = vld [vmem:[#allocation21_spill] sm:$0xff] }
 0x1a1   :  { %2945 = vst [vmem:[%s6268_s3 + $0xb0] sm:$0xff] %v2881_v5  ;;  %v2819_v14 = vadd.f32 %v5815_v49, %v2748_v37  ;;  %v2686_v24 = vmax.f32 %v1765_v51, %v2407_v35  ;;  %v6488_v35 = vld [vmem:[#allocation22_spill] sm:$0xff] }
 0x1a2   :  { %v2884_v25 = vmax.f32 %v2820_v21, 0.0  ;;  %v2751_v0 = vmax.f32 %v6469_v57, %v2687_v22  ;;  %v6487_v21 = vmax.f32 %v6485_v18, %v6486_v19 }
 0x1a3   :  { %v2883_v62 = vmax.f32 %v2819_v14, 0.0  ;;  %v2750_v23 = vmax.f32 %v6472_v2, %v2686_v24  ;;  %v4036_v28 = vpop.f32.mrb[92].mxu0  ;;  %v4152_v29 = vpop.f32.mrb[92].mxu1  ;;  %v6489_v14 = vld [vmem:[#allocation23_spill] sm:$0xff] }
 0x1a4   :  { %2948 = vst [vmem:[%s6268_s3 + $0xc8] sm:$0xff] %v2884_v25  ;;  %v2822_v31 = vadd.f32 %v5815_v49, %v2751_v0  ;;  %v2689_v58 = vmax.f32 %v4036_v28, %v4152_v29  ;;  %v1775_v59 = vpop.f32.mrb[93].mxu0  ;;  %v2417_v15 = vpop.f32.mrb[93].mxu1  ;;  %v6490_v24 = vmax.f32 %v6488_v35, %v6489_v14  ;;  %v6491_v28 = vld [vmem:[#allocation24_spill] sm:$0xff]  ;;  %v6492_v29 = vld [vmem:[#allocation25_spill] sm:$0xff] }
 0x1a5   :  { %2947 = vst [vmem:[%s6268_s3 + $0xc0] sm:$0xff] %v2883_v62  ;;  %v2821_v16 = vadd.f32 %v5815_v49, %v2750_v23  ;;  %v2688_v32 = vmax.f32 %v1775_v59, %v2417_v15  ;;  %v6494_v15 = vld [vmem:[#allocation26_spill] sm:$0xff] }
 0x1a6   :  { %v2886_v42 = vmax.f32 %v2822_v31, 0.0  ;;  %v2753_v46 = vmax.f32 %v6475_v44, %v2689_v58  ;;  %v6493_v31 = vmax.f32 %v6491_v28, %v6492_v29 }
 0x1a7   :  { %v2885_v47 = vmax.f32 %v2821_v16, 0.0  ;;  %v2752_v26 = vmax.f32 %v6478_v3, %v2688_v32  ;;  %v4039_v36 = vpop.f32.mrb[94].mxu0  ;;  %v4155_v17 = vpop.f32.mrb[94].mxu1  ;;  %v6495_v16 = vld [vmem:[#allocation27_spill] sm:$0xff] }
 0x1a8   :  { %2950 = vst [vmem:[%s6268_s3 + $0xd8] sm:$0xff] %v2886_v42  ;;  %v2824_v50 = vadd.f32 %v5815_v49, %v2753_v46  ;;  %v2691_v8 = vmax.f32 %v4039_v36, %v4155_v17  ;;  %v1785_v38 = vpop.f32.mrb[95].mxu0  ;;  %v2427_v39 = vpop.f32.mrb[95].mxu1  ;;  %v6496_v32 = vmax.f32 %v6494_v15, %v6495_v16  ;;  %v6497_v36 = vld [vmem:[#allocation28_spill] sm:$0xff]  ;;  %v6498_v17 = vld [vmem:[#allocation29_spill] sm:$0xff] }
 0x1a9   :  { %2949 = vst [vmem:[%s6268_s3 + $0xd0] sm:$0xff] %v2885_v47  ;;  %v2823_v41 = vadd.f32 %v5815_v49, %v2752_v26  ;;  %v2690_v48 = vmax.f32 %v1785_v38, %v2427_v39  ;;  %v6500_v39 = vld [vmem:[#allocation30_spill] sm:$0xff] }
 0x1aa   :  { %v2888_v9 = vmax.f32 %v2824_v50, 0.0  ;;  %v2755_v52 = vmax.f32 %v6481_v13, %v2691_v8  ;;  %v6499_v50 = vmax.f32 %v6497_v36, %v6498_v17 }
 0x1ab   :  { %v2887_v53 = vmax.f32 %v2823_v41, 0.0  ;;  %v2754_v56 = vmax.f32 %v6484_v7, %v2690_v48  ;;  %v4042_v20 = vpop.f32.mrb[96].mxu0  ;;  %v4158_v30 = vpop.f32.mrb[96].mxu1  ;;  %v6501_v41 = vld [vmem:[#allocation31_spill] sm:$0xff] }
 0x1ac   :  { %2952 = vst [vmem:[%s6268_s3 + $0xe8] sm:$0xff] %v2888_v9  ;;  %v2826_v60 = vadd.f32 %v5815_v49, %v2755_v52  ;;  %v2693_v61 = vmax.f32 %v4042_v20, %v4158_v30  ;;  %v1795_v5 = vpop.f32.mrb[97].mxu0  ;;  %v2437_v6 = vpop.f32.mrb[97].mxu1  ;;  %v6502_v48 = vmax.f32 %v6500_v39, %v6501_v41  ;;  %v6503_v20 = vld [vmem:[#allocation32_spill] sm:$0xff]  ;;  %v6504_v30 = vld [vmem:[#allocation33_spill] sm:$0xff] }
 0x1ad   :  { %2951 = vst [vmem:[%s6268_s3 + $0xe0] sm:$0xff] %v2887_v53  ;;  %v2825_v33 = vadd.f32 %v5815_v49, %v2754_v56  ;;  %v2692_v40 = vmax.f32 %v1795_v5, %v2437_v6  ;;  %v6506_v6 = vld [vmem:[#allocation34_spill] sm:$0xff] }
 0x1ae   :  { %v2890_v37 = vmax.f32 %v2826_v60, 0.0  ;;  %v2757_v22 = vmax.f32 %v6487_v21, %v2693_v61  ;;  %v6505_v60 = vmax.f32 %v6503_v20, %v6504_v30 }
 0x1af   :  { %v2889_v51 = vmax.f32 %v2825_v33, 0.0  ;;  %v2756_v25 = vmax.f32 %v6490_v24, %v2692_v40  ;;  %v4045_v27 = vpop.f32.mrb[98].mxu0  ;;  %v4161_v34 = vpop.f32.mrb[98].mxu1  ;;  %v6507_v33 = vld [vmem:[#allocation35_spill] sm:$0xff] }
 0x1b0   :  { %2954 = vst [vmem:[%s6268_s3 + $0xf8] sm:$0xff] %v2890_v37  ;;  %v2828_v57 = vadd.f32 %v5815_v49, %v2757_v22  ;;  %v2695_v0 = vmax.f32 %v4045_v27, %v4161_v34  ;;  %v1805_v62 = vpop.f32.mrb[99].mxu0  ;;  %v2447_v63 = vpop.f32.mrb[99].mxu1  ;;  %v6508_v40 = vmax.f32 %v6506_v6, %v6507_v33  ;;  %v6509_v27 = vld [vmem:[#allocation36_spill] sm:$0xff]  ;;  %v6510_v34 = vld [vmem:[#allocation37_spill] sm:$0xff] }
 0x1b1   :  { %2953 = vst [vmem:[%s6268_s3 + $0xf0] sm:$0xff] %v2889_v51  ;;  %v2827_v1 = vadd.f32 %v5815_v49, %v2756_v25  ;;  %v2694_v2 = vmax.f32 %v1805_v62, %v2447_v63  ;;  %v6512_v63 = vld [vmem:[#allocation38_spill] sm:$0xff] }
 0x1b2   :  { %v2892_v23 = vmax.f32 %v2828_v57, 0.0  ;;  %v2759_v58 = vmax.f32 %v6493_v31, %v2695_v0  ;;  %v6511_v57 = vmax.f32 %v6509_v27, %v6510_v34 }
 0x1b3   :  { %v2891_v59 = vmax.f32 %v2827_v1, 0.0  ;;  %v2758_v42 = vmax.f32 %v6496_v32, %v2694_v2  ;;  %v4048_v43 = vpop.f32.mrb[100].mxu0  ;;  %v4164_v45 = vpop.f32.mrb[100].mxu1  ;;  %v6513_v1 = vld [vmem:[#allocation39_spill] sm:$0xff] }
 0x1b4   :  { %2956 = vst [vmem:[%s6268_s3 + $0x108] sm:$0xff] %v2892_v23  ;;  %v2830_v44 = vadd.f32 %v5815_v49, %v2759_v58  ;;  %v2697_v46 = vmax.f32 %v4048_v43, %v4164_v45  ;;  %v1815_v47 = vpop.f32.mrb[101].mxu0  ;;  %v2457_v10 = vpop.f32.mrb[101].mxu1  ;;  %v6514_v2 = vmax.f32 %v6512_v63, %v6513_v1  ;;  %v6515_v43 = vld [vmem:[#allocation40_spill] sm:$0xff]  ;;  %v6516_v45 = vld [vmem:[#allocation41_spill] sm:$0xff] }
 0x1b5   :  { %2955 = vst [vmem:[%s6268_s3 + $0x100] sm:$0xff] %v2891_v59  ;;  %v2829_v54 = vadd.f32 %v5815_v49, %v2758_v42  ;;  %v2696_v3 = vmax.f32 %v1815_v47, %v2457_v10  ;;  %v6518_v10 = vld [vmem:[#allocation42_spill] sm:$0xff] }
 0x1b6   :  { %v2894_v26 = vmax.f32 %v2830_v44, 0.0  ;;  %v2761_v8 = vmax.f32 %v6499_v50, %v2697_v46  ;;  %v6517_v44 = vmax.f32 %v6515_v43, %v6516_v45 }
 0x1b7   :  { %v2893_v38 = vmax.f32 %v2829_v54, 0.0  ;;  %v2760_v9 = vmax.f32 %v6502_v48, %v2696_v3  ;;  %v4051_v11 = vpop.f32.mrb[102].mxu0  ;;  %v4167_v12 = vpop.f32.mrb[102].mxu1  ;;  %v6519_v54 = vld [vmem:[#allocation43_spill] sm:$0xff] }
 0x1b8   :  { %2958 = vst [vmem:[%s6268_s3 + $0x118] sm:$0xff] %v2894_v26  ;;  %v2832_v13 = vadd.f32 %v5815_v49, %v2761_v8  ;;  %v2699_v52 = vmax.f32 %v4051_v11, %v4167_v12  ;;  %v1825_v53 = vpop.f32.mrb[103].mxu0  ;;  %v2467_v55 = vpop.f32.mrb[103].mxu1  ;;  %v6520_v3 = vmax.f32 %v6518_v10, %v6519_v54  ;;  %v6521_v11 = vld [vmem:[#allocation44_spill] sm:$0xff]  ;;  %v6522_v12 = vld [vmem:[#allocation45_spill] sm:$0xff] }
 0x1b9   :  { %2957 = vst [vmem:[%s6268_s3 + $0x110] sm:$0xff] %v2893_v38  ;;  %v2831_v4 = vadd.f32 %v5815_v49, %v2760_v9  ;;  %v2698_v7 = vmax.f32 %v1825_v53, %v2467_v55  ;;  %v6524_v55 = vld [vmem:[#allocation46_spill] sm:$0xff] }
 0x1ba   :  { %v2896_v56 = vmax.f32 %v2832_v13, 0.0  ;;  %v2763_v61 = vmax.f32 %v6505_v60, %v2699_v52  ;;  %v6523_v13 = vmax.f32 %v6521_v11, %v6522_v12 }
 0x1bb   :  { %v2895_v5 = vmax.f32 %v2831_v4, 0.0  ;;  %v2762_v37 = vmax.f32 %v6508_v40, %v2698_v7  ;;  %v4054_v18 = vpop.f32.mrb[104].mxu0  ;;  %v4170_v19 = vpop.f32.mrb[104].mxu1  ;;  %v6525_v4 = vld [vmem:[#allocation47_spill] sm:$0xff] }
 0x1bc   :  { %2960 = vst [vmem:[%s6268_s3 + $0x128] sm:$0xff] %v2896_v56  ;;  %v2834_v21 = vadd.f32 %v5815_v49, %v2763_v61  ;;  %v2701_v22 = vmax.f32 %v4054_v18, %v4170_v19  ;;  %v1835_v51 = vpop.f32.mrb[105].mxu0  ;;  %v2477_v35 = vpop.f32.mrb[105].mxu1  ;;  %v6526_v7 = vmax.f32 %v6524_v55, %v6525_v4  ;;  %v6527_v18 = vld [vmem:[#allocation48_spill] sm:$0xff]  ;;  %v6528_v19 = vld [vmem:[#allocation49_spill] sm:$0xff] }
 0x1bd   :  { %2959 = vst [vmem:[%s6268_s3 + $0x120] sm:$0xff] %v2895_v5  ;;  %v2833_v14 = vadd.f32 %v5815_v49, %v2762_v37  ;;  %v2700_v24 = vmax.f32 %v1835_v51, %v2477_v35  ;;  %v6530_v35 = vld [vmem:[#allocation50_spill] sm:$0xff] }
 0x1be   :  { %v2898_v25 = vmax.f32 %v2834_v21, 0.0  ;;  %v2765_v0 = vmax.f32 %v6511_v57, %v2701_v22  ;;  %v6529_v21 = vmax.f32 %v6527_v18, %v6528_v19 }
 0x1bf   :  { %v2897_v62 = vmax.f32 %v2833_v14, 0.0  ;;  %v2764_v23 = vmax.f32 %v6514_v2, %v2700_v24  ;;  %v4057_v28 = vpop.f32.mrb[106].mxu0  ;;  %v4173_v29 = vpop.f32.mrb[106].mxu1  ;;  %v6531_v14 = vld [vmem:[#allocation51_spill] sm:$0xff] }
 0x1c0   :  { %2962 = vst [vmem:[%s6268_s3 + $0x138] sm:$0xff] %v2898_v25  ;;  %v2836_v31 = vadd.f32 %v5815_v49, %v2765_v0  ;;  %v2703_v58 = vmax.f32 %v4057_v28, %v4173_v29  ;;  %v1845_v59 = vpop.f32.mrb[107].mxu0  ;;  %v2487_v15 = vpop.f32.mrb[107].mxu1  ;;  %v6532_v24 = vmax.f32 %v6530_v35, %v6531_v14  ;;  %v6533_v28 = vld [vmem:[#allocation52_spill] sm:$0xff]  ;;  %v6534_v29 = vld [vmem:[#allocation53_spill] sm:$0xff] }
 0x1c1   :  { %2961 = vst [vmem:[%s6268_s3 + $0x130] sm:$0xff] %v2897_v62  ;;  %v2835_v16 = vadd.f32 %v5815_v49, %v2764_v23  ;;  %v2702_v32 = vmax.f32 %v1845_v59, %v2487_v15  ;;  %v6536_v15 = vld [vmem:[#allocation54_spill] sm:$0xff] }
 0x1c2   :  { %v2900_v42 = vmax.f32 %v2836_v31, 0.0  ;;  %v2767_v46 = vmax.f32 %v6517_v44, %v2703_v58  ;;  %v6535_v31 = vmax.f32 %v6533_v28, %v6534_v29 }
 0x1c3   :  { %v2899_v47 = vmax.f32 %v2835_v16, 0.0  ;;  %v2766_v26 = vmax.f32 %v6520_v3, %v2702_v32  ;;  %v4060_v36 = vpop.f32.mrb[108].mxu0  ;;  %v4176_v17 = vpop.f32.mrb[108].mxu1  ;;  %v6537_v16 = vld [vmem:[#allocation55_spill] sm:$0xff] }
 0x1c4   :  { %2964 = vst [vmem:[%s6268_s3 + $0x148] sm:$0xff] %v2900_v42  ;;  %v2838_v50 = vadd.f32 %v5815_v49, %v2767_v46  ;;  %v2705_v8 = vmax.f32 %v4060_v36, %v4176_v17  ;;  %v1855_v38 = vpop.f32.mrb[109].mxu0  ;;  %v2497_v39 = vpop.f32.mrb[109].mxu1  ;;  %v6538_v32 = vmax.f32 %v6536_v15, %v6537_v16  ;;  %v6539_v36 = vld [vmem:[#allocation56_spill] sm:$0xff]  ;;  %v6540_v17 = vld [vmem:[#allocation57_spill] sm:$0xff] }
 0x1c5   :  { %2963 = vst [vmem:[%s6268_s3 + $0x140] sm:$0xff] %v2899_v47  ;;  %v2837_v41 = vadd.f32 %v5815_v49, %v2766_v26  ;;  %v2704_v48 = vmax.f32 %v1855_v38, %v2497_v39  ;;  %v6542_v39 = vld [vmem:[#allocation58_spill] sm:$0xff] }
 0x1c6   :  { %v2902_v9 = vmax.f32 %v2838_v50, 0.0  ;;  %v2769_v52 = vmax.f32 %v6523_v13, %v2705_v8  ;;  %v6541_v50 = vmax.f32 %v6539_v36, %v6540_v17 }
 0x1c7   :  { %v2901_v53 = vmax.f32 %v2837_v41, 0.0  ;;  %v2768_v56 = vmax.f32 %v6526_v7, %v2704_v48  ;;  %v4063_v20 = vpop.f32.mrb[110].mxu0  ;;  %v4179_v30 = vpop.f32.mrb[110].mxu1  ;;  %v6543_v41 = vld [vmem:[#allocation59_spill] sm:$0xff] }
 0x1c8   :  { %2966 = vst [vmem:[%s6268_s3 + $0x158] sm:$0xff] %v2902_v9  ;;  %v2840_v60 = vadd.f32 %v5815_v49, %v2769_v52  ;;  %v2707_v61 = vmax.f32 %v4063_v20, %v4179_v30  ;;  %v1865_v5 = vpop.f32.mrb[111].mxu0  ;;  %v2507_v6 = vpop.f32.mrb[111].mxu1  ;;  %v6544_v48 = vmax.f32 %v6542_v39, %v6543_v41  ;;  %v6545_v20 = vld [vmem:[#allocation60_spill] sm:$0xff]  ;;  %v6546_v30 = vld [vmem:[#allocation61_spill] sm:$0xff] }
 0x1c9   :  { %2965 = vst [vmem:[%s6268_s3 + $0x150] sm:$0xff] %v2901_v53  ;;  %v2839_v33 = vadd.f32 %v5815_v49, %v2768_v56  ;;  %v2706_v40 = vmax.f32 %v1865_v5, %v2507_v6  ;;  %v6548_v6 = vld [vmem:[#allocation62_spill] sm:$0xff] }
 0x1ca   :  { %v2904_v37 = vmax.f32 %v2840_v60, 0.0  ;;  %v2771_v22 = vmax.f32 %v6529_v21, %v2707_v61  ;;  %v6547_v60 = vmax.f32 %v6545_v20, %v6546_v30 }
 0x1cb   :  { %v2903_v51 = vmax.f32 %v2839_v33, 0.0  ;;  %v2770_v25 = vmax.f32 %v6532_v24, %v2706_v40  ;;  %v4066_v27 = vpop.f32.mrb[112].mxu0  ;;  %v4182_v34 = vpop.f32.mrb[112].mxu1  ;;  %v6549_v33 = vld [vmem:[#allocation63_spill] sm:$0xff] }
 0x1cc   :  { %2968 = vst [vmem:[%s6268_s3 + $0x168] sm:$0xff] %v2904_v37  ;;  %v2842_v57 = vadd.f32 %v5815_v49, %v2771_v22  ;;  %v2709_v0 = vmax.f32 %v4066_v27, %v4182_v34  ;;  %v1875_v62 = vpop.f32.mrb[113].mxu0  ;;  %v2517_v63 = vpop.f32.mrb[113].mxu1  ;;  %v6550_v40 = vmax.f32 %v6548_v6, %v6549_v33  ;;  %v6551_v27 = vld [vmem:[#allocation64_spill] sm:$0xff]  ;;  %v6552_v34 = vld [vmem:[#allocation65_spill] sm:$0xff] }
 0x1cd   :  { %2967 = vst [vmem:[%s6268_s3 + $0x160] sm:$0xff] %v2903_v51  ;;  %v2841_v1 = vadd.f32 %v5815_v49, %v2770_v25  ;;  %v2708_v2 = vmax.f32 %v1875_v62, %v2517_v63  ;;  %v6554_v63 = vld [vmem:[#allocation66_spill] sm:$0xff] }
 0x1ce   :  { %v2906_v23 = vmax.f32 %v2842_v57, 0.0  ;;  %v2773_v58 = vmax.f32 %v6535_v31, %v2709_v0  ;;  %v6553_v57 = vmax.f32 %v6551_v27, %v6552_v34 }
 0x1cf   :  { %v2905_v59 = vmax.f32 %v2841_v1, 0.0  ;;  %v2772_v42 = vmax.f32 %v6538_v32, %v2708_v2  ;;  %v4069_v43 = vpop.f32.mrb[114].mxu0  ;;  %v4185_v45 = vpop.f32.mrb[114].mxu1  ;;  %v6555_v1 = vld [vmem:[#allocation67_spill] sm:$0xff] }
 0x1d0   :  { %2970 = vst [vmem:[%s6268_s3 + $0x178] sm:$0xff] %v2906_v23  ;;  %v2844_v44 = vadd.f32 %v5815_v49, %v2773_v58  ;;  %v2711_v46 = vmax.f32 %v4069_v43, %v4185_v45  ;;  %v1885_v47 = vpop.f32.mrb[115].mxu0  ;;  %v2527_v10 = vpop.f32.mrb[115].mxu1  ;;  %v6556_v2 = vmax.f32 %v6554_v63, %v6555_v1  ;;  %v6557_v43 = vld [vmem:[#allocation68_spill] sm:$0xff]  ;;  %v6558_v45 = vld [vmem:[#allocation69_spill] sm:$0xff] }
 0x1d1   :  { %2969 = vst [vmem:[%s6268_s3 + $0x170] sm:$0xff] %v2905_v59  ;;  %v2843_v54 = vadd.f32 %v5815_v49, %v2772_v42  ;;  %v2710_v3 = vmax.f32 %v1885_v47, %v2527_v10  ;;  %v6560_v10 = vld [vmem:[#allocation70_spill] sm:$0xff] }
 0x1d2   :  { %v2908_v26 = vmax.f32 %v2844_v44, 0.0  ;;  %v2775_v8 = vmax.f32 %v6541_v50, %v2711_v46  ;;  %v6559_v44 = vmax.f32 %v6557_v43, %v6558_v45 }
 0x1d3   :  { %v2907_v38 = vmax.f32 %v2843_v54, 0.0  ;;  %v2774_v9 = vmax.f32 %v6544_v48, %v2710_v3  ;;  %v4072_v11 = vpop.f32.mrb[116].mxu0  ;;  %v4188_v12 = vpop.f32.mrb[116].mxu1  ;;  %v6561_v54 = vld [vmem:[#allocation71_spill] sm:$0xff] }
 0x1d4   :  { %2972 = vst [vmem:[%s6268_s3 + $0x188] sm:$0xff] %v2908_v26  ;;  %v2846_v13 = vadd.f32 %v5815_v49, %v2775_v8  ;;  %v2713_v52 = vmax.f32 %v4072_v11, %v4188_v12  ;;  %v1895_v53 = vpop.f32.mrb[117].mxu0  ;;  %v2537_v55 = vpop.f32.mrb[117].mxu1  ;;  %v6562_v3 = vmax.f32 %v6560_v10, %v6561_v54  ;;  %v6563_v11 = vld [vmem:[#allocation72_spill] sm:$0xff]  ;;  %v6564_v12 = vld [vmem:[#allocation73_spill] sm:$0xff] }
 0x1d5   :  { %2971 = vst [vmem:[%s6268_s3 + $0x180] sm:$0xff] %v2907_v38  ;;  %v2845_v4 = vadd.f32 %v5815_v49, %v2774_v9  ;;  %v2712_v7 = vmax.f32 %v1895_v53, %v2537_v55  ;;  %v6566_v55 = vld [vmem:[#allocation74_spill] sm:$0xff] }
 0x1d6   :  { %v2910_v56 = vmax.f32 %v2846_v13, 0.0  ;;  %v2777_v61 = vmax.f32 %v6547_v60, %v2713_v52  ;;  %v6565_v13 = vmax.f32 %v6563_v11, %v6564_v12 }
 0x1d7   :  { %v2909_v5 = vmax.f32 %v2845_v4, 0.0  ;;  %v2776_v37 = vmax.f32 %v6550_v40, %v2712_v7  ;;  %v4075_v18 = vpop.f32.mrb[118].mxu0  ;;  %v4191_v19 = vpop.f32.mrb[118].mxu1  ;;  %v6567_v4 = vld [vmem:[#allocation75_spill] sm:$0xff] }
 0x1d8   :  { %2974 = vst [vmem:[%s6268_s3 + $0x198] sm:$0xff] %v2910_v56  ;;  %v2848_v21 = vadd.f32 %v5815_v49, %v2777_v61  ;;  %v2715_v22 = vmax.f32 %v4075_v18, %v4191_v19  ;;  %v1905_v51 = vpop.f32.mrb[119].mxu0  ;;  %v2547_v35 = vpop.f32.mrb[119].mxu1  ;;  %v6568_v7 = vmax.f32 %v6566_v55, %v6567_v4  ;;  %v6569_v18 = vld [vmem:[#allocation76_spill] sm:$0xff]  ;;  %v6570_v19 = vld [vmem:[#allocation77_spill] sm:$0xff] }
 0x1d9   :  { %2973 = vst [vmem:[%s6268_s3 + $0x190] sm:$0xff] %v2909_v5  ;;  %v2847_v14 = vadd.f32 %v5815_v49, %v2776_v37  ;;  %v2714_v24 = vmax.f32 %v1905_v51, %v2547_v35  ;;  %v6572_v35 = vld [vmem:[#allocation78_spill] sm:$0xff] }
 0x1da   :  { %v2912_v25 = vmax.f32 %v2848_v21, 0.0  ;;  %v2779_v0 = vmax.f32 %v6553_v57, %v2715_v22  ;;  %v6571_v21 = vmax.f32 %v6569_v18, %v6570_v19 }
 0x1db   :  { %v2911_v62 = vmax.f32 %v2847_v14, 0.0  ;;  %v2778_v23 = vmax.f32 %v6556_v2, %v2714_v24  ;;  %v4078_v28 = vpop.f32.mrb[120].mxu0  ;;  %v4194_v29 = vpop.f32.mrb[120].mxu1  ;;  %v6573_v14 = vld [vmem:[#allocation79_spill] sm:$0xff] }
 0x1dc   :  { %2976 = vst [vmem:[%s6268_s3 + $0x1a8] sm:$0xff] %v2912_v25  ;;  %v2850_v31 = vadd.f32 %v5815_v49, %v2779_v0  ;;  %v2717_v58 = vmax.f32 %v4078_v28, %v4194_v29  ;;  %v1915_v59 = vpop.f32.mrb[121].mxu0  ;;  %v2557_v15 = vpop.f32.mrb[121].mxu1  ;;  %v6574_v24 = vmax.f32 %v6572_v35, %v6573_v14  ;;  %v6575_v28 = vld [vmem:[#allocation80_spill] sm:$0xff]  ;;  %v6576_v29 = vld [vmem:[#allocation81_spill] sm:$0xff] }
 0x1dd   :  { %2975 = vst [vmem:[%s6268_s3 + $0x1a0] sm:$0xff] %v2911_v62  ;;  %v2849_v16 = vadd.f32 %v5815_v49, %v2778_v23  ;;  %v2716_v32 = vmax.f32 %v1915_v59, %v2557_v15  ;;  %v6578_v15 = vld [vmem:[#allocation82_spill] sm:$0xff] }
 0x1de   :  { %v2914_v42 = vmax.f32 %v2850_v31, 0.0  ;;  %v2781_v46 = vmax.f32 %v6559_v44, %v2717_v58  ;;  %v6577_v31 = vmax.f32 %v6575_v28, %v6576_v29 }
 0x1df   :  { %v2913_v47 = vmax.f32 %v2849_v16, 0.0  ;;  %v2780_v26 = vmax.f32 %v6562_v3, %v2716_v32  ;;  %v4081_v36 = vpop.f32.mrb[122].mxu0  ;;  %v4197_v17 = vpop.f32.mrb[122].mxu1  ;;  %v6579_v16 = vld [vmem:[#allocation83_spill] sm:$0xff] }
 0x1e0   :  { %2978 = vst [vmem:[%s6268_s3 + $0x1b8] sm:$0xff] %v2914_v42  ;;  %v2852_v50 = vadd.f32 %v5815_v49, %v2781_v46  ;;  %v2719_v8 = vmax.f32 %v4081_v36, %v4197_v17  ;;  %v1925_v38 = vpop.f32.mrb[123].mxu0  ;;  %v2567_v39 = vpop.f32.mrb[123].mxu1  ;;  %v6580_v32 = vmax.f32 %v6578_v15, %v6579_v16 }
 0x1e1   :  { %2977 = vst [vmem:[%s6268_s3 + $0x1b0] sm:$0xff] %v2913_v47  ;;  %v2851_v41 = vadd.f32 %v5815_v49, %v2780_v26  ;;  %v2718_v48 = vmax.f32 %v1925_v38, %v2567_v39 }
 0x1e2   :  { %v2916_v9 = vmax.f32 %v2852_v50, 0.0  ;;  %v2783_v52 = vmax.f32 %v6565_v13, %v2719_v8 }
 0x1e3   :  { %v2915_v53 = vmax.f32 %v2851_v41, 0.0  ;;  %v2782_v56 = vmax.f32 %v6568_v7, %v2718_v48  ;;  %v4084_v20 = vpop.f32.mrb[124].mxu0  ;;  %v4200_v30 = vpop.f32.mrb[124].mxu1 }
 0x1e4   :  { %2980 = vst [vmem:[%s6268_s3 + $0x1c8] sm:$0xff] %v2916_v9  ;;  %v2854_v60 = vadd.f32 %v5815_v49, %v2783_v52  ;;  %v2721_v61 = vmax.f32 %v4084_v20, %v4200_v30  ;;  %v1935_v5 = vpop.f32.mrb[125].mxu0  ;;  %v2577_v6 = vpop.f32.mrb[125].mxu1 }
 0x1e5   :  { %2979 = vst [vmem:[%s6268_s3 + $0x1c0] sm:$0xff] %v2915_v53  ;;  %v2853_v33 = vadd.f32 %v5815_v49, %v2782_v56  ;;  %v2720_v40 = vmax.f32 %v1935_v5, %v2577_v6 }
 0x1e6   :  { %v2918_v37 = vmax.f32 %v2854_v60, 0.0  ;;  %v2785_v22 = vmax.f32 %v6571_v21, %v2721_v61 }
 0x1e7   :  { %v2917_v51 = vmax.f32 %v2853_v33, 0.0  ;;  %v2784_v25 = vmax.f32 %v6574_v24, %v2720_v40  ;;  %v4087_v27 = vpop.f32.mrb[126].mxu0  ;;  %v4203_v34 = vpop.f32.mrb[126].mxu1 }
 0x1e8   :  { %2982 = vst [vmem:[%s6268_s3 + $0x1d8] sm:$0xff] %v2918_v37  ;;  %v2856_v57 = vadd.f32 %v5815_v49, %v2785_v22  ;;  %v2723_v0 = vmax.f32 %v4087_v27, %v4203_v34  ;;  %v1945_v62 = vpop.f32.mrb[127].mxu0  ;;  %v2587_v63 = vpop.f32.mrb[127].mxu1 }
 0x1e9   :  { %2981 = vst [vmem:[%s6268_s3 + $0x1d0] sm:$0xff] %v2917_v51  ;;  %v2855_v1 = vadd.f32 %v5815_v49, %v2784_v25  ;;  %v2722_v2 = vmax.f32 %v1945_v62, %v2587_v63 }
 0x1ea   :  { %v2920_v23 = vmax.f32 %v2856_v57, 0.0  ;;  %v2787_v58 = vmax.f32 %v6577_v31, %v2723_v0 }
 0x1eb   :  { %v2919_v59 = vmax.f32 %v2855_v1, 0.0  ;;  %v2786_v42 = vmax.f32 %v6580_v32, %v2722_v2 }
 0x1ec   :  { %2984 = vst [vmem:[%s6268_s3 + $0x1e8] sm:$0xff] %v2920_v23  ;;  %v2858_v43 = vadd.f32 %v5815_v49, %v2787_v58 }
 0x1ed   :  { %2983 = vst [vmem:[%s6268_s3 + $0x1e0] sm:$0xff] %v2919_v59  ;;  %v2857_v45 = vadd.f32 %v5815_v49, %v2786_v42 }
 0x1ee   :  { %v2922_v44 = vmax.f32 %v2858_v43, 0.0 }
 0x1ef   :  { %v2921_v46 = vmax.f32 %v2857_v45, 0.0 }
 0x1f0   :  { %2986 = vst [vmem:[%s6268_s3 + $0x1f8] sm:$0xff] %v2922_v44 }
 0x1f1   :  { %2985 = vst [vmem:[%s6268_s3 + $0x1f0] sm:$0xff] %v2921_v46 }

// kernel: lenet5_forward.4
= control target key start
LH: loop header
LB: loop body
LE: loop exit
PB: predicated region body
PF: predicated region fallthrough
CT: control target
= control target key end

     0   :  { %vm226_vm0 = vcmask 261120   ;;  %s7776_s1 = inlined_call_operand.vmem [shape: f32[800,128], index: 1, kind: input, shape index: {}]   ;;  %s7777_s0 = inlined_call_operand.vmem [shape: f32[4,128,800], index: 0, kind: input, shape index: {}]   ;;  %s7778_s2 = inlined_call_operand.vmem [shape: f32[1,128], index: 2, kind: input, shape index: {}]   ;;  %s7779_s3 = inlined_call_operand.vmem [shape: f32[128,128], index: 3, kind: output, shape index: {}]  }
   0x1   :  { %v30_v0 = vld [vmem:[%s7776_s1 + $0x80] sm:$0xff]  ;;  %v31_v1 = vld [vmem:[%s7776_s1 + $0x88] sm:$0xff]  ;;  %v32_v11 = vld [vmem:[%s7776_s1 + $0x90] sm:$0xff] }
   0x2   :  { %v62_v2 = vld [vmem:[%s7776_s1 + $0x180] sm:$0xff]  ;;  %v5199_v3 = vpack.c.bf16 %v31_v1, %v30_v0  ;;  %v63_v4 = vld [vmem:[%s7776_s1 + $0x188] sm:$0xff]  ;;  %v33_v13 = vld [vmem:[%s7776_s1 + $0x98] sm:$0xff] }
   0x3   :  { %v14_v5 = vld [vmem:[%s7776_s1] sm:$0xff]  ;;  %v15_v6 = vld [vmem:[%s7776_s1 + $0x8] sm:$0xff]  ;;  %v5210_v7 = vpack.c.bf16 %v63_v4, %v62_v2  ;;  %v64_v14 = vld [vmem:[%s7776_s1 + $0x190] sm:$0xff]  ;;  %v5237_v16 = vpack.c.bf16 %v33_v13, %v32_v11 }
   0x4   :  { %v5212_v8 = vpack.c.bf16 %v15_v6, %v14_v5  ;;  %v46_v9 = vld [vmem:[%s7776_s1 + $0x100] sm:$0xff]  ;;  %v47_v10 = vld [vmem:[%s7776_s1 + $0x108] sm:$0xff]  ;;  %4755 = vmatprep.subr.bf16.mxu0 %v5199_v3  ;;  %v65_v15 = vld [vmem:[%s7776_s1 + $0x198] sm:$0xff] }
   0x5   :  { %v5224_v12 = vpack.c.bf16 %v47_v10, %v46_v9  ;;  %4787 = vmatprep.subr.bf16.mxu1 %v5210_v7  ;;  %v5239_v17 = vpack.c.bf16 %v65_v15, %v64_v14  ;;  %v16_v18 = vld [vmem:[%s7776_s1 + $0x10] sm:$0xff]  ;;  %v17_v19 = vld [vmem:[%s7776_s1 + $0x18] sm:$0xff]  ;;  %v34_v23 = vld [vmem:[%s7776_s1 + $0xa0] sm:$0xff] }
   0x6   :  { %4757 = vmatpush3.bf16.msra.mxu0 %v5212_v8  ;;  %v48_v20 = vld [vmem:[%s7776_s1 + $0x110] sm:$0xff]  ;;  %v5251_v21 = vpack.c.bf16 %v17_v19, %v16_v18  ;;  %v49_v22 = vld [vmem:[%s7776_s1 + $0x118] sm:$0xff]  ;;  %v35_v24 = vld [vmem:[%s7776_s1 + $0xa8] sm:$0xff] }
   0x7   :  { %4789 = vmatpush3.bf16.msra.mxu1 %v5224_v12  ;;  %4759 = vmatprep.subr.bf16.mxu0 %v5237_v16  ;;  %v5264_v25 = vpack.c.bf16 %v49_v22, %v48_v20  ;;  %v5266_v26 = vpack.c.bf16 %v35_v24, %v34_v23  ;;  %v66_v27 = vld [vmem:[%s7776_s1 + $0x1a0] sm:$0xff]  ;;  %v67_v28 = vld [vmem:[%s7776_s1 + $0x1a8] sm:$0xff]  ;;  %v36_v35 = vld [vmem:[%s7776_s1 + $0xb0] sm:$0xff] }
   0x8   :  { %4791 = vmatprep.subr.bf16.mxu1 %v5239_v17  ;;  %v18_v29 = vld [vmem:[%s7776_s1 + $0x20] sm:$0xff]  ;;  %v5277_v30 = vpack.c.bf16 %v67_v28, %v66_v27  ;;  %v19_v31 = vld [vmem:[%s7776_s1 + $0x28] sm:$0xff]  ;;  %v37_v36 = vld [vmem:[%s7776_s1 + $0xb8] sm:$0xff] }
   0x9   :  { %v50_v32 = vld [vmem:[%s7776_s1 + $0x120] sm:$0xff]  ;;  %v51_v33 = vld [vmem:[%s7776_s1 + $0x128] sm:$0xff]  ;;  %v5289_v34 = vpack.c.bf16 %v19_v31, %v18_v29  ;;  %v68_v37 = vld [vmem:[%s7776_s1 + $0x1b0] sm:$0xff]  ;;  %v5304_v39 = vpack.c.bf16 %v37_v36, %v36_v35 }
   0xa   :  { %4761 = vmatpush3.bf16.msra.mxu0 %v5251_v21  ;;  %v5302_v38 = vpack.c.bf16 %v51_v33, %v50_v32  ;;  %v69_v40 = vld [vmem:[%s7776_s1 + $0x1b8] sm:$0xff]  ;;  %v20_v41 = vld [vmem:[%s7776_s1 + $0x30] sm:$0xff]  ;;  %v38_v46 = vld [vmem:[%s7776_s1 + $0xc0] sm:$0xff] }
   0xb   :  { %4793 = vmatpush3.bf16.msra.mxu1 %v5264_v25  ;;  %4763 = vmatprep.subr.bf16.mxu0 %v5266_v26  ;;  %v21_v42 = vld [vmem:[%s7776_s1 + $0x38] sm:$0xff]  ;;  %v5316_v43 = vpack.c.bf16 %v69_v40, %v68_v37  ;;  %v52_v44 = vld [vmem:[%s7776_s1 + $0x130] sm:$0xff]  ;;  %v39_v47 = vld [vmem:[%s7776_s1 + $0xc8] sm:$0xff] }
   0xc   :  { %4795 = vmatprep.subr.bf16.mxu1 %v5277_v30  ;;  %v53_v45 = vld [vmem:[%s7776_s1 + $0x138] sm:$0xff]  ;;  %v70_v48 = vld [vmem:[%s7776_s1 + $0x1c0] sm:$0xff]  ;;  %v71_v49 = vld [vmem:[%s7776_s1 + $0x1c8] sm:$0xff]  ;;  %v5337_v50 = vpack.c.bf16 %v21_v42, %v20_v41  ;;  %v5343_v52 = vpack.c.bf16 %v39_v47, %v38_v46 }
   0xd   :  { %v5341_v51 = vpack.c.bf16 %v53_v45, %v52_v44  ;;  %v22_v53 = vld [vmem:[%s7776_s1 + $0x40] sm:$0xff]  ;;  %v23_v54 = vld [vmem:[%s7776_s1 + $0x48] sm:$0xff]  ;;  %v5355_v56 = vpack.c.bf16 %v71_v49, %v70_v48  ;;  %v40_v58 = vld [vmem:[%s7776_s1 + $0xd0] sm:$0xff] }
   0xe   :  { %4765 = vmatpush3.bf16.msra.mxu0 %v5289_v34  ;;  %v54_v55 = vld [vmem:[%s7776_s1 + $0x140] sm:$0xff]  ;;  %v55_v57 = vld [vmem:[%s7776_s1 + $0x148] sm:$0xff]  ;;  %v41_v59 = vld [vmem:[%s7776_s1 + $0xd8] sm:$0xff]  ;;  %v5373_v62 = vpack.c.bf16 %v23_v54, %v22_v53 }
   0xf   :  { %4797 = vmatpush3.bf16.msra.mxu1 %v5302_v38  ;;  %4767 = vmatprep.subr.bf16.mxu0 %v5304_v39  ;;  %v72_v60 = vld [vmem:[%s7776_s1 + $0x1d0] sm:$0xff]  ;;  %v73_v61 = vld [vmem:[%s7776_s1 + $0x1d8] sm:$0xff]  ;;  %v5377_v63 = vpack.c.bf16 %v55_v57, %v54_v55  ;;  %v5379_v0 = vpack.c.bf16 %v41_v59, %v40_v58  ;;  %v42_v9 = vld [vmem:[%s7776_s1 + $0xe0] sm:$0xff] }
  0x10   :  { %4799 = vmatprep.subr.bf16.mxu1 %v5316_v43  ;;  %v24_v1 = vld [vmem:[%s7776_s1 + $0x50] sm:$0xff]  ;;  %v25_v2 = vld [vmem:[%s7776_s1 + $0x58] sm:$0xff]  ;;  %v5391_v5 = vpack.c.bf16 %v73_v61, %v72_v60  ;;  %v43_v10 = vld [vmem:[%s7776_s1 + $0xe8] sm:$0xff] }
  0x11   :  { %v56_v4 = vld [vmem:[%s7776_s1 + $0x150] sm:$0xff]  ;;  %v57_v6 = vld [vmem:[%s7776_s1 + $0x158] sm:$0xff]  ;;  %v74_v11 = vld [vmem:[%s7776_s1 + $0x1e0] sm:$0xff]  ;;  %v5409_v14 = vpack.c.bf16 %v25_v2, %v24_v1  ;;  %v5421_v20 = vpack.c.bf16 %v43_v10, %v42_v9 }
  0x12   :  { %4769 = vmatpush3.bf16.msra.mxu0 %v5337_v50  ;;  %v75_v13 = vld [vmem:[%s7776_s1 + $0x1e8] sm:$0xff]  ;;  %v26_v15 = vld [vmem:[%s7776_s1 + $0x60] sm:$0xff]  ;;  %v5419_v19 = vpack.c.bf16 %v57_v6, %v56_v4  ;;  %v117_v24 = vld [vmem:[%s7777_s0 + $0x18] sm:$0xff] }
  0x13   :  { %4801 = vmatpush3.bf16.msra.mxu1 %v5341_v51  ;;  %4771 = vmatprep.subr.bf16.mxu0 %v5343_v52  ;;  %v27_v18 = vld [vmem:[%s7776_s1 + $0x68] sm:$0xff]  ;;  %v58_v22 = vld [vmem:[%s7776_s1 + $0x160] sm:$0xff]  ;;  %v5433_v27 = vpack.c.bf16 %v75_v13, %v74_v11  ;;  %v44_v29 = vld [vmem:[%s7776_s1 + $0xf0] sm:$0xff] }
  0x14   :  { %4803 = vmatprep.subr.bf16.mxu1 %v5355_v56  ;;  %v115_v23 = vld [vmem:[%s7777_s0 + $0x8] sm:$0xff]  ;;  %v45_v31 = vld [vmem:[%s7776_s1 + $0xf8] sm:$0xff]  ;;  %v76_v32 = vld [vmem:[%s7776_s1 + $0x1f0] sm:$0xff]  ;;  %484 = vmatprep.mubr.f32.mxu1 %v117_v24  ;;  %v5451_v35 = vpack.c.bf16 %v27_v18, %v26_v15 }
  0x15   :  { %v59_v28 = vld [vmem:[%s7776_s1 + $0x168] sm:$0xff]  ;;  %339 = vmatprep.mubr.f32.mxu0 %v115_v23  ;;  %v77_v33 = vld [vmem:[%s7776_s1 + $0x1f8] sm:$0xff]  ;;  %v5457_v37 = vpack.c.bf16 %v45_v31, %v44_v29  ;;  %v28_v40 = vld [vmem:[%s7776_s1 + $0x70] sm:$0xff] }
  0x16   :  { %4773 = vmatpush3.bf16.msra.mxu0 %v5373_v62  ;;  %v5455_v36 = vpack.c.bf16 %v59_v28, %v58_v22  ;;  %v29_v41 = vld [vmem:[%s7776_s1 + $0x78] sm:$0xff]  ;;  %v60_v42 = vld [vmem:[%s7776_s1 + $0x170] sm:$0xff]  ;;  %v5469_v44 = vpack.c.bf16 %v77_v33, %v76_v32  ;;  %v94_v46 = vld [vmem:[%s7776_s1 + $0x280] sm:$0xff] }
  0x17   :  { %4805 = vmatpush3.bf16.msra.mxu1 %v5377_v63  ;;  %4775 = vmatprep.subr.bf16.mxu0 %v5379_v0  ;;  %v61_v45 = vld [vmem:[%s7776_s1 + $0x178] sm:$0xff]  ;;  %v95_v47 = vld [vmem:[%s7776_s1 + $0x288] sm:$0xff]  ;;  %v110_v48 = vld [vmem:[%s7776_s1 + $0x300] sm:$0xff]  ;;  %v5487_v53 = vpack.c.bf16 %v29_v41, %v28_v40 }
  0x18   :  { %4807 = vmatprep.subr.bf16.mxu1 %v5391_v5  ;;  %v111_v49 = vld [vmem:[%s7776_s1 + $0x308] sm:$0xff]  ;;  %v5491_v54 = vpack.c.bf16 %v61_v45, %v60_v42  ;;  %v5493_v55 = vpack.c.bf16 %v95_v47, %v94_v46  ;;  %v78_v58 = vld [vmem:[%s7776_s1 + $0x200] sm:$0xff]  ;;  %v96_v61 = vld [vmem:[%s7776_s1 + $0x290] sm:$0xff] }
  0x19   :  { %7811 = vst [vmem:[#allocation2_spill] sm:$0xff] %v5487_v53  ;;  %v5496_v57 = vpack.c.bf16 %v111_v49, %v110_v48  ;;  %v79_v59 = vld [vmem:[%s7776_s1 + $0x208] sm:$0xff]  ;;  %v114_v60 = vld [vmem:[%s7777_s0] sm:$0xff]  ;;  %v97_v1 = vld [vmem:[%s7776_s1 + $0x298] sm:$0xff] }
  0x1a   :  { %4777 = vmatpush3.bf16.msra.mxu0 %v5409_v14  ;;  %7812 = vst [vmem:[#allocation3_spill] sm:$0xff] %v5491_v54  ;;  %v116_v2 = vld [vmem:[%s7777_s0 + $0x10] sm:$0xff]  ;;  %v122_v4 = vld [vmem:[%s7777_s0 + $0x40] sm:$0xff]  ;;  %v5526_v9 = vpack.c.bf16 %v79_v59, %v78_v58  ;;  %v5528_v10 = vpack.c.bf16 %v97_v1, %v96_v61  ;;  %v81_v13 = vld [vmem:[%s7776_s1 + $0x218] sm:$0xff] }
  0x1b   :  { %4809 = vmatpush3.bf16.msra.mxu1 %v5419_v19  ;;  %4779 = vmatprep.subr.bf16.mxu0 %v5421_v20  ;;  %v124_v6 = vld [vmem:[%s7777_s0 + $0x50] sm:$0xff]  ;;  %v121_v15 = vld [vmem:[%s7777_s0 + $0x38] sm:$0xff]  ;;  %v98_v18 = vld [vmem:[%s7776_s1 + $0x2a0] sm:$0xff] }
  0x1c   :  { %4811 = vmatprep.subr.bf16.mxu1 %v5433_v27  ;;  %7813 = vst [vmem:[#allocation4_spill] sm:$0xff] %v5526_v9  ;;  %v80_v11 = vld [vmem:[%s7776_s1 + $0x210] sm:$0xff]  ;;  %v99_v22 = vld [vmem:[%s7776_s1 + $0x2a8] sm:$0xff]  ;;  %v129_v24 = vld [vmem:[%s7777_s0 + $0x78] sm:$0xff] }
  0x1d   :  { %v123_v23 = vld [vmem:[%s7777_s0 + $0x48] sm:$0xff]  ;;  %v5556_v29 = vpack.c.bf16 %v81_v13, %v80_v11  ;;  %v82_v31 = vld [vmem:[%s7776_s1 + $0x220] sm:$0xff]  ;;  %v5562_v32 = vpack.c.bf16 %v99_v22, %v98_v18  ;;  %v112_v40 = vld [vmem:[%s7776_s1 + $0x310] sm:$0xff] }
  0x1e   :  { %4781 = vmatpush3.bf16.msra.mxu0 %v5451_v35  ;;  %v131_v28 = vld [vmem:[%s7777_s0 + $0x88] sm:$0xff]  ;;  %v113_v41 = vld [vmem:[%s7776_s1 + $0x318] sm:$0xff]  ;;  %v128_v42 = vld [vmem:[%s7777_s0 + $0x70] sm:$0xff] }
  0x1f   :  { %4813 = vmatpush3.bf16.msra.mxu1 %v5455_v36  ;;  %4783 = vmatprep.subr.bf16.mxu0 %v5457_v37  ;;  %v83_v33 = vld [vmem:[%s7776_s1 + $0x228] sm:$0xff]  ;;  %v100_v45 = vld [vmem:[%s7776_s1 + $0x2b0] sm:$0xff]  ;;  %v101_v46 = vld [vmem:[%s7776_s1 + $0x2b8] sm:$0xff]  ;;  %v5582_v47 = vpack.c.bf16 %v113_v41, %v112_v40 }
  0x20   :  { %4815 = vmatprep.subr.bf16.mxu1 %v5469_v44  ;;  %v130_v48 = vld [vmem:[%s7777_s0 + $0x80] sm:$0xff]  ;;  %v136_v49 = vld [vmem:[%s7777_s0 + $0xb0] sm:$0xff]  ;;  %v5594_v59 = vpack.c.bf16 %v83_v33, %v82_v31  ;;  %v85_v1 = vld [vmem:[%s7776_s1 + $0x238] sm:$0xff] }
  0x21   :  { %7814 = vst [vmem:[#allocation5_spill] sm:$0xff] %v5582_v47  ;;  %v138_v58 = vld [vmem:[%s7777_s0 + $0xc0] sm:$0xff]  ;;  %v84_v61 = vld [vmem:[%s7776_s1 + $0x230] sm:$0xff]  ;;  %v137_v11 = vld [vmem:[%s7777_s0 + $0xb8] sm:$0xff] }
  0x22   :  { %4785 = vmatpush3.bf16.msra.mxu0 %v5487_v53  ;;  %v143_v13 = vld [vmem:[%s7777_s0 + $0xe8] sm:$0xff]  ;;  %v5626_v18 = vpack.c.bf16 %v85_v1, %v84_v61  ;;  %v104_v31 = vld [vmem:[%s7776_s1 + $0x2d0] sm:$0xff]  ;;  %v105_v33 = vld [vmem:[%s7776_s1 + $0x2d8] sm:$0xff] }
  0x23   :  { %4817 = vmatpush3.bf16.msra.mxu1 %v5491_v54  ;;  %4819 = vmatprep.subr.bf16.mxu0 %v5493_v55  ;;  %v144_v40 = vld [vmem:[%s7777_s0 + $0xf0] sm:$0xff]  ;;  %v150_v41 = vld [vmem:[%s7777_s0 + $0x120] sm:$0xff]  ;;  %v107_v1 = vld [vmem:[%s7776_s1 + $0x2e8] sm:$0xff] }
  0x24   :  { %4851 = vmatprep.subr.bf16.mxu1 %v5496_v57  ;;  %v106_v61 = vld [vmem:[%s7776_s1 + $0x2e0] sm:$0xff] }
  0x25   :  { %340 = vmatmul.mubr.f32.vlgmr.msra.gmra.mrb[0].mxu0 %v114_v60  ;;  %v5598_v60 = vpack.c.bf16 %v101_v46, %v100_v45  ;;  %v5660_v46 = vpack.c.bf16 %v105_v33, %v104_v31  ;;  %v109_v31 = vld [vmem:[%s7776_s1 + $0x2f8] sm:$0xff]  ;;  %v158_v33 = vld [vmem:[%s7777_s0 + $0x160] sm:$0xff] }
  0x26   :  { %485 = vmatmul.mubr.f32.vlgmr.msra.gmra.mrb[0].mxu1 %v116_v2  ;;  %344 = vmatprep.mubr.f32.mxu0 %v122_v4  ;;  %v135_v2 = vld [vmem:[%s7777_s0 + $0xa8] sm:$0xff]  ;;  %v102_v4 = vld [vmem:[%s7776_s1 + $0x2c0] sm:$0xff] }
  0x27   :  { %4853 = vmatpush3.bf16.msra.mxu1 %v5496_v57  ;;  %489 = vmatprep.mubr.f32.mxu1 %v124_v6  ;;  %7815 = vst [vmem:[#allocation6_spill] sm:$0xff] %v5598_v60  ;;  %v103_v6 = vld [vmem:[%s7776_s1 + $0x2c8] sm:$0xff]  ;;  %7818 = vst [vmem:[#allocation9_spill] sm:$0xff] %v5660_v46 }
  0x28   :  { %4821 = vmatpush3.bf16.msra.mxu0 %v5526_v9  ;;  %4855 = vmatprep.subr.bf16.mxu1 %v5582_v47  ;;  %v5630_v22 = vpack.c.bf16 %v103_v6, %v102_v4  ;;  %v157_v4 = vld [vmem:[%s7777_s0 + $0x158] sm:$0xff]  ;;  %v159_v6 = vld [vmem:[%s7777_s0 + $0x168] sm:$0xff] }
  0x29   :  { %345 = vmatmul.mubr.f32.gmra.mrb[2].mxu0 %v121_v15  ;;  %4823 = vmatprep.subr.bf16.mxu0 %v5528_v10  ;;  %v145_v15 = vld [vmem:[%s7777_s0 + $0xf8] sm:$0xff] }
  0x2a   :  { %490 = vmatmul.mubr.f32.gmra.mrb[2].mxu1 %v123_v23  ;;  %349 = vmatprep.mubr.f32.mxu0 %v129_v24  ;;  %7816 = vst [vmem:[#allocation7_spill] sm:$0xff] %v5630_v22  ;;  %v86_v23 = vld [vmem:[%s7776_s1 + $0x240] sm:$0xff]  ;;  %v87_v24 = vld [vmem:[%s7776_s1 + $0x248] sm:$0xff] }
  0x2b   :  { %494 = vmatprep.mubr.f32.mxu1 %v131_v28  ;;  %4857 = vmatpush3.bf16.msra.mxu1 %v5582_v47  ;;  %v142_v28 = vld [vmem:[%s7777_s0 + $0xe0] sm:$0xff]  ;;  %v5657_v45 = vpack.c.bf16 %v87_v24, %v86_v23  ;;  %v91_v23 = vld [vmem:[%s7776_s1 + $0x268] sm:$0xff]  ;;  %v156_v24 = vld [vmem:[%s7777_s0 + $0x150] sm:$0xff] }
  0x2c   :  { %4825 = vmatpush3.bf16.msra.mxu0 %v5556_v29  ;;  %4859 = vmatprep.subr.bf16.mxu1 %v5199_v3 }
  0x2d   :  { %350 = vmatmul.mubr.f32.gmra.mrb[4].mxu0 %v128_v42  ;;  %4827 = vmatprep.subr.bf16.mxu0 %v5562_v32  ;;  %v152_v42 = vld [vmem:[%s7777_s0 + $0x130] sm:$0xff]  ;;  %7817 = vst [vmem:[#allocation8_spill] sm:$0xff] %v5657_v45 }
  0x2e   :  { %495 = vmatmul.mubr.f32.gmra.mrb[4].mxu1 %v130_v48  ;;  %354 = vmatprep.mubr.f32.mxu0 %v136_v49  ;;  %v88_v48 = vld [vmem:[%s7776_s1 + $0x250] sm:$0xff]  ;;  %v89_v49 = vld [vmem:[%s7776_s1 + $0x258] sm:$0xff] }
  0x2f   :  { %499 = vmatprep.mubr.f32.mxu1 %v138_v58  ;;  %v149_v58 = vld [vmem:[%s7777_s0 + $0x118] sm:$0xff] }
  0x30   :  { %4829 = vmatpush3.bf16.msra.mxu0 %v5594_v59 }
  0x31   :  { %355 = vmatmul.mubr.f32.gmra.mrb[6].mxu0 %v135_v2  ;;  %4831 = vmatprep.subr.bf16.mxu0 %v5598_v60  ;;  %v151_v2 = vld [vmem:[%s7777_s0 + $0x128] sm:$0xff] }
  0x32   :  { %500 = vmatmul.mubr.f32.gmra.mrb[6].mxu1 %v137_v11  ;;  %359 = vmatprep.mubr.f32.mxu0 %v143_v13  ;;  %v5687_v11 = vpack.c.bf16 %v89_v49, %v88_v48  ;;  %v5690_v13 = vpack.c.bf16 %v107_v1, %v106_v61  ;;  %v92_v49 = vld [vmem:[%s7776_s1 + $0x270] sm:$0xff]  ;;  %v163_v61 = vld [vmem:[%s7777_s0 + $0x188] sm:$0xff]  ;;  %v165_v1 = vld [vmem:[%s7777_s0 + $0x198] sm:$0xff] }
  0x33   :  { %504 = vmatprep.mubr.f32.mxu1 %v145_v15  ;;  %v90_v15 = vld [vmem:[%s7776_s1 + $0x260] sm:$0xff] }
  0x34   :  { %4833 = vmatpush3.bf16.msra.mxu0 %v5626_v18  ;;  %7819 = vst [vmem:[#allocation10_spill] sm:$0xff] %v5687_v11  ;;  %7820 = vst [vmem:[#allocation11_spill] sm:$0xff] %v5690_v13 }
  0x35   :  { %360 = vmatmul.mubr.f32.gmra.mrb[8].mxu0 %v142_v28  ;;  %4835 = vmatprep.subr.bf16.mxu0 %v5630_v22  ;;  %v108_v28 = vld [vmem:[%s7776_s1 + $0x2f0] sm:$0xff] }
  0x36   :  { %505 = vmatmul.mubr.f32.gmra.mrb[8].mxu1 %v144_v40  ;;  %364 = vmatprep.mubr.f32.mxu0 %v150_v41  ;;  %v164_v40 = vld [vmem:[%s7777_s0 + $0x190] sm:$0xff]  ;;  %v166_v41 = vld [vmem:[%s7777_s0 + $0x1a0] sm:$0xff]  ;;  %v5720_v48 = vpack.c.bf16 %v109_v31, %v108_v28  ;;  %v177_v31 = vld [vmem:[%s7777_s0 + $0x1f8] sm:$0xff] }
  0x37   :  { %509 = vmatprep.mubr.f32.mxu1 %v152_v42  ;;  %v5717_v42 = vpack.c.bf16 %v91_v23, %v90_v15  ;;  %v170_v15 = vld [vmem:[%s7777_s0 + $0x1c0] sm:$0xff]  ;;  %v172_v23 = vld [vmem:[%s7777_s0 + $0x1d0] sm:$0xff] }
  0x38   :  { %4837 = vmatpush3.bf16.msra.mxu0 %v5657_v45  ;;  %7822 = vst [vmem:[#allocation13_spill] sm:$0xff] %v5720_v48  ;;  %v180_v28 = vld [vmem:[%s7777_s0 + $0x210] sm:$0xff] }
  0x39   :  { %365 = vmatmul.mubr.f32.gmra.mrb[10].mxu0 %v149_v58  ;;  %4839 = vmatprep.subr.bf16.mxu0 %v5660_v46  ;;  %7821 = vst [vmem:[#allocation12_spill] sm:$0xff] %v5717_v42  ;;  %v93_v58 = vld [vmem:[%s7776_s1 + $0x278] sm:$0xff] }
  0x3a   :  { %510 = vmatmul.mubr.f32.gmra.mrb[10].mxu1 %v151_v2  ;;  %369 = vmatprep.mubr.f32.mxu0 %v157_v4  ;;  %v171_v2 = vld [vmem:[%s7777_s0 + $0x1c8] sm:$0xff]  ;;  %v173_v4 = vld [vmem:[%s7777_s0 + $0x1d8] sm:$0xff] }
  0x3b   :  { %514 = vmatprep.mubr.f32.mxu1 %v159_v6  ;;  %v5741_v6 = vpack.c.bf16 %v93_v58, %v92_v49  ;;  %v184_v49 = vld [vmem:[%s7777_s0 + $0x230] sm:$0xff]  ;;  %v186_v58 = vld [vmem:[%s7777_s0 + $0x240] sm:$0xff] }
  0x3c   :  { %4841 = vmatpush3.bf16.msra.mxu0 %v5687_v11 }
  0x3d   :  { %370 = vmatmul.mubr.f32.gmra.mrb[12].mxu0 %v156_v24  ;;  %4843 = vmatprep.subr.bf16.mxu0 %v5690_v13  ;;  %7823 = vst [vmem:[#allocation14_spill] sm:$0xff] %v5741_v6  ;;  %v178_v24 = vld [vmem:[%s7777_s0 + $0x200] sm:$0xff] }
  0x3e   :  { %515 = vmatmul.mubr.f32.gmra.mrb[12].mxu1 %v158_v33  ;;  %374 = vmatprep.mubr.f32.mxu0 %v164_v40  ;;  %v179_v33 = vld [vmem:[%s7777_s0 + $0x208] sm:$0xff]  ;;  %v185_v40 = vld [vmem:[%s7777_s0 + $0x238] sm:$0xff] }
  0x3f   :  { %519 = vmatprep.mubr.f32.mxu1 %v166_v41  ;;  %v187_v41 = vld [vmem:[%s7777_s0 + $0x248] sm:$0xff] }
  0x40   :  { %4845 = vmatpush3.bf16.msra.mxu0 %v5717_v42 }
  0x41   :  { %375 = vmatmul.mubr.f32.gmra.mrb[14].mxu0 %v163_v61  ;;  %4847 = vmatprep.subr.bf16.mxu0 %v5720_v48  ;;  %v192_v61 = vld [vmem:[%s7777_s0 + $0x270] sm:$0xff] }
  0x42   :  { %520 = vmatmul.mubr.f32.gmra.mrb[14].mxu1 %v165_v1  ;;  %379 = vmatprep.mubr.f32.mxu0 %v171_v2  ;;  %v194_v1 = vld [vmem:[%s7777_s0 + $0x280] sm:$0xff]  ;;  %v191_v2 = vld [vmem:[%s7777_s0 + $0x268] sm:$0xff] }
  0x43   :  { %524 = vmatprep.mubr.f32.mxu1 %v173_v4  ;;  %v193_v4 = vld [vmem:[%s7777_s0 + $0x278] sm:$0xff] }
  0x44   :  { %4849 = vmatpush3.bf16.msra.mxu0 %v5741_v6 }
  0x45   :  { %380 = vmatmul.mubr.f32.gmra.mrb[16].mxu0 %v170_v15  ;;  %4891 = vmatprep.subr.bf16.mxu0 %v5210_v7  ;;  %v199_v15 = vld [vmem:[%s7777_s0 + $0x2a8] sm:$0xff] }
  0x46   :  { %525 = vmatmul.mubr.f32.gmra.mrb[16].mxu1 %v172_v23  ;;  %384 = vmatprep.mubr.f32.mxu0 %v178_v24  ;;  %v201_v23 = vld [vmem:[%s7777_s0 + $0x2b8] sm:$0xff]  ;;  %v198_v24 = vld [vmem:[%s7777_s0 + $0x2a0] sm:$0xff] }
  0x47   :  { %529 = vmatprep.mubr.f32.mxu1 %v180_v28  ;;  %v200_v28 = vld [vmem:[%s7777_s0 + $0x2b0] sm:$0xff] }
  0x49   :  { %385 = vmatmul.mubr.f32.gmra.mrb[18].mxu0 %v177_v31  ;;  %v206_v31 = vld [vmem:[%s7777_s0 + $0x2e0] sm:$0xff] }
  0x4a   :  { %530 = vmatmul.mubr.f32.gmra.mrb[18].mxu1 %v179_v33  ;;  %389 = vmatprep.mubr.f32.mxu0 %v185_v40  ;;  %v208_v33 = vld [vmem:[%s7777_s0 + $0x2f0] sm:$0xff]  ;;  %v205_v40 = vld [vmem:[%s7777_s0 + $0x2d8] sm:$0xff] }
  0x4b   :  { %534 = vmatprep.mubr.f32.mxu1 %v187_v41  ;;  %v207_v41 = vld [vmem:[%s7777_s0 + $0x2e8] sm:$0xff] }
  0x4d   :  { %390 = vmatmul.mubr.f32.gmra.mrb[20].mxu0 %v184_v49  ;;  %v213_v49 = vld [vmem:[%s7777_s0 + $0x318] sm:$0xff] }
  0x4e   :  { %535 = vmatmul.mubr.f32.gmra.mrb[20].mxu1 %v186_v58  ;;  %394 = vmatprep.mubr.f32.mxu0 %v192_v61  ;;  %v215_v58 = vld [vmem:[%s7777_s0 + $0x328] sm:$0xff]  ;;  %v212_v61 = vld [vmem:[%s7777_s0 + $0x310] sm:$0xff] }
  0x4f   :  { %539 = vmatprep.mubr.f32.mxu1 %v194_v1  ;;  %v214_v1 = vld [vmem:[%s7777_s0 + $0x320] sm:$0xff] }
  0x51   :  { %395 = vmatmul.mubr.f32.gmra.mrb[22].mxu0 %v191_v2  ;;  %v220_v2 = vld [vmem:[%s7777_s0 + $0x350] sm:$0xff] }
  0x52   :  { %540 = vmatmul.mubr.f32.gmra.mrb[22].mxu1 %v193_v4  ;;  %399 = vmatprep.mubr.f32.mxu0 %v199_v15  ;;  %v222_v4 = vld [vmem:[%s7777_s0 + $0x360] sm:$0xff]  ;;  %v219_v15 = vld [vmem:[%s7777_s0 + $0x348] sm:$0xff] }
  0x53   :  { %544 = vmatprep.mubr.f32.mxu1 %v201_v23  ;;  %v221_v23 = vld [vmem:[%s7777_s0 + $0x358] sm:$0xff] }
  0x55   :  { %400 = vmatmul.mubr.f32.gmra.mrb[24].mxu0 %v198_v24  ;;  %v119_v24 = vld [vmem:[%s7777_s0 + $0x28] sm:$0xff] }
  0x56   :  { %545 = vmatmul.mubr.f32.gmra.mrb[24].mxu1 %v200_v28  ;;  %404 = vmatprep.mubr.f32.mxu0 %v206_v31  ;;  %v120_v28 = vld [vmem:[%s7777_s0 + $0x30] sm:$0xff]  ;;  %v118_v31 = vld [vmem:[%s7777_s0 + $0x20] sm:$0xff] }
  0x57   :  { %549 = vmatprep.mubr.f32.mxu1 %v208_v33  ;;  %v127_v33 = vld [vmem:[%s7777_s0 + $0x68] sm:$0xff] }
  0x59   :  { %405 = vmatmul.mubr.f32.gmra.mrb[26].mxu0 %v205_v40  ;;  %v126_v40 = vld [vmem:[%s7777_s0 + $0x60] sm:$0xff] }
  0x5a   :  { %550 = vmatmul.mubr.f32.gmra.mrb[26].mxu1 %v207_v41  ;;  %409 = vmatprep.mubr.f32.mxu0 %v213_v49  ;;  %v134_v41 = vld [vmem:[%s7777_s0 + $0xa0] sm:$0xff]  ;;  %v125_v49 = vld [vmem:[%s7777_s0 + $0x58] sm:$0xff] }
  0x5b   :  { %554 = vmatprep.mubr.f32.mxu1 %v215_v58  ;;  %v141_v58 = vld [vmem:[%s7777_s0 + $0xd8] sm:$0xff] }
  0x5d   :  { %410 = vmatmul.mubr.f32.gmra.mrb[28].mxu0 %v212_v61  ;;  %v133_v61 = vld [vmem:[%s7777_s0 + $0x98] sm:$0xff] }
  0x5e   :  { %555 = vmatmul.mubr.f32.gmra.mrb[28].mxu1 %v214_v1  ;;  %414 = vmatprep.mubr.f32.mxu0 %v220_v2  ;;  %v148_v1 = vld [vmem:[%s7777_s0 + $0x110] sm:$0xff] }
  0x5f   :  { %559 = vmatprep.mubr.f32.mxu1 %v222_v4  ;;  %v132_v2 = vld [vmem:[%s7777_s0 + $0x90] sm:$0xff]  ;;  %v155_v4 = vld [vmem:[%s7777_s0 + $0x148] sm:$0xff] }
  0x61   :  { %415 = vmatmul.mubr.f32.gmra.mrb[30].mxu0 %v219_v15  ;;  %v140_v15 = vld [vmem:[%s7777_s0 + $0xd0] sm:$0xff] }
  0x62   :  { %560 = vmatmul.mubr.f32.gmra.mrb[30].mxu1 %v221_v23  ;;  %629 = vmatprep.mubr.f32.mxu0 %v119_v24  ;;  %v162_v23 = vld [vmem:[%s7777_s0 + $0x180] sm:$0xff]  ;;  %v139_v24 = vld [vmem:[%s7777_s0 + $0xc8] sm:$0xff] }
  0x63   :  { %4634 = vmatprep.mubr.msk.f32.mxu1 %vm226_vm0, %v120_v28  ;;  %v169_v28 = vld [vmem:[%s7777_s0 + $0x1b8] sm:$0xff] }
  0x65   :  { %630 = vmatmul.mubr.f32.vlgmr.msra.gmra.mrb[32].mxu0 %v118_v31  ;;  %v147_v31 = vld [vmem:[%s7777_s0 + $0x108] sm:$0xff] }
  0x66   :  { %4635 = vmatmul.mubr.msk.f32.vlgmr.msra.gmra.mrb[32].mxu1 %vm226_vm0, %v127_v33  ;;  %634 = vmatprep.mubr.f32.mxu0 %v126_v40  ;;  %v176_v33 = vld [vmem:[%s7777_s0 + $0x1f0] sm:$0xff]  ;;  %v146_v40 = vld [vmem:[%s7777_s0 + $0x100] sm:$0xff] }
  0x67   :  { %4861 = vmatpush3.bf16.msra.mxu1 %v5212_v8  ;;  %4637 = vmatprep.mubr.msk.f32.mxu1 %vm226_vm0, %v134_v41  ;;  %v183_v41 = vld [vmem:[%s7777_s0 + $0x228] sm:$0xff] }
  0x68   :  { %4863 = vmatprep.subr.bf16.mxu1 %v5237_v16  ;;  %4893 = vmatpush3.bf16.msra.mxu0 %v5224_v12 }
  0x69   :  { %635 = vmatmul.mubr.f32.gmra.mrb[34].mxu0 %v125_v49  ;;  %4895 = vmatprep.subr.bf16.mxu0 %v5239_v17  ;;  %v154_v49 = vld [vmem:[%s7777_s0 + $0x140] sm:$0xff] }
  0x6a   :  { %4638 = vmatmul.mubr.msk.f32.gmra.mrb[34].mxu1 %vm226_vm0, %v141_v58  ;;  %639 = vmatprep.mubr.f32.mxu0 %v133_v61  ;;  %v190_v58 = vld [vmem:[%s7777_s0 + $0x260] sm:$0xff]  ;;  %v153_v61 = vld [vmem:[%s7777_s0 + $0x138] sm:$0xff] }
  0x6b   :  { %4865 = vmatpush3.bf16.msra.mxu1 %v5251_v21  ;;  %4640 = vmatprep.mubr.msk.f32.mxu1 %vm226_vm0, %v148_v1  ;;  %v197_v1 = vld [vmem:[%s7777_s0 + $0x298] sm:$0xff] }
  0x6c   :  { %4867 = vmatprep.subr.bf16.mxu1 %v5266_v26  ;;  %4897 = vmatpush3.bf16.msra.mxu0 %v5264_v25 }
  0x6d   :  { %640 = vmatmul.mubr.f32.gmra.mrb[36].mxu0 %v132_v2  ;;  %4899 = vmatprep.subr.bf16.mxu0 %v5277_v30  ;;  %v161_v2 = vld [vmem:[%s7777_s0 + $0x178] sm:$0xff] }
  0x6e   :  { %4641 = vmatmul.mubr.msk.f32.gmra.mrb[36].mxu1 %vm226_vm0, %v155_v4  ;;  %644 = vmatprep.mubr.f32.mxu0 %v140_v15  ;;  %v204_v4 = vld [vmem:[%s7777_s0 + $0x2d0] sm:$0xff] }
  0x6f   :  { %4869 = vmatpush3.bf16.msra.mxu1 %v5289_v34  ;;  %4643 = vmatprep.mubr.msk.f32.mxu1 %vm226_vm0, %v162_v23  ;;  %v160_v15 = vld [vmem:[%s7777_s0 + $0x170] sm:$0xff]  ;;  %v211_v23 = vld [vmem:[%s7777_s0 + $0x308] sm:$0xff] }
  0x70   :  { %4871 = vmatprep.subr.bf16.mxu1 %v5304_v39  ;;  %4901 = vmatpush3.bf16.msra.mxu0 %v5302_v38 }
  0x71   :  { %645 = vmatmul.mubr.f32.gmra.mrb[38].mxu0 %v139_v24  ;;  %4903 = vmatprep.subr.bf16.mxu0 %v5316_v43  ;;  %v168_v24 = vld [vmem:[%s7777_s0 + $0x1b0] sm:$0xff] }
  0x72   :  { %4644 = vmatmul.mubr.msk.f32.gmra.mrb[38].mxu1 %vm226_vm0, %v169_v28  ;;  %649 = vmatprep.mubr.f32.mxu0 %v147_v31  ;;  %v218_v28 = vld [vmem:[%s7777_s0 + $0x340] sm:$0xff]  ;;  %v167_v31 = vld [vmem:[%s7777_s0 + $0x1a8] sm:$0xff] }
  0x73   :  { %4873 = vmatpush3.bf16.msra.mxu1 %v5337_v50  ;;  %4646 = vmatprep.mubr.msk.f32.mxu1 %vm226_vm0, %v176_v33  ;;  %v225_v33 = vld [vmem:[%s7777_s0 + $0x378] sm:$0xff] }
  0x74   :  { %4875 = vmatprep.subr.bf16.mxu1 %v5343_v52  ;;  %4905 = vmatpush3.bf16.msra.mxu0 %v5341_v51 }
  0x75   :  { %650 = vmatmul.mubr.f32.gmra.mrb[40].mxu0 %v146_v40  ;;  %4907 = vmatprep.subr.bf16.mxu0 %v5355_v56  ;;  %v175_v40 = vld [vmem:[%s7777_s0 + $0x1e8] sm:$0xff] }
  0x76   :  { %4647 = vmatmul.mubr.msk.f32.gmra.mrb[40].mxu1 %vm226_vm0, %v183_v41  ;;  %654 = vmatprep.mubr.f32.mxu0 %v154_v49  ;;  %v3202_v41 = vld [vmem:[%s7777_s0 + $0x388] sm:$0xff]  ;;  %v174_v49 = vld [vmem:[%s7777_s0 + $0x1e0] sm:$0xff] }
  0x77   :  { %4877 = vmatpush3.bf16.msra.mxu1 %v5373_v62  ;;  %4649 = vmatprep.mubr.msk.f32.mxu1 %vm226_vm0, %v190_v58  ;;  %v3201_v58 = vld [vmem:[%s7777_s0 + $0x380] sm:$0xff] }
  0x78   :  { %4879 = vmatprep.subr.bf16.mxu1 %v5379_v0  ;;  %4909 = vmatpush3.bf16.msra.mxu0 %v5377_v63 }
  0x79   :  { %655 = vmatmul.mubr.f32.gmra.mrb[42].mxu0 %v153_v61  ;;  %4911 = vmatprep.subr.bf16.mxu0 %v5391_v5  ;;  %v182_v61 = vld [vmem:[%s7777_s0 + $0x220] sm:$0xff] }
  0x7a   :  { %4650 = vmatmul.mubr.msk.f32.gmra.mrb[42].mxu1 %vm226_vm0, %v197_v1  ;;  %659 = vmatprep.mubr.f32.mxu0 %v161_v2  ;;  %v3209_v1 = vld [vmem:[%s7777_s0 + $0x3c0] sm:$0xff]  ;;  %v181_v2 = vld [vmem:[%s7777_s0 + $0x218] sm:$0xff] }
  0x7b   :  { %4881 = vmatpush3.bf16.msra.mxu1 %v5409_v14  ;;  %4652 = vmatprep.mubr.msk.f32.mxu1 %vm226_vm0, %v204_v4  ;;  %v3208_v4 = vld [vmem:[%s7777_s0 + $0x3b8] sm:$0xff] }
  0x7c   :  { %4883 = vmatprep.subr.bf16.mxu1 %v5421_v20  ;;  %4913 = vmatpush3.bf16.msra.mxu0 %v5419_v19 }
  0x7d   :  { %660 = vmatmul.mubr.f32.gmra.mrb[44].mxu0 %v160_v15  ;;  %4915 = vmatprep.subr.bf16.mxu0 %v5433_v27  ;;  %v189_v15 = vld [vmem:[%s7777_s0 + $0x258] sm:$0xff] }
  0x7e   :  { %4653 = vmatmul.mubr.msk.f32.gmra.mrb[44].mxu1 %vm226_vm0, %v211_v23  ;;  %664 = vmatprep.mubr.f32.mxu0 %v168_v24  ;;  %v3216_v23 = vld [vmem:[%s7777_s0 + $0x3f8] sm:$0xff]  ;;  %v188_v24 = vld [vmem:[%s7777_s0 + $0x250] sm:$0xff] }
  0x7f   :  { %4885 = vmatpush3.bf16.msra.mxu1 %v5451_v35  ;;  %4655 = vmatprep.mubr.msk.f32.mxu1 %vm226_vm0, %v218_v28  ;;  %v3215_v28 = vld [vmem:[%s7777_s0 + $0x3f0] sm:$0xff] }
  0x80   :  { %4887 = vmatprep.subr.bf16.mxu1 %v5457_v37  ;;  %4917 = vmatpush3.bf16.msra.mxu0 %v5455_v36 }
  0x81   :  { %665 = vmatmul.mubr.f32.gmra.mrb[46].mxu0 %v167_v31  ;;  %4919 = vmatprep.subr.bf16.mxu0 %v5469_v44  ;;  %v196_v31 = vld [vmem:[%s7777_s0 + $0x290] sm:$0xff] }
  0x82   :  { %4656 = vmatmul.mubr.msk.f32.gmra.mrb[46].mxu1 %vm226_vm0, %v225_v33  ;;  %669 = vmatprep.mubr.f32.mxu0 %v175_v40  ;;  %v3223_v33 = vld [vmem:[%s7777_s0 + $0x430] sm:$0xff]  ;;  %v195_v40 = vld [vmem:[%s7777_s0 + $0x288] sm:$0xff] }
  0x83   :  { %4889 = vmatpush3.bf16.msra.mxu1 %v5487_v53  ;;  %1080 = vmatprep.mubr.f32.mxu1 %v3202_v41  ;;  %v3222_v41 = vld [vmem:[%s7777_s0 + $0x428] sm:$0xff] }
  0x84   :  { %4923 = vmatprep.subr.bf16.mxu1 %v5493_v55  ;;  %4921 = vmatpush3.bf16.msra.mxu0 %v5491_v54 }
  0x85   :  { %670 = vmatmul.mubr.f32.gmra.mrb[48].mxu0 %v174_v49  ;;  %4955 = vmatprep.subr.bf16.mxu0 %v5496_v57  ;;  %v203_v49 = vld [vmem:[%s7777_s0 + $0x2c8] sm:$0xff] }
  0x86   :  { %1081 = vmatmul.mubr.f32.vlgmr.msra.gmra.mrb[48].mxu1 %v3201_v58  ;;  %674 = vmatprep.mubr.f32.mxu0 %v182_v61  ;;  %v3230_v58 = vld [vmem:[%s7777_s0 + $0x468] sm:$0xff]  ;;  %v202_v61 = vld [vmem:[%s7777_s0 + $0x2c0] sm:$0xff] }
  0x87   :  { %4925 = vmatpush3.bf16.msra.mxu1 %v5526_v9  ;;  %1085 = vmatprep.mubr.f32.mxu1 %v3209_v1  ;;  %v3229_v1 = vld [vmem:[%s7777_s0 + $0x460] sm:$0xff] }
  0x88   :  { %4927 = vmatprep.subr.bf16.mxu1 %v5528_v10 }
  0x89   :  { %675 = vmatmul.mubr.f32.gmra.mrb[50].mxu0 %v181_v2  ;;  %v210_v2 = vld [vmem:[%s7777_s0 + $0x300] sm:$0xff] }
  0x8a   :  { %1086 = vmatmul.mubr.f32.gmra.mrb[50].mxu1 %v3208_v4  ;;  %679 = vmatprep.mubr.f32.mxu0 %v189_v15  ;;  %v3237_v4 = vld [vmem:[%s7777_s0 + $0x4a0] sm:$0xff]  ;;  %v209_v15 = vld [vmem:[%s7777_s0 + $0x2f8] sm:$0xff] }
  0x8b   :  { %1090 = vmatprep.mubr.f32.mxu1 %v3216_v23  ;;  %4929 = vmatpush3.bf16.msra.mxu1 %v5556_v29  ;;  %v3236_v23 = vld [vmem:[%s7777_s0 + $0x498] sm:$0xff] }
  0x8c   :  { %4931 = vmatprep.subr.bf16.mxu1 %v5562_v32 }
  0x8d   :  { %680 = vmatmul.mubr.f32.gmra.mrb[52].mxu0 %v188_v24  ;;  %v217_v24 = vld [vmem:[%s7777_s0 + $0x338] sm:$0xff] }
  0x8e   :  { %1091 = vmatmul.mubr.f32.gmra.mrb[52].mxu1 %v3215_v28  ;;  %684 = vmatprep.mubr.f32.mxu0 %v196_v31  ;;  %v3244_v28 = vld [vmem:[%s7777_s0 + $0x4d8] sm:$0xff]  ;;  %v216_v31 = vld [vmem:[%s7777_s0 + $0x330] sm:$0xff] }
  0x8f   :  { %1095 = vmatprep.mubr.f32.mxu1 %v3223_v33  ;;  %4933 = vmatpush3.bf16.msra.mxu1 %v5594_v59  ;;  %v3243_v33 = vld [vmem:[%s7777_s0 + $0x4d0] sm:$0xff] }
  0x90   :  { %4935 = vmatprep.subr.bf16.mxu1 %v5598_v60 }
  0x91   :  { %685 = vmatmul.mubr.f32.gmra.mrb[54].mxu0 %v195_v40  ;;  %v224_v40 = vld [vmem:[%s7777_s0 + $0x370] sm:$0xff] }
  0x92   :  { %1096 = vmatmul.mubr.f32.gmra.mrb[54].mxu1 %v3222_v41  ;;  %689 = vmatprep.mubr.f32.mxu0 %v203_v49  ;;  %v3251_v41 = vld [vmem:[%s7777_s0 + $0x510] sm:$0xff]  ;;  %v223_v49 = vld [vmem:[%s7777_s0 + $0x368] sm:$0xff] }
  0x93   :  { %1100 = vmatprep.mubr.f32.mxu1 %v3230_v58  ;;  %4937 = vmatpush3.bf16.msra.mxu1 %v5626_v18  ;;  %v3250_v58 = vld [vmem:[%s7777_s0 + $0x508] sm:$0xff] }
  0x94   :  { %4939 = vmatprep.subr.bf16.mxu1 %v5630_v22 }
  0x95   :  { %690 = vmatmul.mubr.f32.gmra.mrb[56].mxu0 %v202_v61  ;;  %v3204_v61 = vld [vmem:[%s7777_s0 + $0x398] sm:$0xff] }
  0x96   :  { %1101 = vmatmul.mubr.f32.gmra.mrb[56].mxu1 %v3229_v1  ;;  %694 = vmatprep.mubr.f32.mxu0 %v210_v2  ;;  %v3258_v1 = vld [vmem:[%s7777_s0 + $0x548] sm:$0xff]  ;;  %v3203_v2 = vld [vmem:[%s7777_s0 + $0x390] sm:$0xff] }
  0x97   :  { %1105 = vmatprep.mubr.f32.mxu1 %v3237_v4  ;;  %4941 = vmatpush3.bf16.msra.mxu1 %v5657_v45  ;;  %v3257_v4 = vld [vmem:[%s7777_s0 + $0x540] sm:$0xff] }
  0x98   :  { %4943 = vmatprep.subr.bf16.mxu1 %v5660_v46 }
  0x99   :  { %695 = vmatmul.mubr.f32.gmra.mrb[58].mxu0 %v209_v15  ;;  %v3211_v15 = vld [vmem:[%s7777_s0 + $0x3d0] sm:$0xff] }
  0x9a   :  { %1106 = vmatmul.mubr.f32.gmra.mrb[58].mxu1 %v3236_v23  ;;  %699 = vmatprep.mubr.f32.mxu0 %v217_v24  ;;  %v3265_v23 = vld [vmem:[%s7777_s0 + $0x580] sm:$0xff]  ;;  %v3210_v24 = vld [vmem:[%s7777_s0 + $0x3c8] sm:$0xff] }
  0x9b   :  { %1110 = vmatprep.mubr.f32.mxu1 %v3244_v28  ;;  %4945 = vmatpush3.bf16.msra.mxu1 %v5687_v11  ;;  %v3264_v28 = vld [vmem:[%s7777_s0 + $0x578] sm:$0xff] }
  0x9c   :  { %4947 = vmatprep.subr.bf16.mxu1 %v5690_v13 }
  0x9d   :  { %700 = vmatmul.mubr.f32.gmra.mrb[60].mxu0 %v216_v31  ;;  %v3218_v31 = vld [vmem:[%s7777_s0 + $0x408] sm:$0xff] }
  0x9e   :  { %1111 = vmatmul.mubr.f32.gmra.mrb[60].mxu1 %v3243_v33  ;;  %704 = vmatprep.mubr.f32.mxu0 %v224_v40  ;;  %v3272_v33 = vld [vmem:[%s7777_s0 + $0x5b8] sm:$0xff]  ;;  %v3217_v40 = vld [vmem:[%s7777_s0 + $0x400] sm:$0xff] }
  0x9f   :  { %1115 = vmatprep.mubr.f32.mxu1 %v3251_v41  ;;  %4949 = vmatpush3.bf16.msra.mxu1 %v5717_v42  ;;  %v3271_v41 = vld [vmem:[%s7777_s0 + $0x5b0] sm:$0xff] }
  0xa0   :  { %4951 = vmatprep.subr.bf16.mxu1 %v5720_v48 }
  0xa1   :  { %705 = vmatmul.mubr.f32.gmra.mrb[62].mxu0 %v223_v49  ;;  %v3225_v49 = vld [vmem:[%s7777_s0 + $0x440] sm:$0xff] }
  0xa2   :  { %1116 = vmatmul.mubr.f32.gmra.mrb[62].mxu1 %v3250_v58  ;;  %1225 = vmatprep.mubr.f32.mxu0 %v3204_v61  ;;  %v3279_v58 = vld [vmem:[%s7777_s0 + $0x5f0] sm:$0xff]  ;;  %v3224_v61 = vld [vmem:[%s7777_s0 + $0x438] sm:$0xff] }
  0xa3   :  { %1120 = vmatprep.mubr.f32.mxu1 %v3258_v1  ;;  %4953 = vmatpush3.bf16.msra.mxu1 %v5741_v6  ;;  %v3278_v1 = vld [vmem:[%s7777_s0 + $0x5e8] sm:$0xff] }
  0xa4   :  { %4995 = vmatprep.subr.bf16.mxu1 %v5210_v7 }
  0xa5   :  { %1226 = vmatmul.mubr.f32.vlgmr.msra.gmra.mrb[64].mxu0 %v3203_v2  ;;  %v3232_v2 = vld [vmem:[%s7777_s0 + $0x478] sm:$0xff] }
  0xa6   :  { %1121 = vmatmul.mubr.f32.gmra.mrb[64].mxu1 %v3257_v4  ;;  %1230 = vmatprep.mubr.f32.mxu0 %v3211_v15  ;;  %v3286_v4 = vld [vmem:[%s7777_s0 + $0x628] sm:$0xff]  ;;  %v3231_v15 = vld [vmem:[%s7777_s0 + $0x470] sm:$0xff] }
  0xa7   :  { %1125 = vmatprep.mubr.f32.mxu1 %v3265_v23  ;;  %4957 = vmatpush3.bf16.msra.mxu0 %v5496_v57  ;;  %v3285_v23 = vld [vmem:[%s7777_s0 + $0x620] sm:$0xff] }
  0xa8   :  { %4959 = vmatprep.subr.bf16.mxu0 %v5582_v47 }
  0xa9   :  { %1231 = vmatmul.mubr.f32.gmra.mrb[66].mxu0 %v3210_v24  ;;  %v3239_v24 = vld [vmem:[%s7777_s0 + $0x4b0] sm:$0xff] }
  0xaa   :  { %1126 = vmatmul.mubr.f32.gmra.mrb[66].mxu1 %v3264_v28  ;;  %1235 = vmatprep.mubr.f32.mxu0 %v3218_v31  ;;  %v3293_v28 = vld [vmem:[%s7777_s0 + $0x660] sm:$0xff]  ;;  %v3238_v31 = vld [vmem:[%s7777_s0 + $0x4a8] sm:$0xff] }
  0xab   :  { %1130 = vmatprep.mubr.f32.mxu1 %v3272_v33  ;;  %4961 = vmatpush3.bf16.msra.mxu0 %v5582_v47  ;;  %v3292_v33 = vld [vmem:[%s7777_s0 + $0x658] sm:$0xff] }
  0xac   :  { %4963 = vmatprep.subr.bf16.mxu0 %v5199_v3 }
  0xad   :  { %1236 = vmatmul.mubr.f32.gmra.mrb[68].mxu0 %v3217_v40  ;;  %v3246_v40 = vld [vmem:[%s7777_s0 + $0x4e8] sm:$0xff] }
  0xae   :  { %1131 = vmatmul.mubr.f32.gmra.mrb[68].mxu1 %v3271_v41  ;;  %1240 = vmatprep.mubr.f32.mxu0 %v3225_v49  ;;  %v3300_v41 = vld [vmem:[%s7777_s0 + $0x698] sm:$0xff]  ;;  %v3245_v49 = vld [vmem:[%s7777_s0 + $0x4e0] sm:$0xff] }
  0xaf   :  { %1135 = vmatprep.mubr.f32.mxu1 %v3279_v58  ;;  %v3299_v58 = vld [vmem:[%s7777_s0 + $0x690] sm:$0xff] }
  0xb1   :  { %1241 = vmatmul.mubr.f32.gmra.mrb[70].mxu0 %v3224_v61  ;;  %v3253_v61 = vld [vmem:[%s7777_s0 + $0x520] sm:$0xff] }
  0xb2   :  { %1136 = vmatmul.mubr.f32.gmra.mrb[70].mxu1 %v3278_v1  ;;  %1245 = vmatprep.mubr.f32.mxu0 %v3232_v2  ;;  %v3307_v1 = vld [vmem:[%s7777_s0 + $0x6d0] sm:$0xff]  ;;  %v3252_v2 = vld [vmem:[%s7777_s0 + $0x518] sm:$0xff] }
  0xb3   :  { %1140 = vmatprep.mubr.f32.mxu1 %v3286_v4  ;;  %v3306_v4 = vld [vmem:[%s7777_s0 + $0x6c8] sm:$0xff] }
  0xb5   :  { %1246 = vmatmul.mubr.f32.gmra.mrb[72].mxu0 %v3231_v15  ;;  %v3260_v15 = vld [vmem:[%s7777_s0 + $0x558] sm:$0xff] }
  0xb6   :  { %1141 = vmatmul.mubr.f32.gmra.mrb[72].mxu1 %v3285_v23  ;;  %1250 = vmatprep.mubr.f32.mxu0 %v3239_v24  ;;  %v3206_v23 = vld [vmem:[%s7777_s0 + $0x3a8] sm:$0xff]  ;;  %v3259_v24 = vld [vmem:[%s7777_s0 + $0x550] sm:$0xff] }
  0xb7   :  { %1145 = vmatprep.mubr.f32.mxu1 %v3293_v28  ;;  %v3205_v28 = vld [vmem:[%s7777_s0 + $0x3a0] sm:$0xff] }
  0xb9   :  { %1251 = vmatmul.mubr.f32.gmra.mrb[74].mxu0 %v3238_v31  ;;  %v3267_v31 = vld [vmem:[%s7777_s0 + $0x590] sm:$0xff] }
  0xba   :  { %1146 = vmatmul.mubr.f32.gmra.mrb[74].mxu1 %v3292_v33  ;;  %1255 = vmatprep.mubr.f32.mxu0 %v3246_v40  ;;  %v3213_v33 = vld [vmem:[%s7777_s0 + $0x3e0] sm:$0xff]  ;;  %v3266_v40 = vld [vmem:[%s7777_s0 + $0x588] sm:$0xff] }
  0xbb   :  { %1150 = vmatprep.mubr.f32.mxu1 %v3300_v41  ;;  %v3212_v41 = vld [vmem:[%s7777_s0 + $0x3d8] sm:$0xff] }
  0xbd   :  { %1256 = vmatmul.mubr.f32.gmra.mrb[76].mxu0 %v3245_v49  ;;  %v3274_v49 = vld [vmem:[%s7777_s0 + $0x5c8] sm:$0xff] }
  0xbe   :  { %1151 = vmatmul.mubr.f32.gmra.mrb[76].mxu1 %v3299_v58  ;;  %1260 = vmatprep.mubr.f32.mxu0 %v3253_v61  ;;  %v3220_v58 = vld [vmem:[%s7777_s0 + $0x418] sm:$0xff]  ;;  %v3273_v61 = vld [vmem:[%s7777_s0 + $0x5c0] sm:$0xff] }
  0xbf   :  { %1155 = vmatprep.mubr.f32.mxu1 %v3307_v1  ;;  %v3219_v1 = vld [vmem:[%s7777_s0 + $0x410] sm:$0xff] }
  0xc1   :  { %1261 = vmatmul.mubr.f32.gmra.mrb[78].mxu0 %v3252_v2  ;;  %v3281_v2 = vld [vmem:[%s7777_s0 + $0x600] sm:$0xff] }
  0xc2   :  { %1156 = vmatmul.mubr.f32.gmra.mrb[78].mxu1 %v3306_v4  ;;  %1265 = vmatprep.mubr.f32.mxu0 %v3260_v15  ;;  %v3227_v4 = vld [vmem:[%s7777_s0 + $0x450] sm:$0xff]  ;;  %v3280_v15 = vld [vmem:[%s7777_s0 + $0x5f8] sm:$0xff] }
  0xc3   :  { %1370 = vmatprep.mubr.f32.mxu1 %v3206_v23  ;;  %v3226_v23 = vld [vmem:[%s7777_s0 + $0x448] sm:$0xff] }
  0xc5   :  { %1266 = vmatmul.mubr.f32.gmra.mrb[80].mxu0 %v3259_v24  ;;  %v3288_v24 = vld [vmem:[%s7777_s0 + $0x638] sm:$0xff] }
  0xc6   :  { %1371 = vmatmul.mubr.f32.vlgmr.msra.gmra.mrb[80].mxu1 %v3205_v28  ;;  %1270 = vmatprep.mubr.f32.mxu0 %v3267_v31  ;;  %v3234_v28 = vld [vmem:[%s7777_s0 + $0x488] sm:$0xff]  ;;  %v3287_v31 = vld [vmem:[%s7777_s0 + $0x630] sm:$0xff] }
  0xc7   :  { %4997 = vmatpush3.bf16.msra.mxu1 %v5224_v12  ;;  %1375 = vmatprep.mubr.f32.mxu1 %v3213_v33  ;;  %v3233_v33 = vld [vmem:[%s7777_s0 + $0x480] sm:$0xff] }
  0xc8   :  { %4999 = vmatprep.subr.bf16.mxu1 %v5239_v17 }
  0xc9   :  { %1271 = vmatmul.mubr.f32.gmra.mrb[82].mxu0 %v3266_v40  ;;  %v3295_v40 = vld [vmem:[%s7777_s0 + $0x670] sm:$0xff] }
  0xca   :  { %1376 = vmatmul.mubr.f32.gmra.mrb[82].mxu1 %v3212_v41  ;;  %1275 = vmatprep.mubr.f32.mxu0 %v3274_v49  ;;  %v3241_v41 = vld [vmem:[%s7777_s0 + $0x4c0] sm:$0xff]  ;;  %v3294_v49 = vld [vmem:[%s7777_s0 + $0x668] sm:$0xff] }
  0xcb   :  { %1380 = vmatprep.mubr.f32.mxu1 %v3220_v58  ;;  %5001 = vmatpush3.bf16.msra.mxu1 %v5264_v25  ;;  %v3240_v58 = vld [vmem:[%s7777_s0 + $0x4b8] sm:$0xff] }
  0xcc   :  { %5003 = vmatprep.subr.bf16.mxu1 %v5277_v30 }
  0xcd   :  { %1276 = vmatmul.mubr.f32.gmra.mrb[84].mxu0 %v3273_v61  ;;  %v3302_v61 = vld [vmem:[%s7777_s0 + $0x6a8] sm:$0xff] }
  0xce   :  { %1381 = vmatmul.mubr.f32.gmra.mrb[84].mxu1 %v3219_v1  ;;  %1280 = vmatprep.mubr.f32.mxu0 %v3281_v2  ;;  %v3248_v1 = vld [vmem:[%s7777_s0 + $0x4f8] sm:$0xff]  ;;  %v3301_v2 = vld [vmem:[%s7777_s0 + $0x6a0] sm:$0xff] }
  0xcf   :  { %1385 = vmatprep.mubr.f32.mxu1 %v3227_v4  ;;  %5005 = vmatpush3.bf16.msra.mxu1 %v5302_v38  ;;  %v3247_v4 = vld [vmem:[%s7777_s0 + $0x4f0] sm:$0xff] }
  0xd0   :  { %5007 = vmatprep.subr.bf16.mxu1 %v5316_v43 }
  0xd1   :  { %1281 = vmatmul.mubr.f32.gmra.mrb[86].mxu0 %v3280_v15  ;;  %v3309_v15 = vld [vmem:[%s7777_s0 + $0x6e0] sm:$0xff] }
  0xd2   :  { %1386 = vmatmul.mubr.f32.gmra.mrb[86].mxu1 %v3226_v23  ;;  %1285 = vmatprep.mubr.f32.mxu0 %v3288_v24  ;;  %v3255_v23 = vld [vmem:[%s7777_s0 + $0x530] sm:$0xff]  ;;  %v3308_v24 = vld [vmem:[%s7777_s0 + $0x6d8] sm:$0xff] }
  0xd3   :  { %1390 = vmatprep.mubr.f32.mxu1 %v3234_v28  ;;  %5009 = vmatpush3.bf16.msra.mxu1 %v5341_v51  ;;  %v3254_v28 = vld [vmem:[%s7777_s0 + $0x528] sm:$0xff] }
  0xd4   :  { %5011 = vmatprep.subr.bf16.mxu1 %v5355_v56 }
  0xd5   :  { %1286 = vmatmul.mubr.f32.gmra.mrb[88].mxu0 %v3287_v31  ;;  %v3207_v31 = vld [vmem:[%s7777_s0 + $0x3b0] sm:$0xff] }
  0xd6   :  { %1391 = vmatmul.mubr.f32.gmra.mrb[88].mxu1 %v3233_v33  ;;  %1290 = vmatprep.mubr.f32.mxu0 %v3295_v40  ;;  %v3262_v33 = vld [vmem:[%s7777_s0 + $0x568] sm:$0xff] }
  0xd7   :  { %1395 = vmatprep.mubr.f32.mxu1 %v3241_v41  ;;  %5013 = vmatpush3.bf16.msra.mxu1 %v5377_v63  ;;  %v3214_v40 = vld [vmem:[%s7777_s0 + $0x3e8] sm:$0xff]  ;;  %v3261_v41 = vld [vmem:[%s7777_s0 + $0x560] sm:$0xff] }
  0xd8   :  { %5015 = vmatprep.subr.bf16.mxu1 %v5391_v5 }
  0xd9   :  { %1291 = vmatmul.mubr.f32.gmra.mrb[90].mxu0 %v3294_v49  ;;  %v3269_v49 = vld [vmem:[%s7777_s0 + $0x5a0] sm:$0xff] }
  0xda   :  { %1396 = vmatmul.mubr.f32.gmra.mrb[90].mxu1 %v3240_v58  ;;  %1295 = vmatprep.mubr.f32.mxu0 %v3302_v61  ;;  %v3221_v58 = vld [vmem:[%s7777_s0 + $0x420] sm:$0xff]  ;;  %v3228_v61 = vld [vmem:[%s7777_s0 + $0x458] sm:$0xff] }
  0xdb   :  { %1400 = vmatprep.mubr.f32.mxu1 %v3248_v1  ;;  %5017 = vmatpush3.bf16.msra.mxu1 %v5419_v19  ;;  %v3268_v1 = vld [vmem:[%s7777_s0 + $0x598] sm:$0xff] }
  0xdc   :  { %5019 = vmatprep.subr.bf16.mxu1 %v5433_v27 }
  0xdd   :  { %1296 = vmatmul.mubr.f32.gmra.mrb[92].mxu0 %v3301_v2  ;;  %v3276_v2 = vld [vmem:[%s7777_s0 + $0x5d8] sm:$0xff] }
  0xde   :  { %1401 = vmatmul.mubr.f32.gmra.mrb[92].mxu1 %v3247_v4  ;;  %1300 = vmatprep.mubr.f32.mxu0 %v3309_v15  ;;  %v3235_v4 = vld [vmem:[%s7777_s0 + $0x490] sm:$0xff]  ;;  %v3242_v15 = vld [vmem:[%s7777_s0 + $0x4c8] sm:$0xff] }
  0xdf   :  { %1405 = vmatprep.mubr.f32.mxu1 %v3255_v23  ;;  %5021 = vmatpush3.bf16.msra.mxu1 %v5455_v36  ;;  %v3275_v23 = vld [vmem:[%s7777_s0 + $0x5d0] sm:$0xff] }
  0xe0   :  { %5023 = vmatprep.subr.bf16.mxu1 %v5469_v44 }
  0xe1   :  { %1301 = vmatmul.mubr.f32.gmra.mrb[94].mxu0 %v3308_v24  ;;  %v3283_v24 = vld [vmem:[%s7777_s0 + $0x610] sm:$0xff] }
  0xe2   :  { %1406 = vmatmul.mubr.f32.gmra.mrb[94].mxu1 %v3254_v28  ;;  %4666 = vmatprep.mubr.msk.f32.mxu0 %vm226_vm0, %v3207_v31  ;;  %v3249_v28 = vld [vmem:[%s7777_s0 + $0x500] sm:$0xff]  ;;  %v3256_v31 = vld [vmem:[%s7777_s0 + $0x538] sm:$0xff] }
  0xe3   :  { %1410 = vmatprep.mubr.f32.mxu1 %v3262_v33  ;;  %5025 = vmatpush3.bf16.msra.mxu1 %v5491_v54  ;;  %v3282_v33 = vld [vmem:[%s7777_s0 + $0x608] sm:$0xff] }
  0xe4   :  { %5059 = vmatprep.subr.bf16.mxu1 %v5496_v57 }
  0xe5   :  { %4667 = vmatmul.mubr.msk.f32.vlgmr.msra.gmra.mrb[96].mxu0 %vm226_vm0, %v3214_v40  ;;  %v3290_v40 = vld [vmem:[%s7777_s0 + $0x648] sm:$0xff] }
  0xe6   :  { %1411 = vmatmul.mubr.f32.gmra.mrb[96].mxu1 %v3261_v41  ;;  %4965 = vmatpush3.bf16.msra.mxu0 %v5212_v8  ;;  %v3263_v41 = vld [vmem:[%s7777_s0 + $0x570] sm:$0xff] }
  0xe7   :  { %1415 = vmatprep.mubr.f32.mxu1 %v3269_v49  ;;  %4669 = vmatprep.mubr.msk.f32.mxu0 %vm226_vm0, %v3221_v58  ;;  %v3270_v49 = vld [vmem:[%s7777_s0 + $0x5a8] sm:$0xff]  ;;  %v3289_v58 = vld [vmem:[%s7777_s0 + $0x640] sm:$0xff] }
  0xe8   :  { %4967 = vmatprep.subr.bf16.mxu0 %v5237_v16 }
  0xe9   :  { %4670 = vmatmul.mubr.msk.f32.gmra.mrb[98].mxu0 %vm226_vm0, %v3228_v61  ;;  %v3297_v61 = vld [vmem:[%s7777_s0 + $0x680] sm:$0xff] }
  0xea   :  { %1416 = vmatmul.mubr.f32.gmra.mrb[98].mxu1 %v3268_v1  ;;  %4969 = vmatpush3.bf16.msra.mxu0 %v5251_v21  ;;  %v3277_v1 = vld [vmem:[%s7777_s0 + $0x5e0] sm:$0xff] }
  0xeb   :  { %1420 = vmatprep.mubr.f32.mxu1 %v3276_v2  ;;  %4672 = vmatprep.mubr.msk.f32.mxu0 %vm226_vm0, %v3235_v4  ;;  %v3284_v2 = vld [vmem:[%s7777_s0 + $0x618] sm:$0xff] }
  0xec   :  { %4971 = vmatprep.subr.bf16.mxu0 %v5266_v26  ;;  %v3296_v4 = vld [vmem:[%s7777_s0 + $0x678] sm:$0xff] }
  0xed   :  { %4673 = vmatmul.mubr.msk.f32.gmra.mrb[100].mxu0 %vm226_vm0, %v3242_v15 }
  0xee   :  { %1421 = vmatmul.mubr.f32.gmra.mrb[100].mxu1 %v3275_v23  ;;  %4973 = vmatpush3.bf16.msra.mxu0 %v5289_v34  ;;  %v3304_v23 = vld [vmem:[%s7777_s0 + $0x6b8] sm:$0xff] }
  0xef   :  { %1425 = vmatprep.mubr.f32.mxu1 %v3283_v24  ;;  %4675 = vmatprep.mubr.msk.f32.mxu0 %vm226_vm0, %v3249_v28  ;;  %v3291_v24 = vld [vmem:[%s7777_s0 + $0x650] sm:$0xff] }
  0xf0   :  { %4975 = vmatprep.subr.bf16.mxu0 %v5304_v39 }
  0xf1   :  { %4676 = vmatmul.mubr.msk.f32.gmra.mrb[102].mxu0 %vm226_vm0, %v3256_v31 }
  0xf2   :  { %1426 = vmatmul.mubr.f32.gmra.mrb[102].mxu1 %v3282_v33  ;;  %4977 = vmatpush3.bf16.msra.mxu0 %v5337_v50 }
  0xf3   :  { %1430 = vmatprep.mubr.f32.mxu1 %v3290_v40  ;;  %4678 = vmatprep.mubr.msk.f32.mxu0 %vm226_vm0, %v3263_v41  ;;  %v3298_v41 = vld [vmem:[%s7777_s0 + $0x688] sm:$0xff] }
  0xf4   :  { %4979 = vmatprep.subr.bf16.mxu0 %v5343_v52 }
  0xf5   :  { %4679 = vmatmul.mubr.msk.f32.gmra.mrb[104].mxu0 %vm226_vm0, %v3270_v49 }
  0xf6   :  { %1431 = vmatmul.mubr.f32.gmra.mrb[104].mxu1 %v3289_v58  ;;  %4981 = vmatpush3.bf16.msra.mxu0 %v5373_v62  ;;  %v3303_v58 = vld [vmem:[%s7777_s0 + $0x6b0] sm:$0xff] }
  0xf7   :  { %1435 = vmatprep.mubr.f32.mxu1 %v3297_v61  ;;  %4681 = vmatprep.mubr.msk.f32.mxu0 %vm226_vm0, %v3277_v1  ;;  %v3311_v1 = vld [vmem:[%s7777_s0 + $0x6f0] sm:$0xff] }
  0xf8   :  { %v3618_v15 = vpop.f32.mrb[0].mxu0  ;;  %4983 = vmatprep.subr.bf16.mxu0 %v5379_v0 }
  0xf9   :  { %v3698_v28 = vpop.f32.mrb[0].mxu1  ;;  %v3619_v31 = vpop.f32.mrb[1].mxu0  ;;  %4682 = vmatmul.mubr.msk.f32.gmra.mrb[106].mxu0 %vm226_vm0, %v3284_v2  ;;  %v3305_v2 = vld [vmem:[%s7777_s0 + $0x6c0] sm:$0xff] }
  0xfa   :  { %v3620_v33 = vadd.f32 %v3619_v31, %v3618_v15  ;;  %v3699_v40 = vpop.f32.mrb[1].mxu1  ;;  %1436 = vmatmul.mubr.f32.gmra.mrb[106].mxu1 %v3296_v4  ;;  %4985 = vmatpush3.bf16.msra.mxu0 %v5409_v14  ;;  %v3312_v31 = vld [vmem:[%s7777_s0 + $0x6f8] sm:$0xff] }
  0xfb   :  { %v3700_v49 = vadd.f32 %v3699_v40, %v3698_v28  ;;  %1440 = vmatprep.mubr.f32.mxu1 %v3304_v23  ;;  %4684 = vmatprep.mubr.msk.f32.mxu0 %vm226_vm0, %v3291_v24 }
  0xfc   :  { %v3621_v61 = vpop.f32.mrb[2].mxu0  ;;  %4987 = vmatprep.subr.bf16.mxu0 %v5421_v20 }
  0xfd   :  { %v6419_v4 = vadd.f32 %v3700_v49, %v3620_v33  ;;  %v3701_v15 = vpop.f32.mrb[2].mxu1  ;;  %v3622_v23 = vpop.f32.mrb[3].mxu0  ;;  %4685 = vmatmul.mubr.msk.f32.gmra.mrb[108].mxu0 %vm226_vm0, %v3298_v41  ;;  %v3310_v33 = vld [vmem:[%s7777_s0 + $0x6e8] sm:$0xff] }
  0xfe   :  { %v3623_v24 = vadd.f32 %v3622_v23, %v3621_v61  ;;  %v3702_v28 = vpop.f32.mrb[3].mxu1  ;;  %1441 = vmatmul.mubr.f32.gmra.mrb[108].mxu1 %v3303_v58  ;;  %4989 = vmatpush3.bf16.msra.mxu0 %v5451_v35  ;;  %v3330_v41 = vld [vmem:[%s7777_s0 + $0x708] sm:$0xff]  ;;  %v3332_v58 = vld [vmem:[%s7777_s0 + $0x718] sm:$0xff] }
  0xff   :  { %v3703_v40 = vadd.f32 %v3702_v28, %v3701_v15  ;;  %1445 = vmatprep.mubr.f32.mxu1 %v3311_v1  ;;  %4687 = vmatprep.mubr.msk.f32.mxu0 %vm226_vm0, %v3305_v2  ;;  %v3329_v28 = vld [vmem:[%s7777_s0 + $0x700] sm:$0xff] }
 0x100   :  { %v3624_v49 = vpop.f32.mrb[4].mxu0  ;;  %4991 = vmatprep.subr.bf16.mxu0 %v5457_v37 }
 0x101   :  { %v6437_v61 = vadd.f32 %v3703_v40, %v3623_v24  ;;  %v3704_v1 = vpop.f32.mrb[4].mxu1  ;;  %v3625_v15 = vpop.f32.mrb[5].mxu0  ;;  %4688 = vmatmul.mubr.msk.f32.gmra.mrb[110].mxu0 %vm226_vm0, %v3312_v31  ;;  %v3331_v24 = vld [vmem:[%s7777_s0 + $0x710] sm:$0xff]  ;;  %v3337_v31 = vld [vmem:[%s7777_s0 + $0x740] sm:$0xff] }
 0x102   :  { %v3626_v2 = vadd.f32 %v3625_v15, %v3624_v49  ;;  %v3705_v23 = vpop.f32.mrb[5].mxu1  ;;  %1446 = vmatmul.mubr.f32.gmra.mrb[110].mxu1 %v3310_v33  ;;  %4993 = vmatpush3.bf16.msra.mxu0 %v5487_v53  ;;  %v3339_v33 = vld [vmem:[%s7777_s0 + $0x750] sm:$0xff] }
 0x103   :  { %v3706_v54 = vadd.f32 %v3705_v23, %v3704_v1  ;;  %1821 = vmatprep.mubr.f32.mxu0 %v3330_v41  ;;  %1966 = vmatprep.mubr.f32.mxu1 %v3332_v58  ;;  %v3336_v23 = vld [vmem:[%s7777_s0 + $0x738] sm:$0xff] }
 0x104   :  { %v3627_v40 = vpop.f32.mrb[6].mxu0  ;;  %5027 = vmatprep.subr.bf16.mxu0 %v5493_v55 }
 0x105   :  { %v6454_v49 = vadd.f32 %v3706_v54, %v3626_v2  ;;  %v3707_v1 = vpop.f32.mrb[6].mxu1  ;;  %v3628_v41 = vpop.f32.mrb[7].mxu0  ;;  %1822 = vmatmul.mubr.f32.vlgmr.msra.gmra.mrb[112].mxu0 %v3329_v28  ;;  %v3338_v54 = vld [vmem:[%s7777_s0 + $0x748] sm:$0xff]  ;;  %v3344_v2 = vld [vmem:[%s7777_s0 + $0x778] sm:$0xff] }
 0x106   :  { %v3629_v58 = vadd.f32 %v3628_v41, %v3627_v40  ;;  %v3708_v15 = vpop.f32.mrb[7].mxu1  ;;  %1967 = vmatmul.mubr.f32.vlgmr.msra.gmra.mrb[112].mxu1 %v3331_v24  ;;  %1826 = vmatprep.mubr.f32.mxu0 %v3337_v31  ;;  %v3346_v24 = vld [vmem:[%s7777_s0 + $0x788] sm:$0xff] }
 0x107   :  { %v3709_v53 = vadd.f32 %v3708_v15, %v3707_v1  ;;  %5061 = vmatpush3.bf16.msra.mxu1 %v5496_v57  ;;  %1971 = vmatprep.mubr.f32.mxu1 %v3339_v33  ;;  %v3343_v15 = vld [vmem:[%s7777_s0 + $0x770] sm:$0xff] }
 0x108   :  { %v3630_v28 = vpop.f32.mrb[8].mxu0  ;;  %5029 = vmatpush3.bf16.msra.mxu0 %v5526_v9  ;;  %5063 = vmatprep.subr.bf16.mxu1 %v5582_v47 }
 0x109   :  { %v6471_v31 = vadd.f32 %v3709_v53, %v3629_v58  ;;  %v3710_v40 = vpop.f32.mrb[8].mxu1  ;;  %v3631_v33 = vpop.f32.mrb[9].mxu0  ;;  %1827 = vmatmul.mubr.f32.gmra.mrb[114].mxu0 %v3336_v23  ;;  %5031 = vmatprep.subr.bf16.mxu0 %v5528_v10  ;;  %v3345_v53 = vld [vmem:[%s7777_s0 + $0x780] sm:$0xff]  ;;  %v3351_v58 = vld [vmem:[%s7777_s0 + $0x7b0] sm:$0xff] }
 0x10a   :  { %v3632_v1 = vadd.f32 %v3631_v33, %v3630_v28  ;;  %v3711_v41 = vpop.f32.mrb[9].mxu1  ;;  %1972 = vmatmul.mubr.f32.gmra.mrb[114].mxu1 %v3338_v54  ;;  %1831 = vmatprep.mubr.f32.mxu0 %v3344_v2  ;;  %v3353_v54 = vld [vmem:[%s7777_s0 + $0x7c0] sm:$0xff] }
 0x10b   :  { %v3712_v9 = vadd.f32 %v3711_v41, %v3710_v40  ;;  %1976 = vmatprep.mubr.f32.mxu1 %v3346_v24  ;;  %5065 = vmatpush3.bf16.msra.mxu1 %v5582_v47  ;;  %v3350_v41 = vld [vmem:[%s7777_s0 + $0x7a8] sm:$0xff] }
 0x10c   :  { %v3633_v23 = vpop.f32.mrb[10].mxu0  ;;  %5033 = vmatpush3.bf16.msra.mxu0 %v5556_v29  ;;  %5067 = vmatprep.subr.bf16.mxu1 %v5199_v3  ;;  %v3352_v3 = vld [vmem:[%s7777_s0 + $0x7b8] sm:$0xff] }
 0x10d   :  { %v6489_v2 = vadd.f32 %v3712_v9, %v3632_v1  ;;  %v3713_v28 = vpop.f32.mrb[10].mxu1  ;;  %v3634_v24 = vpop.f32.mrb[11].mxu0  ;;  %1832 = vmatmul.mubr.f32.gmra.mrb[116].mxu0 %v3343_v15  ;;  %5035 = vmatprep.subr.bf16.mxu0 %v5562_v32  ;;  %v3358_v9 = vld [vmem:[%s7777_s0 + $0x7e8] sm:$0xff]  ;;  %v3360_v15 = vld [vmem:[%s7777_s0 + $0x7f8] sm:$0xff] }
 0x10e   :  { %v3635_v40 = vadd.f32 %v3634_v24, %v3633_v23  ;;  %v3714_v33 = vpop.f32.mrb[11].mxu1  ;;  %1977 = vmatmul.mubr.f32.gmra.mrb[116].mxu1 %v3345_v53  ;;  %1836 = vmatprep.mubr.f32.mxu0 %v3351_v58  ;;  %v3357_v24 = vld [vmem:[%s7777_s0 + $0x7e0] sm:$0xff] }
 0x10f   :  { %v3715_v47 = vadd.f32 %v3714_v33, %v3713_v28  ;;  %1981 = vmatprep.mubr.f32.mxu1 %v3353_v54 }
 0x110   :  { %v3636_v1 = vpop.f32.mrb[12].mxu0  ;;  %5037 = vmatpush3.bf16.msra.mxu0 %v5594_v59 }
 0x111   :  { %v6505_v53 = vadd.f32 %v3715_v47, %v3635_v40  ;;  %v3716_v58 = vpop.f32.mrb[12].mxu1  ;;  %v3637_v23 = vpop.f32.mrb[13].mxu0  ;;  %1837 = vmatmul.mubr.f32.gmra.mrb[118].mxu0 %v3350_v41  ;;  %5039 = vmatprep.subr.bf16.mxu0 %v5598_v60  ;;  %v3359_v47 = vld [vmem:[%s7777_s0 + $0x7f0] sm:$0xff]  ;;  %v3365_v40 = vld [vmem:[%s7777_s0 + $0x820] sm:$0xff] }
 0x112   :  { %v3638_v54 = vadd.f32 %v3637_v23, %v3636_v1  ;;  %v3717_v28 = vpop.f32.mrb[13].mxu1  ;;  %1982 = vmatmul.mubr.f32.gmra.mrb[118].mxu1 %v3352_v3  ;;  %1841 = vmatprep.mubr.f32.mxu0 %v3358_v9  ;;  %v3367_v3 = vld [vmem:[%s7777_s0 + $0x830] sm:$0xff] }
 0x113   :  { %v3718_v33 = vadd.f32 %v3717_v28, %v3716_v58  ;;  %1986 = vmatprep.mubr.f32.mxu1 %v3360_v15  ;;  %v3364_v28 = vld [vmem:[%s7777_s0 + $0x818] sm:$0xff] }
 0x114   :  { %v3639_v41 = vpop.f32.mrb[14].mxu0  ;;  %5041 = vmatpush3.bf16.msra.mxu0 %v5626_v18 }
 0x115   :  { %v6521_v9 = vadd.f32 %v3718_v33, %v3638_v54  ;;  %v3719_v1 = vpop.f32.mrb[14].mxu1  ;;  %v3640_v58 = vpop.f32.mrb[15].mxu0  ;;  %1842 = vmatmul.mubr.f32.gmra.mrb[120].mxu0 %v3357_v24  ;;  %5043 = vmatprep.subr.bf16.mxu0 %v5630_v22  ;;  %v3366_v54 = vld [vmem:[%s7777_s0 + $0x828] sm:$0xff]  ;;  %v3372_v24 = vld [vmem:[%s7777_s0 + $0x858] sm:$0xff] }
 0x116   :  { %v3641_v15 = vadd.f32 %v3640_v58, %v3639_v41  ;;  %v3720_v23 = vpop.f32.mrb[15].mxu1  ;;  %1987 = vmatmul.mubr.f32.gmra.mrb[120].mxu1 %v3359_v47  ;;  %1846 = vmatprep.mubr.f32.mxu0 %v3365_v40  ;;  %v3374_v47 = vld [vmem:[%s7777_s0 + $0x868] sm:$0xff] }
 0x117   :  { %v3721_v60 = vadd.f32 %v3720_v23, %v3719_v1  ;;  %1991 = vmatprep.mubr.f32.mxu1 %v3367_v3  ;;  %v3371_v23 = vld [vmem:[%s7777_s0 + $0x850] sm:$0xff] }
 0x118   :  { %v3642_v33 = vpop.f32.mrb[16].mxu0  ;;  %5045 = vmatpush3.bf16.msra.mxu0 %v5657_v45  ;;  %v3422_v45 = vld [vmem:[%s7777_s0 + $0x9e8] sm:$0xff] }
 0x119   :  { %v6537_v40 = vadd.f32 %v3721_v60, %v3641_v15  ;;  %v3722_v41 = vpop.f32.mrb[16].mxu1  ;;  %v3643_v1 = vpop.f32.mrb[17].mxu0  ;;  %1847 = vmatmul.mubr.f32.gmra.mrb[122].mxu0 %v3364_v28  ;;  %5047 = vmatprep.subr.bf16.mxu0 %v5660_v46  ;;  %v3373_v60 = vld [vmem:[%s7777_s0 + $0x860] sm:$0xff]  ;;  %v3379_v15 = vld [vmem:[%s7777_s0 + $0x890] sm:$0xff] }
 0x11a   :  { %v3644_v3 = vadd.f32 %v3643_v1, %v3642_v33  ;;  %v3723_v58 = vpop.f32.mrb[17].mxu1  ;;  %1992 = vmatmul.mubr.f32.gmra.mrb[122].mxu1 %v3366_v54  ;;  %1851 = vmatprep.mubr.f32.mxu0 %v3372_v24  ;;  %v3381_v54 = vld [vmem:[%s7777_s0 + $0x8a0] sm:$0xff] }
 0x11b   :  { %v3724_v22 = vadd.f32 %v3723_v58, %v3722_v41  ;;  %1996 = vmatprep.mubr.f32.mxu1 %v3374_v47  ;;  %v3378_v58 = vld [vmem:[%s7777_s0 + $0x888] sm:$0xff] }
 0x11c   :  { %v3645_v28 = vpop.f32.mrb[18].mxu0  ;;  %5049 = vmatpush3.bf16.msra.mxu0 %v5687_v11  ;;  %v3415_v11 = vld [vmem:[%s7777_s0 + $0x9b0] sm:$0xff] }
 0x11d   :  { %v6553_v24 = vadd.f32 %v3724_v22, %v3644_v3  ;;  %v3725_v33 = vpop.f32.mrb[18].mxu1  ;;  %v3646_v41 = vpop.f32.mrb[19].mxu0  ;;  %1852 = vmatmul.mubr.f32.gmra.mrb[124].mxu0 %v3371_v23  ;;  %5051 = vmatprep.subr.bf16.mxu0 %v5690_v13  ;;  %v3380_v22 = vld [vmem:[%s7777_s0 + $0x898] sm:$0xff]  ;;  %v3386_v3 = vld [vmem:[%s7777_s0 + $0x8c8] sm:$0xff] }
 0x11e   :  { %v3647_v47 = vadd.f32 %v3646_v41, %v3645_v28  ;;  %v3726_v1 = vpop.f32.mrb[19].mxu1  ;;  %1997 = vmatmul.mubr.f32.gmra.mrb[124].mxu1 %v3373_v60  ;;  %1856 = vmatprep.mubr.f32.mxu0 %v3379_v15  ;;  %v3388_v60 = vld [vmem:[%s7777_s0 + $0x8d8] sm:$0xff] }
 0x11f   :  { %v3727_v46 = vadd.f32 %v3726_v1, %v3725_v33  ;;  %2001 = vmatprep.mubr.f32.mxu1 %v3381_v54  ;;  %v3385_v1 = vld [vmem:[%s7777_s0 + $0x8c0] sm:$0xff] }
 0x120   :  { %v3648_v23 = vpop.f32.mrb[20].mxu0  ;;  %5053 = vmatpush3.bf16.msra.mxu0 %v5717_v42  ;;  %v3408_v42 = vld [vmem:[%s7777_s0 + $0x978] sm:$0xff] }
 0x121   :  { %v6569_v15 = vadd.f32 %v3727_v46, %v3647_v47  ;;  %v3728_v28 = vpop.f32.mrb[20].mxu1  ;;  %v3649_v33 = vpop.f32.mrb[21].mxu0  ;;  %1857 = vmatmul.mubr.f32.gmra.mrb[126].mxu0 %v3378_v58  ;;  %5055 = vmatprep.subr.bf16.mxu0 %v5720_v48  ;;  %v3387_v46 = vld [vmem:[%s7777_s0 + $0x8d0] sm:$0xff]  ;;  %v3393_v47 = vld [vmem:[%s7777_s0 + $0x900] sm:$0xff] }
 0x122   :  { %v3650_v54 = vadd.f32 %v3649_v33, %v3648_v23  ;;  %v3729_v41 = vpop.f32.mrb[21].mxu1  ;;  %2002 = vmatmul.mubr.f32.gmra.mrb[126].mxu1 %v3380_v22  ;;  %1861 = vmatprep.mubr.f32.mxu0 %v3386_v3  ;;  %v3395_v22 = vld [vmem:[%s7777_s0 + $0x910] sm:$0xff] }
 0x123   :  { %v3730_v13 = vadd.f32 %v3729_v41, %v3728_v28  ;;  %2006 = vmatprep.mubr.f32.mxu1 %v3388_v60  ;;  %v3392_v41 = vld [vmem:[%s7777_s0 + $0x8f8] sm:$0xff] }
 0x124   :  { %v3651_v58 = vpop.f32.mrb[22].mxu0  ;;  %5057 = vmatpush3.bf16.msra.mxu0 %v5741_v6  ;;  %v3401_v6 = vld [vmem:[%s7777_s0 + $0x940] sm:$0xff] }
 0x125   :  { %v6585_v3 = vadd.f32 %v3730_v13, %v3650_v54  ;;  %v3731_v23 = vpop.f32.mrb[22].mxu1  ;;  %v3652_v28 = vpop.f32.mrb[23].mxu0  ;;  %1862 = vmatmul.mubr.f32.gmra.mrb[128].mxu0 %v3385_v1  ;;  %5099 = vmatprep.subr.bf16.mxu0 %v5210_v7  ;;  %v3394_v13 = vld [vmem:[%s7777_s0 + $0x908] sm:$0xff]  ;;  %v3400_v54 = vld [vmem:[%s7777_s0 + $0x938] sm:$0xff] }
 0x126   :  { %v3653_v60 = vadd.f32 %v3652_v28, %v3651_v58  ;;  %v3732_v33 = vpop.f32.mrb[23].mxu1  ;;  %2007 = vmatmul.mubr.f32.gmra.mrb[128].mxu1 %v3387_v46  ;;  %1866 = vmatprep.mubr.f32.mxu0 %v3393_v47  ;;  %v3402_v7 = vld [vmem:[%s7777_s0 + $0x948] sm:$0xff]  ;;  %v3399_v28 = vld [vmem:[%s7777_s0 + $0x930] sm:$0xff] }
 0x127   :  { %v3733_v48 = vadd.f32 %v3732_v33, %v3731_v23  ;;  %2011 = vmatprep.mubr.f32.mxu1 %v3395_v22 }
 0x128   :  { %v3654_v1 = vpop.f32.mrb[24].mxu0 }
 0x129   :  { %v6600_v46 = vadd.f32 %v3733_v48, %v3653_v60  ;;  %v3734_v47 = vpop.f32.mrb[24].mxu1  ;;  %v3655_v58 = vpop.f32.mrb[25].mxu0  ;;  %1867 = vmatmul.mubr.f32.gmra.mrb[130].mxu0 %v3392_v41  ;;  %v3407_v48 = vld [vmem:[%s7777_s0 + $0x970] sm:$0xff]  ;;  %v3409_v41 = vld [vmem:[%s7777_s0 + $0x980] sm:$0xff] }
 0x12a   :  { %v3656_v23 = vadd.f32 %v3655_v58, %v3654_v1  ;;  %v3735_v22 = vpop.f32.mrb[25].mxu1  ;;  %2012 = vmatmul.mubr.f32.gmra.mrb[130].mxu1 %v3394_v13  ;;  %1871 = vmatprep.mubr.f32.mxu0 %v3400_v54  ;;  %v3406_v58 = vld [vmem:[%s7777_s0 + $0x968] sm:$0xff] }
 0x12b   :  { %v3736_v33 = vadd.f32 %v3735_v22, %v3734_v47  ;;  %2016 = vmatprep.mubr.f32.mxu1 %v3402_v7 }
 0x12c   :  { %v3657_v60 = vpop.f32.mrb[26].mxu0 }
 0x12d   :  { %v6614_v13 = vadd.f32 %v3736_v33, %v3656_v23  ;;  %v3737_v54 = vpop.f32.mrb[26].mxu1  ;;  %v3658_v1 = vpop.f32.mrb[27].mxu0  ;;  %1872 = vmatmul.mubr.f32.gmra.mrb[132].mxu0 %v3399_v28  ;;  %v3414_v23 = vld [vmem:[%s7777_s0 + $0x9a8] sm:$0xff] }
 0x12e   :  { %v3659_v47 = vadd.f32 %v3658_v1, %v3657_v60  ;;  %v3738_v7 = vpop.f32.mrb[27].mxu1  ;;  %2017 = vmatmul.mubr.f32.gmra.mrb[132].mxu1 %v3401_v6  ;;  %1876 = vmatprep.mubr.f32.mxu0 %v3407_v48  ;;  %v3416_v6 = vld [vmem:[%s7777_s0 + $0x9b8] sm:$0xff]  ;;  %v3413_v1 = vld [vmem:[%s7777_s0 + $0x9a0] sm:$0xff] }
 0x12f   :  { %v3739_v22 = vadd.f32 %v3738_v7, %v3737_v54  ;;  %2021 = vmatprep.mubr.f32.mxu1 %v3409_v41 }
 0x130   :  { %v3660_v33 = vpop.f32.mrb[28].mxu0 }
 0x131   :  { %v6628_v28 = vadd.f32 %v3739_v22, %v3659_v47  ;;  %v3740_v48 = vpop.f32.mrb[28].mxu1  ;;  %v3661_v60 = vpop.f32.mrb[29].mxu0  ;;  %1877 = vmatmul.mubr.f32.gmra.mrb[134].mxu0 %v3406_v58  ;;  %v3421_v47 = vld [vmem:[%s7777_s0 + $0x9e0] sm:$0xff] }
 0x132   :  { %v3662_v54 = vadd.f32 %v3661_v60, %v3660_v33  ;;  %v3741_v41 = vpop.f32.mrb[29].mxu1  ;;  %2022 = vmatmul.mubr.f32.gmra.mrb[134].mxu1 %v3408_v42  ;;  %1881 = vmatprep.mubr.f32.mxu0 %v3414_v23  ;;  %v3423_v42 = vld [vmem:[%s7777_s0 + $0x9f0] sm:$0xff]  ;;  %v3420_v60 = vld [vmem:[%s7777_s0 + $0x9d8] sm:$0xff] }
 0x133   :  { %v3742_v7 = vadd.f32 %v3741_v41, %v3740_v48  ;;  %2026 = vmatprep.mubr.f32.mxu1 %v3416_v6 }
 0x134   :  { %v3663_v22 = vpop.f32.mrb[30].mxu0 }
 0x135   :  { %v6642_v58 = vadd.f32 %v3742_v7, %v3662_v54  ;;  %v3743_v23 = vpop.f32.mrb[30].mxu1  ;;  %v3664_v33 = vpop.f32.mrb[31].mxu0  ;;  %1882 = vmatmul.mubr.f32.gmra.mrb[136].mxu0 %v3413_v1  ;;  %v3428_v54 = vld [vmem:[%s7777_s0 + $0xa18] sm:$0xff] }
 0x136   :  { %v3665_v48 = vadd.f32 %v3664_v33, %v3663_v22  ;;  %v3744_v6 = vpop.f32.mrb[31].mxu1  ;;  %2027 = vmatmul.mubr.f32.gmra.mrb[136].mxu1 %v3415_v11  ;;  %1886 = vmatprep.mubr.f32.mxu0 %v3421_v47  ;;  %v3430_v11 = vld [vmem:[%s7777_s0 + $0xa28] sm:$0xff]  ;;  %v3427_v33 = vld [vmem:[%s7777_s0 + $0xa10] sm:$0xff] }
 0x137   :  { %7824 = vst [vmem:[#allocation15_spill] sm:$0xff] %v6642_v58  ;;  %v3745_v41 = vadd.f32 %v3744_v6, %v3743_v23  ;;  %2031 = vmatprep.mubr.f32.mxu1 %v3423_v42  ;;  %v3429_v6 = vld [vmem:[%s7777_s0 + $0xa20] sm:$0xff]  ;;  %v3434_v58 = vld [vmem:[%s7777_s0 + $0xa48] sm:$0xff] }
 0x138   :  { %v3778_v7 = vpop.f32.mrb[32].mxu0 }
 0x139   :  { %v6656_v1 = vadd.f32 %v3745_v41, %v3665_v48  ;;  %v4636_v47 = vpop.f32.mrb[32].mxu1  ;;  %v3779_v22 = vpop.f32.mrb[33].mxu0  ;;  %1887 = vmatmul.mubr.f32.gmra.mrb[138].mxu0 %v3420_v60  ;;  %v3435_v48 = vld [vmem:[%s7777_s0 + $0xa50] sm:$0xff] }
 0x13a   :  { %v3780_v23 = vadd.f32 %v3779_v22, %v3778_v7  ;;  %v776_v42 = vpop.f32.mrb[33].mxu1  ;;  %2032 = vmatmul.mubr.f32.gmra.mrb[138].mxu1 %v3422_v45  ;;  %1891 = vmatprep.mubr.f32.mxu0 %v3428_v54  ;;  %v3437_v45 = vld [vmem:[%s7777_s0 + $0xa60] sm:$0xff] }
 0x13b   :  { %7825 = vst [vmem:[#allocation16_spill] sm:$0xff] %v6656_v1  ;;  %2036 = vmatprep.mubr.f32.mxu1 %v3430_v11 }
 0x13c   :  { %v632_v41 = vadd.f32 %v3780_v23, %v6419_v4  ;;  %v3781_v60 = vpop.f32.mrb[34].mxu0  ;;  %v3436_v4 = vld [vmem:[%s7777_s0 + $0xa58] sm:$0xff]  ;;  %v3334_v23 = vld [vmem:[%s7777_s0 + $0x728] sm:$0xff] }
 0x13d   :  { %v4639_v54 = vpop.f32.mrb[34].mxu1  ;;  %v3782_v7 = vpop.f32.mrb[35].mxu0  ;;  %1892 = vmatmul.mubr.f32.gmra.mrb[140].mxu0 %v3427_v33 }
 0x13e   :  { %v6671_v22 = vadd.f32 %v776_v42, %v632_v41  ;;  %v3783_v11 = vadd.f32 %v3782_v7, %v3781_v60  ;;  %v786_v1 = vpop.f32.mrb[35].mxu1  ;;  %2037 = vmatmul.mubr.f32.gmra.mrb[140].mxu1 %v3429_v6  ;;  %1896 = vmatprep.mubr.f32.mxu0 %v3435_v48  ;;  %v3335_v6 = vld [vmem:[%s7777_s0 + $0x730] sm:$0xff]  ;;  %v3333_v7 = vld [vmem:[%s7777_s0 + $0x720] sm:$0xff] }
 0x13f   :  { %2041 = vmatprep.mubr.f32.mxu1 %v3437_v45 }
 0x140   :  { %7826 = vst [vmem:[#allocation17_spill] sm:$0xff] %v6671_v22  ;;  %v637_v42 = vadd.f32 %v3783_v11, %v6437_v61  ;;  %v3784_v33 = vpop.f32.mrb[36].mxu0  ;;  %v3342_v61 = vld [vmem:[%s7777_s0 + $0x768] sm:$0xff] }
 0x141   :  { %v6686_v48 = vpop.f32.mrb[36].mxu1  ;;  %v3785_v41 = vpop.f32.mrb[37].mxu0  ;;  %1897 = vmatmul.mubr.f32.gmra.mrb[142].mxu0 %v3434_v58  ;;  %v3341_v58 = vld [vmem:[%s7777_s0 + $0x760] sm:$0xff] }
 0x142   :  { %v3786_v60 = vadd.f32 %v3785_v41, %v3784_v33  ;;  %v796_v45 = vpop.f32.mrb[37].mxu1  ;;  %2042 = vmatmul.mubr.f32.gmra.mrb[142].mxu1 %v3436_v4  ;;  %2111 = vmatprep.mubr.f32.mxu0 %v3334_v23  ;;  %v6691_v22 = vadd.f32 %v4636_v47, %v637_v42  ;;  %v3349_v23 = vld [vmem:[%s7777_s0 + $0x7a0] sm:$0xff]  ;;  %v3340_v41 = vld [vmem:[%s7777_s0 + $0x758] sm:$0xff] }
 0x143   :  { %4698 = vmatprep.mubr.msk.f32.mxu1 %vm226_vm0, %v3335_v6 }
 0x144   :  { %v642_v11 = vadd.f32 %v3786_v60, %v6454_v49  ;;  %v3787_v4 = vpop.f32.mrb[38].mxu0  ;;  %v3356_v60 = vld [vmem:[%s7777_s0 + $0x7d8] sm:$0xff] }
 0x145   :  { %v6704_v33 = vpop.f32.mrb[38].mxu1  ;;  %v3788_v47 = vpop.f32.mrb[39].mxu0  ;;  %2112 = vmatmul.mubr.f32.vlgmr.msra.gmra.mrb[144].mxu0 %v3333_v7  ;;  %v3348_v7 = vld [vmem:[%s7777_s0 + $0x798] sm:$0xff] }
 0x146   :  { %v3789_v42 = vadd.f32 %v3788_v47, %v3787_v4  ;;  %v6706_v6 = vpop.f32.mrb[39].mxu1  ;;  %4699 = vmatmul.mubr.msk.f32.vlgmr.msra.gmra.mrb[144].mxu1 %vm226_vm0, %v3342_v61  ;;  %2116 = vmatprep.mubr.f32.mxu0 %v3341_v58  ;;  %v6712_v49 = vadd.f32 %v786_v1, %v642_v11 }
 0x147   :  { %5069 = vmatpush3.bf16.msra.mxu1 %v5212_v8  ;;  %4701 = vmatprep.mubr.msk.f32.mxu1 %vm226_vm0, %v3349_v23  ;;  %v3363_v8 = vld [vmem:[%s7777_s0 + $0x810] sm:$0xff] }
 0x148   :  { %v647_v61 = vadd.f32 %v3789_v42, %v6471_v31  ;;  %v3790_v58 = vpop.f32.mrb[40].mxu0  ;;  %5071 = vmatprep.subr.bf16.mxu1 %v5237_v16  ;;  %5101 = vmatpush3.bf16.msra.mxu0 %v5224_v12  ;;  %v3347_v12 = vld [vmem:[%s7777_s0 + $0x790] sm:$0xff] }
 0x149   :  { %v6728_v1 = vpop.f32.mrb[40].mxu1  ;;  %v3791_v11 = vpop.f32.mrb[41].mxu0  ;;  %2117 = vmatmul.mubr.f32.gmra.mrb[146].mxu0 %v3340_v41  ;;  %5103 = vmatprep.subr.bf16.mxu0 %v5239_v17  ;;  %v3370_v17 = vld [vmem:[%s7777_s0 + $0x848] sm:$0xff]  ;;  %v3355_v31 = vld [vmem:[%s7777_s0 + $0x7d0] sm:$0xff] }
 0x14a   :  { %v3792_v4 = vadd.f32 %v3791_v11, %v3790_v58  ;;  %v6731_v23 = vpop.f32.mrb[41].mxu1  ;;  %4702 = vmatmul.mubr.msk.f32.gmra.mrb[146].mxu1 %vm226_vm0, %v3356_v60  ;;  %2121 = vmatprep.mubr.f32.mxu0 %v3348_v7  ;;  %v6737_v16 = vadd.f32 %v4639_v54, %v647_v61  ;;  %v3377_v54 = vld [vmem:[%s7777_s0 + $0x880] sm:$0xff] }
 0x14b   :  { %5073 = vmatpush3.bf16.msra.mxu1 %v5251_v21  ;;  %4704 = vmatprep.mubr.msk.f32.mxu1 %vm226_vm0, %v3363_v8 }
 0x14c   :  { %v652_v47 = vadd.f32 %v3792_v4, %v6489_v2  ;;  %v3793_v42 = vpop.f32.mrb[42].mxu0  ;;  %5075 = vmatprep.subr.bf16.mxu1 %v5266_v26  ;;  %5105 = vmatpush3.bf16.msra.mxu0 %v5264_v25  ;;  %v3354_v26 = vld [vmem:[%s7777_s0 + $0x7c8] sm:$0xff]  ;;  %v3384_v25 = vld [vmem:[%s7777_s0 + $0x8b8] sm:$0xff] }
 0x14d   :  { %v6753_v21 = vpop.f32.mrb[42].mxu1  ;;  %v3794_v41 = vpop.f32.mrb[43].mxu0  ;;  %2122 = vmatmul.mubr.f32.gmra.mrb[148].mxu0 %v3347_v12  ;;  %5107 = vmatprep.subr.bf16.mxu0 %v5277_v30  ;;  %v3362_v30 = vld [vmem:[%s7777_s0 + $0x808] sm:$0xff] }
 0x14e   :  { %v3795_v60 = vadd.f32 %v3794_v41, %v3793_v42  ;;  %v6756_v7 = vpop.f32.mrb[43].mxu1  ;;  %4705 = vmatmul.mubr.msk.f32.gmra.mrb[148].mxu1 %vm226_vm0, %v3370_v17  ;;  %2126 = vmatprep.mubr.f32.mxu0 %v3355_v31  ;;  %v6762_v2 = vadd.f32 %v796_v45, %v652_v47  ;;  %v3391_v45 = vld [vmem:[%s7777_s0 + $0x8f0] sm:$0xff] }
 0x14f   :  { %5077 = vmatpush3.bf16.msra.mxu1 %v5289_v34  ;;  %4707 = vmatprep.mubr.msk.f32.mxu1 %vm226_vm0, %v3377_v54 }
 0x150   :  { %v657_v61 = vadd.f32 %v3795_v60, %v6505_v53  ;;  %v3796_v58 = vpop.f32.mrb[44].mxu0  ;;  %5079 = vmatprep.subr.bf16.mxu1 %v5304_v39  ;;  %5109 = vmatpush3.bf16.msra.mxu0 %v5302_v38  ;;  %v3361_v39 = vld [vmem:[%s7777_s0 + $0x800] sm:$0xff]  ;;  %v3398_v38 = vld [vmem:[%s7777_s0 + $0x928] sm:$0xff] }
 0x151   :  { %v6778_v34 = vpop.f32.mrb[44].mxu1  ;;  %v3797_v8 = vpop.f32.mrb[45].mxu0  ;;  %2127 = vmatmul.mubr.f32.gmra.mrb[150].mxu0 %v3354_v26  ;;  %5111 = vmatprep.subr.bf16.mxu0 %v5316_v43  ;;  %v3369_v43 = vld [vmem:[%s7777_s0 + $0x840] sm:$0xff] }
 0x152   :  { %v3798_v11 = vadd.f32 %v3797_v8, %v3796_v58  ;;  %v6781_v4 = vpop.f32.mrb[45].mxu1  ;;  %4708 = vmatmul.mubr.msk.f32.gmra.mrb[150].mxu1 %vm226_vm0, %v3384_v25  ;;  %2131 = vmatprep.mubr.f32.mxu0 %v3362_v30  ;;  %v6788_v53 = vadd.f32 %v6686_v48, %v657_v61  ;;  %v3405_v48 = vld [vmem:[%s7777_s0 + $0x960] sm:$0xff] }
 0x153   :  { %5081 = vmatpush3.bf16.msra.mxu1 %v5337_v50  ;;  %4710 = vmatprep.mubr.msk.f32.mxu1 %vm226_vm0, %v3391_v45 }
 0x154   :  { %v662_v12 = vadd.f32 %v3798_v11, %v6521_v9  ;;  %v3799_v17 = vpop.f32.mrb[46].mxu0  ;;  %5083 = vmatprep.subr.bf16.mxu1 %v5343_v52  ;;  %5113 = vmatpush3.bf16.msra.mxu0 %v5341_v51  ;;  %v3368_v52 = vld [vmem:[%s7777_s0 + $0x838] sm:$0xff] }
 0x155   :  { %v6804_v50 = vpop.f32.mrb[46].mxu1  ;;  %v3800_v31 = vpop.f32.mrb[47].mxu0  ;;  %2132 = vmatmul.mubr.f32.gmra.mrb[152].mxu0 %v3361_v39  ;;  %5115 = vmatprep.subr.bf16.mxu0 %v5355_v56  ;;  %v3412_v51 = vld [vmem:[%s7777_s0 + $0x998] sm:$0xff] }
 0x156   :  { %v3801_v47 = vadd.f32 %v3800_v31, %v3799_v17  ;;  %v6807_v42 = vpop.f32.mrb[47].mxu1  ;;  %4711 = vmatmul.mubr.msk.f32.gmra.mrb[152].mxu1 %vm226_vm0, %v3398_v38  ;;  %2136 = vmatprep.mubr.f32.mxu0 %v3369_v43  ;;  %v6814_v9 = vadd.f32 %v6706_v6, %v662_v12  ;;  %v3376_v56 = vld [vmem:[%s7777_s0 + $0x878] sm:$0xff]  ;;  %v3419_v6 = vld [vmem:[%s7777_s0 + $0x9d0] sm:$0xff] }
 0x157   :  { %5085 = vmatpush3.bf16.msra.mxu1 %v5373_v62  ;;  %4713 = vmatprep.mubr.msk.f32.mxu1 %vm226_vm0, %v3405_v48 }
 0x158   :  { %v667_v54 = vadd.f32 %v3801_v47, %v6537_v40  ;;  %v3802_v41 = vpop.f32.mrb[48].mxu0  ;;  %5087 = vmatprep.subr.bf16.mxu1 %v5379_v0  ;;  %5117 = vmatpush3.bf16.msra.mxu0 %v5377_v63  ;;  %v3375_v0 = vld [vmem:[%s7777_s0 + $0x870] sm:$0xff]  ;;  %v3426_v63 = vld [vmem:[%s7777_s0 + $0xa08] sm:$0xff]  ;;  %v3397_v47 = vld [vmem:[%s7777_s0 + $0x920] sm:$0xff] }
 0x159   :  { %v3878_v62 = vpop.f32.mrb[48].mxu1  ;;  %v3803_v60 = vpop.f32.mrb[49].mxu0  ;;  %2137 = vmatmul.mubr.f32.gmra.mrb[154].mxu0 %v3368_v52  ;;  %5119 = vmatprep.subr.bf16.mxu0 %v5391_v5  ;;  %v3383_v5 = vld [vmem:[%s7777_s0 + $0x8b0] sm:$0xff] }
 0x15a   :  { %v3804_v26 = vadd.f32 %v3803_v60, %v3802_v41  ;;  %v3879_v25 = vpop.f32.mrb[49].mxu1  ;;  %4714 = vmatmul.mubr.msk.f32.gmra.mrb[154].mxu1 %vm226_vm0, %v3412_v51  ;;  %2141 = vmatprep.mubr.f32.mxu0 %v3376_v56  ;;  %v6836_v40 = vadd.f32 %v6704_v33, %v667_v54  ;;  %v3433_v33 = vld [vmem:[%s7777_s0 + $0xa40] sm:$0xff]  ;;  %v7830_v56 = vld [vmem:[#allocation3_spill] sm:$0xff] }
 0x15b   :  { %v6838_v30 = vadd.f32 %v3879_v25, %v3878_v62  ;;  %5089 = vmatpush3.bf16.msra.mxu1 %v5409_v14  ;;  %4716 = vmatprep.mubr.msk.f32.mxu1 %vm226_vm0, %v3419_v6  ;;  %v3464_v25 = vld [vmem:[%s7777_s0 + $0xab8] sm:$0xff] }
 0x15c   :  { %v672_v61 = vadd.f32 %v3804_v26, %v6553_v24  ;;  %v3805_v58 = vpop.f32.mrb[50].mxu0  ;;  %5091 = vmatprep.subr.bf16.mxu1 %v5421_v20  ;;  %5121 = vmatpush3.bf16.msra.mxu0 %v5419_v19  ;;  %v3382_v20 = vld [vmem:[%s7777_s0 + $0x8a8] sm:$0xff]  ;;  %v3440_v19 = vld [vmem:[%s7777_s0 + $0xa78] sm:$0xff]  ;;  %v7832_v26 = vld [vmem:[#allocation4_spill] sm:$0xff] }
 0x15d   :  { %v3881_v14 = vpop.f32.mrb[50].mxu1  ;;  %v3806_v45 = vpop.f32.mrb[51].mxu0  ;;  %2142 = vmatmul.mubr.f32.gmra.mrb[156].mxu0 %v3375_v0  ;;  %5123 = vmatprep.subr.bf16.mxu0 %v5433_v27  ;;  %v3390_v27 = vld [vmem:[%s7777_s0 + $0x8e8] sm:$0xff]  ;;  %v3404_v0 = vld [vmem:[%s7777_s0 + $0x958] sm:$0xff] }
 0x15e   :  { %v3807_v8 = vadd.f32 %v3806_v45, %v3805_v58  ;;  %v3882_v11 = vpop.f32.mrb[51].mxu1  ;;  %4717 = vmatmul.mubr.msk.f32.gmra.mrb[156].mxu1 %vm226_vm0, %v3426_v63  ;;  %2146 = vmatprep.mubr.f32.mxu0 %v3383_v5  ;;  %v6860_v24 = vadd.f32 %v6731_v23, %v672_v61  ;;  %v3458_v23 = vld [vmem:[%s7777_s0 + $0xa88] sm:$0xff]  ;;  %v3403_v45 = vld [vmem:[%s7777_s0 + $0x950] sm:$0xff] }
 0x15f   :  { %v6862_v39 = vadd.f32 %v3882_v11, %v3881_v14  ;;  %5093 = vmatpush3.bf16.msra.mxu1 %v5451_v35  ;;  %4719 = vmatprep.mubr.msk.f32.mxu1 %vm226_vm0, %v3433_v33  ;;  %v3411_v11 = vld [vmem:[%s7777_s0 + $0x990] sm:$0xff] }
 0x160   :  { %7827 = vst [vmem:[#allocation18_spill] sm:$0xff] %v6860_v24  ;;  %v677_v38 = vadd.f32 %v3807_v8, %v6569_v15  ;;  %v3808_v43 = vpop.f32.mrb[52].mxu0  ;;  %5095 = vmatprep.subr.bf16.mxu1 %v5457_v37  ;;  %5125 = vmatpush3.bf16.msra.mxu0 %v5455_v36  ;;  %v3389_v37 = vld [vmem:[%s7777_s0 + $0x8e0] sm:$0xff] }
 0x161   :  { %v3884_v35 = vpop.f32.mrb[52].mxu1  ;;  %v3809_v12 = vpop.f32.mrb[53].mxu0  ;;  %2147 = vmatmul.mubr.f32.gmra.mrb[158].mxu0 %v3382_v20  ;;  %5127 = vmatprep.subr.bf16.mxu0 %v5469_v44  ;;  %v7829_v36 = vld [vmem:[#allocation2_spill] sm:$0xff] }
 0x162   :  { %v3810_v17 = vadd.f32 %v3809_v12, %v3808_v43  ;;  %v3885_v48 = vpop.f32.mrb[53].mxu1  ;;  %4720 = vmatmul.mubr.msk.f32.gmra.mrb[158].mxu1 %vm226_vm0, %v3440_v19  ;;  %2151 = vmatprep.mubr.f32.mxu0 %v3390_v27  ;;  %v6884_v15 = vadd.f32 %v6728_v1, %v677_v38  ;;  %v3457_v44 = vld [vmem:[%s7777_s0 + $0xa80] sm:$0xff]  ;;  %v3418_v12 = vld [vmem:[%s7777_s0 + $0x9c8] sm:$0xff] }
 0x163   :  { %v6886_v31 = vadd.f32 %v3885_v48, %v3884_v35  ;;  %5097 = vmatpush3.bf16.msra.mxu1 %v7829_v36  ;;  %2562 = vmatprep.mubr.f32.mxu1 %v3458_v23  ;;  %v3465_v1 = vld [vmem:[%s7777_s0 + $0xac0] sm:$0xff] }
 0x164   :  { %7828 = vst [vmem:[#allocation19_spill] sm:$0xff] %v6884_v15  ;;  %v682_v52 = vadd.f32 %v3810_v17, %v6585_v3  ;;  %v3811_v51 = vpop.f32.mrb[54].mxu0  ;;  %5131 = vmatprep.subr.bf16.mxu1 %v5493_v55  ;;  %5129 = vmatpush3.bf16.msra.mxu0 %v7830_v56  ;;  %v3396_v3 = vld [vmem:[%s7777_s0 + $0x918] sm:$0xff]  ;;  %v3425_v56 = vld [vmem:[%s7777_s0 + $0xa00] sm:$0xff] }
 0x165   :  { %v3887_v54 = vpop.f32.mrb[54].mxu1  ;;  %v3812_v41 = vpop.f32.mrb[55].mxu0  ;;  %2152 = vmatmul.mubr.f32.gmra.mrb[160].mxu0 %v3389_v37  ;;  %5163 = vmatprep.subr.bf16.mxu0 %v5496_v57  ;;  %v7835_v37 = vld [vmem:[#allocation6_spill] sm:$0xff] }
 0x166   :  { %v3813_v6 = vadd.f32 %v3812_v41, %v3811_v51  ;;  %v3888_v62 = vpop.f32.mrb[55].mxu1  ;;  %2563 = vmatmul.mubr.f32.vlgmr.msra.gmra.mrb[160].mxu1 %v3457_v44  ;;  %2156 = vmatprep.mubr.f32.mxu0 %v3397_v47  ;;  %v6906_v55 = vadd.f32 %v6756_v7, %v682_v52  ;;  %v3472_v7 = vld [vmem:[%s7777_s0 + $0xaf8] sm:$0xff] }
 0x167   :  { %v6908_v60 = vadd.f32 %v3888_v62, %v3887_v54  ;;  %5133 = vmatpush3.bf16.msra.mxu1 %v7832_v26  ;;  %2567 = vmatprep.mubr.f32.mxu1 %v3465_v1  ;;  %v3485_v1 = vld [vmem:[%s7777_s0 + $0xb60] sm:$0xff]  ;;  %v7837_v54 = vld [vmem:[#allocation15_spill] sm:$0xff] }
 0x168   :  { %7831 = vst [vmem:[#allocation2_spill] sm:$0xff] %v6906_v55  ;;  %v687_v63 = vadd.f32 %v3813_v6, %v6600_v46  ;;  %v3814_v5 = vpop.f32.mrb[56].mxu0  ;;  %5135 = vmatprep.subr.bf16.mxu1 %v5528_v10  ;;  %v3471_v10 = vld [vmem:[%s7777_s0 + $0xaf0] sm:$0xff]  ;;  %v7838_v62 = vld [vmem:[#allocation7_spill] sm:$0xff] }
 0x169   :  { %v3890_v61 = vpop.f32.mrb[56].mxu1  ;;  %v3815_v58 = vpop.f32.mrb[57].mxu0  ;;  %2157 = vmatmul.mubr.f32.gmra.mrb[162].mxu0 %v3396_v3 }
 0x16a   :  { %v3816_v33 = vadd.f32 %v3815_v58, %v3814_v5  ;;  %v3891_v14 = vpop.f32.mrb[57].mxu1  ;;  %2568 = vmatmul.mubr.f32.gmra.mrb[162].mxu1 %v3464_v25  ;;  %2161 = vmatprep.mubr.f32.mxu0 %v3404_v0  ;;  %v6926_v46 = vadd.f32 %v6753_v21, %v687_v63  ;;  %v3479_v21 = vld [vmem:[%s7777_s0 + $0xb30] sm:$0xff] }
 0x16b   :  { %v6928_v8 = vadd.f32 %v3891_v14, %v3890_v61  ;;  %2572 = vmatprep.mubr.f32.mxu1 %v3472_v7  ;;  %5137 = vmatpush3.bf16.msra.mxu1 %v5556_v29  ;;  %v3410_v29 = vld [vmem:[%s7777_s0 + $0x988] sm:$0xff]  ;;  %v3492_v7 = vld [vmem:[%s7777_s0 + $0xb98] sm:$0xff]  ;;  %v7840_v58 = vld [vmem:[#allocation8_spill] sm:$0xff] }
 0x16c   :  { %7833 = vst [vmem:[#allocation3_spill] sm:$0xff] %v6926_v46  ;;  %v692_v20 = vadd.f32 %v3816_v33, %v6614_v13  ;;  %v3817_v19 = vpop.f32.mrb[58].mxu0  ;;  %5139 = vmatprep.subr.bf16.mxu1 %v5562_v32  ;;  %v3478_v32 = vld [vmem:[%s7777_s0 + $0xb28] sm:$0xff]  ;;  %v3432_v61 = vld [vmem:[%s7777_s0 + $0xa38] sm:$0xff]  ;;  %v7841_v33 = vld [vmem:[#allocation16_spill] sm:$0xff] }
 0x16d   :  { %v3893_v27 = vpop.f32.mrb[58].mxu1  ;;  %v3818_v38 = vpop.f32.mrb[59].mxu0  ;;  %2162 = vmatmul.mubr.f32.gmra.mrb[164].mxu0 %v3403_v45 }
 0x16e   :  { %v3819_v43 = vadd.f32 %v3818_v38, %v3817_v19  ;;  %v3894_v23 = vpop.f32.mrb[59].mxu1  ;;  %2573 = vmatmul.mubr.f32.gmra.mrb[164].mxu1 %v3471_v10  ;;  %2166 = vmatprep.mubr.f32.mxu0 %v3411_v11  ;;  %v6946_v13 = vadd.f32 %v6781_v4, %v692_v20  ;;  %v3486_v4 = vld [vmem:[%s7777_s0 + $0xb68] sm:$0xff]  ;;  %v7842_v10 = vld [vmem:[#allocation9_spill] sm:$0xff]  ;;  %v3431_v38 = vld [vmem:[%s7777_s0 + $0xa30] sm:$0xff] }
 0x16f   :  { %v6948_v35 = vadd.f32 %v3894_v23, %v3893_v27  ;;  %2577 = vmatprep.mubr.f32.mxu1 %v3479_v21  ;;  %5141 = vmatpush3.bf16.msra.mxu1 %v5594_v59  ;;  %v3417_v59 = vld [vmem:[%s7777_s0 + $0x9c0] sm:$0xff]  ;;  %v3499_v23 = vld [vmem:[%s7777_s0 + $0xbd0] sm:$0xff] }
 0x170   :  { %7834 = vst [vmem:[#allocation4_spill] sm:$0xff] %v6946_v13  ;;  %v697_v17 = vadd.f32 %v3819_v43, %v6628_v28  ;;  %v3820_v48 = vpop.f32.mrb[60].mxu0  ;;  %5143 = vmatprep.subr.bf16.mxu1 %v7835_v37 }
 0x171   :  { %v3896_v36 = vpop.f32.mrb[60].mxu1  ;;  %v3821_v44 = vpop.f32.mrb[61].mxu0  ;;  %2167 = vmatmul.mubr.f32.gmra.mrb[166].mxu0 %v3410_v29  ;;  %v7844_v29 = vld [vmem:[#allocation10_spill] sm:$0xff] }
 0x172   :  { %v3822_v47 = vadd.f32 %v3821_v44, %v3820_v48  ;;  %v3897_v52 = vpop.f32.mrb[61].mxu1  ;;  %2578 = vmatmul.mubr.f32.gmra.mrb[166].mxu1 %v3478_v32  ;;  %2171 = vmatprep.mubr.f32.mxu0 %v3418_v12  ;;  %v6966_v28 = vadd.f32 %v6778_v34, %v697_v17  ;;  %v3493_v34 = vld [vmem:[%s7777_s0 + $0xba0] sm:$0xff]  ;;  %v3507_v17 = vld [vmem:[%s7777_s0 + $0xc10] sm:$0xff]  ;;  %v7845_v48 = vld [vmem:[#allocation11_spill] sm:$0xff] }
 0x173   :  { %v6968_v51 = vadd.f32 %v3897_v52, %v3896_v36  ;;  %2582 = vmatprep.mubr.f32.mxu1 %v3486_v4  ;;  %5145 = vmatpush3.bf16.msra.mxu1 %v5626_v18  ;;  %v3424_v18 = vld [vmem:[%s7777_s0 + $0x9f8] sm:$0xff]  ;;  %v3506_v52 = vld [vmem:[%s7777_s0 + $0xc08] sm:$0xff] }
 0x174   :  { %7836 = vst [vmem:[#allocation6_spill] sm:$0xff] %v6966_v28  ;;  %v702_v41 = vadd.f32 %v3822_v47, %v7837_v54  ;;  %v3823_v6 = vpop.f32.mrb[62].mxu0  ;;  %5147 = vmatprep.subr.bf16.mxu1 %v7838_v62  ;;  %v3438_v47 = vld [vmem:[%s7777_s0 + $0xa68] sm:$0xff] }
 0x175   :  { %v3899_v3 = vpop.f32.mrb[62].mxu1  ;;  %v3824_v26 = vpop.f32.mrb[63].mxu0  ;;  %2172 = vmatmul.mubr.f32.gmra.mrb[168].mxu0 %v3417_v59  ;;  %v3460_v59 = vld [vmem:[%s7777_s0 + $0xa98] sm:$0xff] }
 0x176   :  { %v3825_v25 = vadd.f32 %v3824_v26, %v3823_v6  ;;  %v3900_v0 = vpop.f32.mrb[63].mxu1  ;;  %2583 = vmatmul.mubr.f32.gmra.mrb[168].mxu1 %v3485_v1  ;;  %2176 = vmatprep.mubr.f32.mxu0 %v3425_v56  ;;  %v6986_v63 = vadd.f32 %v6807_v42, %v702_v41  ;;  %v3500_v42 = vld [vmem:[%s7777_s0 + $0xbd8] sm:$0xff]  ;;  %v7846_v1 = vld [vmem:[#allocation12_spill] sm:$0xff]  ;;  %v3514_v41 = vld [vmem:[%s7777_s0 + $0xc48] sm:$0xff] }
 0x177   :  { %v6988_v5 = vadd.f32 %v3900_v0, %v3899_v3  ;;  %2587 = vmatprep.mubr.f32.mxu1 %v3493_v34  ;;  %5149 = vmatpush3.bf16.msra.mxu1 %v7840_v58  ;;  %v7847_v6 = vld [vmem:[#allocation13_spill] sm:$0xff]  ;;  %v3513_v0 = vld [vmem:[%s7777_s0 + $0xc40] sm:$0xff] }
 0x178   :  { %7839 = vst [vmem:[#allocation15_spill] sm:$0xff] %v6986_v63  ;;  %v707_v14 = vadd.f32 %v3825_v25, %v7841_v33  ;;  %v3958_v45 = vpop.f32.mrb[64].mxu0  ;;  %5151 = vmatprep.subr.bf16.mxu1 %v7842_v10  ;;  %v3459_v25 = vld [vmem:[%s7777_s0 + $0xa90] sm:$0xff]  ;;  %v3521_v33 = vld [vmem:[%s7777_s0 + $0xc80] sm:$0xff] }
 0x179   :  { %v3902_v11 = vpop.f32.mrb[64].mxu1  ;;  %v3959_v20 = vpop.f32.mrb[65].mxu0  ;;  %2177 = vmatmul.mubr.f32.gmra.mrb[170].mxu0 %v3424_v18  ;;  %v3467_v18 = vld [vmem:[%s7777_s0 + $0xad0] sm:$0xff] }
 0x17a   :  { %v7003_v19 = vadd.f32 %v6804_v50, %v707_v14  ;;  %v3903_v21 = vpop.f32.mrb[65].mxu1  ;;  %v3960_v27 = vadd.f32 %v3959_v20, %v3958_v45  ;;  %2588 = vmatmul.mubr.f32.gmra.mrb[170].mxu1 %v3492_v7  ;;  %2181 = vmatprep.mubr.f32.mxu0 %v3432_v61  ;;  %v3439_v50 = vld [vmem:[%s7777_s0 + $0xa70] sm:$0xff]  ;;  %v7848_v7 = vld [vmem:[#allocation14_spill] sm:$0xff] }
 0x17b   :  { %v7008_v43 = vadd.f32 %v3903_v21, %v3902_v11  ;;  %2592 = vmatprep.mubr.f32.mxu1 %v3500_v42  ;;  %5153 = vmatpush3.bf16.msra.mxu1 %v7844_v29  ;;  %v3466_v11 = vld [vmem:[%s7777_s0 + $0xac8] sm:$0xff] }
 0x17c   :  { %7843 = vst [vmem:[#allocation7_spill] sm:$0xff] %v7003_v19  ;;  %v7018_v32 = vadd.f32 %v3960_v27, %v6838_v30  ;;  %v3961_v12 = vpop.f32.mrb[66].mxu0  ;;  %5155 = vmatprep.subr.bf16.mxu1 %v7845_v48  ;;  %v3474_v21 = vld [vmem:[%s7777_s0 + $0xb08] sm:$0xff] }
 0x17d   :  { %v3905_v4 = vpop.f32.mrb[66].mxu1  ;;  %v3962_v37 = vpop.f32.mrb[67].mxu0  ;;  %2182 = vmatmul.mubr.f32.gmra.mrb[172].mxu0 %v3431_v38 }
 0x17e   :  { %v3906_v36 = vpop.f32.mrb[67].mxu1  ;;  %v3963_v44 = vadd.f32 %v3962_v37, %v3961_v12  ;;  %2593 = vmatmul.mubr.f32.gmra.mrb[172].mxu1 %v3499_v23  ;;  %2186 = vmatprep.mubr.f32.mxu0 %v3439_v50  ;;  %v3528_v23 = vld [vmem:[%s7777_s0 + $0xcb8] sm:$0xff]  ;;  %v3481_v37 = vld [vmem:[%s7777_s0 + $0xb40] sm:$0xff] }
 0x17f   :  { %v7027_v30 = vadd.f32 %v3906_v36, %v3905_v4  ;;  %2597 = vmatprep.mubr.f32.mxu1 %v3507_v17  ;;  %5157 = vmatpush3.bf16.msra.mxu1 %v7846_v1  ;;  %v7849_v50 = vld [vmem:[#allocation5_spill] sm:$0xff]  ;;  %v3527_v4 = vld [vmem:[%s7777_s0 + $0xcb0] sm:$0xff] }
 0x180   :  { %v7037_v56 = vadd.f32 %v3963_v44, %v6862_v39  ;;  %v3964_v54 = vpop.f32.mrb[68].mxu0  ;;  %5159 = vmatprep.subr.bf16.mxu1 %v7847_v6 }
 0x181   :  { %v3908_v34 = vpop.f32.mrb[68].mxu1  ;;  %v3965_v62 = vpop.f32.mrb[69].mxu0  ;;  %2187 = vmatmul.mubr.f32.gmra.mrb[174].mxu0 %v3438_v47  ;;  %v3535_v47 = vld [vmem:[%s7777_s0 + $0xcf0] sm:$0xff] }
 0x182   :  { %v3909_v3 = vpop.f32.mrb[69].mxu1  ;;  %v3966_v26 = vadd.f32 %v3965_v62, %v3964_v54  ;;  %2598 = vmatmul.mubr.f32.gmra.mrb[174].mxu1 %v3506_v52  ;;  %2707 = vmatprep.mubr.f32.mxu0 %v3460_v59 }
 0x183   :  { %v7046_v39 = vadd.f32 %v3909_v3, %v3908_v34  ;;  %2602 = vmatprep.mubr.f32.mxu1 %v3514_v41  ;;  %5161 = vmatpush3.bf16.msra.mxu1 %v7848_v7  ;;  %v3480_v41 = vld [vmem:[%s7777_s0 + $0xb38] sm:$0xff] }
 0x184   :  { %v7056_v61 = vadd.f32 %v3966_v26, %v6886_v31  ;;  %v3967_v58 = vpop.f32.mrb[70].mxu0  ;;  %v3520_v31 = vld [vmem:[%s7777_s0 + $0xc78] sm:$0xff]  ;;  %v3542_v26 = vld [vmem:[%s7777_s0 + $0xd28] sm:$0xff] }
 0x185   :  { %v3911_v14 = vpop.f32.mrb[70].mxu1  ;;  %v3968_v45 = vpop.f32.mrb[71].mxu0  ;;  %2708 = vmatmul.mubr.f32.vlgmr.msra.gmra.mrb[176].mxu0 %v3459_v25  ;;  %v3488_v34 = vld [vmem:[%s7777_s0 + $0xb78] sm:$0xff] }
 0x186   :  { %v3912_v42 = vpop.f32.mrb[71].mxu1  ;;  %v3969_v10 = vadd.f32 %v3968_v45, %v3967_v58  ;;  %2603 = vmatmul.mubr.f32.gmra.mrb[176].mxu1 %v3513_v0  ;;  %2712 = vmatprep.mubr.f32.mxu0 %v3467_v18  ;;  %v3487_v58 = vld [vmem:[%s7777_s0 + $0xb70] sm:$0xff] }
 0x187   :  { %v7064_v20 = vadd.f32 %v3912_v42, %v3911_v14  ;;  %2607 = vmatprep.mubr.f32.mxu1 %v3521_v33  ;;  %5165 = vmatpush3.bf16.msra.mxu0 %v5496_v57  ;;  %v3473_v57 = vld [vmem:[%s7777_s0 + $0xb00] sm:$0xff]  ;;  %v3495_v14 = vld [vmem:[%s7777_s0 + $0xbb0] sm:$0xff] }
 0x188   :  { %v7074_v27 = vadd.f32 %v3969_v10, %v6908_v60  ;;  %v3970_v38 = vpop.f32.mrb[72].mxu0  ;;  %5167 = vmatprep.subr.bf16.mxu0 %v7849_v50  ;;  %v3549_v10 = vld [vmem:[%s7777_s0 + $0xd60] sm:$0xff] }
 0x189   :  { %v3914_v29 = vpop.f32.mrb[72].mxu1  ;;  %v3971_v12 = vpop.f32.mrb[73].mxu0  ;;  %2713 = vmatmul.mubr.f32.gmra.mrb[178].mxu0 %v3466_v11 }
 0x18a   :  { %v3915_v17 = vpop.f32.mrb[73].mxu1  ;;  %v3972_v48 = vadd.f32 %v3971_v12, %v3970_v38  ;;  %2608 = vmatmul.mubr.f32.gmra.mrb[178].mxu1 %v3520_v31  ;;  %2717 = vmatprep.mubr.f32.mxu0 %v3474_v21 }
 0x18b   :  { %v7083_v60 = vadd.f32 %v3915_v17, %v3914_v29  ;;  %2612 = vmatprep.mubr.f32.mxu1 %v3528_v23  ;;  %5169 = vmatpush3.bf16.msra.mxu0 %v7849_v50  ;;  %v3494_v23 = vld [vmem:[%s7777_s0 + $0xba8] sm:$0xff] }
 0x18c   :  { %v7093_v36 = vadd.f32 %v3972_v48, %v6928_v8  ;;  %v3973_v44 = vpop.f32.mrb[74].mxu0  ;;  %v3534_v8 = vld [vmem:[%s7777_s0 + $0xce8] sm:$0xff]  ;;  %v3556_v48 = vld [vmem:[%s7777_s0 + $0xd98] sm:$0xff] }
 0x18d   :  { %v3917_v52 = vpop.f32.mrb[74].mxu1  ;;  %v3974_v59 = vpop.f32.mrb[75].mxu0  ;;  %2718 = vmatmul.mubr.f32.gmra.mrb[180].mxu0 %v3473_v57  ;;  %v3502_v29 = vld [vmem:[%s7777_s0 + $0xbe8] sm:$0xff] }
 0x18e   :  { %v3918_v1 = vpop.f32.mrb[75].mxu1  ;;  %v3975_v54 = vadd.f32 %v3974_v59, %v3973_v44  ;;  %2613 = vmatmul.mubr.f32.gmra.mrb[180].mxu1 %v3527_v4  ;;  %2722 = vmatprep.mubr.f32.mxu0 %v3481_v37  ;;  %v3509_v59 = vld [vmem:[%s7777_s0 + $0xc20] sm:$0xff] }
 0x18f   :  { %v7101_v6 = vadd.f32 %v3918_v1, %v3917_v52  ;;  %2617 = vmatprep.mubr.f32.mxu1 %v3535_v47  ;;  %v3501_v47 = vld [vmem:[%s7777_s0 + $0xbe0] sm:$0xff] }
 0x190   :  { %v7110_v62 = vadd.f32 %v3975_v54, %v6948_v35  ;;  %v3976_v3 = vpop.f32.mrb[76].mxu0  ;;  %v3541_v35 = vld [vmem:[%s7777_s0 + $0xd20] sm:$0xff] }
 0x191   :  { %v3920_v25 = vpop.f32.mrb[76].mxu1  ;;  %v3977_v0 = vpop.f32.mrb[77].mxu0  ;;  %2723 = vmatmul.mubr.f32.gmra.mrb[182].mxu0 %v3480_v41  ;;  %v3563_v41 = vld [vmem:[%s7777_s0 + $0xdd0] sm:$0xff] }
 0x192   :  { %v3921_v18 = vpop.f32.mrb[77].mxu1  ;;  %v3978_v7 = vadd.f32 %v3977_v0, %v3976_v3  ;;  %2618 = vmatmul.mubr.f32.gmra.mrb[182].mxu1 %v3534_v8  ;;  %2727 = vmatprep.mubr.f32.mxu0 %v3488_v34 }
 0x193   :  { %v7118_v33 = vadd.f32 %v3921_v18, %v3920_v25  ;;  %2622 = vmatprep.mubr.f32.mxu1 %v3542_v26  ;;  %v3562_v18 = vld [vmem:[%s7777_s0 + $0xdc8] sm:$0xff] }
 0x194   :  { %v7127_v45 = vadd.f32 %v3978_v7, %v6968_v51  ;;  %v3979_v42 = vpop.f32.mrb[78].mxu0  ;;  %v3548_v51 = vld [vmem:[%s7777_s0 + $0xd58] sm:$0xff] }
 0x195   :  { %v3923_v11 = vpop.f32.mrb[78].mxu1  ;;  %v3980_v31 = vpop.f32.mrb[79].mxu0  ;;  %2728 = vmatmul.mubr.f32.gmra.mrb[184].mxu0 %v3487_v58  ;;  %v3516_v7 = vld [vmem:[%s7777_s0 + $0xc58] sm:$0xff] }
 0x196   :  { %v3924_v21 = vpop.f32.mrb[79].mxu1  ;;  %v3981_v38 = vadd.f32 %v3980_v31, %v3979_v42  ;;  %2623 = vmatmul.mubr.f32.gmra.mrb[184].mxu1 %v3541_v35  ;;  %2732 = vmatprep.mubr.f32.mxu0 %v3495_v14  ;;  %v3462_v35 = vld [vmem:[%s7777_s0 + $0xaa8] sm:$0xff] }
 0x197   :  { %v7135_v50 = vadd.f32 %v3924_v21, %v3923_v11  ;;  %2627 = vmatprep.mubr.f32.mxu1 %v3549_v10 }
 0x198   :  { %v7144_v12 = vadd.f32 %v3981_v38, %v6988_v5  ;;  %v3982_v17 = vpop.f32.mrb[80].mxu0  ;;  %v3555_v5 = vld [vmem:[%s7777_s0 + $0xd90] sm:$0xff]  ;;  %v3461_v38 = vld [vmem:[%s7777_s0 + $0xaa0] sm:$0xff] }
 0x199   :  { %v4038_v57 = vpop.f32.mrb[80].mxu1  ;;  %v3983_v4 = vpop.f32.mrb[81].mxu0  ;;  %2733 = vmatmul.mubr.f32.gmra.mrb[186].mxu0 %v3494_v23  ;;  %v3523_v23 = vld [vmem:[%s7777_s0 + $0xc90] sm:$0xff] }
 0x19a   :  { %v3984_v37 = vadd.f32 %v3983_v4, %v3982_v17  ;;  %v4039_v44 = vpop.f32.mrb[81].mxu1  ;;  %2628 = vmatmul.mubr.f32.gmra.mrb[186].mxu1 %v3548_v51  ;;  %2737 = vmatprep.mubr.f32.mxu0 %v3502_v29  ;;  %v3469_v29 = vld [vmem:[%s7777_s0 + $0xae0] sm:$0xff] }
 0x19b   :  { %v4040_v52 = vadd.f32 %v4039_v44, %v4038_v57  ;;  %2632 = vmatprep.mubr.f32.mxu1 %v3556_v48 }
 0x19c   :  { %v7159_v1 = vadd.f32 %v3984_v37, %v7008_v43  ;;  %v3985_v54 = vpop.f32.mrb[82].mxu0  ;;  %v3508_v43 = vld [vmem:[%s7777_s0 + $0xc18] sm:$0xff] }
 0x19d   :  { %v4041_v8 = vpop.f32.mrb[82].mxu1  ;;  %v3986_v34 = vpop.f32.mrb[83].mxu0  ;;  %2738 = vmatmul.mubr.f32.gmra.mrb[188].mxu0 %v3501_v47  ;;  %v7165_v3 = vadd.f32 %v4040_v52, %v7018_v32  ;;  %v3468_v47 = vld [vmem:[%s7777_s0 + $0xad8] sm:$0xff]  ;;  %v3530_v52 = vld [vmem:[%s7777_s0 + $0xcc8] sm:$0xff] }
 0x19e   :  { %v3987_v26 = vadd.f32 %v3986_v34, %v3985_v54  ;;  %v4042_v25 = vpop.f32.mrb[83].mxu1  ;;  %2633 = vmatmul.mubr.f32.gmra.mrb[188].mxu1 %v3555_v5  ;;  %2742 = vmatprep.mubr.f32.mxu0 %v3509_v59  ;;  %v3476_v59 = vld [vmem:[%s7777_s0 + $0xb18] sm:$0xff] }
 0x19f   :  { %v4043_v0 = vadd.f32 %v4042_v25, %v4041_v8  ;;  %2637 = vmatprep.mubr.f32.mxu1 %v3563_v41 }
 0x1a0   :  { %v7177_v32 = vadd.f32 %v3987_v26, %v7027_v30  ;;  %v3988_v58 = vpop.f32.mrb[84].mxu0  ;;  %v3515_v30 = vld [vmem:[%s7777_s0 + $0xc50] sm:$0xff] }
 0x1a1   :  { %v4044_v14 = vpop.f32.mrb[84].mxu1  ;;  %v3989_v42 = vpop.f32.mrb[85].mxu0  ;;  %2743 = vmatmul.mubr.f32.gmra.mrb[190].mxu0 %v3508_v43  ;;  %v7183_v10 = vadd.f32 %v4043_v0, %v7037_v56  ;;  %v3475_v43 = vld [vmem:[%s7777_s0 + $0xb10] sm:$0xff]  ;;  %v3537_v0 = vld [vmem:[%s7777_s0 + $0xd00] sm:$0xff] }
 0x1a2   :  { %v3990_v11 = vadd.f32 %v3989_v42, %v3988_v58  ;;  %v4045_v31 = vpop.f32.mrb[85].mxu1  ;;  %2638 = vmatmul.mubr.f32.gmra.mrb[190].mxu1 %v3562_v18  ;;  %2747 = vmatprep.mubr.f32.mxu0 %v3516_v7  ;;  %v3483_v7 = vld [vmem:[%s7777_s0 + $0xb50] sm:$0xff] }
 0x1a3   :  { %v4046_v21 = vadd.f32 %v4045_v31, %v4044_v14  ;;  %2852 = vmatprep.mubr.f32.mxu1 %v3462_v35 }
 0x1a4   :  { %v7195_v56 = vadd.f32 %v3990_v11, %v7046_v39  ;;  %v3991_v51 = vpop.f32.mrb[86].mxu0  ;;  %v3522_v39 = vld [vmem:[%s7777_s0 + $0xc88] sm:$0xff] }
 0x1a5   :  { %v4047_v17 = vpop.f32.mrb[86].mxu1  ;;  %v3992_v48 = vpop.f32.mrb[87].mxu0  ;;  %2748 = vmatmul.mubr.f32.gmra.mrb[192].mxu0 %v3515_v30  ;;  %v7201_v57 = vadd.f32 %v4046_v21, %v7056_v61  ;;  %v3482_v30 = vld [vmem:[%s7777_s0 + $0xb48] sm:$0xff]  ;;  %v3544_v21 = vld [vmem:[%s7777_s0 + $0xd38] sm:$0xff] }
 0x1a6   :  { %v3993_v4 = vadd.f32 %v3992_v48, %v3991_v51  ;;  %v4048_v37 = vpop.f32.mrb[87].mxu1  ;;  %2853 = vmatmul.mubr.f32.vlgmr.msra.gmra.mrb[192].mxu1 %v3461_v38  ;;  %2752 = vmatprep.mubr.f32.mxu0 %v3523_v23  ;;  %v3490_v23 = vld [vmem:[%s7777_s0 + $0xb88] sm:$0xff] }
 0x1a7   :  { %v4049_v44 = vadd.f32 %v4048_v37, %v4047_v17  ;;  %2857 = vmatprep.mubr.f32.mxu1 %v3469_v29 }
 0x1a8   :  { %v7213_v61 = vadd.f32 %v3993_v4, %v7064_v20  ;;  %v3994_v5 = vpop.f32.mrb[88].mxu0  ;;  %v3529_v20 = vld [vmem:[%s7777_s0 + $0xcc0] sm:$0xff] }
 0x1a9   :  { %v4050_v54 = vpop.f32.mrb[88].mxu1  ;;  %v3995_v41 = vpop.f32.mrb[89].mxu0  ;;  %2753 = vmatmul.mubr.f32.gmra.mrb[194].mxu0 %v3522_v39  ;;  %v7219_v8 = vadd.f32 %v4049_v44, %v7074_v27  ;;  %v3489_v39 = vld [vmem:[%s7777_s0 + $0xb80] sm:$0xff]  ;;  %v3551_v44 = vld [vmem:[%s7777_s0 + $0xd70] sm:$0xff] }
 0x1aa   :  { %v3996_v34 = vadd.f32 %v3995_v41, %v3994_v5  ;;  %v4051_v26 = vpop.f32.mrb[89].mxu1  ;;  %2858 = vmatmul.mubr.f32.gmra.mrb[194].mxu1 %v3468_v47  ;;  %2757 = vmatprep.mubr.f32.mxu0 %v3530_v52  ;;  %v3497_v52 = vld [vmem:[%s7777_s0 + $0xbc0] sm:$0xff] }
 0x1ab   :  { %v4052_v25 = vadd.f32 %v4051_v26, %v4050_v54  ;;  %2862 = vmatprep.mubr.f32.mxu1 %v3476_v59 }
 0x1ac   :  { %v7231_v27 = vadd.f32 %v3996_v34, %v7083_v60  ;;  %v3997_v18 = vpop.f32.mrb[90].mxu0  ;;  %v3536_v60 = vld [vmem:[%s7777_s0 + $0xcf8] sm:$0xff] }
 0x1ad   :  { %v4053_v58 = vpop.f32.mrb[90].mxu1  ;;  %v3998_v35 = vpop.f32.mrb[91].mxu0  ;;  %2758 = vmatmul.mubr.f32.gmra.mrb[196].mxu0 %v3529_v20  ;;  %v7237_v14 = vadd.f32 %v4052_v25, %v7093_v36  ;;  %v3496_v20 = vld [vmem:[%s7777_s0 + $0xbb8] sm:$0xff]  ;;  %v3558_v25 = vld [vmem:[%s7777_s0 + $0xda8] sm:$0xff] }
 0x1ae   :  { %v3999_v42 = vadd.f32 %v3998_v35, %v3997_v18  ;;  %v4054_v11 = vpop.f32.mrb[91].mxu1  ;;  %2863 = vmatmul.mubr.f32.gmra.mrb[196].mxu1 %v3475_v43  ;;  %2762 = vmatprep.mubr.f32.mxu0 %v3537_v0  ;;  %v3504_v0 = vld [vmem:[%s7777_s0 + $0xbf8] sm:$0xff] }
 0x1af   :  { %v4055_v31 = vadd.f32 %v4054_v11, %v4053_v58  ;;  %2867 = vmatprep.mubr.f32.mxu1 %v3483_v7 }
 0x1b0   :  { %v7249_v36 = vadd.f32 %v3999_v42, %v7101_v6  ;;  %v4000_v38 = vpop.f32.mrb[92].mxu0  ;;  %v3543_v6 = vld [vmem:[%s7777_s0 + $0xd30] sm:$0xff] }
 0x1b1   :  { %v4056_v51 = vpop.f32.mrb[92].mxu1  ;;  %v4001_v29 = vpop.f32.mrb[93].mxu0  ;;  %2763 = vmatmul.mubr.f32.gmra.mrb[198].mxu0 %v3536_v60  ;;  %v7255_v17 = vadd.f32 %v4055_v31, %v7110_v62 }
 0x1b2   :  { %v4002_v48 = vadd.f32 %v4001_v29, %v4000_v38  ;;  %v4057_v4 = vpop.f32.mrb[93].mxu1  ;;  %2868 = vmatmul.mubr.f32.gmra.mrb[198].mxu1 %v3482_v30  ;;  %2767 = vmatprep.mubr.f32.mxu0 %v3544_v21  ;;  %v3511_v38 = vld [vmem:[%s7777_s0 + $0xc30] sm:$0xff] }
 0x1b3   :  { %v4058_v37 = vadd.f32 %v4057_v4, %v4056_v51  ;;  %2872 = vmatprep.mubr.f32.mxu1 %v3490_v23 }
 0x1b4   :  { %v7267_v62 = vadd.f32 %v4002_v48, %v7118_v33  ;;  %v4003_v47 = vpop.f32.mrb[94].mxu0  ;;  %v3550_v33 = vld [vmem:[%s7777_s0 + $0xd68] sm:$0xff] }
 0x1b5   :  { %v4059_v5 = vpop.f32.mrb[94].mxu1  ;;  %v4004_v59 = vpop.f32.mrb[95].mxu0  ;;  %2768 = vmatmul.mubr.f32.gmra.mrb[200].mxu0 %v3543_v6  ;;  %v7273_v54 = vadd.f32 %v4058_v37, %v7127_v45  ;;  %v3564_v37 = vld [vmem:[%s7777_s0 + $0xdd8] sm:$0xff] }
 0x1b6   :  { %v4005_v41 = vadd.f32 %v4004_v59, %v4003_v47  ;;  %v4060_v34 = vpop.f32.mrb[95].mxu1  ;;  %2873 = vmatmul.mubr.f32.gmra.mrb[200].mxu1 %v3489_v39  ;;  %2772 = vmatprep.mubr.f32.mxu0 %v3551_v44 }
 0x1b7   :  { %v4061_v26 = vadd.f32 %v4060_v34, %v4059_v5  ;;  %2877 = vmatprep.mubr.f32.mxu1 %v3497_v52  ;;  %v3518_v52 = vld [vmem:[%s7777_s0 + $0xc68] sm:$0xff] }
 0x1b8   :  { %v7285_v45 = vadd.f32 %v4005_v41, %v7135_v50  ;;  %v4668_v43 = vpop.f32.mrb[96].mxu0  ;;  %v3557_v50 = vld [vmem:[%s7777_s0 + $0xda0] sm:$0xff] }
 0x1b9   :  { %v4062_v18 = vpop.f32.mrb[96].mxu1  ;;  %v7291_v7 = vadd.f32 %v4668_v43, %v7183_v10  ;;  %v1517_v58 = vpop.f32.mrb[97].mxu0  ;;  %2773 = vmatmul.mubr.f32.gmra.mrb[202].mxu0 %v3550_v33  ;;  %v1408_v35 = vadd.f32 %v4061_v26, %v7144_v12  ;;  %v3503_v10 = vld [vmem:[%s7777_s0 + $0xbf0] sm:$0xff]  ;;  %v3565_v12 = vld [vmem:[%s7777_s0 + $0xde0] sm:$0xff] }
 0x1ba   :  { %v4063_v42 = vpop.f32.mrb[97].mxu1  ;;  %v7295_v11 = vadd.f32 %v1517_v58, %v7165_v3  ;;  %2878 = vmatmul.mubr.f32.gmra.mrb[202].mxu1 %v3496_v20  ;;  %2777 = vmatprep.mubr.f32.mxu0 %v3558_v25  ;;  %v7850_v3 = vld [vmem:[#allocation17_spill] sm:$0xff]  ;;  %v3470_v20 = vld [vmem:[%s7777_s0 + $0xae8] sm:$0xff] }
 0x1bb   :  { %v4064_v31 = vadd.f32 %v4063_v42, %v4062_v18  ;;  %2882 = vmatprep.mubr.f32.mxu1 %v3504_v0  ;;  %v3525_v18 = vld [vmem:[%s7777_s0 + $0xca0] sm:$0xff] }
 0x1bc   :  { %v4671_v21 = vpop.f32.mrb[98].mxu0 }
 0x1bd   :  { %v4065_v23 = vpop.f32.mrb[98].mxu1  ;;  %v7314_v51 = vadd.f32 %v4671_v21, %v7219_v8  ;;  %v1527_v29 = vpop.f32.mrb[99].mxu0  ;;  %2778 = vmatmul.mubr.f32.gmra.mrb[204].mxu0 %v3557_v50  ;;  %v1413_v48 = vadd.f32 %v4064_v31, %v7159_v1  ;;  %v3510_v8 = vld [vmem:[%s7777_s0 + $0xc28] sm:$0xff]  ;;  %v3463_v1 = vld [vmem:[%s7777_s0 + $0xab0] sm:$0xff]  ;;  %v3484_v21 = vld [vmem:[%s7777_s0 + $0xb58] sm:$0xff] }
 0x1be   :  { %v4066_v4 = vpop.f32.mrb[99].mxu1  ;;  %v7318_v6 = vadd.f32 %v1527_v29, %v7201_v57  ;;  %2883 = vmatmul.mubr.f32.gmra.mrb[204].mxu1 %v3503_v10  ;;  %2782 = vmatprep.mubr.f32.mxu0 %v3565_v12 }
 0x1bf   :  { %v4067_v44 = vadd.f32 %v4066_v4, %v4065_v23  ;;  %2887 = vmatprep.mubr.f32.mxu1 %v3511_v38  ;;  %v3532_v4 = vld [vmem:[%s7777_s0 + $0xcd8] sm:$0xff] }
 0x1c0   :  { %v4674_v47 = vpop.f32.mrb[100].mxu0 }
 0x1c1   :  { %v4068_v5 = vpop.f32.mrb[100].mxu1  ;;  %v7337_v59 = vadd.f32 %v4674_v47, %v7255_v17  ;;  %v1537_v41 = vpop.f32.mrb[101].mxu0  ;;  %2783 = vmatmul.mubr.f32.gmra.mrb[206].mxu0 %v3564_v37  ;;  %v1418_v34 = vadd.f32 %v4067_v44, %v7177_v32  ;;  %v3517_v32 = vld [vmem:[%s7777_s0 + $0xc60] sm:$0xff] }
 0x1c2   :  { %v4069_v33 = vpop.f32.mrb[101].mxu1  ;;  %v7341_v26 = vadd.f32 %v1537_v41, %v7237_v14  ;;  %2888 = vmatmul.mubr.f32.gmra.mrb[206].mxu1 %v3510_v8  ;;  %4730 = vmatprep.mubr.msk.f32.mxu0 %vm226_vm0, %v3463_v1  ;;  %v3477_v14 = vld [vmem:[%s7777_s0 + $0xb20] sm:$0xff] }
 0x1c3   :  { %v4070_v17 = vadd.f32 %v4069_v33, %v4068_v5  ;;  %2892 = vmatprep.mubr.f32.mxu1 %v3518_v52  ;;  %v3498_v5 = vld [vmem:[%s7777_s0 + $0xbc8] sm:$0xff]  ;;  %v3531_v33 = vld [vmem:[%s7777_s0 + $0xcd0] sm:$0xff] }
 0x1c4   :  { %v4677_v0 = vpop.f32.mrb[102].mxu0 }
 0x1c5   :  { %v4071_v58 = vpop.f32.mrb[102].mxu1  ;;  %v7360_v42 = vadd.f32 %v4677_v0, %v1408_v35  ;;  %v1547_v50 = vpop.f32.mrb[103].mxu0  ;;  %4731 = vmatmul.mubr.msk.f32.vlgmr.msra.gmra.mrb[208].mxu0 %vm226_vm0, %v3470_v20  ;;  %v1423_v31 = vadd.f32 %v4070_v17, %v7195_v56  ;;  %v3524_v56 = vld [vmem:[%s7777_s0 + $0xc98] sm:$0xff]  ;;  %v3539_v17 = vld [vmem:[%s7777_s0 + $0xd10] sm:$0xff] }
 0x1c6   :  { %v4072_v10 = vpop.f32.mrb[103].mxu1  ;;  %v7365_v12 = vadd.f32 %v1547_v50, %v7273_v54  ;;  %2893 = vmatmul.mubr.f32.gmra.mrb[208].mxu1 %v3517_v32  ;;  %4733 = vmatprep.mubr.msk.f32.mxu0 %vm226_vm0, %v3477_v14  ;;  %v3491_v54 = vld [vmem:[%s7777_s0 + $0xb90] sm:$0xff] }
 0x1c7   :  { %v4073_v38 = vadd.f32 %v4072_v10, %v4071_v58  ;;  %2897 = vmatprep.mubr.f32.mxu1 %v3525_v18  ;;  %v3512_v10 = vld [vmem:[%s7777_s0 + $0xc38] sm:$0xff] }
 0x1c8   :  { %v4680_v29 = vpop.f32.mrb[104].mxu0 }
 0x1c9   :  { %v4074_v37 = vpop.f32.mrb[104].mxu1  ;;  %v7384_v44 = vadd.f32 %v4680_v29, %v1418_v34  ;;  %v1557_v8 = vpop.f32.mrb[105].mxu0  ;;  %4734 = vmatmul.mubr.msk.f32.gmra.mrb[210].mxu0 %vm226_vm0, %v3484_v21  ;;  %v1428_v1 = vadd.f32 %v4073_v38, %v7213_v61  ;;  %v3505_v61 = vld [vmem:[%s7777_s0 + $0xc00] sm:$0xff]  ;;  %v3546_v29 = vld [vmem:[%s7777_s0 + $0xd48] sm:$0xff] }
 0x1ca   :  { %v4075_v47 = vpop.f32.mrb[105].mxu1  ;;  %v7388_v52 = vadd.f32 %v1557_v8, %v1413_v48  ;;  %2898 = vmatmul.mubr.f32.gmra.mrb[210].mxu1 %v3524_v56  ;;  %4736 = vmatprep.mubr.msk.f32.mxu0 %vm226_vm0, %v3491_v54  ;;  %v3538_v56 = vld [vmem:[%s7777_s0 + $0xd08] sm:$0xff] }
 0x1cb   :  { %7851 = vst [vmem:[#allocation8_spill] sm:$0xff] %v7384_v44  ;;  %v4076_v34 = vadd.f32 %v4075_v47, %v4074_v37  ;;  %2902 = vmatprep.mubr.f32.mxu1 %v3532_v4 }
 0x1cc   :  { %7852 = vst [vmem:[#allocation16_spill] sm:$0xff] %v7388_v52  ;;  %v4683_v20 = vpop.f32.mrb[106].mxu0 }
 0x1cd   :  { %v4077_v32 = vpop.f32.mrb[106].mxu1  ;;  %v7407_v14 = vadd.f32 %v4683_v20, %v1428_v1  ;;  %v1567_v0 = vpop.f32.mrb[107].mxu0  ;;  %4737 = vmatmul.mubr.msk.f32.gmra.mrb[212].mxu0 %vm226_vm0, %v3498_v5  ;;  %v1433_v18 = vadd.f32 %v4076_v34, %v7231_v27  ;;  %v3519_v27 = vld [vmem:[%s7777_s0 + $0xc70] sm:$0xff]  ;;  %v3526_v5 = vld [vmem:[%s7777_s0 + $0xca8] sm:$0xff] }
 0x1ce   :  { %v4078_v58 = vpop.f32.mrb[107].mxu1  ;;  %v7411_v50 = vadd.f32 %v1567_v0, %v1423_v31  ;;  %2903 = vmatmul.mubr.f32.gmra.mrb[212].mxu1 %v3531_v33  ;;  %4739 = vmatprep.mubr.msk.f32.mxu0 %vm226_vm0, %v3505_v61  ;;  %v3533_v61 = vld [vmem:[%s7777_s0 + $0xce0] sm:$0xff] }
 0x1cf   :  { %7853 = vst [vmem:[#allocation9_spill] sm:$0xff] %v7407_v14  ;;  %v4079_v38 = vadd.f32 %v4078_v58, %v4077_v32  ;;  %2907 = vmatprep.mubr.f32.mxu1 %v3539_v17  ;;  %v3553_v32 = vld [vmem:[%s7777_s0 + $0xd80] sm:$0xff] }
 0x1d0   :  { %7854 = vst [vmem:[#allocation10_spill] sm:$0xff] %v7411_v50  ;;  %v4686_v54 = vpop.f32.mrb[108].mxu0 }
 0x1d1   :  { %v4080_v4 = vpop.f32.mrb[108].mxu1  ;;  %v1438_v37 = vadd.f32 %v4079_v38, %v7249_v36  ;;  %v1577_v8 = vpop.f32.mrb[109].mxu0  ;;  %4740 = vmatmul.mubr.msk.f32.gmra.mrb[214].mxu0 %vm226_vm0, %v3512_v10  ;;  %v3545_v36 = vld [vmem:[%s7777_s0 + $0xd40] sm:$0xff] }
 0x1d2   :  { %v4081_v1 = vpop.f32.mrb[109].mxu1  ;;  %v7432_v47 = vadd.f32 %v1577_v8, %v1433_v18  ;;  %2908 = vmatmul.mubr.f32.gmra.mrb[214].mxu1 %v3538_v56  ;;  %4742 = vmatprep.mubr.msk.f32.mxu0 %vm226_vm0, %v3519_v27  ;;  %v3540_v56 = vld [vmem:[%s7777_s0 + $0xd18] sm:$0xff] }
 0x1d3   :  { %v7438_v34 = vadd.f32 %v4686_v54, %v1438_v37  ;;  %v4082_v33 = vadd.f32 %v4081_v1, %v4080_v4  ;;  %2912 = vmatprep.mubr.f32.mxu1 %v3546_v29  ;;  %v3552_v29 = vld [vmem:[%s7777_s0 + $0xd78] sm:$0xff] }
 0x1d4   :  { %7855 = vst [vmem:[#allocation11_spill] sm:$0xff] %v7432_v47  ;;  %v4689_v17 = vpop.f32.mrb[110].mxu0  ;;  %v3560_v37 = vld [vmem:[%s7777_s0 + $0xdb8] sm:$0xff] }
 0x1d5   :  { %7856 = vst [vmem:[#allocation12_spill] sm:$0xff] %v7438_v34  ;;  %v4083_v18 = vpop.f32.mrb[110].mxu1  ;;  %v1443_v58 = vadd.f32 %v4082_v33, %v7267_v62  ;;  %v1587_v10 = vpop.f32.mrb[111].mxu0  ;;  %4743 = vmatmul.mubr.msk.f32.gmra.mrb[216].mxu0 %vm226_vm0, %v3526_v5  ;;  %v3547_v62 = vld [vmem:[%s7777_s0 + $0xd50] sm:$0xff] }
 0x1d6   :  { %v4084_v38 = vpop.f32.mrb[111].mxu1  ;;  %2913 = vmatmul.mubr.f32.gmra.mrb[216].mxu1 %v3545_v36  ;;  %4745 = vmatprep.mubr.msk.f32.mxu0 %vm226_vm0, %v3533_v61 }
 0x1d7   :  { %v4085_v27 = vadd.f32 %v4084_v38, %v4083_v18  ;;  %v7459_v54 = vadd.f32 %v1587_v10, %v1443_v58  ;;  %2917 = vmatprep.mubr.f32.mxu1 %v3553_v32  ;;  %v3554_v32 = vld [vmem:[%s7777_s0 + $0xd88] sm:$0xff]  ;;  %v3561_v10 = vld [vmem:[%s7777_s0 + $0xdc0] sm:$0xff] }
 0x1d8   :  { %v4138_v4 = vpop.f32.mrb[112].mxu0 }
 0x1d9   :  { %7857 = vst [vmem:[#allocation13_spill] sm:$0xff] %v7459_v54  ;;  %v1448_v8 = vadd.f32 %v4085_v27, %v7285_v45  ;;  %v4218_v5 = vpop.f32.mrb[112].mxu1  ;;  %v4139_v33 = vpop.f32.mrb[113].mxu0  ;;  %4746 = vmatmul.mubr.msk.f32.gmra.mrb[218].mxu0 %vm226_vm0, %v3540_v56  ;;  %v3559_v45 = vld [vmem:[%s7777_s0 + $0xdb0] sm:$0xff] }
 0x1da   :  { %v4140_v36 = vadd.f32 %v4139_v33, %v4138_v4  ;;  %v4219_v61 = vpop.f32.mrb[113].mxu1  ;;  %2918 = vmatmul.mubr.f32.gmra.mrb[218].mxu1 %v3552_v29  ;;  %4748 = vmatprep.mubr.msk.f32.mxu0 %vm226_vm0, %v3547_v62  ;;  %v3567_v56 = vld [vmem:[%s7777_s0 + $0xdf0] sm:$0xff]  ;;  %v3566_v33 = vld [vmem:[%s7777_s0 + $0xde8] sm:$0xff] }
 0x1db   :  { %v7478_v18 = vadd.f32 %v4689_v17, %v1448_v8  ;;  %v4220_v58 = vadd.f32 %v4219_v61, %v4218_v5  ;;  %2922 = vmatprep.mubr.f32.mxu1 %v3560_v37  ;;  %v3568_v8 = vld [vmem:[%s7777_s0 + $0xdf8] sm:$0xff] }
 0x1dc   :  { %v4141_v38 = vpop.f32.mrb[114].mxu0 }
 0x1dd   :  { %7858 = vst [vmem:[#allocation14_spill] sm:$0xff] %v7478_v18  ;;  %v7491_v17 = vadd.f32 %v4220_v58, %v4140_v36  ;;  %v4221_v29 = vpop.f32.mrb[114].mxu1  ;;  %v4142_v62 = vpop.f32.mrb[115].mxu0  ;;  %4749 = vmatmul.mubr.msk.f32.gmra.mrb[220].mxu0 %vm226_vm0, %v3554_v32 }
 0x1de   :  { %v4143_v4 = vadd.f32 %v4142_v62, %v4141_v38  ;;  %v4222_v37 = vpop.f32.mrb[115].mxu1  ;;  %2923 = vmatmul.mubr.f32.gmra.mrb[220].mxu1 %v3559_v45  ;;  %4751 = vmatprep.mubr.msk.f32.mxu0 %vm226_vm0, %v3561_v10 }
 0x1df   :  { %v4223_v5 = vadd.f32 %v4222_v37, %v4221_v29  ;;  %2927 = vmatprep.mubr.f32.mxu1 %v3567_v56 }
 0x1e0   :  { %v4144_v36 = vpop.f32.mrb[116].mxu0 }
 0x1e1   :  { %v7501_v61 = vadd.f32 %v4223_v5, %v4143_v4  ;;  %v4224_v58 = vpop.f32.mrb[116].mxu1  ;;  %v4145_v32 = vpop.f32.mrb[117].mxu0  ;;  %4752 = vmatmul.mubr.msk.f32.gmra.mrb[222].mxu0 %vm226_vm0, %v3568_v8 }
 0x1e2   :  { %v4146_v45 = vadd.f32 %v4145_v32, %v4144_v36  ;;  %v4225_v38 = vpop.f32.mrb[117].mxu1  ;;  %2928 = vmatmul.mubr.f32.gmra.mrb[222].mxu1 %v3566_v33 }
 0x1e3   :  { %v4226_v10 = vadd.f32 %v4225_v38, %v4224_v58 }
 0x1e4   :  { %v4147_v62 = vpop.f32.mrb[118].mxu0 }
 0x1e5   :  { %v7504_v27 = vadd.f32 %v4226_v10, %v4146_v45  ;;  %v4227_v29 = vpop.f32.mrb[118].mxu1  ;;  %v4148_v56 = vpop.f32.mrb[119].mxu0 }
 0x1e6   :  { %v4149_v37 = vadd.f32 %v4148_v56, %v4147_v62  ;;  %v4228_v1 = vpop.f32.mrb[119].mxu1 }
 0x1e7   :  { %v4229_v0 = vadd.f32 %v4228_v1, %v4227_v29 }
 0x1e8   :  { %v4150_v20 = vpop.f32.mrb[120].mxu0 }
 0x1e9   :  { %v7506_v31 = vadd.f32 %v4229_v0, %v4149_v37  ;;  %v4230_v4 = vpop.f32.mrb[120].mxu1  ;;  %v4151_v5 = vpop.f32.mrb[121].mxu0 }
 0x1ea   :  { %v4152_v21 = vadd.f32 %v4151_v5, %v4150_v20  ;;  %v4231_v48 = vpop.f32.mrb[121].mxu1 }
 0x1eb   :  { %v4232_v8 = vadd.f32 %v4231_v48, %v4230_v4 }
 0x1ec   :  { %v4153_v36 = vpop.f32.mrb[122].mxu0 }
 0x1ed   :  { %v7508_v32 = vadd.f32 %v4232_v8, %v4152_v21  ;;  %v4233_v33 = vpop.f32.mrb[122].mxu1  ;;  %v4154_v58 = vpop.f32.mrb[123].mxu0 }
 0x1ee   :  { %v4155_v45 = vadd.f32 %v4154_v58, %v4153_v36  ;;  %v4234_v38 = vpop.f32.mrb[123].mxu1 }
 0x1ef   :  { %v4235_v10 = vadd.f32 %v4234_v38, %v4233_v33 }
 0x1f0   :  { %v4156_v41 = vpop.f32.mrb[124].mxu0 }
 0x1f1   :  { %v7510_v62 = vadd.f32 %v4235_v10, %v4155_v45  ;;  %v4236_v1 = vpop.f32.mrb[124].mxu1  ;;  %v4157_v29 = vpop.f32.mrb[125].mxu0 }
 0x1f2   :  { %v4158_v0 = vadd.f32 %v4157_v29, %v4156_v41  ;;  %v4237_v56 = vpop.f32.mrb[125].mxu1 }
 0x1f3   :  { %v4238_v37 = vadd.f32 %v4237_v56, %v4236_v1 }
 0x1f4   :  { %v4159_v23 = vpop.f32.mrb[126].mxu0 }
 0x1f5   :  { %v7512_v20 = vadd.f32 %v4238_v37, %v4158_v0  ;;  %v4239_v48 = vpop.f32.mrb[126].mxu1  ;;  %v4160_v4 = vpop.f32.mrb[127].mxu0 }
 0x1f6   :  { %v4161_v21 = vadd.f32 %v4160_v4, %v4159_v23  ;;  %v4240_v5 = vpop.f32.mrb[127].mxu1 }
 0x1f7   :  { %v4241_v8 = vadd.f32 %v4240_v5, %v4239_v48 }
 0x1f8   :  { %v4162_v35 = vpop.f32.mrb[128].mxu0 }
 0x1f9   :  { %v7514_v36 = vadd.f32 %v4241_v8, %v4161_v21  ;;  %v4242_v33 = vpop.f32.mrb[128].mxu1  ;;  %v4163_v58 = vpop.f32.mrb[129].mxu0 }
 0x1fa   :  { %v4164_v45 = vadd.f32 %v4163_v58, %v4162_v35  ;;  %v4243_v38 = vpop.f32.mrb[129].mxu1 }
 0x1fb   :  { %v4244_v10 = vadd.f32 %v4243_v38, %v4242_v33 }
 0x1fc   :  { %v4165_v43 = vpop.f32.mrb[130].mxu0 }
 0x1fd   :  { %v7516_v41 = vadd.f32 %v4244_v10, %v4164_v45  ;;  %v4245_v1 = vpop.f32.mrb[130].mxu1  ;;  %v4166_v29 = vpop.f32.mrb[131].mxu0 }
 0x1fe   :  { %v4167_v0 = vadd.f32 %v4166_v29, %v4165_v43  ;;  %v4246_v56 = vpop.f32.mrb[131].mxu1 }
 0x1ff   :  { %v4247_v37 = vadd.f32 %v4246_v56, %v4245_v1 }
 0x200   :  { %v4168_v25 = vpop.f32.mrb[132].mxu0 }
 0x201   :  { %v7518_v23 = vadd.f32 %v4247_v37, %v4167_v0  ;;  %v4248_v48 = vpop.f32.mrb[132].mxu1  ;;  %v4169_v4 = vpop.f32.mrb[133].mxu0 }
 0x202   :  { %v4170_v21 = vadd.f32 %v4169_v4, %v4168_v25  ;;  %v4249_v5 = vpop.f32.mrb[133].mxu1 }
 0x203   :  { %v4250_v8 = vadd.f32 %v4249_v5, %v4248_v48 }
 0x204   :  { %v4171_v57 = vpop.f32.mrb[134].mxu0 }
 0x205   :  { %v7520_v35 = vadd.f32 %v4250_v8, %v4170_v21  ;;  %v4251_v33 = vpop.f32.mrb[134].mxu1  ;;  %v4172_v58 = vpop.f32.mrb[135].mxu0 }
 0x206   :  { %v4173_v45 = vadd.f32 %v4172_v58, %v4171_v57  ;;  %v4252_v38 = vpop.f32.mrb[135].mxu1 }
 0x207   :  { %v4253_v10 = vadd.f32 %v4252_v38, %v4251_v33 }
 0x208   :  { %v4174_v39 = vpop.f32.mrb[136].mxu0 }
 0x209   :  { %v7522_v43 = vadd.f32 %v4253_v10, %v4173_v45  ;;  %v4254_v1 = vpop.f32.mrb[136].mxu1  ;;  %v4175_v29 = vpop.f32.mrb[137].mxu0 }
 0x20a   :  { %v4176_v0 = vadd.f32 %v4175_v29, %v4174_v39  ;;  %v4255_v56 = vpop.f32.mrb[137].mxu1 }
 0x20b   :  { %v4256_v37 = vadd.f32 %v4255_v56, %v4254_v1 }
 0x20c   :  { %v4177_v30 = vpop.f32.mrb[138].mxu0 }
 0x20d   :  { %v7524_v25 = vadd.f32 %v4256_v37, %v4176_v0  ;;  %v4257_v48 = vpop.f32.mrb[138].mxu1  ;;  %v4178_v4 = vpop.f32.mrb[139].mxu0 }
 0x20e   :  { %v4179_v21 = vadd.f32 %v4178_v4, %v4177_v30  ;;  %v4258_v5 = vpop.f32.mrb[139].mxu1 }
 0x20f   :  { %v4259_v8 = vadd.f32 %v4258_v5, %v4257_v48 }
 0x210   :  { %v4180_v60 = vpop.f32.mrb[140].mxu0 }
 0x211   :  { %v7526_v57 = vadd.f32 %v4259_v8, %v4179_v21  ;;  %v4260_v33 = vpop.f32.mrb[140].mxu1  ;;  %v4181_v58 = vpop.f32.mrb[141].mxu0 }
 0x212   :  { %v4182_v45 = vadd.f32 %v4181_v58, %v4180_v60  ;;  %v4261_v38 = vpop.f32.mrb[141].mxu1 }
 0x213   :  { %v4262_v10 = vadd.f32 %v4261_v38, %v4260_v33 }
 0x214   :  { %v4183_v18 = vpop.f32.mrb[142].mxu0 }
 0x215   :  { %v7528_v39 = vadd.f32 %v4262_v10, %v4182_v45  ;;  %v4263_v1 = vpop.f32.mrb[142].mxu1  ;;  %v4184_v29 = vpop.f32.mrb[143].mxu0 }
 0x216   :  { %v4185_v0 = vadd.f32 %v4184_v29, %v4183_v18  ;;  %v4264_v56 = vpop.f32.mrb[143].mxu1 }
 0x217   :  { %v4265_v37 = vadd.f32 %v4264_v56, %v4263_v1 }
 0x218   :  { %v4298_v19 = vpop.f32.mrb[144].mxu0 }
 0x219   :  { %v7530_v30 = vadd.f32 %v4265_v37, %v4185_v0  ;;  %v4700_v48 = vpop.f32.mrb[144].mxu1  ;;  %v4299_v4 = vpop.f32.mrb[145].mxu0 }
 0x21a   :  { %v4300_v21 = vadd.f32 %v4299_v4, %v4298_v19  ;;  %v2258_v5 = vpop.f32.mrb[145].mxu1 }
 0x21c   :  { %v2114_v8 = vadd.f32 %v4300_v21, %v7491_v17  ;;  %v4301_v60 = vpop.f32.mrb[146].mxu0 }
 0x21d   :  { %v4703_v58 = vpop.f32.mrb[146].mxu1  ;;  %v4302_v33 = vpop.f32.mrb[147].mxu0 }
 0x21e   :  { %v7533_v38 = vadd.f32 %v2258_v5, %v2114_v8  ;;  %v4303_v45 = vadd.f32 %v4302_v33, %v4301_v60  ;;  %v2268_v10 = vpop.f32.mrb[147].mxu1 }
 0x220   :  { %v2119_v18 = vadd.f32 %v4303_v45, %v7501_v61  ;;  %v4304_v29 = vpop.f32.mrb[148].mxu0 }
 0x221   :  { %v4706_v1 = vpop.f32.mrb[148].mxu1  ;;  %v4305_v56 = vpop.f32.mrb[149].mxu0 }
 0x222   :  { %v4306_v0 = vadd.f32 %v4305_v56, %v4304_v29  ;;  %v2278_v37 = vpop.f32.mrb[149].mxu1  ;;  %v7536_v54 = vadd.f32 %v4700_v48, %v2119_v18 }
 0x224   :  { %v2124_v19 = vadd.f32 %v4306_v0, %v7504_v27  ;;  %v4307_v4 = vpop.f32.mrb[150].mxu0 }
 0x225   :  { %v4709_v17 = vpop.f32.mrb[150].mxu1  ;;  %v4308_v21 = vpop.f32.mrb[151].mxu0 }
 0x226   :  { %v4309_v63 = vadd.f32 %v4308_v21, %v4307_v4  ;;  %v2288_v34 = vpop.f32.mrb[151].mxu1  ;;  %v7539_v5 = vadd.f32 %v2268_v10, %v2124_v19 }
 0x228   :  { %v2129_v8 = vadd.f32 %v4309_v63, %v7506_v31  ;;  %v4310_v60 = vpop.f32.mrb[152].mxu0 }
 0x229   :  { %v4712_v61 = vpop.f32.mrb[152].mxu1  ;;  %v4311_v33 = vpop.f32.mrb[153].mxu0 }
 0x22a   :  { %v4312_v45 = vadd.f32 %v4311_v33, %v4310_v60  ;;  %v2298_v28 = vpop.f32.mrb[153].mxu1  ;;  %v7542_v29 = vadd.f32 %v4703_v58, %v2129_v8 }
 0x22c   :  { %v2134_v48 = vadd.f32 %v4312_v45, %v7508_v32  ;;  %v4313_v18 = vpop.f32.mrb[154].mxu0 }
 0x22d   :  { %v4715_v27 = vpop.f32.mrb[154].mxu1  ;;  %v4314_v56 = vpop.f32.mrb[155].mxu0 }
 0x22e   :  { %v4315_v0 = vadd.f32 %v4314_v56, %v4313_v18  ;;  %v2308_v47 = vpop.f32.mrb[155].mxu1  ;;  %v7545_v4 = vadd.f32 %v2278_v37, %v2134_v48 }
 0x230   :  { %v2139_v10 = vadd.f32 %v4315_v0, %v7510_v62  ;;  %v4316_v19 = vpop.f32.mrb[156].mxu0 }
 0x231   :  { %v7548_v63 = vpop.f32.mrb[156].mxu1  ;;  %v4317_v31 = vpop.f32.mrb[157].mxu0 }
 0x232   :  { %v4318_v21 = vadd.f32 %v4317_v31, %v4316_v19  ;;  %v2318_v60 = vpop.f32.mrb[157].mxu1  ;;  %v7550_v33 = vadd.f32 %v4706_v1, %v2139_v10 }
 0x234   :  { %v2144_v58 = vadd.f32 %v4318_v21, %v7512_v20  ;;  %v4319_v32 = vpop.f32.mrb[158].mxu0 }
 0x235   :  { %v7553_v8 = vpop.f32.mrb[158].mxu1  ;;  %v4320_v45 = vpop.f32.mrb[159].mxu0 }
 0x236   :  { %v4321_v18 = vadd.f32 %v4320_v45, %v4319_v32  ;;  %v7555_v56 = vpop.f32.mrb[159].mxu1  ;;  %v7557_v37 = vadd.f32 %v2288_v34, %v2144_v58 }
 0x238   :  { %v2149_v62 = vadd.f32 %v4321_v18, %v7514_v36  ;;  %v4322_v48 = vpop.f32.mrb[160].mxu0 }
 0x239   :  { %v4398_v0 = vpop.f32.mrb[160].mxu1  ;;  %v4323_v13 = vpop.f32.mrb[161].mxu0 }
 0x23a   :  { %v4324_v19 = vadd.f32 %v4323_v13, %v4322_v48  ;;  %v4399_v31 = vpop.f32.mrb[161].mxu1  ;;  %v7560_v1 = vadd.f32 %v4709_v17, %v2149_v62 }
 0x23b   :  { %v7562_v10 = vadd.f32 %v4399_v31, %v4398_v0 }
 0x23c   :  { %v2154_v20 = vadd.f32 %v4324_v19, %v7516_v41  ;;  %v4325_v21 = vpop.f32.mrb[162].mxu0 }
 0x23d   :  { %v4401_v50 = vpop.f32.mrb[162].mxu1  ;;  %v4326_v32 = vpop.f32.mrb[163].mxu0 }
 0x23e   :  { %v4327_v45 = vadd.f32 %v4326_v32, %v4325_v21  ;;  %v4402_v55 = vpop.f32.mrb[163].mxu1  ;;  %v7565_v34 = vadd.f32 %v2298_v28, %v2154_v20 }
 0x23f   :  { %v7567_v58 = vadd.f32 %v4402_v55, %v4401_v50 }
 0x240   :  { %v2159_v36 = vadd.f32 %v4327_v45, %v7518_v23  ;;  %v4328_v18 = vpop.f32.mrb[164].mxu0 }
 0x241   :  { %v4404_v13 = vpop.f32.mrb[164].mxu1  ;;  %v4329_v48 = vpop.f32.mrb[165].mxu0 }
 0x242   :  { %v4330_v17 = vadd.f32 %v4329_v48, %v4328_v18  ;;  %v4405_v62 = vpop.f32.mrb[165].mxu1  ;;  %v7570_v0 = vadd.f32 %v4712_v61, %v2159_v36 }
 0x243   :  { %v7572_v31 = vadd.f32 %v4405_v62, %v4404_v13 }
 0x244   :  { %v2164_v41 = vadd.f32 %v4330_v17, %v7520_v35  ;;  %v4331_v19 = vpop.f32.mrb[166].mxu0 }
 0x245   :  { %v4407_v21 = vpop.f32.mrb[166].mxu1  ;;  %v4332_v32 = vpop.f32.mrb[167].mxu0 }
 0x246   :  { %v4333_v28 = vadd.f32 %v4332_v32, %v4331_v19  ;;  %v4408_v20 = vpop.f32.mrb[167].mxu1  ;;  %v7575_v55 = vadd.f32 %v2308_v47, %v2164_v41 }
 0x247   :  { %v4409_v50 = vadd.f32 %v4408_v20, %v4407_v21 }
 0x248   :  { %7859 = vst [vmem:[#allocation5_spill] sm:$0xff] %v7575_v55  ;;  %v2169_v23 = vadd.f32 %v4333_v28, %v7522_v43  ;;  %v4334_v45 = vpop.f32.mrb[168].mxu0 }
 0x249   :  { %v4410_v14 = vpop.f32.mrb[168].mxu1  ;;  %v4335_v18 = vpop.f32.mrb[169].mxu0 }
 0x24a   :  { %v4336_v48 = vadd.f32 %v4335_v18, %v4334_v45  ;;  %v4411_v61 = vpop.f32.mrb[169].mxu1  ;;  %v7578_v36 = vadd.f32 %v4715_v27, %v2169_v23 }
 0x24b   :  { %v4412_v13 = vadd.f32 %v4411_v61, %v4410_v14 }
 0x24c   :  { %7860 = vst [vmem:[#allocation17_spill] sm:$0xff] %v7578_v36  ;;  %v2174_v35 = vadd.f32 %v4336_v48, %v7524_v25  ;;  %v4337_v17 = vpop.f32.mrb[170].mxu0 }
 0x24d   :  { %v4413_v62 = vpop.f32.mrb[170].mxu1  ;;  %v4338_v46 = vpop.f32.mrb[171].mxu0 }
 0x24e   :  { %v4339_v19 = vadd.f32 %v4338_v46, %v4337_v17  ;;  %v4414_v32 = vpop.f32.mrb[171].mxu1  ;;  %v7581_v47 = vadd.f32 %v2318_v60, %v2174_v35 }
 0x24f   :  { %v4415_v41 = vadd.f32 %v4414_v32, %v4413_v62 }
 0x250   :  { %7861 = vst [vmem:[#allocation20_spill] sm:$0xff] %v7581_v47  ;;  %v2179_v43 = vadd.f32 %v4339_v19, %v7526_v57  ;;  %v4340_v21 = vpop.f32.mrb[172].mxu0 }
 0x251   :  { %v4416_v28 = vpop.f32.mrb[172].mxu1  ;;  %v4341_v20 = vpop.f32.mrb[173].mxu0 }
 0x252   :  { %v4342_v45 = vadd.f32 %v4341_v20, %v4340_v21  ;;  %v4417_v18 = vpop.f32.mrb[173].mxu1  ;;  %v7585_v27 = vadd.f32 %v7548_v63, %v2179_v43 }
 0x253   :  { %v4418_v14 = vadd.f32 %v4417_v18, %v4416_v28 }
 0x254   :  { %7862 = vst [vmem:[#allocation21_spill] sm:$0xff] %v7585_v27  ;;  %v2184_v25 = vadd.f32 %v4342_v45, %v7528_v39  ;;  %v4343_v23 = vpop.f32.mrb[174].mxu0 }
 0x255   :  { %v4419_v48 = vpop.f32.mrb[174].mxu1  ;;  %v4344_v46 = vpop.f32.mrb[175].mxu0 }
 0x256   :  { %v4345_v61 = vadd.f32 %v4344_v46, %v4343_v23  ;;  %v4420_v60 = vpop.f32.mrb[175].mxu1  ;;  %v7589_v35 = vadd.f32 %v7555_v56, %v2184_v25 }
 0x257   :  { %v4421_v57 = vadd.f32 %v4420_v60, %v4419_v48 }
 0x258   :  { %7863 = vst [vmem:[#allocation22_spill] sm:$0xff] %v7589_v35  ;;  %v2189_v17 = vadd.f32 %v4345_v61, %v7530_v30  ;;  %v4478_v62 = vpop.f32.mrb[176].mxu0 }
 0x259   :  { %v4422_v19 = vpop.f32.mrb[176].mxu1  ;;  %v4479_v32 = vpop.f32.mrb[177].mxu0 }
 0x25a   :  { %v7593_v63 = vadd.f32 %v7553_v8, %v2189_v17  ;;  %v4423_v43 = vpop.f32.mrb[177].mxu1  ;;  %v4480_v21 = vadd.f32 %v4479_v32, %v4478_v62 }
 0x25b   :  { %v4424_v39 = vadd.f32 %v4423_v43, %v4422_v19 }
 0x25c   :  { %7864 = vst [vmem:[#allocation23_spill] sm:$0xff] %v7593_v63  ;;  %v2710_v28 = vadd.f32 %v4480_v21, %v7562_v10  ;;  %v4481_v20 = vpop.f32.mrb[178].mxu0 }
 0x25d   :  { %v4425_v45 = vpop.f32.mrb[178].mxu1  ;;  %v4482_v18 = vpop.f32.mrb[179].mxu0 }
 0x25e   :  { %v4426_v23 = vpop.f32.mrb[179].mxu1  ;;  %v4483_v56 = vadd.f32 %v4482_v18, %v4481_v20 }
 0x25f   :  { %v4427_v25 = vadd.f32 %v4426_v23, %v4425_v45 }
 0x260   :  { %v2715_v48 = vadd.f32 %v4483_v56, %v7567_v58  ;;  %v4484_v30 = vpop.f32.mrb[180].mxu0 }
 0x261   :  { %v4428_v46 = vpop.f32.mrb[180].mxu1  ;;  %v4485_v61 = vpop.f32.mrb[181].mxu0 }
 0x262   :  { %v4429_v60 = vpop.f32.mrb[181].mxu1  ;;  %v4486_v35 = vadd.f32 %v4485_v61, %v4484_v30 }
 0x263   :  { %v4430_v8 = vadd.f32 %v4429_v60, %v4428_v46 }
 0x264   :  { %v2720_v17 = vadd.f32 %v4486_v35, %v7572_v31  ;;  %v4487_v62 = vpop.f32.mrb[182].mxu0 }
 0x265   :  { %v4431_v19 = vpop.f32.mrb[182].mxu1  ;;  %v4488_v32 = vpop.f32.mrb[183].mxu0 }
 0x266   :  { %v4432_v10 = vpop.f32.mrb[183].mxu1  ;;  %v4489_v43 = vadd.f32 %v4488_v32, %v4487_v62 }
 0x267   :  { %v4433_v21 = vadd.f32 %v4432_v10, %v4431_v19 }
 0x268   :  { %v7598_v63 = vadd.f32 %v4489_v43, %v4409_v50  ;;  %v4490_v20 = vpop.f32.mrb[184].mxu0 }
 0x269   :  { %v4434_v45 = vpop.f32.mrb[184].mxu1  ;;  %v4491_v18 = vpop.f32.mrb[185].mxu0 }
 0x26a   :  { %v4435_v58 = vpop.f32.mrb[185].mxu1  ;;  %v4492_v23 = vadd.f32 %v4491_v18, %v4490_v20 }
 0x26b   :  { %v4436_v56 = vadd.f32 %v4435_v58, %v4434_v45 }
 0x26c   :  { %v7600_v27 = vadd.f32 %v4492_v23, %v4412_v13  ;;  %v4493_v30 = vpop.f32.mrb[186].mxu0 }
 0x26d   :  { %v4437_v46 = vpop.f32.mrb[186].mxu1  ;;  %v4494_v61 = vpop.f32.mrb[187].mxu0 }
 0x26e   :  { %v4438_v31 = vpop.f32.mrb[187].mxu1  ;;  %v4495_v35 = vadd.f32 %v4494_v61, %v4493_v30 }
 0x26f   :  { %v4439_v60 = vadd.f32 %v4438_v31, %v4437_v46 }
 0x270   :  { %v7602_v47 = vadd.f32 %v4495_v35, %v4415_v41  ;;  %v4496_v62 = vpop.f32.mrb[188].mxu0 }
 0x271   :  { %v4440_v19 = vpop.f32.mrb[188].mxu1  ;;  %v4497_v50 = vpop.f32.mrb[189].mxu0 }
 0x272   :  { %v4441_v32 = vpop.f32.mrb[189].mxu1  ;;  %v4498_v10 = vadd.f32 %v4497_v50, %v4496_v62 }
 0x273   :  { %v7604_v43 = vadd.f32 %v4441_v32, %v4440_v19 }
 0x274   :  { %v7606_v55 = vadd.f32 %v4498_v10, %v4418_v14  ;;  %v4499_v20 = vpop.f32.mrb[190].mxu0 }
 0x275   :  { %v4443_v13 = vpop.f32.mrb[190].mxu1  ;;  %v4500_v45 = vpop.f32.mrb[191].mxu0 }
 0x276   :  { %v4444_v18 = vpop.f32.mrb[191].mxu1  ;;  %v4501_v58 = vadd.f32 %v4500_v45, %v4499_v20 }
 0x277   :  { %v7608_v23 = vadd.f32 %v4444_v18, %v4443_v13 }
 0x278   :  { %v7610_v30 = vadd.f32 %v4501_v58, %v4421_v57  ;;  %v4502_v41 = vpop.f32.mrb[192].mxu0 }
 0x279   :  { %v4558_v46 = vpop.f32.mrb[192].mxu1  ;;  %v4503_v61 = vpop.f32.mrb[193].mxu0 }
 0x27a   :  { %v4504_v31 = vadd.f32 %v4503_v61, %v4502_v41  ;;  %v4559_v35 = vpop.f32.mrb[193].mxu1 }
 0x27b   :  { %v4560_v36 = vadd.f32 %v4559_v35, %v4558_v46 }
 0x27c   :  { %v7612_v62 = vadd.f32 %v4504_v31, %v4424_v39  ;;  %v4505_v19 = vpop.f32.mrb[194].mxu0 }
 0x27d   :  { %v4561_v14 = vpop.f32.mrb[194].mxu1  ;;  %v4506_v50 = vpop.f32.mrb[195].mxu0  ;;  %v2855_v32 = vadd.f32 %v4560_v36, %v2710_v28 }
 0x27e   :  { %v4507_v10 = vadd.f32 %v4506_v50, %v4505_v19  ;;  %v4562_v52 = vpop.f32.mrb[195].mxu1 }
 0x27f   :  { %v4563_v24 = vadd.f32 %v4562_v52, %v4561_v14 }
 0x280   :  { %v7614_v20 = vadd.f32 %v4507_v10, %v4427_v25  ;;  %v4508_v13 = vpop.f32.mrb[196].mxu0 }
 0x281   :  { %v4564_v57 = vpop.f32.mrb[196].mxu1  ;;  %v4509_v45 = vpop.f32.mrb[197].mxu0  ;;  %v2860_v18 = vadd.f32 %v4563_v24, %v2715_v48 }
 0x282   :  { %v4510_v58 = vadd.f32 %v4509_v45, %v4508_v13  ;;  %v4565_v44 = vpop.f32.mrb[197].mxu1 }
 0x283   :  { %v4566_v41 = vadd.f32 %v4565_v44, %v4564_v57 }
 0x284   :  { %v7616_v61 = vadd.f32 %v4510_v58, %v4430_v8  ;;  %v4511_v39 = vpop.f32.mrb[198].mxu0 }
 0x285   :  { %v4567_v46 = vpop.f32.mrb[198].mxu1  ;;  %v4512_v31 = vpop.f32.mrb[199].mxu0  ;;  %v2865_v35 = vadd.f32 %v4566_v41, %v2720_v17 }
 0x286   :  { %v4513_v15 = vadd.f32 %v4512_v31, %v4511_v39  ;;  %v4568_v36 = vpop.f32.mrb[199].mxu1 }
 0x287   :  { %v4569_v28 = vadd.f32 %v4568_v36, %v4567_v46 }
 0x288   :  { %v7618_v19 = vadd.f32 %v4513_v15, %v4433_v21  ;;  %v4514_v52 = vpop.f32.mrb[200].mxu0 }
 0x289   :  { %v4570_v25 = vpop.f32.mrb[200].mxu1  ;;  %v4515_v14 = vpop.f32.mrb[201].mxu0  ;;  %v2870_v50 = vadd.f32 %v4569_v28, %v7598_v63 }
 0x28a   :  { %v4516_v24 = vadd.f32 %v4515_v14, %v4514_v52  ;;  %v4571_v48 = vpop.f32.mrb[201].mxu1 }
 0x28b   :  { %v4572_v10 = vadd.f32 %v4571_v48, %v4570_v25 }
 0x28c   :  { %v7621_v44 = vadd.f32 %v4516_v24, %v4436_v56  ;;  %v4517_v8 = vpop.f32.mrb[202].mxu0 }
 0x28d   :  { %v4573_v13 = vpop.f32.mrb[202].mxu1  ;;  %v4518_v57 = vpop.f32.mrb[203].mxu0  ;;  %v2875_v17 = vadd.f32 %v4572_v10, %v7600_v27 }
 0x28e   :  { %v4519_v45 = vadd.f32 %v4518_v57, %v4517_v8  ;;  %v4574_v58 = vpop.f32.mrb[203].mxu1 }
 0x28f   :  { %v4575_v41 = vadd.f32 %v4574_v58, %v4573_v13 }
 0x290   :  { %v7624_v15 = vadd.f32 %v4519_v45, %v4439_v60  ;;  %v4520_v21 = vpop.f32.mrb[204].mxu0 }
 0x291   :  { %v4576_v39 = vpop.f32.mrb[204].mxu1  ;;  %v4521_v46 = vpop.f32.mrb[205].mxu0  ;;  %v2880_v63 = vadd.f32 %v4575_v41, %v7602_v47 }
 0x292   :  { %v4522_v31 = vadd.f32 %v4521_v46, %v4520_v21  ;;  %v4577_v36 = vpop.f32.mrb[205].mxu1  ;;  %v7865_v46 = vmax.f32 %v6691_v22, %v7291_v7 }
 0x293   :  { %v4578_v28 = vadd.f32 %v4577_v36, %v4576_v39 }
 0x294   :  { %v7628_v56 = vadd.f32 %v4522_v31, %v7604_v43  ;;  %v4523_v52 = vpop.f32.mrb[206].mxu0 }
 0x295   :  { %v4579_v25 = vpop.f32.mrb[206].mxu1  ;;  %v4524_v14 = vpop.f32.mrb[207].mxu0  ;;  %v2885_v27 = vadd.f32 %v4578_v28, %v7606_v55  ;;  %v7639_v55 = vld [vmem:[%s7778_s2] ss:$0 sm:$0xff] }
 0x296   :  { %v4525_v24 = vadd.f32 %v4524_v14, %v4523_v52  ;;  %v4580_v48 = vpop.f32.mrb[207].mxu1 }
 0x297   :  { %v4581_v60 = vadd.f32 %v4580_v48, %v4579_v25 }
 0x298   :  { %v7632_v10 = vadd.f32 %v4525_v24, %v7608_v23  ;;  %v4732_v8 = vpop.f32.mrb[208].mxu0 }
 0x299   :  { %v4582_v13 = vpop.f32.mrb[208].mxu1  ;;  %v3005_v47 = vadd.f32 %v4732_v8, %v2860_v18  ;;  %v2999_v57 = vpop.f32.mrb[209].mxu0  ;;  %v2890_v45 = vadd.f32 %v4581_v60, %v7610_v30 }
 0x29a   :  { %v4583_v58 = vpop.f32.mrb[209].mxu1  ;;  %v3000_v43 = vadd.f32 %v2999_v57, %v2855_v32 }
 0x29b   :  { %v3095_v41 = vmax.f32 %v7536_v54, %v3005_v47  ;;  %v4584_v21 = vadd.f32 %v4583_v58, %v4582_v13  ;;  %v7866_v54 = vmax.f32 %v7850_v3, %v7295_v11 }
 0x29c   :  { %v3094_v39 = vmax.f32 %v7533_v38, %v3000_v43  ;;  %v4735_v23 = vpop.f32.mrb[210].mxu0 }
 0x29d   :  { %v3111_v18 = vmax.f32 %v7865_v46, %v3095_v41  ;;  %v4585_v31 = vpop.f32.mrb[210].mxu1  ;;  %v3015_v36 = vadd.f32 %v4735_v23, %v2870_v50  ;;  %v3009_v30 = vpop.f32.mrb[211].mxu0  ;;  %v2895_v32 = vadd.f32 %v4584_v21, %v7612_v62  ;;  %v7867_v62 = vmax.f32 %v6737_v16, %v7314_v51 }
 0x29e   :  { %v3110_v28 = vmax.f32 %v7866_v54, %v3094_v39  ;;  %v4586_v52 = vpop.f32.mrb[211].mxu1  ;;  %v3010_v25 = vadd.f32 %v3009_v30, %v2865_v35  ;;  %v7870_v46 = vmax.f32 %v6762_v2, %v7341_v26 }
 0x29f   :  { %v3134_v14 = vadd.f32 %v7639_v55, %v3111_v18  ;;  %v3097_v38 = vmax.f32 %v7542_v29, %v3015_v36  ;;  %v4587_v24 = vadd.f32 %v4586_v52, %v4585_v31  ;;  %v7868_v29 = vmax.f32 %v6712_v49, %v7318_v6 }
 0x2a0   :  { %v3133_v48 = vadd.f32 %v7639_v55, %v3110_v28  ;;  %v3096_v22 = vmax.f32 %v7539_v5, %v3010_v25  ;;  %v4738_v7 = vpop.f32.mrb[212].mxu0 }
 0x2a1   :  { %v3150_v50 = vmax.f32 %v3134_v14, 0.0  ;;  %v3113_v60 = vmax.f32 %v7867_v62, %v3097_v38  ;;  %v4588_v8 = vpop.f32.mrb[212].mxu1  ;;  %v3025_v11 = vadd.f32 %v4738_v7, %v2880_v63  ;;  %v3019_v3 = vpop.f32.mrb[213].mxu0  ;;  %v2900_v35 = vadd.f32 %v4587_v24, %v7614_v20  ;;  %v7874_v7 = vld [vmem:[#allocation8_spill] sm:$0xff] }
 0x2a2   :  { %v3149_v13 = vmax.f32 %v3133_v48, 0.0  ;;  %v3112_v47 = vmax.f32 %v7868_v29, %v3096_v22  ;;  %v4589_v57 = vpop.f32.mrb[213].mxu1  ;;  %v3020_v58 = vadd.f32 %v3019_v3, %v2875_v17  ;;  %v7869_v17 = vmax.f32 %v6788_v53, %v7337_v59 }
 0x2a3   :  { %3166 = vst [vmem:[%s7779_s3 + $0x8] sm:$0xff] %v3150_v50  ;;  %v3136_v5 = vadd.f32 %v7639_v55, %v3113_v60  ;;  %v3099_v16 = vmax.f32 %v7550_v33, %v3025_v11  ;;  %v4590_v51 = vadd.f32 %v4589_v57, %v4588_v8  ;;  %v7872_v14 = vmax.f32 %v6814_v9, %v7365_v12 }
 0x2a4   :  { %3165 = vst [vmem:[%s7779_s3] sm:$0xff] %v3149_v13  ;;  %v3135_v20 = vadd.f32 %v7639_v55, %v3112_v47  ;;  %v3098_v49 = vmax.f32 %v7545_v4, %v3020_v58  ;;  %v4741_v6 = vpop.f32.mrb[214].mxu0  ;;  %v7877_v13 = vld [vmem:[#allocation16_spill] sm:$0xff] }
 0x2a5   :  { %v3152_v63 = vmax.f32 %v3136_v5, 0.0  ;;  %v3115_v43 = vmax.f32 %v7869_v17, %v3099_v16  ;;  %v4591_v41 = vpop.f32.mrb[214].mxu1  ;;  %v3035_v21 = vadd.f32 %v4741_v6, %v2890_v45  ;;  %v3029_v39 = vpop.f32.mrb[215].mxu0  ;;  %v2905_v33 = vadd.f32 %v4590_v51, %v7616_v61  ;;  %v7879_v5 = vld [vmem:[#allocation17_spill] sm:$0xff]  ;;  %v7881_v17 = vld [vmem:[#allocation3_spill] sm:$0xff] }
 0x2a6   :  { %v3151_v23 = vmax.f32 %v3135_v20, 0.0  ;;  %v3114_v18 = vmax.f32 %v7870_v46, %v3098_v49  ;;  %v4592_v31 = vpop.f32.mrb[215].mxu1  ;;  %v3030_v36 = vadd.f32 %v3029_v39, %v2885_v27  ;;  %v7871_v27 = vmax.f32 %v6836_v40, %v7360_v42  ;;  %v7880_v20 = vld [vmem:[#allocation5_spill] sm:$0xff] }
 0x2a7   :  { %3168 = vst [vmem:[%s7779_s3 + $0x18] sm:$0xff] %v3152_v63  ;;  %v3138_v4 = vadd.f32 %v7639_v55, %v3115_v43  ;;  %v3101_v53 = vmax.f32 %v7560_v1, %v3035_v21  ;;  %v4593_v59 = vadd.f32 %v4592_v31, %v4591_v41  ;;  %v7882_v43 = vld [vmem:[#allocation9_spill] sm:$0xff]  ;;  %v7885_v31 = vld [vmem:[#allocation10_spill] sm:$0xff] }
 0x2a8   :  { %3167 = vst [vmem:[%s7779_s3 + $0x10] sm:$0xff] %v3151_v23  ;;  %v3137_v61 = vadd.f32 %v7639_v55, %v3114_v18  ;;  %v3100_v2 = vmax.f32 %v7557_v37, %v3030_v36  ;;  %v4744_v26 = vpop.f32.mrb[216].mxu0  ;;  %v7883_v41 = vmax.f32 %v7881_v17, %v7882_v43  ;;  %v7884_v18 = vld [vmem:[#allocation2_spill] sm:$0xff] }
 0x2a9   :  { %v3154_v45 = vmax.f32 %v3138_v4, 0.0  ;;  %v3117_v30 = vmax.f32 %v7871_v27, %v3101_v53  ;;  %v4594_v54 = vpop.f32.mrb[216].mxu1  ;;  %v3045_v28 = vadd.f32 %v4744_v26, %v2900_v35  ;;  %v3039_v52 = vpop.f32.mrb[217].mxu0  ;;  %v2910_v1 = vadd.f32 %v4593_v59, %v7618_v19  ;;  %v7876_v35 = vld [vmem:[#allocation18_spill] sm:$0xff] }
 0x2aa   :  { %v3153_v25 = vmax.f32 %v3137_v61, 0.0  ;;  %v3116_v38 = vmax.f32 %v7872_v14, %v3100_v2  ;;  %v4595_v24 = vpop.f32.mrb[217].mxu1  ;;  %v3040_v48 = vadd.f32 %v3039_v52, %v2895_v32  ;;  %v7873_v32 = vld [vmem:[#allocation19_spill] sm:$0xff]  ;;  %v7878_v29 = vmax.f32 %v7876_v35, %v7877_v13  ;;  %v7897_v13 = vld [vmem:[#allocation13_spill] sm:$0xff] }
 0x2ab   :  { %3170 = vst [vmem:[%s7779_s3 + $0x28] sm:$0xff] %v3154_v45  ;;  %v3140_v37 = vadd.f32 %v7639_v55, %v3117_v30  ;;  %v3103_v40 = vmax.f32 %v7570_v0, %v3045_v28  ;;  %v4596_v42 = vadd.f32 %v4595_v24, %v4594_v54  ;;  %v7875_v50 = vmax.f32 %v7873_v32, %v7874_v7  ;;  %v7887_v45 = vld [vmem:[#allocation20_spill] sm:$0xff]  ;;  %v7888_v28 = vld [vmem:[#allocation21_spill] sm:$0xff]  ;;  %v7896_v35 = vld [vmem:[#allocation15_spill] sm:$0xff] }
 0x2ac   :  { %3169 = vst [vmem:[%s7779_s3 + $0x20] sm:$0xff] %v3153_v25  ;;  %v3139_v19 = vadd.f32 %v7639_v55, %v3116_v38  ;;  %v3102_v9 = vmax.f32 %v7565_v34, %v3040_v48  ;;  %v4747_v12 = vpop.f32.mrb[218].mxu0  ;;  %v7886_v36 = vmax.f32 %v7884_v18, %v7885_v31  ;;  %v7889_v24 = vld [vmem:[#allocation4_spill] sm:$0xff]  ;;  %v7890_v48 = vld [vmem:[#allocation11_spill] sm:$0xff] }
 0x2ad   :  { %v3156_v22 = vmax.f32 %v3140_v37, 0.0  ;;  %v3119_v62 = vmax.f32 %v7875_v50, %v3103_v40  ;;  %v4597_v60 = vpop.f32.mrb[218].mxu1  ;;  %v3055_v8 = vadd.f32 %v4747_v12, %v2910_v1  ;;  %v3049_v11 = vpop.f32.mrb[219].mxu0  ;;  %v2915_v0 = vadd.f32 %v4596_v42, %v7621_v44 }
 0x2ae   :  { %v3155_v3 = vmax.f32 %v3139_v19, 0.0  ;;  %v3118_v47 = vmax.f32 %v7878_v29, %v3102_v9  ;;  %v4598_v57 = vpop.f32.mrb[219].mxu1  ;;  %v3050_v58 = vadd.f32 %v3049_v11, %v2905_v33  ;;  %v7891_v37 = vmax.f32 %v7889_v24, %v7890_v48  ;;  %v7892_v19 = vld [vmem:[#allocation6_spill] sm:$0xff]  ;;  %v7893_v9 = vld [vmem:[#allocation12_spill] sm:$0xff] }
 0x2af   :  { %3172 = vst [vmem:[%s7779_s3 + $0x38] sm:$0xff] %v3156_v22  ;;  %v3142_v34 = vadd.f32 %v7639_v55, %v3119_v62  ;;  %v3105_v16 = vmax.f32 %v7879_v5, %v3055_v8  ;;  %v4599_v51 = vadd.f32 %v4598_v57, %v4597_v60  ;;  %v7894_v12 = vmax.f32 %v7892_v19, %v7893_v9  ;;  %v7895_v60 = vld [vmem:[#allocation22_spill] sm:$0xff]  ;;  %v7899_v57 = vld [vmem:[#allocation23_spill] sm:$0xff] }
 0x2b0   :  { %3171 = vst [vmem:[%s7779_s3 + $0x30] sm:$0xff] %v3155_v3  ;;  %v3141_v44 = vadd.f32 %v7639_v55, %v3118_v47  ;;  %v3104_v49 = vmax.f32 %v7880_v20, %v3050_v58  ;;  %v4750_v6 = vpop.f32.mrb[220].mxu0  ;;  %v7898_v29 = vmax.f32 %v7896_v35, %v7897_v13  ;;  %v7901_v5 = vld [vmem:[#allocation14_spill] sm:$0xff] }
 0x2b1   :  { %v3158_v63 = vmax.f32 %v3142_v34, 0.0  ;;  %v3121_v21 = vmax.f32 %v7883_v41, %v3105_v16  ;;  %v4600_v39 = vpop.f32.mrb[220].mxu1  ;;  %v2920_v33 = vadd.f32 %v4599_v51, %v7624_v15  ;;  %v3059_v23 = vpop.f32.mrb[221].mxu0  ;;  %v7900_v34 = vld [vmem:[#allocation7_spill] sm:$0xff] }
 0x2b2   :  { %v3157_v46 = vmax.f32 %v3141_v44, 0.0  ;;  %v3120_v4 = vmax.f32 %v7886_v36, %v3104_v49  ;;  %v4601_v53 = vpop.f32.mrb[221].mxu1  ;;  %v3060_v59 = vadd.f32 %v3059_v23, %v2915_v0  ;;  %v7902_v16 = vmax.f32 %v7900_v34, %v7901_v5 }
 0x2b3   :  { %3174 = vst [vmem:[%s7779_s3 + $0x48] sm:$0xff] %v3158_v63  ;;  %v3144_v61 = vadd.f32 %v7639_v55, %v3121_v21  ;;  %v3065_v2 = vadd.f32 %v4750_v6, %v2920_v33  ;;  %v4602_v26 = vadd.f32 %v4601_v53, %v4600_v39 }
 0x2b4   :  { %3173 = vst [vmem:[%s7779_s3 + $0x40] sm:$0xff] %v3157_v46  ;;  %v3143_v15 = vadd.f32 %v7639_v55, %v3120_v4  ;;  %v3106_v27 = vmax.f32 %v7887_v45, %v3060_v59  ;;  %v4753_v30 = vpop.f32.mrb[222].mxu0 }
 0x2b5   :  { %v3160_v54 = vmax.f32 %v3144_v61, 0.0  ;;  %v3107_v52 = vmax.f32 %v7888_v28, %v3065_v2  ;;  %v4603_v1 = vpop.f32.mrb[222].mxu1  ;;  %v2925_v25 = vadd.f32 %v4602_v26, %v7628_v56  ;;  %v3069_v14 = vpop.f32.mrb[223].mxu0 }
 0x2b6   :  { %v3159_v38 = vmax.f32 %v3143_v15, 0.0  ;;  %v3122_v40 = vmax.f32 %v7891_v37, %v3106_v27  ;;  %v4604_v42 = vpop.f32.mrb[223].mxu1 }
 0x2b7   :  { %3176 = vst [vmem:[%s7779_s3 + $0x58] sm:$0xff] %v3160_v54  ;;  %v3123_v22 = vmax.f32 %v7894_v12, %v3107_v52  ;;  %v4605_v32 = vadd.f32 %v4604_v42, %v4603_v1  ;;  %v3070_v7 = vadd.f32 %v3069_v14, %v2925_v25 }
 0x2b8   :  { %3175 = vst [vmem:[%s7779_s3 + $0x50] sm:$0xff] %v3159_v38  ;;  %v3145_v56 = vadd.f32 %v7639_v55, %v3122_v40 }
 0x2b9   :  { %v3146_v50 = vadd.f32 %v7639_v55, %v3123_v22  ;;  %v2930_v62 = vadd.f32 %v4605_v32, %v7632_v10  ;;  %v3108_v8 = vmax.f32 %v7895_v60, %v3070_v7 }
 0x2ba   :  { %v3161_v11 = vmax.f32 %v3145_v56, 0.0 }
 0x2bb   :  { %v3162_v0 = vmax.f32 %v3146_v50, 0.0  ;;  %v3075_v3 = vadd.f32 %v4753_v30, %v2930_v62  ;;  %v3124_v47 = vmax.f32 %v7898_v29, %v3108_v8 }
 0x2bc   :  { %3177 = vst [vmem:[%s7779_s3 + $0x60] sm:$0xff] %v3161_v11 }
 0x2bd   :  { %3178 = vst [vmem:[%s7779_s3 + $0x68] sm:$0xff] %v3162_v0  ;;  %v3109_v58 = vmax.f32 %v7899_v57, %v3075_v3  ;;  %v3147_v10 = vadd.f32 %v7639_v55, %v3124_v47 }
 0x2bf   :  { %v3125_v51 = vmax.f32 %v7902_v16, %v3109_v58  ;;  %v3163_v44 = vmax.f32 %v3147_v10, 0.0 }
 0x2c1   :  { %v3148_v20 = vadd.f32 %v7639_v55, %v3125_v51  ;;  %3179 = vst [vmem:[%s7779_s3 + $0x70] sm:$0xff] %v3163_v44 }
 0x2c3   :  { %v3164_v49 = vmax.f32 %v3148_v20, 0.0 }
 0x2c5   :  { %3180 = vst [vmem:[%s7779_s3 + $0x78] sm:$0xff] %v3164_v49 }

// kernel: lenet5_forward.5
= control target key start
LH: loop header
LB: loop body
LE: loop exit
PB: predicated region body
PF: predicated region fallthrough
CT: control target
= control target key end

     0   :  { %10 = vsyncpa [#allocation4], 0  ;;  %s2337_s18 = smov 0   ;;  %s2641_s0 = inlined_call_operand.vmem [shape: f32[2,4096], index: 0, kind: input, shape index: {}]   ;;  %s2642_s1 = inlined_call_operand.vmem [shape: bf16[4096,512], index: 1, kind: input, shape index: {}]   ;;  %s2643_s2 = inlined_call_operand.vmem [shape: f32[1,512], index: 2, kind: input, shape index: {}]   ;;  %s2644_s3 = inlined_call_operand.vmem [shape: bf16[512,128], index: 3, kind: input, shape index: {}]   ;;  %s2645_s4 = inlined_call_operand.vmem [shape: f32[1,128], index: 4, kind: input, shape index: {}]   ;;  %s2646_s5 = inlined_call_operand.hbm [shape: f32[2,128], index: 5, kind: output, shape index: {}]  }
   0x1 LB: > { %s2343_s19 = sadd.s32 4294967295, %s2302_s18   ;;  %p1361_p0 = scmp.ge.s32.totalorder %s2302_s18, 1  ;;  %s2302_s18 = sphi %s2337_s18, %s16_s18  }
   0x2   : > { %p196_p1 = scmp.lt.s32.totalorder %s2302_s18, 9 }
   0x4   : > { %p197_p2 = pnand %p1361_p0, %p196_p1 }
   0x5   : > { %s1362_s20 = sshll.u32 (!%p197_p2), %s2343_s19, 2  ;;  %s1364_s21 = sshll.u32 (!%p197_p2), %s2343_s19, 6 }
   0x6   : > { %200 = sbr.rel (%p197_p2) target bundleno = 635 (0x27b), region = 40  ;;  %p226_p3 = scmp.lt.s32.totalorder (!%p197_p2), %s1362_s20, 31 }
   0x7   : > { %p232_p4 = scmp.lt.s32.totalorder (!%p197_p2), %s1364_s21, 511  ;;  %p1367_p5 = scmp.ne.s32.totalorder (!%p197_p2), %s2343_s19, 0 }
   0xd   : > { %s2648_s20 = smov (!%p226_p3, %s1362_s20), 31  ;;  %s2650_s21 = smov (!%p232_p4, %s1364_s21), 511 }
   0xe   : > { %s1363_s22 = sshll.u32 %s2648_s20, 1  ;;  %s1374_s26 = sshll.u32 %s2650_s21, 4  ;;  %v2304_v0 = vmov (!%p1367_p5), 0.0  }
   0xf   : > { %s2352_s25 = scalar_lea.vmem %s2641_s0, %s1363_s22  ;;  %s2357_s29 = scalar_lea.vmem %s2642_s1, %s1374_s26  ;;  %242 = vst [vmem:[#allocation2] sm:$0xff] (!%p1367_p5), %v2304_v0 }
  0x10   : > { %241 = sbr.rel (%p1367_p5) target bundleno = 23 (0x17), region = 44 }
  0x17 PF: > { %v2073_v1 = vld [vmem:[%s2357_s29 + $0x4] ss:$16 sps:$4 sm:$0xff]   ;;  %v2075_v2 = vld [vmem:[%s2357_s29 + $0xc] ss:$16 sps:$4 sm:$0xff]   ;;  %v2077_v3 = vld [vmem:[%s2357_s29] ss:$16 sps:$4 sm:$0xff]   ;;  %v634_v39 = vlaneseq }
  0x18   : > { %1605 = vmatprep.subr.bf16.mxu0 %v2073_v1  ;;  %v2078_v4 = vld [vmem:[%s2357_s29 + $0x8] ss:$16 sps:$4 sm:$0xff]   ;;  %1733 = vmatprep.subr.bf16.mxu1 %v2075_v2  ;;  %v2079_v5 = vld [vmem:[%s2357_s29 + $0x24] ss:$16 sps:$4 sm:$0xff]   ;;  %v2081_v6 = vld [vmem:[%s2357_s29 + $0x2c] ss:$16 sps:$4 sm:$0xff]  }
  0x19   : > { %1607 = vmatpush1.bf16.msra.mxu0 %v2077_v3  ;;  %1735 = vmatpush1.bf16.msra.mxu1 %v2078_v4  ;;  %v2083_v7 = vld [vmem:[%s2357_s29 + $0x20] ss:$16 sps:$4 sm:$0xff]   ;;  %v2084_v8 = vld [vmem:[%s2357_s29 + $0x28] ss:$16 sps:$4 sm:$0xff]   ;;  %v2085_v9 = vld [vmem:[%s2357_s29 + $0x44] ss:$16 sps:$4 sm:$0xff]  }
  0x1a   : > { %1609 = vmatprep.subr.bf16.mxu0 %v2079_v5  ;;  %1737 = vmatprep.subr.bf16.mxu1 %v2081_v6  ;;  %v2087_v10 = vld [vmem:[%s2357_s29 + $0x4c] ss:$16 sps:$4 sm:$0xff]   ;;  %v2089_v11 = vld [vmem:[%s2357_s29 + $0x40] ss:$16 sps:$4 sm:$0xff]   ;;  %v2090_v12 = vld [vmem:[%s2357_s29 + $0x48] ss:$16 sps:$4 sm:$0xff]  }
  0x1b   : > { %v2091_v13 = vld [vmem:[%s2357_s29 + $0x64] ss:$16 sps:$4 sm:$0xff]   ;;  %v2093_v14 = vld [vmem:[%s2357_s29 + $0x6c] ss:$16 sps:$4 sm:$0xff]   ;;  %v2095_v15 = vld [vmem:[%s2357_s29 + $0x60] ss:$16 sps:$4 sm:$0xff]  }
  0x1c   : > { %v2096_v16 = vld [vmem:[%s2357_s29 + $0x68] ss:$16 sps:$4 sm:$0xff]   ;;  %v2097_v17 = vld [vmem:[%s2357_s29 + $0x84] ss:$16 sps:$4 sm:$0xff]   ;;  %v2099_v18 = vld [vmem:[%s2357_s29 + $0x8c] ss:$16 sps:$4 sm:$0xff]  }
  0x1d   : > { %1611 = vmatpush1.bf16.msra.mxu0 %v2083_v7  ;;  %1739 = vmatpush1.bf16.msra.mxu1 %v2084_v8  ;;  %v2101_v19 = vld [vmem:[%s2357_s29 + $0x80] ss:$16 sps:$4 sm:$0xff]   ;;  %v2102_v20 = vld [vmem:[%s2357_s29 + $0x88] ss:$16 sps:$4 sm:$0xff]   ;;  %v2103_v21 = vld [vmem:[%s2357_s29 + $0xa4] ss:$16 sps:$4 sm:$0xff]  }
  0x1e   : > { %1613 = vmatprep.subr.bf16.mxu0 %v2085_v9  ;;  %1741 = vmatprep.subr.bf16.mxu1 %v2087_v10  ;;  %v2105_v22 = vld [vmem:[%s2357_s29 + $0xac] ss:$16 sps:$4 sm:$0xff]   ;;  %v2107_v23 = vld [vmem:[%s2357_s29 + $0xa0] ss:$16 sps:$4 sm:$0xff]   ;;  %v2108_v24 = vld [vmem:[%s2357_s29 + $0xa8] ss:$16 sps:$4 sm:$0xff]  }
  0x1f   : > { %v2109_v25 = vld [vmem:[%s2357_s29 + $0xc4] ss:$16 sps:$4 sm:$0xff]   ;;  %v2111_v26 = vld [vmem:[%s2357_s29 + $0xcc] ss:$16 sps:$4 sm:$0xff]   ;;  %v2113_v27 = vld [vmem:[%s2357_s29 + $0xc0] ss:$16 sps:$4 sm:$0xff]  }
  0x20   : > { %v2114_v28 = vld [vmem:[%s2357_s29 + $0xc8] ss:$16 sps:$4 sm:$0xff]   ;;  %v2115_v29 = vld [vmem:[%s2357_s29 + $0xe4] ss:$16 sps:$4 sm:$0xff]   ;;  %v2117_v30 = vld [vmem:[%s2357_s29 + $0xec] ss:$16 sps:$4 sm:$0xff]  }
  0x21   : > { %1615 = vmatpush1.bf16.msra.mxu0 %v2089_v11  ;;  %1743 = vmatpush1.bf16.msra.mxu1 %v2090_v12  ;;  %v2119_v31 = vld [vmem:[%s2357_s29 + $0xe0] ss:$16 sps:$4 sm:$0xff]   ;;  %v2120_v32 = vld [vmem:[%s2357_s29 + $0xe8] ss:$16 sps:$4 sm:$0xff]   ;;  %v2121_v33 = vld [vmem:[%s2357_s29 + $0x104] ss:$16 sps:$4 sm:$0xff]  }
  0x22   : > { %1617 = vmatprep.subr.bf16.mxu0 %v2091_v13  ;;  %1745 = vmatprep.subr.bf16.mxu1 %v2093_v14  ;;  %v2123_v34 = vld [vmem:[%s2357_s29 + $0x10c] ss:$16 sps:$4 sm:$0xff]   ;;  %v2125_v35 = vld [vmem:[%s2357_s29 + $0x100] ss:$16 sps:$4 sm:$0xff]   ;;  %v2126_v36 = vld [vmem:[%s2357_s29 + $0x108] ss:$16 sps:$4 sm:$0xff]  }
  0x23   : > { %v2305_v37 = vmov 1983009808   ;;  %v2127_v40 = vld [vmem:[%s2357_s29 + $0x124] ss:$16 sps:$4 sm:$0xff]   ;;  %v2129_v41 = vld [vmem:[%s2357_s29 + $0x12c] ss:$16 sps:$4 sm:$0xff]  }
  0x24   : > { %v632_v38 = vunpack.c.l.s4 %v2305_v37  ;;  %v2131_v42 = vld [vmem:[%s2357_s29 + $0x120] ss:$16 sps:$4 sm:$0xff]   ;;  %v2399_v44 = vshrl.u32 %v634_v39, 7  ;;  %v2132_v45 = vld [vmem:[%s2357_s29 + $0x128] ss:$16 sps:$4 sm:$0xff]   ;;  %p1368_p6 = scmp.ne.s32.totalorder %s2343_s19, 7 }
  0x25   : > { %1619 = vmatpush1.bf16.msra.mxu0 %v2095_v15  ;;  %1747 = vmatpush1.bf16.msra.mxu1 %v2096_v16  ;;  %v2133_v46 = vld [vmem:[%s2357_s29 + $0x144] ss:$16 sps:$4 sm:$0xff]   ;;  %v2135_v47 = vld [vmem:[%s2357_s29 + $0x14c] ss:$16 sps:$4 sm:$0xff]   ;;  %v2137_v48 = vld [vmem:[%s2357_s29 + $0x140] ss:$16 sps:$4 sm:$0xff]  }
  0x26   : > { %1621 = vmatprep.subr.bf16.mxu0 %v2097_v17  ;;  %1749 = vmatprep.subr.bf16.mxu1 %v2099_v18  ;;  %v633_v43 = vunpack.c.0.s8 %v632_v38  ;;  %v2138_v49 = vld [vmem:[%s2357_s29 + $0x148] ss:$16 sps:$4 sm:$0xff]   ;;  %v2139_v51 = vld [vmem:[%s2357_s29 + $0x164] ss:$16 sps:$4 sm:$0xff]   ;;  %v2141_v52 = vld [vmem:[%s2357_s29 + $0x16c] ss:$16 sps:$4 sm:$0xff]  }
  0x27   : > { %v244_v53 = vld [vmem:[%s2352_s25] sm:$0xff]  ;;  %v2144_v56 = vld [vmem:[%s2357_s29 + $0x168] ss:$16 sps:$4 sm:$0xff]   ;;  %v2147_v58 = vld [vmem:[%s2357_s29 + $0x18c] ss:$16 sps:$4 sm:$0xff]  }
  0x28   : > { %v2407_v50 = vsub.s32 %v633_v43, %v2399_v44  ;;  %v2143_v54 = vld [vmem:[%s2357_s29 + $0x160] ss:$16 sps:$4 sm:$0xff]   ;;  %v2145_v57 = vld [vmem:[%s2357_s29 + $0x184] ss:$16 sps:$4 sm:$0xff]   ;;  %v2150_v61 = vld [vmem:[%s2357_s29 + $0x188] ss:$16 sps:$4 sm:$0xff]   ;;  %v630_v8 = vcombine.high %v244_v53, %v244_v53 }
  0x29   : > { %1623 = vmatpush1.bf16.msra.mxu0 %v2101_v19  ;;  %1751 = vmatpush1.bf16.msra.mxu1 %v2102_v20  ;;  %v2149_v60 = vld [vmem:[%s2357_s29 + $0x180] ss:$16 sps:$4 sm:$0xff]   ;;  %v2151_v62 = vld [vmem:[%s2357_s29 + $0x1a4] ss:$16 sps:$4 sm:$0xff]   ;;  %v2153_v63 = vld [vmem:[%s2357_s29 + $0x1ac] ss:$16 sps:$4 sm:$0xff]  }
  0x2a   : > { %1625 = vmatprep.subr.bf16.mxu0 %v2103_v21  ;;  %1753 = vmatprep.subr.bf16.mxu1 %v2105_v22  ;;  %v637_v55 = vrot.slane %v244_v53, %v2407_v50  ;;  %v2155_v0 = vld [vmem:[%s2357_s29 + $0x1a0] ss:$16 sps:$4 sm:$0xff]   ;;  %v2156_v1 = vld [vmem:[%s2357_s29 + $0x1a8] ss:$16 sps:$4 sm:$0xff]   ;;  %v2157_v2 = vld [vmem:[%s2357_s29 + $0x1c4] ss:$16 sps:$4 sm:$0xff]   ;;  %v2434_v13 = vrot.slane %v630_v8, %v2407_v50 }
  0x2b   : > { %v2159_v3 = vld [vmem:[%s2357_s29 + $0x1cc] ss:$16 sps:$4 sm:$0xff]   ;;  %v2161_v4 = vld [vmem:[%s2357_s29 + $0x1c0] ss:$16 sps:$4 sm:$0xff]   ;;  %v2162_v5 = vld [vmem:[%s2357_s29 + $0x1c8] ss:$16 sps:$4 sm:$0xff]  }
  0x2c   : > { %v645_v59 = vcombine.high %v637_v55, %v637_v55  ;;  %v2163_v6 = vld [vmem:[%s2357_s29 + $0x1e4] ss:$16 sps:$4 sm:$0xff]   ;;  %v2165_v7 = vld [vmem:[%s2357_s29 + $0x1ec] ss:$16 sps:$4 sm:$0xff]   ;;  %v2167_v9 = vld [vmem:[%s2357_s29 + $0x1e0] ss:$16 sps:$4 sm:$0xff]   ;;  %v646_v18 = vcombine.high %v2434_v13, %v2434_v13 }
  0x2d   : > { %1627 = vmatpush1.bf16.msra.mxu0 %v2107_v23  ;;  %1755 = vmatpush1.bf16.msra.mxu1 %v2108_v24  ;;  %v2168_v10 = vld [vmem:[%s2357_s29 + $0x1e8] ss:$16 sps:$4 sm:$0xff]   ;;  %v2170_v11 = vld [vmem:[%s2357_s29 + $0x204] ss:$16 sps:$4 sm:$0xff]   ;;  %v2173_v12 = vld [vmem:[%s2357_s29 + $0x20c] ss:$16 sps:$4 sm:$0xff]  }
  0x2e   : > { %1629 = vmatprep.subr.bf16.mxu0 %v2109_v25  ;;  %1757 = vmatprep.subr.bf16.mxu1 %v2111_v26  ;;  %v2172_v14 = vld [vmem:[%s2357_s29 + $0x200] ss:$16 sps:$4 sm:$0xff]   ;;  %v2175_v15 = vld [vmem:[%s2357_s29 + $0x208] ss:$16 sps:$4 sm:$0xff]   ;;  %v2176_v16 = vld [vmem:[%s2357_s29 + $0x224] ss:$16 sps:$4 sm:$0xff]  }
  0x2f   : > { %715 = vmatprep.mubr.f32.mxu0 %v645_v59  ;;  %857 = vmatprep.mubr.f32.mxu1 %v645_v59  ;;  %v2179_v17 = vld [vmem:[%s2357_s29 + $0x22c] ss:$16 sps:$4 sm:$0xff]   ;;  %v2178_v19 = vld [vmem:[%s2357_s29 + $0x220] ss:$16 sps:$4 sm:$0xff]   ;;  %v2181_v20 = vld [vmem:[%s2357_s29 + $0x228] ss:$16 sps:$4 sm:$0xff]  }
  0x30   : > { %v2182_v21 = vld [vmem:[%s2357_s29 + $0x244] ss:$16 sps:$4 sm:$0xff]   ;;  %v2185_v22 = vld [vmem:[%s2357_s29 + $0x24c] ss:$16 sps:$4 sm:$0xff]   ;;  %v2184_v23 = vld [vmem:[%s2357_s29 + $0x240] ss:$16 sps:$4 sm:$0xff]  }
  0x31   : > { %1631 = vmatpush1.bf16.msra.mxu0 %v2113_v27  ;;  %1759 = vmatpush1.bf16.msra.mxu1 %v2114_v28  ;;  %v2187_v24 = vld [vmem:[%s2357_s29 + $0x248] ss:$16 sps:$4 sm:$0xff]   ;;  %v2188_v25 = vld [vmem:[%s2357_s29 + $0x264] ss:$16 sps:$4 sm:$0xff]   ;;  %v2191_v26 = vld [vmem:[%s2357_s29 + $0x26c] ss:$16 sps:$4 sm:$0xff]  }
  0x32   : > { %1633 = vmatprep.subr.bf16.mxu0 %v2115_v29  ;;  %1761 = vmatprep.subr.bf16.mxu1 %v2117_v30  ;;  %v2190_v27 = vld [vmem:[%s2357_s29 + $0x260] ss:$16 sps:$4 sm:$0xff]   ;;  %v2193_v28 = vld [vmem:[%s2357_s29 + $0x268] ss:$16 sps:$4 sm:$0xff]   ;;  %v2194_v29 = vld [vmem:[%s2357_s29 + $0x284] ss:$16 sps:$4 sm:$0xff]  }
  0x33   : > { %v2197_v30 = vld [vmem:[%s2357_s29 + $0x28c] ss:$16 sps:$4 sm:$0xff]   ;;  %v2206_v37 = vld [vmem:[%s2357_s29 + $0x2c4] ss:$16 sps:$4 sm:$0xff]   ;;  %v2208_v39 = vld [vmem:[%s2357_s29 + $0x2c0] ss:$16 sps:$4 sm:$0xff]  }
  0x34   : > { %v2209_v38 = vld [vmem:[%s2357_s29 + $0x2cc] ss:$16 sps:$4 sm:$0xff]   ;;  %v2214_v43 = vld [vmem:[%s2357_s29 + $0x2e0] ss:$16 sps:$4 sm:$0xff]   ;;  %v2236_v59 = vld [vmem:[%s2357_s29 + $0x364] ss:$16 sps:$4 sm:$0xff]  }
  0x35   : > { %1635 = vmatpush1.bf16.msra.mxu0 %v2119_v31  ;;  %1763 = vmatpush1.bf16.msra.mxu1 %v2120_v32  ;;  %v2196_v31 = vld [vmem:[%s2357_s29 + $0x280] ss:$16 sps:$4 sm:$0xff]   ;;  %v2199_v32 = vld [vmem:[%s2357_s29 + $0x288] ss:$16 sps:$4 sm:$0xff]   ;;  %v2257_v8 = vld [vmem:[%s2357_s29 + $0x3cc] ss:$16 sps:$4 sm:$0xff]  }
  0x36   : > { %1637 = vmatprep.subr.bf16.mxu0 %v2121_v33  ;;  %1765 = vmatprep.subr.bf16.mxu1 %v2123_v34  ;;  %v2200_v33 = vld [vmem:[%s2357_s29 + $0x2a4] ss:$16 sps:$4 sm:$0xff]   ;;  %v2203_v34 = vld [vmem:[%s2357_s29 + $0x2ac] ss:$16 sps:$4 sm:$0xff]   ;;  %v2226_v53 = vld [vmem:[%s2357_s29 + $0x320] ss:$16 sps:$4 sm:$0xff]  }
  0x39   : > { %1639 = vmatpush1.bf16.msra.mxu0 %v2125_v35  ;;  %1767 = vmatpush1.bf16.msra.mxu1 %v2126_v36  ;;  %v2202_v35 = vld [vmem:[%s2357_s29 + $0x2a0] ss:$16 sps:$4 sm:$0xff]   ;;  %v2205_v36 = vld [vmem:[%s2357_s29 + $0x2a8] ss:$16 sps:$4 sm:$0xff]  }
  0x3a   : > { %1641 = vmatprep.subr.bf16.mxu0 %v2127_v40  ;;  %1769 = vmatprep.subr.bf16.mxu1 %v2129_v41  ;;  %v2211_v40 = vld [vmem:[%s2357_s29 + $0x2c8] ss:$16 sps:$4 sm:$0xff]   ;;  %v2212_v41 = vld [vmem:[%s2357_s29 + $0x2e4] ss:$16 sps:$4 sm:$0xff]  }
  0x3d   : > { %1643 = vmatpush1.bf16.msra.mxu0 %v2131_v42  ;;  %1771 = vmatpush1.bf16.msra.mxu1 %v2132_v45  ;;  %v2215_v42 = vld [vmem:[%s2357_s29 + $0x2ec] ss:$16 sps:$4 sm:$0xff]   ;;  %v2217_v45 = vld [vmem:[%s2357_s29 + $0x2e8] ss:$16 sps:$4 sm:$0xff]  }
  0x3e   : > { %1645 = vmatprep.subr.bf16.mxu0 %v2133_v46  ;;  %1773 = vmatprep.subr.bf16.mxu1 %v2135_v47  ;;  %v2218_v46 = vld [vmem:[%s2357_s29 + $0x304] ss:$16 sps:$4 sm:$0xff]   ;;  %v2221_v47 = vld [vmem:[%s2357_s29 + $0x30c] ss:$16 sps:$4 sm:$0xff]  }
  0x41   : > { %1647 = vmatpush1.bf16.msra.mxu0 %v2137_v48  ;;  %1775 = vmatpush1.bf16.msra.mxu1 %v2138_v49  ;;  %v2220_v48 = vld [vmem:[%s2357_s29 + $0x300] ss:$16 sps:$4 sm:$0xff]   ;;  %v2223_v49 = vld [vmem:[%s2357_s29 + $0x308] ss:$16 sps:$4 sm:$0xff]  }
  0x42   : > { %1649 = vmatprep.subr.bf16.mxu0 %v2139_v51  ;;  %1777 = vmatprep.subr.bf16.mxu1 %v2141_v52  ;;  %v2224_v51 = vld [vmem:[%s2357_s29 + $0x324] ss:$16 sps:$4 sm:$0xff]   ;;  %v2227_v52 = vld [vmem:[%s2357_s29 + $0x32c] ss:$16 sps:$4 sm:$0xff]  }
  0x45   : > { %1651 = vmatpush1.bf16.msra.mxu0 %v2143_v54  ;;  %1779 = vmatpush1.bf16.msra.mxu1 %v2144_v56  ;;  %v2229_v54 = vld [vmem:[%s2357_s29 + $0x328] ss:$16 sps:$4 sm:$0xff]   ;;  %v2233_v56 = vld [vmem:[%s2357_s29 + $0x34c] ss:$16 sps:$4 sm:$0xff]  }
  0x46   : > { %1653 = vmatprep.subr.bf16.mxu0 %v2145_v57  ;;  %1781 = vmatprep.subr.bf16.mxu1 %v2147_v58  ;;  %v2232_v57 = vld [vmem:[%s2357_s29 + $0x340] ss:$16 sps:$4 sm:$0xff]   ;;  %v2235_v58 = vld [vmem:[%s2357_s29 + $0x348] ss:$16 sps:$4 sm:$0xff]  }
  0x49   : > { %1655 = vmatpush1.bf16.msra.mxu0 %v2149_v60  ;;  %1783 = vmatpush1.bf16.msra.mxu1 %v2150_v61  ;;  %v2239_v60 = vld [vmem:[%s2357_s29 + $0x36c] ss:$16 sps:$4 sm:$0xff]   ;;  %v2238_v61 = vld [vmem:[%s2357_s29 + $0x360] ss:$16 sps:$4 sm:$0xff]  }
  0x4a   : > { %1657 = vmatprep.subr.bf16.mxu0 %v2151_v62  ;;  %1785 = vmatprep.subr.bf16.mxu1 %v2153_v63  ;;  %v2241_v62 = vld [vmem:[%s2357_s29 + $0x368] ss:$16 sps:$4 sm:$0xff]   ;;  %v2242_v63 = vld [vmem:[%s2357_s29 + $0x384] ss:$16 sps:$4 sm:$0xff]  }
  0x4d   : > { %1659 = vmatpush1.bf16.msra.mxu0 %v2155_v0  ;;  %1787 = vmatpush1.bf16.msra.mxu1 %v2156_v1  ;;  %v2245_v0 = vld [vmem:[%s2357_s29 + $0x38c] ss:$16 sps:$4 sm:$0xff]   ;;  %v2244_v1 = vld [vmem:[%s2357_s29 + $0x380] ss:$16 sps:$4 sm:$0xff]  }
  0x4e   : > { %1661 = vmatprep.subr.bf16.mxu0 %v2157_v2  ;;  %1789 = vmatprep.subr.bf16.mxu1 %v2159_v3  ;;  %v2247_v2 = vld [vmem:[%s2357_s29 + $0x388] ss:$16 sps:$4 sm:$0xff]   ;;  %v2248_v3 = vld [vmem:[%s2357_s29 + $0x3a4] ss:$16 sps:$4 sm:$0xff]  }
  0x51   : > { %1663 = vmatpush1.bf16.msra.mxu0 %v2161_v4  ;;  %1791 = vmatpush1.bf16.msra.mxu1 %v2162_v5  ;;  %v2251_v4 = vld [vmem:[%s2357_s29 + $0x3ac] ss:$16 sps:$4 sm:$0xff]   ;;  %v2250_v5 = vld [vmem:[%s2357_s29 + $0x3a0] ss:$16 sps:$4 sm:$0xff]  }
  0x52   : > { %1665 = vmatprep.subr.bf16.mxu0 %v2163_v6  ;;  %1793 = vmatprep.subr.bf16.mxu1 %v2165_v7  ;;  %v2253_v6 = vld [vmem:[%s2357_s29 + $0x3a8] ss:$16 sps:$4 sm:$0xff]   ;;  %v2254_v7 = vld [vmem:[%s2357_s29 + $0x3c4] ss:$16 sps:$4 sm:$0xff]  }
  0x55   : > { %1667 = vmatpush1.bf16.msra.mxu0 %v2167_v9  ;;  %1795 = vmatpush1.bf16.msra.mxu1 %v2168_v10  ;;  %v2256_v9 = vld [vmem:[%s2357_s29 + $0x3c0] ss:$16 sps:$4 sm:$0xff]   ;;  %v2259_v10 = vld [vmem:[%s2357_s29 + $0x3c8] ss:$16 sps:$4 sm:$0xff]  }
  0x56   : > { %1669 = vmatprep.subr.bf16.mxu0 %v2170_v11  ;;  %1797 = vmatprep.subr.bf16.mxu1 %v2173_v12  ;;  %v2260_v11 = vld [vmem:[%s2357_s29 + $0x3e4] ss:$16 sps:$4 sm:$0xff]   ;;  %v2263_v12 = vld [vmem:[%s2357_s29 + $0x3ec] ss:$16 sps:$4 sm:$0xff]  }
  0x58   : > { %716 = vmatmul.mubr.f32.vlgmr.msra.gmra.mrb[0].mxu0 %v637_v55  ;;  %858 = vmatmul.mubr.f32.vlgmr.msra.gmra.mrb[0].mxu1 %v637_v55  ;;  %v2230_v55 = vld [vmem:[%s2357_s29 + $0x344] ss:$16 sps:$4 sm:$0xff]  }
  0x59   : > { %1671 = vmatpush1.bf16.msra.mxu0 %v2172_v14  ;;  %1799 = vmatpush1.bf16.msra.mxu1 %v2175_v15  ;;  %v2262_v14 = vld [vmem:[%s2357_s29 + $0x3e0] ss:$16 sps:$4 sm:$0xff]   ;;  %v2265_v15 = vld [vmem:[%s2357_s29 + $0x3e8] ss:$16 sps:$4 sm:$0xff]  }
  0x5a   : > { %1673 = vmatprep.subr.bf16.mxu0 %v2176_v16  ;;  %1801 = vmatprep.subr.bf16.mxu1 %v2179_v17 }
  0x5b   : > { %786 = vmatprep.mubr.f32.mxu0 %v646_v18  ;;  %928 = vmatprep.mubr.f32.mxu1 %v646_v18 }
  0x5d   : > { %1675 = vmatpush1.bf16.msra.mxu0 %v2178_v19  ;;  %1803 = vmatpush1.bf16.msra.mxu1 %v2181_v20 }
  0x5e   : > { %1677 = vmatprep.subr.bf16.mxu0 %v2182_v21  ;;  %1805 = vmatprep.subr.bf16.mxu1 %v2185_v22 }
  0x61   : > { %1679 = vmatpush1.bf16.msra.mxu0 %v2184_v23  ;;  %1807 = vmatpush1.bf16.msra.mxu1 %v2187_v24  ;;  %v243_v24 = vld [vmem:[#allocation2] sm:$0xff] }
  0x62   : > { %1681 = vmatprep.subr.bf16.mxu0 %v2188_v25  ;;  %1809 = vmatprep.subr.bf16.mxu1 %v2191_v26 }
  0x65   : > { %1683 = vmatpush1.bf16.msra.mxu0 %v2190_v27  ;;  %1811 = vmatpush1.bf16.msra.mxu1 %v2193_v28  ;;  %v1376_v27 = vld [vmem:[%s2644_s3] sm:$0xff] (!%p1368_p6)  }
  0x66   : > { %1685 = vmatprep.subr.bf16.mxu0 %v2194_v29  ;;  %1813 = vmatprep.subr.bf16.mxu1 %v2197_v30  ;;  %v1526_v28 = vld [vmem:[%s2644_s3 + $0xc0] sm:$0xff] (!%p1368_p6)   ;;  %v1511_v30 = vld [vmem:[%s2644_s3 + $0x48] sm:$0xff] (!%p1368_p6)  }
  0x67   : > { %v1518_v29 = vld [vmem:[%s2644_s3 + $0x80] sm:$0xff] (!%p1368_p6)  }
  0x69   : > { %1687 = vmatpush1.bf16.msra.mxu0 %v2196_v31  ;;  %1815 = vmatpush1.bf16.msra.mxu1 %v2199_v32  ;;  %v1527_v31 = vld [vmem:[%s2644_s3 + $0xc8] sm:$0xff] (!%p1368_p6)  }
  0x6a   : > { %1689 = vmatprep.subr.bf16.mxu0 %v2200_v33  ;;  %1817 = vmatprep.subr.bf16.mxu1 %v2203_v34  ;;  %v1503_v32 = vld [vmem:[%s2644_s3 + $0x8] sm:$0xff] (!%p1368_p6)   ;;  %v1512_v34 = vld [vmem:[%s2644_s3 + $0x50] sm:$0xff] (!%p1368_p6)  }
  0x6b   : > { %v1519_v33 = vld [vmem:[%s2644_s3 + $0x88] sm:$0xff] (!%p1368_p6)  }
  0x6d   : > { %1691 = vmatpush1.bf16.msra.mxu0 %v2202_v35  ;;  %1819 = vmatpush1.bf16.msra.mxu1 %v2205_v36  ;;  %v1528_v35 = vld [vmem:[%s2644_s3 + $0xd0] sm:$0xff] (!%p1368_p6)  }
  0x6e   : > { %1693 = vmatprep.subr.bf16.mxu0 %v2206_v37  ;;  %1821 = vmatprep.subr.bf16.mxu1 %v2209_v38  ;;  %v1504_v36 = vld [vmem:[%s2644_s3 + $0x10] sm:$0xff] (!%p1368_p6)   ;;  %v1513_v38 = vld [vmem:[%s2644_s3 + $0x58] sm:$0xff] (!%p1368_p6)  }
  0x6f   : > { %v1520_v37 = vld [vmem:[%s2644_s3 + $0x90] sm:$0xff] (!%p1368_p6)  }
  0x71   : > { %1695 = vmatpush1.bf16.msra.mxu0 %v2208_v39  ;;  %1823 = vmatpush1.bf16.msra.mxu1 %v2211_v40  ;;  %v1529_v39 = vld [vmem:[%s2644_s3 + $0xd8] sm:$0xff] (!%p1368_p6)   ;;  %v968_v40 = vsub.s32 (!%p1368_p6), 0, %v2399_v44 }
  0x72   : > { %1697 = vmatprep.subr.bf16.mxu0 %v2212_v41  ;;  %1825 = vmatprep.subr.bf16.mxu1 %v2215_v42  ;;  %v972_v41 = vsub.s32 (!%p1368_p6), 1, %v2399_v44  ;;  %v976_v42 = vsub.s32 (!%p1368_p6), 2, %v2399_v44 }
  0x75   : > { %1699 = vmatpush1.bf16.msra.mxu0 %v2214_v43  ;;  %1827 = vmatpush1.bf16.msra.mxu1 %v2217_v45  ;;  %v980_v43 = vsub.s32 (!%p1368_p6), 3, %v2399_v44  ;;  %v1505_v45 = vld [vmem:[%s2644_s3 + $0x18] sm:$0xff] (!%p1368_p6)   ;;  %v1514_v44 = vld [vmem:[%s2644_s3 + $0x60] sm:$0xff] (!%p1368_p6)  }
  0x76   : > { %1701 = vmatprep.subr.bf16.mxu0 %v2218_v46  ;;  %1829 = vmatprep.subr.bf16.mxu1 %v2221_v47  ;;  %v1521_v46 = vld [vmem:[%s2644_s3 + $0x98] sm:$0xff] (!%p1368_p6)   ;;  %v964_v47 = vld [vmem:[%s2643_s2] sm:$0xf] (!%p1368_p6) }
  0x79   : > { %1703 = vmatpush1.bf16.msra.mxu0 %v2220_v48  ;;  %1831 = vmatpush1.bf16.msra.mxu1 %v2223_v49  ;;  %v1530_v48 = vld [vmem:[%s2644_s3 + $0xe0] sm:$0xff] (!%p1368_p6)   ;;  %v969_v49 = vrot.slane (!%p1368_p6), %v964_v47, %v968_v40 }
  0x7a   : > { %1705 = vmatprep.subr.bf16.mxu0 %v2224_v51  ;;  %1833 = vmatprep.subr.bf16.mxu1 %v2227_v52  ;;  %v973_v51 = vrot.slane (!%p1368_p6), %v964_v47, %v972_v41  ;;  %v977_v52 = vrot.slane (!%p1368_p6), %v964_v47, %v976_v42 }
  0x7d   : > { %1707 = vmatpush1.bf16.msra.mxu0 %v2226_v53  ;;  %1835 = vmatpush1.bf16.msra.mxu1 %v2229_v54  ;;  %v981_v53 = vrot.slane (!%p1368_p6), %v964_v47, %v980_v43  ;;  %v982_v54 = vcombine.low (!%p1368_p6), %v969_v49, %v973_v51 }
  0x7e   : > { %1709 = vmatprep.subr.bf16.mxu0 %v2230_v55  ;;  %1837 = vmatprep.subr.bf16.mxu1 %v2233_v56  ;;  %v1506_v56 = vld [vmem:[%s2644_s3 + $0x20] sm:$0xff] (!%p1368_p6)  }
  0x7f   : > { %v983_v55 = vcombine.low (!%p1368_p6), %v977_v52, %v981_v53 }
  0x81   : > { %1711 = vmatpush1.bf16.msra.mxu0 %v2232_v57  ;;  %1839 = vmatpush1.bf16.msra.mxu1 %v2235_v58  ;;  %v1522_v57 = vld [vmem:[%s2644_s3 + $0xa0] sm:$0xff] (!%p1368_p6)   ;;  %v1515_v58 = vld [vmem:[%s2644_s3 + $0x68] sm:$0xff] (!%p1368_p6)  }
  0x82   : > { %1713 = vmatprep.subr.bf16.mxu0 %v2236_v59  ;;  %1841 = vmatprep.subr.bf16.mxu1 %v2239_v60  ;;  %v1531_v59 = vld [vmem:[%s2644_s3 + $0xe8] sm:$0xff] (!%p1368_p6)   ;;  %v990_v60 = vrot.slane (!%p1368_p6), %v982_v54, %v2407_v50 }
  0x85   : > { %1715 = vmatpush1.bf16.msra.mxu0 %v2238_v61  ;;  %1843 = vmatpush1.bf16.msra.mxu1 %v2241_v62  ;;  %v997_v61 = vrot.slane (!%p1368_p6), %v983_v55, %v2407_v50 }
  0x86   : > { %1717 = vmatprep.subr.bf16.mxu0 %v2242_v63  ;;  %1845 = vmatprep.subr.bf16.mxu1 %v2245_v0  ;;  %v1507_v0 = vld [vmem:[%s2644_s3 + $0x28] sm:$0xff] (!%p1368_p6)  }
  0x87   : > { %v998_v63 = vcombine.low (!%p1368_p6), %v990_v60, %v997_v61 }
  0x89   : > { %1719 = vmatpush1.bf16.msra.mxu0 %v2244_v1  ;;  %1847 = vmatpush1.bf16.msra.mxu1 %v2247_v2  ;;  %v1523_v1 = vld [vmem:[%s2644_s3 + $0xa8] sm:$0xff] (!%p1368_p6)   ;;  %v1516_v2 = vld [vmem:[%s2644_s3 + $0x70] sm:$0xff] (!%p1368_p6)  }
  0x8a   : > { %1721 = vmatprep.subr.bf16.mxu0 %v2248_v3  ;;  %1849 = vmatprep.subr.bf16.mxu1 %v2251_v4  ;;  %v1532_v3 = vld [vmem:[%s2644_s3 + $0xf0] sm:$0xff] (!%p1368_p6)  }
  0x8d   : > { %1723 = vmatpush1.bf16.msra.mxu0 %v2250_v5  ;;  %1851 = vmatpush1.bf16.msra.mxu1 %v2253_v6  ;;  %v1508_v6 = vld [vmem:[%s2644_s3 + $0x30] sm:$0xff] (!%p1368_p6)  }
  0x8e   : > { %1725 = vmatprep.subr.bf16.mxu0 %v2254_v7  ;;  %1853 = vmatprep.subr.bf16.mxu1 %v2257_v8  ;;  %v1524_v7 = vld [vmem:[%s2644_s3 + $0xb0] sm:$0xff] (!%p1368_p6)   ;;  %v1517_v8 = vld [vmem:[%s2644_s3 + $0x78] sm:$0xff] (!%p1368_p6)  }
  0x91   : > { %1727 = vmatpush1.bf16.msra.mxu0 %v2256_v9  ;;  %1855 = vmatpush1.bf16.msra.mxu1 %v2259_v10  ;;  %v1533_v9 = vld [vmem:[%s2644_s3 + $0xf8] sm:$0xff] (!%p1368_p6)  }
  0x92   : > { %1729 = vmatprep.subr.bf16.mxu0 %v2260_v11  ;;  %1857 = vmatprep.subr.bf16.mxu1 %v2263_v12 }
  0x95   : > { %1731 = vmatpush1.bf16.msra.mxu0 %v2262_v14  ;;  %1859 = vmatpush1.bf16.msra.mxu1 %v2265_v15  ;;  %v1509_v15 = vld [vmem:[%s2644_s3 + $0x38] sm:$0xff] (!%p1368_p6)  }
  0x96   : > { %1893 = vmatprep.subr.bf16.mxu1 (!%p1368_p6), %v1526_v28 }
  0x98   : > { %787 = vmatmul.mubr.f32.vlgmr.msra.gmra.mrb[0].mxu0 %v2434_v13  ;;  %929 = vmatmul.mubr.f32.vlgmr.msra.gmra.mrb[0].mxu1 %v2434_v13  ;;  %v1510_v13 = vld [vmem:[%s2644_s3 + $0x40] sm:$0xff] (!%p1368_p6)  }
  0x99   : > { %1861 = vmatprep.subr.bf16.mxu0 (!%p1368_p6), %v1510_v13  ;;  %1895 = vmatpush3.bf16.msra.mxu1 (!%p1368_p6), %v1518_v29 }
  0x9a   : > { %1863 = vmatpush3.bf16.msra.mxu0 (!%p1368_p6), %v1376_v27  ;;  %1897 = vmatprep.subr.bf16.mxu1 (!%p1368_p6), %v1527_v31 }
  0x9b   : > { %1865 = vmatprep.subr.bf16.mxu0 (!%p1368_p6), %v1511_v30 }
  0x9d   : > { %1899 = vmatpush3.bf16.msra.mxu1 (!%p1368_p6), %v1519_v33 }
  0x9e   : > { %1867 = vmatpush3.bf16.msra.mxu0 (!%p1368_p6), %v1503_v32  ;;  %1901 = vmatprep.subr.bf16.mxu1 (!%p1368_p6), %v1528_v35 }
  0x9f   : > { %1869 = vmatprep.subr.bf16.mxu0 (!%p1368_p6), %v1512_v34 }
  0xa1   : > { %1903 = vmatpush3.bf16.msra.mxu1 (!%p1368_p6), %v1520_v37 }
  0xa2   : > { %1871 = vmatpush3.bf16.msra.mxu0 (!%p1368_p6), %v1504_v36  ;;  %1905 = vmatprep.subr.bf16.mxu1 (!%p1368_p6), %v1529_v39 }
  0xa3   : > { %1873 = vmatprep.subr.bf16.mxu0 (!%p1368_p6), %v1513_v38 }
  0xa5   : > { %1907 = vmatpush3.bf16.msra.mxu1 (!%p1368_p6), %v1521_v46 }
  0xa6   : > { %1875 = vmatpush3.bf16.msra.mxu0 (!%p1368_p6), %v1505_v45  ;;  %1909 = vmatprep.subr.bf16.mxu1 (!%p1368_p6), %v1530_v48 }
  0xa7   : > { %1877 = vmatprep.subr.bf16.mxu0 (!%p1368_p6), %v1514_v44 }
  0xa9   : > { %1911 = vmatpush3.bf16.msra.mxu1 (!%p1368_p6), %v1522_v57 }
  0xaa   : > { %1879 = vmatpush3.bf16.msra.mxu0 (!%p1368_p6), %v1506_v56  ;;  %1913 = vmatprep.subr.bf16.mxu1 (!%p1368_p6), %v1531_v59 }
  0xab   : > { %1881 = vmatprep.subr.bf16.mxu0 (!%p1368_p6), %v1515_v58 }
  0xad   : > { %1915 = vmatpush3.bf16.msra.mxu1 (!%p1368_p6), %v1523_v1 }
  0xae   : > { %1883 = vmatpush3.bf16.msra.mxu0 (!%p1368_p6), %v1507_v0  ;;  %1917 = vmatprep.subr.bf16.mxu1 (!%p1368_p6), %v1532_v3 }
  0xaf   : > { %1885 = vmatprep.subr.bf16.mxu0 (!%p1368_p6), %v1516_v2 }
  0xb1   : > { %1919 = vmatpush3.bf16.msra.mxu1 (!%p1368_p6), %v1524_v7 }
  0xb2   : > { %1887 = vmatpush3.bf16.msra.mxu0 (!%p1368_p6), %v1508_v6  ;;  %1921 = vmatprep.subr.bf16.mxu1 (!%p1368_p6), %v1533_v9 }
  0xb3   : > { %1889 = vmatprep.subr.bf16.mxu0 (!%p1368_p6), %v1517_v8 }
  0xb6   : > { %1891 = vmatpush3.bf16.msra.mxu0 (!%p1368_p6), %v1509_v15 }
 0x16b   : > { %v788_v16 = vpop.f32.mrb[0].mxu0  ;;  %v930_v17 = vpop.f32.mrb[0].mxu1 }
 0x16c   : > { %v790_v18 = vpop.f32.mrb[1].mxu0  ;;  %v932_v19 = vpop.f32.mrb[1].mxu1 }
 0x16d   : > { %v939_v20 = vcombine.low %v788_v16, %v790_v18  ;;  %v940_v21 = vcombine.low %v930_v17, %v932_v19  ;;  %v1525_v16 = vld [vmem:[%s2644_s3 + $0xb8] sm:$0xff] (!%p1368_p6)  }
 0x16e   : > { %1923 = vmatpush3.bf16.msra.mxu1 (!%p1368_p6), %v1525_v16 }
 0x16f   : > { %v947_v22 = vrot.slane %v939_v20, %v2407_v50  ;;  %v954_v23 = vrot.slane %v940_v21, %v2407_v50  ;;  %962 = sbr.rel (%p1368_p6) target bundleno = 610 (0x262), region = 48 }
 0x171   : > { %v955_v25 = vcombine.low %v947_v22, %v954_v23 }
 0x173   : > { %v957_v26 = vadd.f32 %v955_v25, %v243_v24 }
 0x175   : > { %958 = vst [vmem:[#allocation2] sm:$0xff] %v957_v26 }
 0x17c   : > { %v963_v62 = vld [vmem:[#allocation2] sm:$0xff] }
 0x17d   : > { %v1000_v4 = vadd.f32 %v998_v63, %v963_v62 }
 0x17f   : > { %v1001_v5 = vmax.f32 %v1000_v4, 0.0 }
 0x181   : > { %v1145_v10 = vrot.slane %v1001_v5, %v2407_v50  ;;  %v1138_v11 = vcombine.high %v1001_v5, %v1001_v5 }
 0x183   : > { %v1153_v12 = vcombine.high %v1145_v10, %v1145_v10  ;;  %v1152_v14 = vrot.slane %v1138_v11, %v2407_v50  ;;  %v1369_v50 = vld [vmem:[%s2645_s4] ss:$0 sm:$0xff] }
 0x185   : > { %1223 = vmatprep.mubr.f32.mxu0 %v1153_v12  ;;  %v1154_v17 = vcombine.high %v1152_v14, %v1152_v14 }
 0x186   : > { %1224 = vmatmul.mubr.f32.vlgmr.msra.gmra.mrb[0].mxu0 %v1145_v10 }
 0x187   : > { %1293 = vmatprep.mubr.f32.mxu1 %v1154_v17 }
 0x188   : > { %1294 = vmatmul.mubr.f32.vlgmr.msra.gmra.mrb[0].mxu1 %v1152_v14 }
 0x259   : > { %v1566_v18 = vpop.f32.mrb[0].mxu0 }
 0x25a   : > { %v1567_v20 = vpop.f32.mrb[1].mxu0 }
 0x25b   : > { %v1601_v19 = vpop.f32.mrb[0].mxu1  ;;  %v1568_v22 = vadd.f32 %v1567_v20, %v1566_v18 }
 0x25c   : > { %v1602_v21 = vpop.f32.mrb[1].mxu1 }
 0x25d   : > { %v1603_v23 = vadd.f32 %v1602_v21, %v1601_v19  ;;  %v1226_v24 = vadd.f32 %v1568_v22, %v1369_v50 }
 0x25f   : > { %v1296_v25 = vadd.f32 %v1603_v23, %v1226_v24 }
 0x261   : > { %1299 = vst [vmem:[#allocation3] sm:$0x3] %v1296_v25 }
 0x262 PF: > { %p2060_p7 = scmp.eq.s32.totalorder %s2343_s19, 7  ;;  %s2306_s29 = smov [#allocation3]  }
 0x263   : > { %s1307_s30 = sshll.u32 %s2306_s29, 4  ;;  %s1308_s30 = int_to_ptr.vmem [resolvable:$true] %s1307_s30 }
 0x264   : > { %s2266_s6 = scalar_lea.vmem %s1308_s30, 32  ;;  %p2273_p11 = scmp.lt.s32.totalorder %s1308_s30, %s1308_s30 }
 0x265   : > { %p2267_p8 = scmp.ne.s32.totalorder %s1308_s30, %s2266_s6  ;;  %p2274_p12 = scmp.lt.s32.totalorder %s2266_s6, %s2266_s6 }
 0x267   : > { %p2268_p9 = pnand %p2267_p8, %p2060_p7  ;;  %p2275_p13 = por %p2274_p12, %p2273_p11 }
 0x269   : > { %p2269_p10 = pneg %p2268_p9 }
 0x26b   : > { %p2276_p0 = pnand %p2275_p13, %p2269_p10 }
 0x26d   : > { %2279 = shalt.err (!%p2276_p0)
}
 0x26e   : > { %s2280_s9 = scalar_lea.hbm %s2646_s5, 32 }
 0x26f   : > { %p2281_p1 = scmp.ne.s32.totalorder %s2646_s5, %s2280_s9  ;;  %p2286_p4 = scmp.lt.u32.totalorder %s2280_s9, %s2646_s5 }
 0x271   : > { %p2282_p2 = pnand %p2281_p1, %p2060_p7 }
 0x273   : > { %p2283_p3 = pneg %p2282_p2 }
 0x275   : > { %p2288_p5 = pnand %p2286_p4, %p2283_p3 }
 0x277   : > { %2291 = shalt.err (!%p2288_p5)
}
 0x278   : > { %2057 = dma.vmem_to_hbm [thread:$0]  (%p2060_p7), %s1308_s30, 32, %s2646_s5, [#allocation4]  }
 0x279   : > { %2297 = dma.done.wait (%p2060_p7), [#allocation4], 32  }
 0x27a   : > { %2299 = vsyncadd (%p2060_p7), [#allocation4], 4294967264 }
 0x27b PF: > { %s16_s18 = sadd.s32 1, %s2302_s18  }
 0x27c   : > { %p13_p6 = scmp.ge.s32.totalorder %s16_s18, 10  }
 0x27e   :  { %15 = sbr.rel (!%p13_p6) target bundleno = 1 (0x1), region = 78 }
 0x285   :  { %1320 = vsyncpa [#allocation4], 1 }
 0x286   :  { %1322 = vsyncpa [#allocation4 + $0x1], 1 }

</bundles_post_ra>
